<compile_context>
chip_gen: v7x
topology: tpu7x:2x2x1
jax: 0.10.0
libtpu: 0.0.40
codegen_flags: <defaults>
</compile_context>

<pallas_src>
import functools

import jax
import jax.numpy as jnp
import numpy as np
from jax import lax
from jax.experimental import pallas as pl
from jax.experimental.pallas import tpu as pltpu

_LANES = 128          # channel padding inside the kernel (one lane tile)
_LEFT = 8             # sublane-aligned column offset of the conv interior


# ----------------------------- kernel --------------------------------------


def _conv3x3_relu(a3d, w_ref, b_ref, pad_ref, *, H, W):
    """(H, W, cin) activation -> 3x3 SAME conv -> +bias -> ReLU -> (H*W, cout)."""
    cin = a3d.shape[-1]
    # Zero-filled halo scratch; channels are zero-padded up to _LANES lanes so
    # every im2col tap is a full 128-lane tile (aligned concat, deep MXU K).
    pad_ref[...] = jnp.zeros_like(pad_ref)
    pad_ref[1:H + 1, _LEFT:_LEFT + W, :cin] = a3d
    xp = pad_ref[...]                                        # (H+2, WPAD, 128)
    cols = jnp.concatenate(
        [xp[dy:dy + H, _LEFT - 1 + dx:_LEFT - 1 + dx + W, :].reshape(H * W, _LANES)
         for dy in range(3) for dx in range(3)],
        axis=1)                                              # (H*W, 9*128)
    y = jnp.dot(cols, w_ref[...], preferred_element_type=jnp.float32)
    return jnp.maximum(y + b_ref[...], 0.0)                  # (H*W, cout)


def _segmenter_kernel(x_ref, io9_ref, io7_ref, io5_ref, io3_ref, io1_ref,
                      w1_ref, b1_ref, w2_ref, b2_ref, w3_ref, b3_ref,
                      w4_ref, b4_ref, w5_ref, b5_ref,
                      out_ref, pad_ref, *, H, W):
    hw = H * W
    a = x_ref[0] + io9_ref[0]                                       # (H,W,16)
    a = _conv3x3_relu(a, w1_ref, b1_ref, pad_ref, H=H, W=W)         # (HW,32)
    a = (a + io7_ref[0].reshape(hw, -1)).reshape(H, W, -1)
    a = _conv3x3_relu(a, w2_ref, b2_ref, pad_ref, H=H, W=W)         # (HW,64)
    a = (a + io5_ref[0].reshape(hw, -1)).reshape(H, W, -1)
    a = _conv3x3_relu(a, w3_ref, b3_ref, pad_ref, H=H, W=W)         # (HW,128)
    a = (a + io3_ref[0].reshape(hw, -1)).reshape(H, W, -1)
    a = _conv3x3_relu(a, w4_ref, b4_ref, pad_ref, H=H, W=W)         # (HW,256)
    a = a + io1_ref[0].reshape(hw, -1)                              # (HW,256)
    # conv5 (1x1, 256 -> 1) + sigmoid, computed transposed so the single
    # output channel is written as one lane-dense (1, H*W) row.
    y = jnp.dot(w5_ref[...], a.T, preferred_element_type=jnp.float32)  # (1,HW)
    out_ref[0] = jax.nn.sigmoid(y + b5_ref[...])


# ----------------------------- wrapper --------------------------------------


def _pack_w3x3(w):
    """(3,3,cin,cout) HWIO weights -> (9*_LANES, cout), channel rows zero-padded."""
    _, _, cin, cout = w.shape
    wp = jnp.zeros((9, _LANES, cout), w.dtype)
    wp = wp.at[:, :cin, :].set(w.reshape(9, cin, cout))
    return wp.reshape(9 * _LANES, cout)


def segmenter_forward(params, x, intermediate_outputs):
    """x: (N,H,W,16) f32. intermediate_outputs: {9,7,5,3,1} -> (N,H,W,C) f32."""
    N, H, W, _ = x.shape
    io = intermediate_outputs
    w1, b1 = params["conv1"]
    w2, b2 = params["conv2"]
    w3, b3 = params["conv3"]
    w4, b4 = params["conv4"]
    w5, b5 = params["conv5"]
    w1p, w2p, w3p, w4p = (_pack_w3x3(w) for w in (w1, w2, w3, w4))
    w5p = w5.reshape(1, w5.shape[2])                              # (1, 256)
    b1r, b2r, b3r, b4r, b5r = (b.reshape(1, -1) for b in (b1, b2, b3, b4, b5))

    def io_spec(c):
        return pl.BlockSpec((1, H, W, c), lambda n: (n, 0, 0, 0))

    def full_spec(a):
        return pl.BlockSpec(a.shape, lambda n: (0,) * a.ndim)

    kernel = functools.partial(_segmenter_kernel, H=H, W=W)
    out = pl.pallas_call(
        kernel,
        out_shape=jax.ShapeDtypeStruct((N, 1, H * W), jnp.float32),
        grid=(N,),
        in_specs=[
            io_spec(x.shape[-1]),
            io_spec(io[9].shape[-1]), io_spec(io[7].shape[-1]),
            io_spec(io[5].shape[-1]), io_spec(io[3].shape[-1]),
            io_spec(io[1].shape[-1]),
            full_spec(w1p), full_spec(b1r), full_spec(w2p), full_spec(b2r),
            full_spec(w3p), full_spec(b3r), full_spec(w4p), full_spec(b4r),
            full_spec(w5p), full_spec(b5r),
        ],
        out_specs=pl.BlockSpec((1, 1, H * W), lambda n: (n, 0, 0)),
        scratch_shapes=[
            pltpu.VMEM((H + 2, _LEFT + W + 8, _LANES), jnp.float32)],
        compiler_params=pltpu.CompilerParams(
            dimension_semantics=("parallel",)),
    )(x, io[9], io[7], io[5], io[3], io[1],
      w1p, b1r, w2p, b2r, w3p, b3r, w4p, b4r, w5p, b5r)
    return out.reshape(N, H, W, 1)


# ----------------------------- params / reference ---------------------------


def init_params(key):
    """Conv2d-style init (uniform +/- 1/sqrt(fan_in)); weights stored HWIO."""
    specs = [("conv1", 3, 16, 32), ("conv2", 3, 32, 64),
             ("conv3", 3, 64, 128), ("conv4", 3, 128, 256),
             ("conv5", 1, 256, 1)]
    params = {}
    for name, k, cin, cout in specs:
        key, kw, kb = jax.random.split(key, 3)
        bound = 1.0 / np.sqrt(cin * k * k)
        w = jax.random.uniform(kw, (k, k, cin, cout), jnp.float32, -bound, bound)
        b = jax.random.uniform(kb, (cout,), jnp.float32, -bound, bound)
        params[name] = (w, b)
    return params


def _ref_conv(x, w, b):
    y = lax.conv_general_dilated(
        x, w, (1, 1), "SAME",
        dimension_numbers=("NHWC", "HWIO", "NHWC"),
        precision=lax.Precision.HIGHEST)
    return y + b


def segmenter_reference(params, x, io):
    x = jnp.maximum(_ref_conv(x + io[9], *params["conv1"]), 0.0)
    x = jnp.maximum(_ref_conv(x + io[7], *params["conv2"]), 0.0)
    x = jnp.maximum(_ref_conv(x + io[5], *params["conv3"]), 0.0)
    x = jnp.maximum(_ref_conv(x + io[3], *params["conv4"]), 0.0)
    x = jax.nn.sigmoid(_ref_conv(x + io[1], *params["conv5"]))
    return x


# ----------------------------- main ------------------------------------------


if __name__ == "__main__":
    N, H, W = 2, 16, 16
    key = jax.random.PRNGKey(0)
    key, kp, kx, k9, k7, k5, k3, k1 = jax.random.split(key, 8)

    params = init_params(kp)
    x = jax.random.normal(kx, (N, H, W, 16), jnp.float32)
    intermediate_outputs = {
        9: jax.random.normal(k9, (N, H, W, 16), jnp.float32),
        7: jax.random.normal(k7, (N, H, W, 32), jnp.float32),
        5: jax.random.normal(k5, (N, H, W, 64), jnp.float32),
        3: jax.random.normal(k3, (N, H, W, 128), jnp.float32),
        1: jax.random.normal(k1, (N, H, W, 256), jnp.float32),
    }

    fwd = jax.jit(segmenter_forward)
    out = jax.block_until_ready(fwd(params, x, intermediate_outputs))

    ref = jax.block_until_ready(
        segmenter_reference(params, x, intermediate_outputs))
    np.testing.assert_allclose(np.asarray(out), np.asarray(ref),
                               rtol=1e-3, atol=1e-3)
    assert out.shape == (N, H, W, 1)
    print("KERNEL_OK")
</pallas_src>

<mosaic_0001>
module attributes {stable_mosaic.version = 11 : i64} {
  func.func @_segmenter_kernel(%arg0: i32, %arg1: memref<1x16x16x16xf32, #tpu.memory_space<vmem>>, %arg2: memref<1x16x16x16xf32, #tpu.memory_space<vmem>>, %arg3: memref<1x16x16x32xf32, #tpu.memory_space<vmem>>, %arg4: memref<1x16x16x64xf32, #tpu.memory_space<vmem>>, %arg5: memref<1x16x16x128xf32, #tpu.memory_space<vmem>>, %arg6: memref<1x16x16x256xf32, #tpu.memory_space<vmem>>, %arg7: memref<1152x32xf32, #tpu.memory_space<vmem>>, %arg8: memref<1x32xf32, #tpu.memory_space<vmem>>, %arg9: memref<1152x64xf32, #tpu.memory_space<vmem>>, %arg10: memref<1x64xf32, #tpu.memory_space<vmem>>, %arg11: memref<1152x128xf32, #tpu.memory_space<vmem>>, %arg12: memref<1x128xf32, #tpu.memory_space<vmem>>, %arg13: memref<1152x256xf32, #tpu.memory_space<vmem>>, %arg14: memref<1x256xf32, #tpu.memory_space<vmem>>, %arg15: memref<1x256xf32, #tpu.memory_space<vmem>>, %arg16: memref<1x1xf32, #tpu.memory_space<vmem>>, %arg17: memref<1x1x256xf32, #tpu.memory_space<vmem>>, %arg18: memref<18x32x128xf32, #tpu.memory_space<vmem>>) attributes {dimension_semantics = [#tpu.dimension_semantics<parallel>], iteration_bounds = array<i64: 2>, scalar_prefetch = 0 : i64, scratch_operands = 1 : i64, tpu.core_type = #tpu.core_type<tc>, window_params = [{transform_indices = @transform_0, window_bounds = array<i64: 1, 16, 16, 16>}, {transform_indices = @transform_1, window_bounds = array<i64: 1, 16, 16, 16>}, {transform_indices = @transform_2, window_bounds = array<i64: 1, 16, 16, 32>}, {transform_indices = @transform_3, window_bounds = array<i64: 1, 16, 16, 64>}, {transform_indices = @transform_4, window_bounds = array<i64: 1, 16, 16, 128>}, {transform_indices = @transform_5, window_bounds = array<i64: 1, 16, 16, 256>}, {pipeline_mode = #tpu.pipeline_mode<synchronous>, transform_indices = @transform_6, window_bounds = array<i64: 1152, 32>}, {pipeline_mode = #tpu.pipeline_mode<synchronous>, transform_indices = @transform_7, window_bounds = array<i64: 1, 32>}, {pipeline_mode = #tpu.pipeline_mode<synchronous>, transform_indices = @transform_8, window_bounds = array<i64: 1152, 64>}, {pipeline_mode = #tpu.pipeline_mode<synchronous>, transform_indices = @transform_9, window_bounds = array<i64: 1, 64>}, {pipeline_mode = #tpu.pipeline_mode<synchronous>, transform_indices = @transform_10, window_bounds = array<i64: 1152, 128>}, {pipeline_mode = #tpu.pipeline_mode<synchronous>, transform_indices = @transform_11, window_bounds = array<i64: 1, 128>}, {pipeline_mode = #tpu.pipeline_mode<synchronous>, transform_indices = @transform_12, window_bounds = array<i64: 1152, 256>}, {pipeline_mode = #tpu.pipeline_mode<synchronous>, transform_indices = @transform_13, window_bounds = array<i64: 1, 256>}, {pipeline_mode = #tpu.pipeline_mode<synchronous>, transform_indices = @transform_14, window_bounds = array<i64: 1, 256>}, {pipeline_mode = #tpu.pipeline_mode<synchronous>, transform_indices = @transform_15, window_bounds = array<i64: 1, 1>}, {transform_indices = @transform_16, window_bounds = array<i64: 1, 1, 256>}]} {
    %c0 = arith.constant 0 : index
    %c0_0 = arith.constant 0 : index
    %c0_1 = arith.constant 0 : index
    %c0_2 = arith.constant 0 : index
    %0 = vector.load %arg1[%c0, %c0_0, %c0_1, %c0_2] : memref<1x16x16x16xf32, #tpu.memory_space<vmem>>, vector<1x16x16x16xf32>
    %1 = vector.shape_cast %0 : vector<1x16x16x16xf32> to vector<16x16x16xf32>
    %c0_3 = arith.constant 0 : index
    %c0_4 = arith.constant 0 : index
    %c0_5 = arith.constant 0 : index
    %c0_6 = arith.constant 0 : index
    %2 = vector.load %arg2[%c0_3, %c0_4, %c0_5, %c0_6] : memref<1x16x16x16xf32, #tpu.memory_space<vmem>>, vector<1x16x16x16xf32>
    %3 = vector.shape_cast %2 : vector<1x16x16x16xf32> to vector<16x16x16xf32>
    %4 = arith.addf %1, %3 : vector<16x16x16xf32>
    %cst = arith.constant 0.000000e+00 : f32
    %5 = vector.broadcast %cst : f32 to vector<18x32x128xf32>
    %c0_7 = arith.constant 0 : index
    %c0_8 = arith.constant 0 : index
    %c0_9 = arith.constant 0 : index
    %6 = vector.load %arg18[%c0_7, %c0_8, %c0_9] : memref<18x32x128xf32, #tpu.memory_space<vmem>>, vector<18x32x128xf32>
    tpu.vector_store %arg18[%c0_7, %c0_8, %c0_9], %5 {strides = array<i32>} : memref<18x32x128xf32, #tpu.memory_space<vmem>>, vector<18x32x128xf32>,
    %c1 = arith.constant 1 : index
    %c8 = arith.constant 8 : index
    %c0_10 = arith.constant 0 : index
    %7 = vector.load %arg18[%c1, %c8, %c0_10] : memref<18x32x128xf32, #tpu.memory_space<vmem>>, vector<16x16x16xf32>
    tpu.vector_store %arg18[%c1, %c8, %c0_10], %4 {strides = array<i32>} : memref<18x32x128xf32, #tpu.memory_space<vmem>>, vector<16x16x16xf32>,
    %c0_11 = arith.constant 0 : index
    %c0_12 = arith.constant 0 : index
    %c0_13 = arith.constant 0 : index
    %8 = vector.load %arg18[%c0_11, %c0_12, %c0_13] : memref<18x32x128xf32, #tpu.memory_space<vmem>>, vector<18x32x128xf32>
    %9 = vector.extract_strided_slice %8 {offsets = [0, 7, 0], sizes = [16, 16, 128], strides = [1, 1, 1]} : vector<18x32x128xf32> to vector<16x16x128xf32>
    %10 = vector.shape_cast %9 : vector<16x16x128xf32> to vector<256x128xf32>
    %11 = vector.extract_strided_slice %8 {offsets = [0, 8, 0], sizes = [16, 16, 128], strides = [1, 1, 1]} : vector<18x32x128xf32> to vector<16x16x128xf32>
    %12 = vector.shape_cast %11 : vector<16x16x128xf32> to vector<256x128xf32>
    %13 = vector.extract_strided_slice %8 {offsets = [0, 9, 0], sizes = [16, 16, 128], strides = [1, 1, 1]} : vector<18x32x128xf32> to vector<16x16x128xf32>
    %14 = vector.shape_cast %13 : vector<16x16x128xf32> to vector<256x128xf32>
    %15 = vector.extract_strided_slice %8 {offsets = [1, 7, 0], sizes = [16, 16, 128], strides = [1, 1, 1]} : vector<18x32x128xf32> to vector<16x16x128xf32>
    %16 = vector.shape_cast %15 : vector<16x16x128xf32> to vector<256x128xf32>
    %17 = vector.extract_strided_slice %8 {offsets = [1, 8, 0], sizes = [16, 16, 128], strides = [1, 1, 1]} : vector<18x32x128xf32> to vector<16x16x128xf32>
    %18 = vector.shape_cast %17 : vector<16x16x128xf32> to vector<256x128xf32>
    %19 = vector.extract_strided_slice %8 {offsets = [1, 9, 0], sizes = [16, 16, 128], strides = [1, 1, 1]} : vector<18x32x128xf32> to vector<16x16x128xf32>
    %20 = vector.shape_cast %19 : vector<16x16x128xf32> to vector<256x128xf32>
    %21 = vector.extract_strided_slice %8 {offsets = [2, 7, 0], sizes = [16, 16, 128], strides = [1, 1, 1]} : vector<18x32x128xf32> to vector<16x16x128xf32>
    %22 = vector.shape_cast %21 : vector<16x16x128xf32> to vector<256x128xf32>
    %23 = vector.extract_strided_slice %8 {offsets = [2, 8, 0], sizes = [16, 16, 128], strides = [1, 1, 1]} : vector<18x32x128xf32> to vector<16x16x128xf32>
    %24 = vector.shape_cast %23 : vector<16x16x128xf32> to vector<256x128xf32>
    %25 = vector.extract_strided_slice %8 {offsets = [2, 9, 0], sizes = [16, 16, 128], strides = [1, 1, 1]} : vector<18x32x128xf32> to vector<16x16x128xf32>
    %26 = vector.shape_cast %25 : vector<16x16x128xf32> to vector<256x128xf32>
    %27 = tpu.concatenate %10, %12, %14, %16, %18, %20, %22, %24, %26 in 1 : vector<256x128xf32>, vector<256x128xf32>, vector<256x128xf32>, vector<256x128xf32>, vector<256x128xf32>, vector<256x128xf32>, vector<256x128xf32>, vector<256x128xf32>, vector<256x128xf32> -> vector<256x1152xf32>
    %c0_14 = arith.constant 0 : index
    %c0_15 = arith.constant 0 : index
    %28 = vector.load %arg7[%c0_14, %c0_15] : memref<1152x32xf32, #tpu.memory_space<vmem>>, vector<1152x32xf32>
    %cst_16 = arith.constant dense<0.000000e+00> : vector<256x32xf32>
    %29 = tpu.matmul %27, %28, %cst_16 {dimension_numbers = #tpu.dot_dimension_numbers<[1], [0], [0], [1], [0, 0, 1, 1], [], []>} : vector<256x1152xf32>, vector<1152x32xf32>, vector<256x32xf32> -> vector<256x32xf32>
    %c0_17 = arith.constant 0 : index
    %c0_18 = arith.constant 0 : index
    %30 = vector.load %arg8[%c0_17, %c0_18] : memref<1x32xf32, #tpu.memory_space<vmem>>, vector<1x32xf32>
    %31 = vector.broadcast %30 : vector<1x32xf32> to vector<256x32xf32>
    %32 = arith.addf %29, %31 : vector<256x32xf32>
    %cst_19 = arith.constant 0.000000e+00 : f32
    %33 = vector.broadcast %cst_19 : f32 to vector<256x32xf32>
    %34 = arith.maximumf %32, %33 : vector<256x32xf32>
    %c0_20 = arith.constant 0 : index
    %c0_21 = arith.constant 0 : index
    %c0_22 = arith.constant 0 : index
    %c0_23 = arith.constant 0 : index
    %35 = vector.load %arg3[%c0_20, %c0_21, %c0_22, %c0_23] : memref<1x16x16x32xf32, #tpu.memory_space<vmem>>, vector<1x16x16x32xf32>
    %36 = vector.shape_cast %35 : vector<1x16x16x32xf32> to vector<16x16x32xf32>
    %37 = vector.shape_cast %36 : vector<16x16x32xf32> to vector<256x32xf32>
    %38 = arith.addf %34, %37 : vector<256x32xf32>
    %39 = vector.shape_cast %38 : vector<256x32xf32> to vector<16x16x32xf32>
    %cst_24 = arith.constant 0.000000e+00 : f32
    %40 = vector.broadcast %cst_24 : f32 to vector<18x32x128xf32>
    %c0_25 = arith.constant 0 : index
    %c0_26 = arith.constant 0 : index
    %c0_27 = arith.constant 0 : index
    %41 = vector.load %arg18[%c0_25, %c0_26, %c0_27] : memref<18x32x128xf32, #tpu.memory_space<vmem>>, vector<18x32x128xf32>
    tpu.vector_store %arg18[%c0_25, %c0_26, %c0_27], %40 {strides = array<i32>} : memref<18x32x128xf32, #tpu.memory_space<vmem>>, vector<18x32x128xf32>,
    %c1_28 = arith.constant 1 : index
    %c8_29 = arith.constant 8 : index
    %c0_30 = arith.constant 0 : index
    %42 = vector.load %arg18[%c1_28, %c8_29, %c0_30] : memref<18x32x128xf32, #tpu.memory_space<vmem>>, vector<16x16x32xf32>
    tpu.vector_store %arg18[%c1_28, %c8_29, %c0_30], %39 {strides = array<i32>} : memref<18x32x128xf32, #tpu.memory_space<vmem>>, vector<16x16x32xf32>,
    %c0_31 = arith.constant 0 : index
    %c0_32 = arith.constant 0 : index
    %c0_33 = arith.constant 0 : index
    %43 = vector.load %arg18[%c0_31, %c0_32, %c0_33] : memref<18x32x128xf32, #tpu.memory_space<vmem>>, vector<18x32x128xf32>
    %44 = vector.extract_strided_slice %43 {offsets = [0, 7, 0], sizes = [16, 16, 128], strides = [1, 1, 1]} : vector<18x32x128xf32> to vector<16x16x128xf32>
    %45 = vector.shape_cast %44 : vector<16x16x128xf32> to vector<256x128xf32>
    %46 = vector.extract_strided_slice %43 {offsets = [0, 8, 0], sizes = [16, 16, 128], strides = [1, 1, 1]} : vector<18x32x128xf32> to vector<16x16x128xf32>
    %47 = vector.shape_cast %46 : vector<16x16x128xf32> to vector<256x128xf32>
    %48 = vector.extract_strided_slice %43 {offsets = [0, 9, 0], sizes = [16, 16, 128], strides = [1, 1, 1]} : vector<18x32x128xf32> to vector<16x16x128xf32>
    %49 = vector.shape_cast %48 : vector<16x16x128xf32> to vector<256x128xf32>
    %50 = vector.extract_strided_slice %43 {offsets = [1, 7, 0], sizes = [16, 16, 128], strides = [1, 1, 1]} : vector<18x32x128xf32> to vector<16x16x128xf32>
    %51 = vector.shape_cast %50 : vector<16x16x128xf32> to vector<256x128xf32>
    %52 = vector.extract_strided_slice %43 {offsets = [1, 8, 0], sizes = [16, 16, 128], strides = [1, 1, 1]} : vector<18x32x128xf32> to vector<16x16x128xf32>
    %53 = vector.shape_cast %52 : vector<16x16x128xf32> to vector<256x128xf32>
    %54 = vector.extract_strided_slice %43 {offsets = [1, 9, 0], sizes = [16, 16, 128], strides = [1, 1, 1]} : vector<18x32x128xf32> to vector<16x16x128xf32>
    %55 = vector.shape_cast %54 : vector<16x16x128xf32> to vector<256x128xf32>
    %56 = vector.extract_strided_slice %43 {offsets = [2, 7, 0], sizes = [16, 16, 128], strides = [1, 1, 1]} : vector<18x32x128xf32> to vector<16x16x128xf32>
    %57 = vector.shape_cast %56 : vector<16x16x128xf32> to vector<256x128xf32>
    %58 = vector.extract_strided_slice %43 {offsets = [2, 8, 0], sizes = [16, 16, 128], strides = [1, 1, 1]} : vector<18x32x128xf32> to vector<16x16x128xf32>
    %59 = vector.shape_cast %58 : vector<16x16x128xf32> to vector<256x128xf32>
    %60 = vector.extract_strided_slice %43 {offsets = [2, 9, 0], sizes = [16, 16, 128], strides = [1, 1, 1]} : vector<18x32x128xf32> to vector<16x16x128xf32>
    %61 = vector.shape_cast %60 : vector<16x16x128xf32> to vector<256x128xf32>
    %62 = tpu.concatenate %45, %47, %49, %51, %53, %55, %57, %59, %61 in 1 : vector<256x128xf32>, vector<256x128xf32>, vector<256x128xf32>, vector<256x128xf32>, vector<256x128xf32>, vector<256x128xf32>, vector<256x128xf32>, vector<256x128xf32>, vector<256x128xf32> -> vector<256x1152xf32>
    %c0_34 = arith.constant 0 : index
    %c0_35 = arith.constant 0 : index
    %63 = vector.load %arg9[%c0_34, %c0_35] : memref<1152x64xf32, #tpu.memory_space<vmem>>, vector<1152x64xf32>
    %cst_36 = arith.constant dense<0.000000e+00> : vector<256x64xf32>
    %64 = tpu.matmul %62, %63, %cst_36 {dimension_numbers = #tpu.dot_dimension_numbers<[1], [0], [0], [1], [0, 0, 1, 1], [], []>} : vector<256x1152xf32>, vector<1152x64xf32>, vector<256x64xf32> -> vector<256x64xf32>
    %c0_37 = arith.constant 0 : index
    %c0_38 = arith.constant 0 : index
    %65 = vector.load %arg10[%c0_37, %c0_38] : memref<1x64xf32, #tpu.memory_space<vmem>>, vector<1x64xf32>
    %66 = vector.broadcast %65 : vector<1x64xf32> to vector<256x64xf32>
    %67 = arith.addf %64, %66 : vector<256x64xf32>
    %cst_39 = arith.constant 0.000000e+00 : f32
    %68 = vector.broadcast %cst_39 : f32 to vector<256x64xf32>
    %69 = arith.maximumf %67, %68 : vector<256x64xf32>
    %c0_40 = arith.constant 0 : index
    %c0_41 = arith.constant 0 : index
    %c0_42 = arith.constant 0 : index
    %c0_43 = arith.constant 0 : index
    %70 = vector.load %arg4[%c0_40, %c0_41, %c0_42, %c0_43] : memref<1x16x16x64xf32, #tpu.memory_space<vmem>>, vector<1x16x16x64xf32>
    %71 = vector.shape_cast %70 : vector<1x16x16x64xf32> to vector<16x16x64xf32>
    %72 = vector.shape_cast %71 : vector<16x16x64xf32> to vector<256x64xf32>
    %73 = arith.addf %69, %72 : vector<256x64xf32>
    %74 = vector.shape_cast %73 : vector<256x64xf32> to vector<16x16x64xf32>
    %cst_44 = arith.constant 0.000000e+00 : f32
    %75 = vector.broadcast %cst_44 : f32 to vector<18x32x128xf32>
    %c0_45 = arith.constant 0 : index
    %c0_46 = arith.constant 0 : index
    %c0_47 = arith.constant 0 : index
    %76 = vector.load %arg18[%c0_45, %c0_46, %c0_47] : memref<18x32x128xf32, #tpu.memory_space<vmem>>, vector<18x32x128xf32>
    tpu.vector_store %arg18[%c0_45, %c0_46, %c0_47], %75 {strides = array<i32>} : memref<18x32x128xf32, #tpu.memory_space<vmem>>, vector<18x32x128xf32>,
    %c1_48 = arith.constant 1 : index
    %c8_49 = arith.constant 8 : index
    %c0_50 = arith.constant 0 : index
    %77 = vector.load %arg18[%c1_48, %c8_49, %c0_50] : memref<18x32x128xf32, #tpu.memory_space<vmem>>, vector<16x16x64xf32>
    tpu.vector_store %arg18[%c1_48, %c8_49, %c0_50], %74 {strides = array<i32>} : memref<18x32x128xf32, #tpu.memory_space<vmem>>, vector<16x16x64xf32>,
    %c0_51 = arith.constant 0 : index
    %c0_52 = arith.constant 0 : index
    %c0_53 = arith.constant 0 : index
    %78 = vector.load %arg18[%c0_51, %c0_52, %c0_53] : memref<18x32x128xf32, #tpu.memory_space<vmem>>, vector<18x32x128xf32>
    %79 = vector.extract_strided_slice %78 {offsets = [0, 7, 0], sizes = [16, 16, 128], strides = [1, 1, 1]} : vector<18x32x128xf32> to vector<16x16x128xf32>
    %80 = vector.shape_cast %79 : vector<16x16x128xf32> to vector<256x128xf32>
    %81 = vector.extract_strided_slice %78 {offsets = [0, 8, 0], sizes = [16, 16, 128], strides = [1, 1, 1]} : vector<18x32x128xf32> to vector<16x16x128xf32>
    %82 = vector.shape_cast %81 : vector<16x16x128xf32> to vector<256x128xf32>
    %83 = vector.extract_strided_slice %78 {offsets = [0, 9, 0], sizes = [16, 16, 128], strides = [1, 1, 1]} : vector<18x32x128xf32> to vector<16x16x128xf32>
    %84 = vector.shape_cast %83 : vector<16x16x128xf32> to vector<256x128xf32>
    %85 = vector.extract_strided_slice %78 {offsets = [1, 7, 0], sizes = [16, 16, 128], strides = [1, 1, 1]} : vector<18x32x128xf32> to vector<16x16x128xf32>
    %86 = vector.shape_cast %85 : vector<16x16x128xf32> to vector<256x128xf32>
    %87 = vector.extract_strided_slice %78 {offsets = [1, 8, 0], sizes = [16, 16, 128], strides = [1, 1, 1]} : vector<18x32x128xf32> to vector<16x16x128xf32>
    %88 = vector.shape_cast %87 : vector<16x16x128xf32> to vector<256x128xf32>
    %89 = vector.extract_strided_slice %78 {offsets = [1, 9, 0], sizes = [16, 16, 128], strides = [1, 1, 1]} : vector<18x32x128xf32> to vector<16x16x128xf32>
    %90 = vector.shape_cast %89 : vector<16x16x128xf32> to vector<256x128xf32>
    %91 = vector.extract_strided_slice %78 {offsets = [2, 7, 0], sizes = [16, 16, 128], strides = [1, 1, 1]} : vector<18x32x128xf32> to vector<16x16x128xf32>
    %92 = vector.shape_cast %91 : vector<16x16x128xf32> to vector<256x128xf32>
    %93 = vector.extract_strided_slice %78 {offsets = [2, 8, 0], sizes = [16, 16, 128], strides = [1, 1, 1]} : vector<18x32x128xf32> to vector<16x16x128xf32>
    %94 = vector.shape_cast %93 : vector<16x16x128xf32> to vector<256x128xf32>
    %95 = vector.extract_strided_slice %78 {offsets = [2, 9, 0], sizes = [16, 16, 128], strides = [1, 1, 1]} : vector<18x32x128xf32> to vector<16x16x128xf32>
    %96 = vector.shape_cast %95 : vector<16x16x128xf32> to vector<256x128xf32>
    %97 = tpu.concatenate %80, %82, %84, %86, %88, %90, %92, %94, %96 in 1 : vector<256x128xf32>, vector<256x128xf32>, vector<256x128xf32>, vector<256x128xf32>, vector<256x128xf32>, vector<256x128xf32>, vector<256x128xf32>, vector<256x128xf32>, vector<256x128xf32> -> vector<256x1152xf32>
    %c0_54 = arith.constant 0 : index
    %c0_55 = arith.constant 0 : index
    %98 = vector.load %arg11[%c0_54, %c0_55] : memref<1152x128xf32, #tpu.memory_space<vmem>>, vector<1152x128xf32>
    %cst_56 = arith.constant dense<0.000000e+00> : vector<256x128xf32>
    %99 = tpu.matmul %97, %98, %cst_56 {dimension_numbers = #tpu.dot_dimension_numbers<[1], [0], [0], [1], [0, 0, 1, 1], [], []>} : vector<256x1152xf32>, vector<1152x128xf32>, vector<256x128xf32> -> vector<256x128xf32>
    %c0_57 = arith.constant 0 : index
    %c0_58 = arith.constant 0 : index
    %100 = vector.load %arg12[%c0_57, %c0_58] : memref<1x128xf32, #tpu.memory_space<vmem>>, vector<1x128xf32>
    %101 = vector.broadcast %100 : vector<1x128xf32> to vector<256x128xf32>
    %102 = arith.addf %99, %101 : vector<256x128xf32>
    %cst_59 = arith.constant 0.000000e+00 : f32
    %103 = vector.broadcast %cst_59 : f32 to vector<256x128xf32>
    %104 = arith.maximumf %102, %103 : vector<256x128xf32>
    %c0_60 = arith.constant 0 : index
    %c0_61 = arith.constant 0 : index
    %c0_62 = arith.constant 0 : index
    %c0_63 = arith.constant 0 : index
    %105 = vector.load %arg5[%c0_60, %c0_61, %c0_62, %c0_63] : memref<1x16x16x128xf32, #tpu.memory_space<vmem>>, vector<1x16x16x128xf32>
    %106 = vector.shape_cast %105 : vector<1x16x16x128xf32> to vector<16x16x128xf32>
    %107 = vector.shape_cast %106 : vector<16x16x128xf32> to vector<256x128xf32>
    %108 = arith.addf %104, %107 : vector<256x128xf32>
    %109 = vector.shape_cast %108 : vector<256x128xf32> to vector<16x16x128xf32>
    %cst_64 = arith.constant 0.000000e+00 : f32
    %110 = vector.broadcast %cst_64 : f32 to vector<18x32x128xf32>
    %c0_65 = arith.constant 0 : index
    %c0_66 = arith.constant 0 : index
    %c0_67 = arith.constant 0 : index
    %111 = vector.load %arg18[%c0_65, %c0_66, %c0_67] : memref<18x32x128xf32, #tpu.memory_space<vmem>>, vector<18x32x128xf32>
    tpu.vector_store %arg18[%c0_65, %c0_66, %c0_67], %110 {strides = array<i32>} : memref<18x32x128xf32, #tpu.memory_space<vmem>>, vector<18x32x128xf32>,
    %c1_68 = arith.constant 1 : index
    %c8_69 = arith.constant 8 : index
    %c0_70 = arith.constant 0 : index
    %112 = vector.load %arg18[%c1_68, %c8_69, %c0_70] : memref<18x32x128xf32, #tpu.memory_space<vmem>>, vector<16x16x128xf32>
    tpu.vector_store %arg18[%c1_68, %c8_69, %c0_70], %109 {strides = array<i32>} : memref<18x32x128xf32, #tpu.memory_space<vmem>>, vector<16x16x128xf32>,
    %c0_71 = arith.constant 0 : index
    %c0_72 = arith.constant 0 : index
    %c0_73 = arith.constant 0 : index
    %113 = vector.load %arg18[%c0_71, %c0_72, %c0_73] : memref<18x32x128xf32, #tpu.memory_space<vmem>>, vector<18x32x128xf32>
    %114 = vector.extract_strided_slice %113 {offsets = [0, 7, 0], sizes = [16, 16, 128], strides = [1, 1, 1]} : vector<18x32x128xf32> to vector<16x16x128xf32>
    %115 = vector.shape_cast %114 : vector<16x16x128xf32> to vector<256x128xf32>
    %116 = vector.extract_strided_slice %113 {offsets = [0, 8, 0], sizes = [16, 16, 128], strides = [1, 1, 1]} : vector<18x32x128xf32> to vector<16x16x128xf32>
    %117 = vector.shape_cast %116 : vector<16x16x128xf32> to vector<256x128xf32>
    %118 = vector.extract_strided_slice %113 {offsets = [0, 9, 0], sizes = [16, 16, 128], strides = [1, 1, 1]} : vector<18x32x128xf32> to vector<16x16x128xf32>
    %119 = vector.shape_cast %118 : vector<16x16x128xf32> to vector<256x128xf32>
    %120 = vector.extract_strided_slice %113 {offsets = [1, 7, 0], sizes = [16, 16, 128], strides = [1, 1, 1]} : vector<18x32x128xf32> to vector<16x16x128xf32>
    %121 = vector.shape_cast %120 : vector<16x16x128xf32> to vector<256x128xf32>
    %122 = vector.extract_strided_slice %113 {offsets = [1, 8, 0], sizes = [16, 16, 128], strides = [1, 1, 1]} : vector<18x32x128xf32> to vector<16x16x128xf32>
    %123 = vector.shape_cast %122 : vector<16x16x128xf32> to vector<256x128xf32>
    %124 = vector.extract_strided_slice %113 {offsets = [1, 9, 0], sizes = [16, 16, 128], strides = [1, 1, 1]} : vector<18x32x128xf32> to vector<16x16x128xf32>
    %125 = vector.shape_cast %124 : vector<16x16x128xf32> to vector<256x128xf32>
    %126 = vector.extract_strided_slice %113 {offsets = [2, 7, 0], sizes = [16, 16, 128], strides = [1, 1, 1]} : vector<18x32x128xf32> to vector<16x16x128xf32>
    %127 = vector.shape_cast %126 : vector<16x16x128xf32> to vector<256x128xf32>
    %128 = vector.extract_strided_slice %113 {offsets = [2, 8, 0], sizes = [16, 16, 128], strides = [1, 1, 1]} : vector<18x32x128xf32> to vector<16x16x128xf32>
    %129 = vector.shape_cast %128 : vector<16x16x128xf32> to vector<256x128xf32>
    %130 = vector.extract_strided_slice %113 {offsets = [2, 9, 0], sizes = [16, 16, 128], strides = [1, 1, 1]} : vector<18x32x128xf32> to vector<16x16x128xf32>
    %131 = vector.shape_cast %130 : vector<16x16x128xf32> to vector<256x128xf32>
    %132 = tpu.concatenate %115, %117, %119, %121, %123, %125, %127, %129, %131 in 1 : vector<256x128xf32>, vector<256x128xf32>, vector<256x128xf32>, vector<256x128xf32>, vector<256x128xf32>, vector<256x128xf32>, vector<256x128xf32>, vector<256x128xf32>, vector<256x128xf32> -> vector<256x1152xf32>
    %c0_74 = arith.constant 0 : index
    %c0_75 = arith.constant 0 : index
    %133 = vector.load %arg13[%c0_74, %c0_75] : memref<1152x256xf32, #tpu.memory_space<vmem>>, vector<1152x256xf32>
    %cst_76 = arith.constant dense<0.000000e+00> : vector<256x256xf32>
    %134 = tpu.matmul %132, %133, %cst_76 {dimension_numbers = #tpu.dot_dimension_numbers<[1], [0], [0], [1], [0, 0, 1, 1], [], []>} : vector<256x1152xf32>, vector<1152x256xf32>, vector<256x256xf32> -> vector<256x256xf32>
    %c0_77 = arith.constant 0 : index
    %c0_78 = arith.constant 0 : index
    %135 = vector.load %arg14[%c0_77, %c0_78] : memref<1x256xf32, #tpu.memory_space<vmem>>, vector<1x256xf32>
    %136 = vector.broadcast %135 : vector<1x256xf32> to vector<256x256xf32>
    %137 = arith.addf %134, %136 : vector<256x256xf32>
    %cst_79 = arith.constant 0.000000e+00 : f32
    %138 = vector.broadcast %cst_79 : f32 to vector<256x256xf32>
    %139 = arith.maximumf %137, %138 : vector<256x256xf32>
    %c0_80 = arith.constant 0 : index
    %c0_81 = arith.constant 0 : index
    %c0_82 = arith.constant 0 : index
    %c0_83 = arith.constant 0 : index
    %140 = vector.load %arg6[%c0_80, %c0_81, %c0_82, %c0_83] : memref<1x16x16x256xf32, #tpu.memory_space<vmem>>, vector<1x16x16x256xf32>
    %141 = vector.shape_cast %140 : vector<1x16x16x256xf32> to vector<16x16x256xf32>
    %142 = vector.shape_cast %141 : vector<16x16x256xf32> to vector<256x256xf32>
    %143 = arith.addf %139, %142 : vector<256x256xf32>
    %c0_84 = arith.constant 0 : index
    %c0_85 = arith.constant 0 : index
    %144 = vector.load %arg15[%c0_84, %c0_85] : memref<1x256xf32, #tpu.memory_space<vmem>>, vector<1x256xf32>
    %145 = tpu.transpose %143, [1, 0] : vector<256x256xf32> -> vector<256x256xf32>
    %cst_86 = arith.constant dense<0.000000e+00> : vector<1x256xf32>
    %146 = tpu.matmul %144, %145, %cst_86 {dimension_numbers = #tpu.dot_dimension_numbers<[1], [0], [0], [1], [0, 0, 1, 1], [], []>} : vector<1x256xf32>, vector<256x256xf32>, vector<1x256xf32> -> vector<1x256xf32>
    %c0_87 = arith.constant 0 : index
    %c0_88 = arith.constant 0 : index
    %147 = vector.load %arg16[%c0_87, %c0_88] : memref<1x1xf32, #tpu.memory_space<vmem>>, vector<1x1xf32>
    %148 = vector.broadcast %147 : vector<1x1xf32> to vector<1x256xf32>
    %149 = arith.addf %146, %148 : vector<1x256xf32>
    %150 = arith.negf %149 : vector<1x256xf32>
    %151 = math.exp %150 : vector<1x256xf32>
    %cst_89 = arith.constant 1.000000e+00 : f32
    %152 = vector.broadcast %cst_89 : f32 to vector<1x256xf32>
    %153 = arith.addf %152, %151 : vector<1x256xf32>
    %154 = arith.divf %152, %153 : vector<1x256xf32>
    %c0_90 = arith.constant 0 : index
    %c0_91 = arith.constant 0 : index
    %c0_92 = arith.constant 0 : index
    %155 = vector.load %arg17[%c0_90, %c0_91, %c0_92] : memref<1x1x256xf32, #tpu.memory_space<vmem>>, vector<1x1x256xf32>
    %156 = vector.shape_cast %155 : vector<1x1x256xf32> to vector<1x256xf32>
    %157 = vector.shape_cast %154 : vector<1x256xf32> to vector<1x1x256xf32>
    tpu.vector_store %arg17[%c0_90, %c0_91, %c0_92], %157 {strides = array<i32>} : memref<1x1x256xf32, #tpu.memory_space<vmem>>, vector<1x1x256xf32>,
    return
  }
  func.func @transform_0(%arg0: i32) -> (i32, i32, i32, i32) {
    %c0_i32 = arith.constant 0 : i32
    %c0_i32_0 = arith.constant 0 : i32
    %c0_i32_1 = arith.constant 0 : i32
    %c0_i32_2 = arith.constant 0 : i32
    return %arg0, %c0_i32, %c0_i32_0, %c0_i32_1 : i32, i32, i32, i32
  }
  func.func @transform_1(%arg0: i32) -> (i32, i32, i32, i32) {
    %c0_i32 = arith.constant 0 : i32
    %c0_i32_0 = arith.constant 0 : i32
    %c0_i32_1 = arith.constant 0 : i32
    %c0_i32_2 = arith.constant 0 : i32
    return %arg0, %c0_i32, %c0_i32_0, %c0_i32_1 : i32, i32, i32, i32
  }
  func.func @transform_2(%arg0: i32) -> (i32, i32, i32, i32) {
    %c0_i32 = arith.constant 0 : i32
    %c0_i32_0 = arith.constant 0 : i32
    %c0_i32_1 = arith.constant 0 : i32
    %c0_i32_2 = arith.constant 0 : i32
    return %arg0, %c0_i32, %c0_i32_0, %c0_i32_1 : i32, i32, i32, i32
  }
  func.func @transform_3(%arg0: i32) -> (i32, i32, i32, i32) {
    %c0_i32 = arith.constant 0 : i32
    %c0_i32_0 = arith.constant 0 : i32
    %c0_i32_1 = arith.constant 0 : i32
    %c0_i32_2 = arith.constant 0 : i32
    return %arg0, %c0_i32, %c0_i32_0, %c0_i32_1 : i32, i32, i32, i32
  }
  func.func @transform_4(%arg0: i32) -> (i32, i32, i32, i32) {
    %c0_i32 = arith.constant 0 : i32
    %c0_i32_0 = arith.constant 0 : i32
    %c0_i32_1 = arith.constant 0 : i32
    %c0_i32_2 = arith.constant 0 : i32
    return %arg0, %c0_i32, %c0_i32_0, %c0_i32_1 : i32, i32, i32, i32
  }
  func.func @transform_5(%arg0: i32) -> (i32, i32, i32, i32) {
    %c0_i32 = arith.constant 0 : i32
    %c0_i32_0 = arith.constant 0 : i32
    %c0_i32_1 = arith.constant 0 : i32
    %c0_i32_2 = arith.constant 0 : i32
    return %arg0, %c0_i32, %c0_i32_0, %c0_i32_1 : i32, i32, i32, i32
  }
  func.func @transform_6(%arg0: i32) -> (i32, i32) {
    %c0_i32 = arith.constant 0 : i32
    %c0_i32_0 = arith.constant 0 : i32
    %c0_i32_1 = arith.constant 0 : i32
    return %c0_i32, %c0_i32_0 : i32, i32
  }
  func.func @transform_7(%arg0: i32) -> (i32, i32) {
    %c0_i32 = arith.constant 0 : i32
    %c0_i32_0 = arith.constant 0 : i32
    %c0_i32_1 = arith.constant 0 : i32
    return %c0_i32, %c0_i32_0 : i32, i32
  }
  func.func @transform_8(%arg0: i32) -> (i32, i32) {
    %c0_i32 = arith.constant 0 : i32
    %c0_i32_0 = arith.constant 0 : i32
    %c0_i32_1 = arith.constant 0 : i32
    return %c0_i32, %c0_i32_0 : i32, i32
  }
  func.func @transform_9(%arg0: i32) -> (i32, i32) {
    %c0_i32 = arith.constant 0 : i32
    %c0_i32_0 = arith.constant 0 : i32
    %c0_i32_1 = arith.constant 0 : i32
    return %c0_i32, %c0_i32_0 : i32, i32
  }
  func.func @transform_10(%arg0: i32) -> (i32, i32) {
    %c0_i32 = arith.constant 0 : i32
    %c0_i32_0 = arith.constant 0 : i32
    %c0_i32_1 = arith.constant 0 : i32
    return %c0_i32, %c0_i32_0 : i32, i32
  }
  func.func @transform_11(%arg0: i32) -> (i32, i32) {
    %c0_i32 = arith.constant 0 : i32
    %c0_i32_0 = arith.constant 0 : i32
    %c0_i32_1 = arith.constant 0 : i32
    return %c0_i32, %c0_i32_0 : i32, i32
  }
  func.func @transform_12(%arg0: i32) -> (i32, i32) {
    %c0_i32 = arith.constant 0 : i32
    %c0_i32_0 = arith.constant 0 : i32
    %c0_i32_1 = arith.constant 0 : i32
    return %c0_i32, %c0_i32_0 : i32, i32
  }
  func.func @transform_13(%arg0: i32) -> (i32, i32) {
    %c0_i32 = arith.constant 0 : i32
    %c0_i32_0 = arith.constant 0 : i32
    %c0_i32_1 = arith.constant 0 : i32
    return %c0_i32, %c0_i32_0 : i32, i32
  }
  func.func @transform_14(%arg0: i32) -> (i32, i32) {
    %c0_i32 = arith.constant 0 : i32
    %c0_i32_0 = arith.constant 0 : i32
    %c0_i32_1 = arith.constant 0 : i32
    return %c0_i32, %c0_i32_0 : i32, i32
  }
  func.func @transform_15(%arg0: i32) -> (i32, i32) {
    %c0_i32 = arith.constant 0 : i32
    %c0_i32_0 = arith.constant 0 : i32
    %c0_i32_1 = arith.constant 0 : i32
    return %c0_i32, %c0_i32_0 : i32, i32
  }
  func.func @transform_16(%arg0: i32) -> (i32, i32, i32) {
    %c0_i32 = arith.constant 0 : i32
    %c0_i32_0 = arith.constant 0 : i32
    %c0_i32_1 = arith.constant 0 : i32
    return %arg0, %c0_i32, %c0_i32_0 : i32, i32, i32
  }
}

</mosaic_0001>

<bundles_post_ra>
// kernel: segmenter_forward.1
= control target key start
LH: loop header
LB: loop body
LE: loop exit
PB: predicated region body
PF: predicated region fallthrough
CT: control target
= control target key end

     0   :  { %s18060_s0 = inlined_call_operand.vmem [shape: f32[2,16,16,16], index: 0, kind: input, shape index: {}]   ;;  %s18061_s1 = inlined_call_operand.vmem [shape: f32[2,16,16,16], index: 1, kind: input, shape index: {}]   ;;  %s18062_s2 = inlined_call_operand.hbm [shape: f32[2,16,16,32], index: 2, kind: input, shape index: {}]   ;;  %s18063_s3 = inlined_call_operand.hbm [shape: f32[2,16,16,64], index: 3, kind: input, shape index: {}]   ;;  %s18064_s4 = inlined_call_operand.hbm [shape: f32[2,16,16,128], index: 4, kind: input, shape index: {}]   ;;  %s18065_s5 = inlined_call_operand.vmem [shape: f32[2,16,16,256], index: 5, kind: input, shape index: {}]   ;;  %s18066_s6 = inlined_call_operand.vmem [shape: f32[1152,32], index: 6, kind: input, shape index: {}]   ;;  %s18067_s7 = inlined_call_operand.vmem [shape: f32[1,32], index: 7, kind: input, shape index: {}]   ;;  %s18068_s8 = inlined_call_operand.vmem [shape: f32[1152,64], index: 8, kind: input, shape index: {}]   ;;  %s18069_s9 = inlined_call_operand.vmem [shape: f32[1,64], index: 9, kind: input, shape index: {}]   ;;  %s18070_s10 = inlined_call_operand.vmem [shape: f32[1152,128], index: 10, kind: input, shape index: {}]   ;;  %s18071_s11 = inlined_call_operand.vmem [shape: f32[1,128], index: 11, kind: input, shape index: {}]   ;;  %s18072_s12 = inlined_call_operand.vmem [shape: f32[1152,256], index: 12, kind: input, shape index: {}]   ;;  %s18073_s13 = inlined_call_operand.vmem [shape: f32[1,256], index: 13, kind: input, shape index: {}]   ;;  %s18074_s14 = inlined_call_operand.vmem [shape: f32[1,256], index: 14, kind: input, shape index: {}]   ;;  %s18075_s15 = inlined_call_operand.<no memory space> [shape: f32[1,1], index: 15, kind: input, shape index: {}]   ;;  %s18076_s16 = inlined_call_operand.vmem [shape: f32[2,1,256], index: 16, kind: output, shape index: {}]  }
   0x1   :  { %18320 = sst [smem:[#allocation71_spill]] %s18060_s0  ;;  %v21_v0 = vstv %s18075_s15 }
   0x2   :  { %18321 = sst [smem:[#allocation72_spill]] %s18063_s3  ;;  %22 = vst [vmem:[#allocation3] sm:$0x1] %v21_v0 }
   0x3   :  { %18322 = sst [smem:[#allocation73_spill]] %s18065_s5 }
   0x4   :  { %18323 = sst [smem:[#allocation74_spill]] %s18071_s11 }
   0x5   :  { %18324 = sst [smem:[#allocation75_spill]] %s18072_s12 }
   0x6   :  { %18325 = sst [smem:[#allocation76_spill]] %s18073_s13 }
   0x7   :  { %18326 = sst [smem:[#allocation77_spill]] %s18074_s14 }
   0x8   :  { %18327 = sst [smem:[#allocation78_spill]] %s18076_s16 }
   0x9   :  { %23 = vsyncpa [#allocation5], 0 }
   0xa   :  { %25 = vsyncpa [#allocation5 + $0x1], 0 }
   0xb   :  { %26 = vsyncpa [#allocation7], 0 }
   0xc   :  { %28 = vsyncpa [#allocation7 + $0x1], 0  ;;  %s11752_s23 = smov 0   ;;  %s11754_s24 = smov 0  }
   0xd   :  { %s11756_s25 = smov 0   ;;  %s11758_s26 = smov 0  }
   0xe LB: > { %s11771_s15 = sadd.s32 4294967295, %s11653_s26   ;;  %s11774_s27 = sadd.s32 1, %s11653_s26   ;;  %s11653_s26 = sphi %s11758_s26, %s18808_s26   ;;  %s11649_s25 = sphi %s11756_s25, %s18812_s25   ;;  %s11645_s24 = sphi %s11754_s24, %s18811_s24   ;;  %s11641_s23 = sphi %s11752_s23, %s18810_s23  }
   0xf   : > { %18328 = sst [smem:[#allocation11_spill]] %s11774_s27  ;;  %s90_s28 = ssub.s32 %s11653_s26, %s11774_s27 }
  0x10   : > { %s93_s29 = sadd.s32 1, %s11649_s25  ;;  %p91_p0 = scmp.eq.s32.totalorder %s90_s28, 0 }
  0x11   : > { %p100_p1 = scmp.ne.s32.totalorder %s11649_s25, %s11645_s24  ;;  %p101_p2 = scmp.eq.s32.totalorder %s11653_s26, 0 }
  0x12   : > { %p106_p3 = scmp.ne.s32.totalorder %s11645_s24, %s11641_s23  ;;  %p107_p5 = scmp.eq.s32.totalorder %s11771_s15, 0 }
  0x13   : > { %s11784_s30 = scalar_select %p91_p0, %s11649_s25, %s93_s29  }
  0x14   : > { %p102_p4 = por %p101_p2, %p100_p1  ;;  %p11406_p6 = scmp.lt.s32.totalorder %s11653_s26, 2 }
  0x15   : > { %18329 = sst [smem:[#allocation12_spill]] %s11784_s30  ;;  %p11788_p7 = por %p107_p5, %p106_p3 }
  0x16   : > { %s18077_s17 = sand.u32 1, %s11649_s25   ;;  %s11798_s19 = sshll.u32 %s11653_s26, 12 }
  0x17   : > { %s18330_s0 = scalar_select %p11788_p7, 1, 0 }
  0x18   : > { %s11795_s18 = sshll.u32 %s18077_s17, 8  ;;  %p11800_p8 = pnand %p11406_p6, %p102_p4 }
  0x19   : > { %s511_s21 = sand.u32 1, %s11653_s26   ;;  %s18332_s3 = sld [smem:[#allocation72_spill]] }
  0x1a   : > { %s515_s29 = scalar_lea.vmem [#allocation6], %s11795_s18  ;;  %s11816_s30 = scalar_lea.sflag [#allocation7], %s511_s21 }
  0x1b   : > { %s522_s17 = sshll.u32 %s515_s29, 4  ;;  %p11822_p12 = pneg %p11800_p8  ;;  %s11813_s17 = int_to_ptr.vmem [resolvable:$true] %s522_s17 }
  0x1f   : > { %s11809_s28 = scalar_lea.hbm %s18332_s3, %s11798_s19  ;;  %s11530_s29 = scalar_lea.hbm %s18332_s3, 8192 }
  0x20   : > { %s11525_s27 = scalar_lea.hbm %s11809_s28, 4096  ;;  %p11531_p1 = scmp.lt.u32.totalorder %s11809_s28, %s18332_s3 }
  0x21   : > { %p11526_p11 = scmp.ne.s32.totalorder %s11809_s28, %s11525_s27  ;;  %p11532_p2 = scmp.lt.u32.totalorder %s11530_s29, %s11525_s27 }
  0x22   : > { %p11534_p4 = scmp.lt.u32.totalorder %s11525_s27, %s11809_s28 }
  0x23   : > { %p11528_p13 = pnand %p11822_p12, %p11526_p11  ;;  %p11533_p3 = por %p11532_p2, %p11531_p1 }
  0x25   : > { %p11529_p0 = pneg %p11528_p13  ;;  %p11535_p5 = por %p11534_p4, %p11533_p3 }
  0x27   : > { %p11536_p6 = pnand %p11535_p5, %p11529_p0 }
  0x29   : > { %11539 = shalt.err (!%p11536_p6)
}
  0x2a   : > { %s11540_s21 = scalar_lea.vmem %s11813_s17, 4096  ;;  %s11655_s22 = smov [#allocation6]  }
  0x2b   : > { %p11541_p11 = scmp.ne.s32.totalorder %s11813_s17, %s11540_s21  ;;  %s11545_s23 = sshll.u32 %s11655_s22, 4  ;;  %s11546_s23 = int_to_ptr.vmem [resolvable:$false] %s11545_s23 }
  0x2c   : > { %s11547_s5 = scalar_lea.vmem %s11546_s23, 8192  ;;  %p11548_p10 = scmp.lt.s32.totalorder %s11813_s17, %s11546_s23 }
  0x2d   : > { %p11543_p13 = pnand %p11541_p11, %p11822_p12  ;;  %p11549_p7 = scmp.lt.s32.totalorder %s11547_s5, %s11540_s21 }
  0x2f   : > { %p11544_p9 = pneg %p11543_p13  ;;  %p11550_p1 = por %p11549_p7, %p11548_p10 }
  0x31   : > { %p11551_p2 = pnand %p11550_p1, %p11544_p9 }
  0x33   : > { %11554 = shalt.err (!%p11551_p2)
}
  0x34   : > { %s18081_s14 = smov 128   ;;  %s18083_s27 = smov 8  }
  0x35   : > { %11402 = dma.hbm_to_vmem [thread:$0]  (!%p11800_p8), %s11809_s28, 4096, %s11813_s17, %s11816_s30, %s18081_s14, %s18081_s14, %s18083_s27  }
  0x36   : > { %p18334_p7 = scmp.lt.s32.totalorder %s11653_s26, 3  ;;  %p18335_p9 = scmp.ge.s32.totalorder %s11653_s26, 1 }
  0x37   : > { %s11861_s23 = scalar_lea.hbm %s18062_s2, %s11798_s19  ;;  %s494_s5 = scalar_lea.vmem [#allocation4], %s11795_s18 }
  0x38   : > { %p11853_p10 = pnand %p18335_p9, %p18334_p7  ;;  %s501_s3 = sshll.u32 %s494_s5, 4  ;;  %s11864_s3 = int_to_ptr.vmem [resolvable:$true] %s501_s3 }
  0x39   : > { %s11870_s26 = scalar_lea.hbm %s18064_s4, %s11798_s19  ;;  %s18337_s14 = sand.u32 1, %s11649_s25  }
  0x3a   : > { %s18336_s29 = scalar_select %p11853_p10, 1, 0 }
  0x3b   : > { %s11874_s27 = scalar_lea.sflag [#allocation5], %s18337_s14  ;;  %s11555_s13 = scalar_lea.hbm %s11861_s23, 4096 }
  0x3c   : > { %p11556_p0 = scmp.ne.s32.totalorder %s11861_s23, %s11555_s13  ;;  %s11560_s11 = scalar_lea.hbm %s18062_s2, 8192 }
  0x3d   : > { %p11561_p5 = scmp.lt.u32.totalorder %s11861_s23, %s18062_s2  ;;  %p11562_p6 = scmp.lt.u32.totalorder %s11560_s11, %s11555_s13 }
  0x3e   : > { %p11558_p3 = pnand %p11556_p0, %p11822_p12  ;;  %p11564_p13 = scmp.lt.u32.totalorder %s11555_s13, %s11861_s23 }
  0x3f   : > { %p11563_p11 = por %p11562_p6, %p11561_p5 }
  0x40   : > { %p11559_p4 = pneg %p11558_p3 }
  0x41   : > { %p11565_p1 = por %p11564_p13, %p11563_p11 }
  0x43   : > { %p11566_p2 = pnand %p11565_p1, %p11559_p4 }
  0x45   : > { %11569 = shalt.err (!%p11566_p2)
}
  0x46   : > { %s11570_s19 = scalar_lea.vmem %s11864_s3, 4096  ;;  %s11658_s14 = smov [#allocation4]  }
  0x47   : > { %p11571_p7 = scmp.ne.s32.totalorder %s11864_s3, %s11570_s19  ;;  %s11575_s17 = sshll.u32 %s11658_s14, 4  ;;  %s11576_s17 = int_to_ptr.vmem [resolvable:$false] %s11575_s17 }
  0x48   : > { %s11577_s12 = scalar_lea.vmem %s11576_s17, 8192  ;;  %p11578_p3 = scmp.lt.s32.totalorder %s11864_s3, %s11576_s17 }
  0x49   : > { %p11573_p9 = pnand %p11571_p7, %p11822_p12  ;;  %p11579_p10 = scmp.lt.s32.totalorder %s11577_s12, %s11570_s19 }
  0x4b   : > { %p11574_p0 = pneg %p11573_p9  ;;  %p11580_p5 = por %p11579_p10, %p11578_p3 }
  0x4d   : > { %p11581_p6 = pnand %p11580_p5, %p11574_p0 }
  0x4f   : > { %11584 = shalt.err (!%p11581_p6)
}
  0x50   : > { %s18338_s11 = smov 8   ;;  %s18339_s13 = smov 128  }
  0x51   : > { %11399 = dma.hbm_to_vmem [thread:$0]  (!%p11800_p8), %s11861_s23, 4096, %s11864_s3, %s11874_s27, %s18339_s13, %s18339_s13, %s18338_s11  }
  0x52   : > { %s536_s28 = scalar_lea.vmem [#allocation8], %s11795_s18  ;;  %s11585_s22 = scalar_lea.hbm %s11870_s26, 4096 }
  0x53   : > { %s543_s21 = sshll.u32 %s536_s28, 4  ;;  %p11586_p10 = scmp.ne.s32.totalorder %s11870_s26, %s11585_s22  ;;  %s11902_s21 = int_to_ptr.vmem [resolvable:$true] %s543_s21 }
  0x54   : > { %s11590_s14 = scalar_lea.hbm %s18064_s4, 8192  ;;  %p11591_p13 = scmp.lt.u32.totalorder %s11870_s26, %s18064_s4 }
  0x55   : > { %p11588_p4 = pnand %p11586_p10, %p11822_p12  ;;  %p11592_p1 = scmp.lt.u32.totalorder %s11590_s14, %s11585_s22 }
  0x56   : > { %p11594_p7 = scmp.lt.u32.totalorder %s11585_s22, %s11870_s26 }
  0x57   : > { %p11589_p11 = pneg %p11588_p4  ;;  %p11593_p2 = por %p11592_p1, %p11591_p13 }
  0x59   : > { %p11595_p9 = por %p11594_p7, %p11593_p2 }
  0x5b   : > { %p11596_p0 = pnand %p11595_p9, %p11589_p11 }
  0x5d   : > { %11599 = shalt.err (!%p11596_p0)
}
  0x5e   : > { %s11600_s3 = scalar_lea.vmem %s11902_s21, 4096  ;;  %s11659_s18 = smov [#allocation8]  }
  0x5f   : > { %p11601_p3 = scmp.ne.s32.totalorder %s11902_s21, %s11600_s3  ;;  %s11605_s27 = sshll.u32 %s11659_s18, 4  ;;  %s11606_s27 = int_to_ptr.vmem [resolvable:$false] %s11605_s27 }
  0x60   : > { %s11607_s23 = scalar_lea.vmem %s11606_s27, 8192  ;;  %p11608_p10 = scmp.lt.s32.totalorder %s11902_s21, %s11606_s27 }
  0x61   : > { %p11603_p5 = pnand %p11601_p3, %p11822_p12  ;;  %p11609_p4 = scmp.lt.s32.totalorder %s11607_s23, %s11600_s3 }
  0x63   : > { %p11604_p6 = pneg %p11603_p5  ;;  %p11610_p13 = por %p11609_p4, %p11608_p10 }
  0x65   : > { %p11611_p1 = pnand %p11610_p13, %p11604_p6 }
  0x67   : > { %11614 = shalt.err (!%p11611_p1)
}
  0x68   : > { %11405 = dma.hbm_to_vmem [thread:$0]  (!%p11800_p8), %s11870_s26, 4096, %s11902_s21, %s11816_s30, %s18339_s13, %s18339_s13, %s18338_s11  }
  0x69   : > { %p18340_p12 = scmp.ne.s32.totalorder %s18336_s29, 0 }
  0x6b   : > { %563 = sbr.rel (%p18340_p12) target bundleno = 3115 (0xc2b), region = 84 }
  0x72   : > { %s565_s16 = sand.u32 1, %s11645_s24   ;;  %p18341_p11 = scmp.ne.s32.totalorder %s18330_s0, 0 }
  0x73   : > { %s11932_s28 = sshll.u32 %s565_s16, 8  ;;  %s566_s22 = scalar_lea.sflag [#allocation5], %s565_s16 }
  0x74   : > { %s11935_s5 = scalar_lea.vmem [#allocation4], %s11932_s28 }
  0x75   : > { %11632 = dma.done.wait (%p18341_p11), %s566_s22, 4096  }
  0x76   : > { %11634 = vsyncadd (%p18341_p11), %s566_s22, 4294963200  ;;  %s574_s30 = sand.u32 1, %s11771_s15   ;;  %s11943_s29 = scalar_lea.vmem [#allocation6], %s11932_s28 }
  0x77   : > { %s575_s20 = scalar_lea.sflag [#allocation7], %s574_s30 }
  0x78   : > { %11636 = dma.done.wait (%p18341_p11), %s575_s20, 8192  }
  0x79   : > { %11638 = vsyncadd (%p18341_p11), %s575_s20, 4294959104  ;;  %v18088_v1 = vmov 0.0|0.0   ;;  %v11661_v2 = vmov 0.0   ;;  %p660_p8 = scmp.lt.s32.totalorder %s11771_s15, 1  ;;  %v1279_v3 = vld [vmem:[%s18066_s6] sm:$0xff]  ;;  %v1280_v4 = vld [vmem:[%s18066_s6 + $0x8] sm:$0xff] }
  0x7a   : > { %9366 = vmatprep.subr.bf16.mxu0 %v18088_v1  ;;  %1494 = vmatprep.mubr.f32.mxu0 %v11661_v2  ;;  %780 = vst [vmem:[#allocation2 + $0x28] sm:$0xff] %v11661_v2  ;;  %781 = vst [vmem:[#allocation2 + $0x30] sm:$0xff] %v11661_v2  ;;  %v1281_v5 = vld [vmem:[%s18066_s6 + $0x10] sm:$0xff]  ;;  %v9367_v6 = vpack.c.bf16 %v1280_v4, %v1279_v3  ;;  %v1282_v7 = vld [vmem:[%s18066_s6 + $0x18] sm:$0xff]  ;;  %s18342_s11 = sld [smem:[#allocation71_spill]]  ;;  %vm848_vm0 = vcmask 130048  }
  0x7b   : > { %784 = vst [vmem:[#allocation2 + $0x48] sm:$0xff] %v11661_v2  ;;  %785 = vst [vmem:[#allocation2 + $0x50] sm:$0xff] %v11661_v2  ;;  %10390 = vmatprep.subr.bf16.mxu1 %v18088_v1  ;;  %s18814_s15 = smov (!%p660_p8, %s11771_s15), 1  ;;  %v9370_v8 = vpack.c.bf16 %v1282_v7, %v1281_v5  ;;  %v1283_v9 = vld [vmem:[%s18066_s6 + $0x20] sm:$0xff]  ;;  %v1284_v10 = vld [vmem:[%s18066_s6 + $0x28] sm:$0xff]  ;;  %vm1001_vm1 = vcmask 1040384  }
  0x7c   : > { %788 = vst [vmem:[#allocation2 + $0x68] sm:$0xff] %v11661_v2  ;;  %789 = vst [vmem:[#allocation2 + $0x70] sm:$0xff] %v11661_v2  ;;  %9368 = vmatpush1.bf16.msra.mxu0 %v9367_v6  ;;  %s8979_s23 = sshll.u32 %s18814_s15, 8  ;;  %v9373_v11 = vpack.c.bf16 %v1284_v10, %v1283_v9  ;;  %v1285_v12 = vld [vmem:[%s18066_s6 + $0x30] sm:$0xff]  ;;  %v1286_v13 = vld [vmem:[%s18066_s6 + $0x38] sm:$0xff]  ;;  %vm1130_vm2 = vcmask 1046528  }
  0x7d   : > { %792 = vst [vmem:[#allocation2 + $0x88] sm:$0xff] %v11661_v2  ;;  %793 = vst [vmem:[#allocation2 + $0x90] sm:$0xff] %v11661_v2  ;;  %9369 = vmatprep.subr.bf16.mxu0 %v18088_v1  ;;  %s12024_s14 = scalar_lea.vmem %s18061_s1, %s8979_s23  ;;  %v9376_v14 = vpack.c.bf16 %v1286_v13, %v1285_v12  ;;  %v1287_v17 = vld [vmem:[%s18066_s6 + $0x40] sm:$0xff]  ;;  %v1288_v18 = vld [vmem:[%s18066_s6 + $0x48] sm:$0xff]  ;;  %vm2723_vm3 = vcmask 261120   ;;  %vm4596_vm4 = vcmask 523264  }
  0x7e   : > { %796 = vst [vmem:[#allocation2 + $0xa8] sm:$0xff] %v11661_v2  ;;  %797 = vst [vmem:[#allocation2 + $0xb0] sm:$0xff] %v11661_v2  ;;  %v711_v16 = vld [vmem:[%s12024_s14] sm:$0xff]  ;;  %v712_v21 = vld [vmem:[%s12024_s14 + $0x8] sm:$0xff]  ;;  %v9379_v27 = vpack.c.bf16 %v1288_v18, %v1287_v17  ;;  %s18704_s20 = sld [smem:[#allocation74_spill]]  ;;  %s16560_s17 = scalar_lea.vmem [#allocation8], %s11932_s28 }
  0x7f   : > { %800 = vst [vmem:[#allocation2 + $0xc8] sm:$0xff] %v11661_v2  ;;  %801 = vst [vmem:[#allocation2 + $0xd0] sm:$0xff] %v11661_v2  ;;  %v713_v23 = vld [vmem:[%s12024_s14 + $0x10] sm:$0xff]  ;;  %v714_v28 = vld [vmem:[%s12024_s14 + $0x18] sm:$0xff]  ;;  %s8981_s12 = sshll.u32 %s18814_s15, 9  ;;  %s18805_s27 = sld [smem:[#allocation73_spill]] }
  0x80   : > { %804 = vst [vmem:[#allocation2 + $0xe8] sm:$0xff] %v11661_v2  ;;  %805 = vst [vmem:[#allocation2 + $0xf0] sm:$0xff] %v11661_v2  ;;  %9371 = vmatpush1.bf16.msra.mxu0 %v9370_v8  ;;  %s12019_s13 = scalar_lea.vmem %s18342_s11, %s8979_s23  ;;  %v715_v30 = vld [vmem:[%s12024_s14 + $0x20] sm:$0xff]  ;;  %v1289_v31 = vld [vmem:[%s18066_s6 + $0x50] sm:$0xff]  ;;  %s18806_s22 = sld [smem:[#allocation77_spill]] }
  0x81   : > { %808 = vst [vmem:[#allocation2 + $0x108] sm:$0xff] %v11661_v2  ;;  %809 = vst [vmem:[#allocation2 + $0x110] sm:$0xff] %v11661_v2  ;;  %9372 = vmatprep.subr.bf16.mxu0 %v18088_v1  ;;  %v679_v15 = vld [vmem:[%s12019_s13] sm:$0xff]  ;;  %v680_v20 = vld [vmem:[%s12019_s13 + $0x8] sm:$0xff]  ;;  %s8968_s30 = sshll.u32 %s18814_s15, 1  ;;  %s18807_s26 = sld [smem:[#allocation78_spill]] }
  0x82   : > { %812 = vst [vmem:[#allocation2 + $0x128] sm:$0xff] %v11661_v2  ;;  %813 = vst [vmem:[#allocation2 + $0x130] sm:$0xff] %v11661_v2  ;;  %v743_v19 = vadd.f32 %v711_v16, %v679_v15  ;;  %v681_v22 = vld [vmem:[%s12019_s13 + $0x10] sm:$0xff]  ;;  %v744_v24 = vadd.f32 %v712_v21, %v680_v20  ;;  %v682_v26 = vld [vmem:[%s12019_s13 + $0x18] sm:$0xff] }
  0x83   : > { %816 = vst [vmem:[#allocation2 + $0x148] sm:$0xff] %v11661_v2  ;;  %817 = vst [vmem:[#allocation2 + $0x150] sm:$0xff] %v11661_v2  ;;  %v745_v25 = vadd.f32 %v713_v23, %v681_v22  ;;  %v683_v29 = vld [vmem:[%s12019_s13 + $0x20] sm:$0xff]  ;;  %v1290_v32 = vld [vmem:[%s18066_s6 + $0x58] sm:$0xff]  ;;  %v746_v33 = vadd.f32 %v714_v28, %v682_v26 }
  0x84   : > { %820 = vst [vmem:[#allocation2 + $0x168] sm:$0xff] %v11661_v2  ;;  %821 = vst [vmem:[#allocation2 + $0x170] sm:$0xff] %v11661_v2  ;;  %9374 = vmatpush1.bf16.msra.mxu0 %v9373_v11  ;;  %v747_v34 = vadd.f32 %v715_v30, %v683_v29  ;;  %v684_v35 = vld [vmem:[%s12019_s13 + $0x28] sm:$0xff]  ;;  %v685_v37 = vld [vmem:[%s12019_s13 + $0x30] sm:$0xff]  ;;  %v9382_v42 = vpack.c.bf16 %v1290_v32, %v1289_v31 }
  0x85   : > { %824 = vst [vmem:[#allocation2 + $0x188] sm:$0xff] %v11661_v2  ;;  %825 = vst [vmem:[#allocation2 + $0x190] sm:$0xff] %v11661_v2  ;;  %9375 = vmatprep.subr.bf16.mxu0 %v18088_v1  ;;  %v716_v36 = vld [vmem:[%s12024_s14 + $0x28] sm:$0xff]  ;;  %v717_v38 = vld [vmem:[%s12024_s14 + $0x30] sm:$0xff]  ;;  %s17904_s28 = scalar_lea.vmem %s18805_s27, %s8981_s12 }
  0x86   : > { %828 = vst [vmem:[#allocation2 + $0x1a8] sm:$0xff] %v11661_v2  ;;  %829 = vst [vmem:[#allocation2 + $0x1b0] sm:$0xff] %v11661_v2  ;;  %v748_v39 = vadd.f32 %v716_v36, %v684_v35  ;;  %v749_v40 = vadd.f32 %v717_v38, %v685_v37  ;;  %v686_v41 = vld [vmem:[%s12019_s13 + $0x38] sm:$0xff]  ;;  %v687_v44 = vld [vmem:[%s12019_s13 + $0x40] sm:$0xff] }
  0x87   : > { %832 = vst [vmem:[#allocation2 + $0x1c8] sm:$0xff] %v11661_v2  ;;  %833 = vst [vmem:[#allocation2 + $0x1d0] sm:$0xff] %v11661_v2  ;;  %v718_v43 = vld [vmem:[%s12024_s14 + $0x38] sm:$0xff]  ;;  %v719_v45 = vld [vmem:[%s12024_s14 + $0x40] sm:$0xff]  ;;  %s678_s11 = scalar_lea.vmem %s18807_s26, %s8968_s30 }
  0x88   : > { %836 = vst [vmem:[#allocation2 + $0x1e8] sm:$0xff] %v11661_v2  ;;  %837 = vst [vmem:[#allocation2 + $0x1f0] sm:$0xff] %v11661_v2  ;;  %9377 = vmatpush1.bf16.msra.mxu0 %v9376_v14  ;;  %v1291_v46 = vld [vmem:[%s18066_s6 + $0x60] sm:$0xff]  ;;  %v1292_v47 = vld [vmem:[%s18066_s6 + $0x68] sm:$0xff]  ;;  %v750_v48 = vadd.f32 %v718_v43, %v686_v41  ;;  %v751_v49 = vadd.f32 %v719_v45, %v687_v44 }
  0x89   : > { %840 = vst [vmem:[#allocation2 + $0x208] sm:$0xff] %v11661_v2  ;;  %841 = vst [vmem:[#allocation2 + $0x210] sm:$0xff] %v11661_v2  ;;  %9378 = vmatprep.subr.bf16.mxu0 %v18088_v1  ;;  %v688_v50 = vld [vmem:[%s12019_s13 + $0x48] sm:$0xff]  ;;  %v689_v53 = vld [vmem:[%s12019_s13 + $0x50] sm:$0xff]  ;;  %v9385_v58 = vpack.c.bf16 %v1292_v47, %v1291_v46 }
  0x8a   : > { %6398 = vst [vmem:[#allocation2 + $0x8] sm:$0xff] %v11661_v2  ;;  %849 = vst.msk [vmem:[#allocation2 + $0x28] sm:$0xff] %vm848_vm0, %v743_v19  ;;  %v720_v52 = vld [vmem:[%s12024_s14 + $0x48] sm:$0xff]  ;;  %v1293_v54 = vld [vmem:[%s18066_s6 + $0x70] sm:$0xff] }
  0x8b   : > { %850 = vst.msk [vmem:[#allocation2 + $0x30] sm:$0xff] %vm848_vm0, %v744_v24  ;;  %851 = vst.msk [vmem:[#allocation2 + $0x48] sm:$0xff] %vm848_vm0, %v745_v25  ;;  %v1294_v55 = vld [vmem:[%s18066_s6 + $0x78] sm:$0xff]  ;;  %v752_v56 = vadd.f32 %v720_v52, %v688_v50  ;;  %v721_v57 = vld [vmem:[%s12024_s14 + $0x50] sm:$0xff] }
  0x8c   : > { %852 = vst.msk [vmem:[#allocation2 + $0x50] sm:$0xff] %vm848_vm0, %v746_v33  ;;  %853 = vst.msk [vmem:[#allocation2 + $0x68] sm:$0xff] %vm848_vm0, %v747_v34  ;;  %9380 = vmatpush1.bf16.msra.mxu0 %v9379_v27  ;;  %v753_v61 = vadd.f32 %v721_v57, %v689_v53  ;;  %v690_v62 = vld [vmem:[%s12019_s13 + $0x58] sm:$0xff]  ;;  %v691_v0 = vld [vmem:[%s12019_s13 + $0x60] sm:$0xff]  ;;  %v9388_v10 = vpack.c.bf16 %v1294_v55, %v1293_v54 }
  0x8d   : > { %9381 = vmatprep.subr.bf16.mxu0 %v18088_v1  ;;  %854 = vst.msk [vmem:[#allocation2 + $0x70] sm:$0xff] %vm848_vm0, %v748_v39  ;;  %855 = vst.msk [vmem:[#allocation2 + $0x88] sm:$0xff] %vm848_vm0, %v749_v40  ;;  %v722_v63 = vld [vmem:[%s12024_s14 + $0x58] sm:$0xff]  ;;  %v723_v3 = vld [vmem:[%s12024_s14 + $0x60] sm:$0xff] }
  0x8e   : > { %856 = vst.msk [vmem:[#allocation2 + $0x90] sm:$0xff] %vm848_vm0, %v750_v48  ;;  %857 = vst.msk [vmem:[#allocation2 + $0xa8] sm:$0xff] %vm848_vm0, %v751_v49  ;;  %v754_v6 = vadd.f32 %v722_v63, %v690_v62  ;;  %v755_v7 = vadd.f32 %v723_v3, %v691_v0  ;;  %v692_v8 = vld [vmem:[%s12019_s13 + $0x68] sm:$0xff]  ;;  %v693_v14 = vld [vmem:[%s12019_s13 + $0x70] sm:$0xff] }
  0x8f   : > { %858 = vst.msk [vmem:[#allocation2 + $0xb0] sm:$0xff] %vm848_vm0, %v752_v56  ;;  %859 = vst.msk [vmem:[#allocation2 + $0xc8] sm:$0xff] %vm848_vm0, %v753_v61  ;;  %v724_v9 = vld [vmem:[%s12024_s14 + $0x68] sm:$0xff]  ;;  %v1295_v15 = vld [vmem:[%s18066_s6 + $0x80] sm:$0xff] }
  0x90   : > { %9383 = vmatpush1.bf16.msra.mxu0 %v9382_v42  ;;  %860 = vst.msk [vmem:[#allocation2 + $0xd0] sm:$0xff] %vm848_vm0, %v754_v6  ;;  %861 = vst.msk [vmem:[#allocation2 + $0xe8] sm:$0xff] %vm848_vm0, %v755_v7  ;;  %v756_v13 = vadd.f32 %v724_v9, %v692_v8  ;;  %v1296_v16 = vld [vmem:[%s18066_s6 + $0x88] sm:$0xff]  ;;  %v725_v17 = vld [vmem:[%s12024_s14 + $0x70] sm:$0xff] }
  0x91   : > { %v12073_v51 = vld [vmem:[#allocation2 + $0x28] sm:$0xff]  ;;  %9384 = vmatprep.subr.bf16.mxu0 %v18088_v1  ;;  %v757_v20 = vadd.f32 %v725_v17, %v693_v14  ;;  %v694_v21 = vld [vmem:[%s12019_s13 + $0x78] sm:$0xff]  ;;  %v695_v23 = vld [vmem:[%s12019_s13 + $0x80] sm:$0xff]  ;;  %v9391_v25 = vpack.c.bf16 %v1296_v16, %v1295_v15 }
  0x92   : > { %18343 = vst [vmem:[#allocation13_spill] sm:$0xff] %v12073_v51  ;;  %2656 = vst [vmem:[#allocation2 + $0x28] sm:$0xff] %v11661_v2  ;;  %v12087_v59 = vld [vmem:[#allocation2 + $0x30] sm:$0xff]  ;;  %v12089_v60 = vld [vmem:[#allocation2 + $0x48] sm:$0xff] }
  0x93   : > { %18344 = vst [vmem:[#allocation14_spill] sm:$0xff] %v12087_v59  ;;  %2657 = vst [vmem:[#allocation2 + $0x30] sm:$0xff] %v11661_v2  ;;  %v12099_v4 = vld [vmem:[#allocation2 + $0x50] sm:$0xff]  ;;  %v12101_v5 = vld [vmem:[#allocation2 + $0x68] sm:$0xff] }
  0x94   : > { %2660 = vst [vmem:[#allocation2 + $0x48] sm:$0xff] %v11661_v2  ;;  %2661 = vst [vmem:[#allocation2 + $0x50] sm:$0xff] %v11661_v2  ;;  %9386 = vmatpush1.bf16.msra.mxu0 %v9385_v58  ;;  %v12108_v11 = vld [vmem:[#allocation2 + $0x70] sm:$0xff]  ;;  %v12110_v12 = vld [vmem:[#allocation2 + $0x88] sm:$0xff] }
  0x95   : > { %2664 = vst [vmem:[#allocation2 + $0x68] sm:$0xff] %v11661_v2  ;;  %9387 = vmatprep.subr.bf16.mxu0 %v18088_v1  ;;  %2665 = vst [vmem:[#allocation2 + $0x70] sm:$0xff] %v11661_v2  ;;  %v12125_v18 = vld [vmem:[#allocation2 + $0x90] sm:$0xff]  ;;  %v12127_v19 = vld [vmem:[#allocation2 + $0xa8] sm:$0xff] }
  0x96   : > { %2668 = vst [vmem:[#allocation2 + $0x88] sm:$0xff] %v11661_v2  ;;  %862 = vst.msk [vmem:[#allocation2 + $0xf0] sm:$0xff] %vm848_vm0, %v756_v13  ;;  %v726_v22 = vld [vmem:[%s12024_s14 + $0x78] sm:$0xff]  ;;  %v727_v24 = vld [vmem:[%s12024_s14 + $0x80] sm:$0xff] }
  0x97   : > { %2669 = vst [vmem:[#allocation2 + $0x90] sm:$0xff] %v11661_v2  ;;  %2672 = vst [vmem:[#allocation2 + $0xa8] sm:$0xff] %v11661_v2  ;;  %v1297_v26 = vld [vmem:[%s18066_s6 + $0x90] sm:$0xff]  ;;  %v1298_v27 = vld [vmem:[%s18066_s6 + $0x98] sm:$0xff]  ;;  %v758_v29 = vadd.f32 %v726_v22, %v694_v21  ;;  %v759_v30 = vadd.f32 %v727_v24, %v695_v23 }
  0x98   : > { %9389 = vmatpush1.bf16.msra.mxu0 %v9388_v10  ;;  %v12142_v28 = vld [vmem:[#allocation2 + $0xb0] sm:$0xff]  ;;  %863 = vst.msk [vmem:[#allocation2 + $0x108] sm:$0xff] %vm848_vm0, %v757_v20  ;;  %v12147_v31 = vld [vmem:[#allocation2 + $0xc8] sm:$0xff]  ;;  %v1299_v37 = vld [vmem:[%s18066_s6 + $0xa0] sm:$0xff]  ;;  %v9394_v41 = vpack.c.bf16 %v1298_v27, %v1297_v26 }
  0x99   : > { %9390 = vmatprep.subr.bf16.mxu0 %v18088_v1  ;;  %2673 = vst [vmem:[#allocation2 + $0xb0] sm:$0xff] %v11661_v2  ;;  %v696_v32 = vld [vmem:[%s12019_s13 + $0x88] sm:$0xff]  ;;  %2676 = vst [vmem:[#allocation2 + $0xc8] sm:$0xff] %v11661_v2  ;;  %v697_v35 = vld [vmem:[%s12019_s13 + $0x90] sm:$0xff]  ;;  %2209 = vmatprep.mubr.f32.mxu1 %v12147_v31 }
  0x9a   : > { %v728_v33 = vld [vmem:[%s12024_s14 + $0x88] sm:$0xff]  ;;  %864 = vst.msk [vmem:[#allocation2 + $0x110] sm:$0xff] %vm848_vm0, %v758_v29  ;;  %865 = vst.msk [vmem:[#allocation2 + $0x128] sm:$0xff] %vm848_vm0, %v759_v30  ;;  %v729_v36 = vld [vmem:[%s12024_s14 + $0x90] sm:$0xff] }
  0x9b   : > { %v760_v34 = vadd.f32 %v728_v33, %v696_v32  ;;  %v12160_v38 = vld [vmem:[#allocation2 + $0xd0] sm:$0xff]  ;;  %v12162_v39 = vld [vmem:[#allocation2 + $0xe8] sm:$0xff]  ;;  %v761_v40 = vadd.f32 %v729_v36, %v697_v35  ;;  %v698_v42 = vld [vmem:[%s12019_s13 + $0x98] sm:$0xff] }
  0x9c   : > { %9392 = vmatpush1.bf16.msra.mxu0 %v9391_v25  ;;  %2677 = vst [vmem:[#allocation2 + $0xd0] sm:$0xff] %v11661_v2  ;;  %2680 = vst [vmem:[#allocation2 + $0xe8] sm:$0xff] %v11661_v2  ;;  %v730_v43 = vld [vmem:[%s12024_s14 + $0x98] sm:$0xff]  ;;  %v699_v44 = vld [vmem:[%s12019_s13 + $0xa0] sm:$0xff] }
  0x9d   : > { %866 = vst.msk [vmem:[#allocation2 + $0x130] sm:$0xff] %vm848_vm0, %v760_v34  ;;  %9393 = vmatprep.subr.bf16.mxu0 %v18088_v1  ;;  %v1300_v45 = vld [vmem:[%s18066_s6 + $0xa8] sm:$0xff]  ;;  %v12174_v46 = vld [vmem:[#allocation2 + $0xf0] sm:$0xff]  ;;  %867 = vst.msk [vmem:[#allocation2 + $0x148] sm:$0xff] %vm848_vm0, %v761_v40  ;;  %v762_v47 = vadd.f32 %v730_v43, %v698_v42 }
  0x9e   : > { %v731_v48 = vld [vmem:[%s12024_s14 + $0xa0] sm:$0xff]  ;;  %2681 = vst [vmem:[#allocation2 + $0xf0] sm:$0xff] %v11661_v2  ;;  %v700_v50 = vld [vmem:[%s12019_s13 + $0xa8] sm:$0xff]  ;;  %v701_v55 = vld [vmem:[%s12019_s13 + $0xb0] sm:$0xff]  ;;  %v9397_v57 = vpack.c.bf16 %v1300_v45, %v1299_v37 }
  0x9f   : > { %v763_v49 = vadd.f32 %v731_v48, %v699_v44  ;;  %v732_v52 = vld [vmem:[%s12024_s14 + $0xa8] sm:$0xff]  ;;  %868 = vst.msk [vmem:[#allocation2 + $0x150] sm:$0xff] %vm848_vm0, %v762_v47  ;;  %v733_v56 = vld [vmem:[%s12024_s14 + $0xb0] sm:$0xff]  ;;  %v1302_v61 = vld [vmem:[%s18066_s6 + $0xb8] sm:$0xff] }
  0xa0   : > { %v12181_v53 = vld [vmem:[#allocation2 + $0x108] sm:$0xff]  ;;  %v764_v54 = vadd.f32 %v732_v52, %v700_v50  ;;  %9395 = vmatpush1.bf16.msra.mxu0 %v9394_v41  ;;  %v1301_v58 = vld [vmem:[%s18066_s6 + $0xb0] sm:$0xff]  ;;  %v765_v62 = vadd.f32 %v733_v56, %v701_v55  ;;  %v702_v63 = vld [vmem:[%s12019_s13 + $0xb8] sm:$0xff] }
  0xa1   : > { %2684 = vst [vmem:[#allocation2 + $0x108] sm:$0xff] %v11661_v2  ;;  %869 = vst.msk [vmem:[#allocation2 + $0x168] sm:$0xff] %vm848_vm0, %v763_v49  ;;  %9396 = vmatprep.subr.bf16.mxu0 %v18088_v1  ;;  %v12196_v0 = vld [vmem:[#allocation2 + $0x110] sm:$0xff]  ;;  %v12198_v3 = vld [vmem:[#allocation2 + $0x128] sm:$0xff]  ;;  %v9400_v17 = vpack.c.bf16 %v1302_v61, %v1301_v58 }
  0xa2   : > { %870 = vst.msk [vmem:[#allocation2 + $0x170] sm:$0xff] %vm848_vm0, %v764_v54  ;;  %v734_v6 = vld [vmem:[%s12024_s14 + $0xb8] sm:$0xff]  ;;  %2685 = vst [vmem:[#allocation2 + $0x110] sm:$0xff] %v11661_v2  ;;  %v703_v8 = vld [vmem:[%s12019_s13 + $0xc0] sm:$0xff] }
  0xa3   : > { %2688 = vst [vmem:[#allocation2 + $0x128] sm:$0xff] %v11661_v2  ;;  %871 = vst.msk [vmem:[#allocation2 + $0x188] sm:$0xff] %vm848_vm0, %v765_v62  ;;  %v766_v7 = vadd.f32 %v734_v6, %v702_v63  ;;  %v735_v9 = vld [vmem:[%s12024_s14 + $0xc0] sm:$0xff]  ;;  %v704_v10 = vld [vmem:[%s12019_s13 + $0xc8] sm:$0xff] }
  0xa4   : > { %v1303_v13 = vld [vmem:[%s18066_s6 + $0xc0] sm:$0xff]  ;;  %v1304_v14 = vld [vmem:[%s18066_s6 + $0xc8] sm:$0xff]  ;;  %v12214_v15 = vld [vmem:[#allocation2 + $0x130] sm:$0xff]  ;;  %v767_v16 = vadd.f32 %v735_v9, %v703_v8  ;;  %9398 = vmatpush1.bf16.msra.mxu0 %v9397_v57 }
  0xa5   : > { %18345 = vst [vmem:[#allocation15_spill] sm:$0xff] %v12214_v15  ;;  %2689 = vst [vmem:[#allocation2 + $0x130] sm:$0xff] %v11661_v2  ;;  %v12217_v20 = vld [vmem:[#allocation2 + $0x148] sm:$0xff]  ;;  %v705_v22 = vld [vmem:[%s12019_s13 + $0xd0] sm:$0xff]  ;;  %9399 = vmatprep.subr.bf16.mxu0 %v18088_v1  ;;  %v9403_v36 = vpack.c.bf16 %v1304_v14, %v1303_v13 }
  0xa6   : > { %872 = vst.msk [vmem:[#allocation2 + $0x190] sm:$0xff] %vm848_vm0, %v766_v7  ;;  %v736_v21 = vld [vmem:[%s12024_s14 + $0xc8] sm:$0xff]  ;;  %2692 = vst [vmem:[#allocation2 + $0x148] sm:$0xff] %v11661_v2  ;;  %v737_v24 = vld [vmem:[%s12024_s14 + $0xd0] sm:$0xff] }
  0xa7   : > { %873 = vst.msk [vmem:[#allocation2 + $0x1a8] sm:$0xff] %vm848_vm0, %v767_v16  ;;  %v768_v23 = vadd.f32 %v736_v21, %v704_v10  ;;  %v706_v25 = vld [vmem:[%s12019_s13 + $0xd8] sm:$0xff]  ;;  %v12228_v27 = vld [vmem:[#allocation2 + $0x150] sm:$0xff]  ;;  %v769_v29 = vadd.f32 %v737_v24, %v705_v22  ;;  %v707_v32 = vld [vmem:[%s12019_s13 + $0xe0] sm:$0xff]  ;;  %v12310_v16 = vrot.slane %v11661_v2, 7 }
  0xa8   : > { %v738_v26 = vld [vmem:[%s12024_s14 + $0xd8] sm:$0xff]  ;;  %18346 = vst [vmem:[#allocation16_spill] sm:$0xff] %v12228_v27  ;;  %v739_v33 = vld [vmem:[%s12024_s14 + $0xe0] sm:$0xff]  ;;  %2693 = vst [vmem:[#allocation2 + $0x150] sm:$0xff] %v11661_v2  ;;  %9401 = vmatpush1.bf16.msra.mxu0 %v9400_v17 }
  0xa9   : > { %v770_v30 = vadd.f32 %v738_v26, %v706_v25  ;;  %v12233_v34 = vld [vmem:[#allocation2 + $0x168] sm:$0xff]  ;;  %874 = vst.msk [vmem:[#allocation2 + $0x1b0] sm:$0xff] %vm848_vm0, %v768_v23  ;;  %v771_v35 = vadd.f32 %v739_v33, %v707_v32  ;;  %v1305_v37 = vld [vmem:[%s18066_s6 + $0xd0] sm:$0xff]  ;;  %v1306_v40 = vld [vmem:[%s18066_s6 + $0xd8] sm:$0xff]  ;;  %9402 = vmatprep.subr.bf16.mxu0 %v18088_v1 }
  0xaa   : > { %2696 = vst [vmem:[#allocation2 + $0x168] sm:$0xff] %v11661_v2  ;;  %v12243_v41 = vld [vmem:[#allocation2 + $0x170] sm:$0xff]  ;;  %875 = vst.msk [vmem:[#allocation2 + $0x1c8] sm:$0xff] %vm848_vm0, %v769_v29  ;;  %v12249_v42 = vld [vmem:[#allocation2 + $0x188] sm:$0xff]  ;;  %v9406_v48 = vpack.c.bf16 %v1306_v40, %v1305_v37 }
  0xab   : > { %18347 = vst [vmem:[#allocation17_spill] sm:$0xff] %v12243_v41  ;;  %876 = vst.msk [vmem:[#allocation2 + $0x1d0] sm:$0xff] %vm848_vm0, %v770_v30  ;;  %v708_v43 = vld [vmem:[%s12019_s13 + $0xe8] sm:$0xff]  ;;  %v1375_v50 = vld [vmem:[%s18066_s6 + $0x300] sm:$0xff] }
  0xac   : > { %2697 = vst [vmem:[#allocation2 + $0x170] sm:$0xff] %v11661_v2  ;;  %877 = vst.msk [vmem:[#allocation2 + $0x1e8] sm:$0xff] %vm848_vm0, %v771_v35  ;;  %v740_v44 = vld [vmem:[%s12024_s14 + $0xe8] sm:$0xff]  ;;  %9404 = vmatpush1.bf16.msra.mxu0 %v9403_v36  ;;  %v1307_v54 = vld [vmem:[%s18066_s6 + $0xe0] sm:$0xff]  ;;  %v1008_v35 = vrot.slane %v12073_v51, 7 }
  0xad   : > { %2700 = vst [vmem:[#allocation2 + $0x188] sm:$0xff] %v11661_v2  ;;  %v772_v45 = vadd.f32 %v740_v44, %v708_v43  ;;  %v12255_v47 = vld [vmem:[#allocation2 + $0x190] sm:$0xff]  ;;  %v1376_v52 = vld [vmem:[%s18066_s6 + $0x308] sm:$0xff]  ;;  %9405 = vmatprep.subr.bf16.mxu0 %v18088_v1  ;;  %v1378_v7 = vld [vmem:[%s18066_s6 + $0x318] sm:$0xff] }
  0xae   : > { %2701 = vst [vmem:[#allocation2 + $0x190] sm:$0xff] %v11661_v2  ;;  %v12258_v49 = vld [vmem:[#allocation2 + $0x1a8] sm:$0xff]  ;;  %v12275_v56 = vpack.c.bf16 %v1376_v52, %v1375_v50  ;;  %v1377_v6 = vld [vmem:[%s18066_s6 + $0x310] sm:$0xff]  ;;  %v1310_v9 = vld [vmem:[%s18066_s6 + $0xf8] sm:$0xff] }
  0xaf   : > { %878 = vst.msk [vmem:[#allocation2 + $0x1f0] sm:$0xff] %vm848_vm0, %v772_v45  ;;  %v1308_v55 = vld [vmem:[%s18066_s6 + $0xe8] sm:$0xff]  ;;  %2704 = vst [vmem:[#allocation2 + $0x1a8] sm:$0xff] %v11661_v2  ;;  %v1309_v8 = vld [vmem:[%s18066_s6 + $0xf0] sm:$0xff]  ;;  %v12304_v10 = vpack.c.bf16 %v1378_v7, %v1377_v6  ;;  %v12371_v45 = vsel %vm1001_vm1, %v12310_v16, %v1008_v35 }
  0xb0   : > { %18348 = vst [vmem:[#allocation18_spill] sm:$0xff] %v12275_v56  ;;  %v12277_v57 = vld [vmem:[#allocation2 + $0x1b0] sm:$0xff]  ;;  %10406 = vmatpush1.bf16.msra.mxu1 %v12275_v56  ;;  %9407 = vmatpush1.bf16.msra.mxu0 %v9406_v48  ;;  %v9409_v62 = vpack.c.bf16 %v1308_v55, %v1307_v54  ;;  %v9412_v14 = vpack.c.bf16 %v1310_v9, %v1309_v8  ;;  %v1379_v17 = vld [vmem:[%s18066_s6 + $0x320] sm:$0xff]  ;;  %v1380_v21 = vld [vmem:[%s18066_s6 + $0x328] sm:$0xff]  ;;  %v1010_v48 = vrot.slane %v12087_v59, 7  ;;  %v1013_v8 = vrot.slane %v12089_v60, 7 }
  0xb1   : > { %18349 = vst [vmem:[#allocation19_spill] sm:$0xff] %v12277_v57  ;;  %2705 = vst [vmem:[#allocation2 + $0x1b0] sm:$0xff] %v11661_v2  ;;  %v12280_v58 = vld [vmem:[#allocation2 + $0x1c8] sm:$0xff]  ;;  %10391 = vmatprep.subr.bf16.mxu1 %v18088_v1  ;;  %9408 = vmatprep.subr.bf16.mxu0 %v18088_v1  ;;  %v1311_v22 = vld [vmem:[%s18066_s6 + $0x100] sm:$0xff]  ;;  %v12327_v24 = vpack.c.bf16 %v1380_v21, %v1379_v17 }
  0xb2   : > { %18350 = vst [vmem:[#allocation20_spill] sm:$0xff] %v12280_v58  ;;  %v12282_v61 = vld [vmem:[#allocation2 + $0x1d0] sm:$0xff]  ;;  %2708 = vst [vmem:[#allocation2 + $0x1c8] sm:$0xff] %v11661_v2  ;;  %v1312_v23 = vld [vmem:[%s18066_s6 + $0x108] sm:$0xff]  ;;  %v12394_v7 = vsel %vm1001_vm1, %v1008_v35, %v1010_v48 }
  0xb3   : > { %18351 = vst [vmem:[#allocation21_spill] sm:$0xff] %v12282_v61  ;;  %2709 = vst [vmem:[#allocation2 + $0x1d0] sm:$0xff] %v11661_v2  ;;  %v12287_v63 = vld [vmem:[#allocation2 + $0x1e8] sm:$0xff]  ;;  %v9415_v25 = vpack.c.bf16 %v1312_v23, %v1311_v22  ;;  %v1381_v26 = vld [vmem:[%s18066_s6 + $0x330] sm:$0xff] }
  0xb4   : > { %18352 = vst [vmem:[#allocation22_spill] sm:$0xff] %v12287_v63  ;;  %2712 = vst [vmem:[#allocation2 + $0x1e8] sm:$0xff] %v11661_v2  ;;  %10407 = vmatpush1.bf16.msra.mxu1 %v12304_v10  ;;  %9410 = vmatpush1.bf16.msra.mxu0 %v9409_v62  ;;  %v1382_v29 = vld [vmem:[%s18066_s6 + $0x338] sm:$0xff]  ;;  %v1313_v30 = vld [vmem:[%s18066_s6 + $0x110] sm:$0xff] }
  0xb5   : > { %18353 = vst [vmem:[#allocation23_spill] sm:$0xff] %v12304_v10  ;;  %10392 = vmatprep.subr.bf16.mxu1 %v18088_v1  ;;  %9411 = vmatprep.subr.bf16.mxu0 %v18088_v1  ;;  %18355 = vst [vmem:[#allocation25_spill] sm:$0xff] %v12327_v24  ;;  %v1314_v32 = vld [vmem:[%s18066_s6 + $0x118] sm:$0xff]  ;;  %v12344_v33 = vpack.c.bf16 %v1382_v29, %v1381_v26  ;;  %v1383_v37 = vld [vmem:[%s18066_s6 + $0x340] sm:$0xff]  ;;  %v1015_v26 = vrot.slane %v12099_v4, 7 }
  0xb6   : > { %v12307_v13 = vld [vmem:[#allocation2 + $0x1f0] sm:$0xff]  ;;  %v9418_v36 = vpack.c.bf16 %v1314_v32, %v1313_v30  ;;  %v1384_v40 = vld [vmem:[%s18066_s6 + $0x348] sm:$0xff]  ;;  %v1315_v43 = vld [vmem:[%s18066_s6 + $0x120] sm:$0xff] }
  0xb7   : > { %18354 = vst [vmem:[#allocation24_spill] sm:$0xff] %v12307_v13  ;;  %2713 = vst [vmem:[#allocation2 + $0x1f0] sm:$0xff] %v11661_v2  ;;  %v12364_v44 = vpack.c.bf16 %v1384_v40, %v1383_v37  ;;  %v1385_v52 = vld [vmem:[%s18066_s6 + $0x350] sm:$0xff]  ;;  %v1386_v54 = vld [vmem:[%s18066_s6 + $0x358] sm:$0xff]  ;;  %v12441_v40 = vsel %vm1001_vm1, %v1013_v8, %v1015_v26 }
  0xb8   : > { %10408 = vmatpush1.bf16.msra.mxu1 %v12327_v24  ;;  %9413 = vmatpush1.bf16.msra.mxu0 %v9412_v14  ;;  %18356 = vst [vmem:[#allocation26_spill] sm:$0xff] %v12344_v33  ;;  %v1317_v55 = vld [vmem:[%s18066_s6 + $0x130] sm:$0xff]  ;;  %v1318_v62 = vld [vmem:[%s18066_s6 + $0x138] sm:$0xff]  ;;  %v12388_v6 = vpack.c.bf16 %v1386_v54, %v1385_v52  ;;  %v1387_v14 = vld [vmem:[%s18066_s6 + $0x360] sm:$0xff] }
  0xb9   : > { %10393 = vmatprep.subr.bf16.mxu1 %v18088_v1  ;;  %9414 = vmatprep.subr.bf16.mxu0 %v18088_v1  ;;  %18357 = vst [vmem:[#allocation27_spill] sm:$0xff] %v12364_v44  ;;  %v9424_v9 = vpack.c.bf16 %v1318_v62, %v1317_v55  ;;  %v1388_v17 = vld [vmem:[%s18066_s6 + $0x368] sm:$0xff]  ;;  %v1319_v21 = vld [vmem:[%s18066_s6 + $0x140] sm:$0xff]  ;;  %v1389_v30 = vld [vmem:[%s18066_s6 + $0x370] sm:$0xff] }
  0xba   : > { %18358 = vst [vmem:[#allocation28_spill] sm:$0xff] %v12388_v6  ;;  %v1320_v22 = vld [vmem:[%s18066_s6 + $0x148] sm:$0xff]  ;;  %v12411_v23 = vpack.c.bf16 %v1388_v17, %v1387_v14  ;;  %v1390_v32 = vld [vmem:[%s18066_s6 + $0x378] sm:$0xff]  ;;  %v1321_v35 = vld [vmem:[%s18066_s6 + $0x150] sm:$0xff] }
  0xbb   : > { %1495 = vmatmul.mubr.f32.vlgmr.msra.gmra.mrb[0].mxu0 %v12310_v16  ;;  %v9427_v29 = vpack.c.bf16 %v1320_v22, %v1319_v21  ;;  %v12435_v37 = vpack.c.bf16 %v1390_v32, %v1389_v30  ;;  %18362 = vst [vmem:[#allocation32_spill] sm:$0xff] %v12441_v40  ;;  %v1391_v48 = vld [vmem:[%s18066_s6 + $0x380] sm:$0xff]  ;;  %v1324_v54 = vld [vmem:[%s18066_s6 + $0x168] sm:$0xff]  ;;  %v1393_v14 = vld [vmem:[%s18066_s6 + $0x390] sm:$0xff]  ;;  %v1023_v30 = vrot.slane %v12110_v12, 7 }
  0xbc   : > { %10409 = vmatpush1.bf16.msra.mxu1 %v12344_v33  ;;  %9416 = vmatpush1.bf16.msra.mxu0 %v9415_v25  ;;  %18359 = vst [vmem:[#allocation29_spill] sm:$0xff] %v12411_v23  ;;  %v12418_v25 = vsel %vm1001_vm1, %v12310_v16, %v1013_v8  ;;  %v1323_v52 = vld [vmem:[%s18066_s6 + $0x160] sm:$0xff]  ;;  %v1020_v8 = vrot.slane %v12108_v11, 7  ;;  %v1394_v17 = vld [vmem:[%s18066_s6 + $0x398] sm:$0xff]  ;;  %v1325_v21 = vld [vmem:[%s18066_s6 + $0x170] sm:$0xff]  ;;  %v1070_v33 = vrot.slane %v12277_v57, 7 }
  0xbd   : > { %1499 = vmatprep.mubr.f32.mxu0 %v11661_v2  ;;  %9417 = vmatprep.subr.bf16.mxu0 %v18088_v1  ;;  %v1316_v2 = vld [vmem:[%s18066_s6 + $0x128] sm:$0xff]  ;;  %18360 = vst [vmem:[#allocation30_spill] sm:$0xff] %v12418_v25  ;;  %18361 = vst [vmem:[#allocation31_spill] sm:$0xff] %v12435_v37  ;;  %v1326_v22 = vld [vmem:[%s18066_s6 + $0x178] sm:$0xff]  ;;  %v12482_v26 = vpack.c.bf16 %v1394_v17, %v1393_v14 }
  0xbe   : > { %10394 = vmatprep.subr.bf16.mxu1 %v18088_v1  ;;  %v9421_v50 = vpack.c.bf16 %v1316_v2, %v1315_v43  ;;  %v1018_v43 = vrot.slane %v12101_v5, 7  ;;  %v9436_v32 = vpack.c.bf16 %v1326_v22, %v1325_v21  ;;  %v1329_v14 = vld [vmem:[%s18066_s6 + $0x190] sm:$0xff]  ;;  %v1330_v17 = vld [vmem:[%s18066_s6 + $0x198] sm:$0xff] }
  0xbf   : > { %1500 = vmatmul.mubr.f32.gmra.mrb[2].mxu0 %v12310_v16  ;;  %18365 = vst [vmem:[#allocation35_spill] sm:$0xff] %v12482_v26  ;;  %v709_v24 = vld [vmem:[%s12019_s13 + $0xf0] sm:$0xff] }
  0xc0   : > { %10410 = vmatpush1.bf16.msra.mxu1 %v12364_v44  ;;  %1504 = vmatprep.mubr.f32.mxu0 %v12073_v51  ;;  %v12465_v62 = vsel %vm1001_vm1, %v12310_v16, %v1018_v43  ;;  %v741_v10 = vld [vmem:[%s12024_s14 + $0xf0] sm:$0xff] }
  0xc1   : > { %9419 = vmatpush1.bf16.msra.mxu0 %v9418_v36  ;;  %10395 = vmatprep.subr.bf16.mxu1 %v18088_v1  ;;  %v1322_v36 = vld [vmem:[%s18066_s6 + $0x158] sm:$0xff]  ;;  %18364 = vst [vmem:[#allocation34_spill] sm:$0xff] %v12465_v62  ;;  %v773_v56 = vadd.f32 %v741_v10, %v709_v24  ;;  %v1078_v24 = vrot.slane %v12287_v63, 7 }
  0xc2   : > { %9420 = vmatprep.subr.bf16.mxu0 %v18088_v1  ;;  %v9430_v2 = vpack.c.bf16 %v1322_v36, %v1321_v35  ;;  %v1395_v35 = vld [vmem:[%s18066_s6 + $0x3a0] sm:$0xff]  ;;  %v1396_v36 = vld [vmem:[%s18066_s6 + $0x3a8] sm:$0xff] }
  0xc3   : > { %1505 = vmatmul.mubr.f32.gmra.mrb[4].mxu0 %v12371_v45  ;;  %879 = vst.msk [vmem:[#allocation2 + $0x208] sm:$0xff] %vm848_vm0, %v773_v56  ;;  %v1407_v56 = vld [vmem:[%s18066_s6 + $0x400] sm:$0xff] }
  0xc4   : > { %10411 = vmatpush1.bf16.msra.mxu1 %v12388_v6  ;;  %1509 = vmatprep.mubr.f32.mxu0 %v12087_v59  ;;  %v1065_v6 = vrot.slane %v12255_v47, 7 }
  0xc5   : > { %9422 = vmatpush1.bf16.msra.mxu0 %v9421_v50  ;;  %10396 = vmatprep.subr.bf16.mxu1 %v18088_v1  ;;  %v1392_v50 = vld [vmem:[%s18066_s6 + $0x388] sm:$0xff] }
  0xc6   : > { %9423 = vmatprep.subr.bf16.mxu0 %v18088_v1  ;;  %v12458_v55 = vpack.c.bf16 %v1392_v50, %v1391_v48  ;;  %v12505_v48 = vpack.c.bf16 %v1396_v36, %v1395_v35  ;;  %v12512_v50 = vsel %vm1001_vm1, %v12310_v16, %v1023_v30  ;;  %v9442_v35 = vpack.c.bf16 %v1330_v17, %v1329_v14  ;;  %v1399_v36 = vld [vmem:[%s18066_s6 + $0x3c0] sm:$0xff]  ;;  %v1401_v14 = vld [vmem:[%s18066_s6 + $0x3d0] sm:$0xff]  ;;  %v1402_v17 = vld [vmem:[%s18066_s6 + $0x3d8] sm:$0xff] }
  0xc7   : > { %1510 = vmatmul.mubr.f32.gmra.mrb[6].mxu0 %v12394_v7  ;;  %18368 = vst [vmem:[#allocation38_spill] sm:$0xff] %v12512_v50 }
  0xc8   : > { %10412 = vmatpush1.bf16.msra.mxu1 %v12411_v23  ;;  %1514 = vmatprep.mubr.f32.mxu0 %v12089_v60  ;;  %18363 = vst [vmem:[#allocation33_spill] sm:$0xff] %v12458_v55  ;;  %18367 = vst [vmem:[#allocation37_spill] sm:$0xff] %v12505_v48 }
  0xc9   : > { %9425 = vmatpush1.bf16.msra.mxu0 %v9424_v9  ;;  %10397 = vmatprep.subr.bf16.mxu1 %v18088_v1  ;;  %v9433_v9 = vpack.c.bf16 %v1324_v54, %v1323_v52  ;;  %v1025_v52 = vrot.slane %v12125_v18, 7 }
  0xca   : > { %9426 = vmatprep.subr.bf16.mxu0 %v18088_v1 }
  0xcb   : > { %1515 = vmatmul.mubr.f32.gmra.mrb[8].mxu0 %v12418_v25  ;;  %v12535_v22 = vsel %vm1001_vm1, %v1023_v30, %v1025_v52  ;;  %v1332_v30 = vld [vmem:[%s18066_s6 + $0x1a8] sm:$0xff] }
  0xcc   : > { %10413 = vmatpush1.bf16.msra.mxu1 %v12435_v37  ;;  %1519 = vmatprep.mubr.f32.mxu0 %v12099_v4  ;;  %18370 = vst [vmem:[#allocation40_spill] sm:$0xff] %v12535_v22  ;;  %v1060_v37 = vrot.slane %v12243_v41, 7 }
  0xcd   : > { %9428 = vmatpush1.bf16.msra.mxu0 %v9427_v29  ;;  %10398 = vmatprep.subr.bf16.mxu1 %v18088_v1  ;;  %v12488_v29 = vsel %vm1001_vm1, %v1018_v43, %v1020_v8  ;;  %v1328_v43 = vld [vmem:[%s18066_s6 + $0x188] sm:$0xff]  ;;  %v1397_v8 = vld [vmem:[%s18066_s6 + $0x3b0] sm:$0xff] }
  0xce   : > { %9429 = vmatprep.subr.bf16.mxu0 %v18088_v1  ;;  %18366 = vst [vmem:[#allocation36_spill] sm:$0xff] %v12488_v29 }
  0xcf   : > { %1520 = vmatmul.mubr.f32.gmra.mrb[10].mxu0 %v12441_v40 }
  0xd0   : > { %10414 = vmatpush1.bf16.msra.mxu1 %v12458_v55  ;;  %1524 = vmatprep.mubr.f32.mxu0 %v12101_v5 }
  0xd1   : > { %9431 = vmatpush1.bf16.msra.mxu0 %v9430_v2  ;;  %10399 = vmatprep.subr.bf16.mxu1 %v18088_v1  ;;  %v1327_v2 = vld [vmem:[%s18066_s6 + $0x180] sm:$0xff] }
  0xd2   : > { %9432 = vmatprep.subr.bf16.mxu0 %v18088_v1  ;;  %v9439_v54 = vpack.c.bf16 %v1328_v43, %v1327_v2  ;;  %v1400_v2 = vld [vmem:[%s18066_s6 + $0x3c8] sm:$0xff]  ;;  %v1331_v43 = vld [vmem:[%s18066_s6 + $0x1a0] sm:$0xff] }
  0xd3   : > { %1525 = vmatmul.mubr.f32.gmra.mrb[12].mxu0 %v12465_v62  ;;  %v12552_v52 = vpack.c.bf16 %v1400_v2, %v1399_v36  ;;  %v1333_v36 = vld [vmem:[%s18066_s6 + $0x1b0] sm:$0xff]  ;;  %v1334_v2 = vld [vmem:[%s18066_s6 + $0x1b8] sm:$0xff] }
  0xd4   : > { %10415 = vmatpush1.bf16.msra.mxu1 %v12482_v26  ;;  %1529 = vmatprep.mubr.f32.mxu0 %v12108_v11  ;;  %v1055_v26 = vrot.slane %v12228_v27, 7 }
  0xd5   : > { %9434 = vmatpush1.bf16.msra.mxu0 %v9433_v9  ;;  %10400 = vmatprep.subr.bf16.mxu1 %v18088_v1  ;;  %v1398_v9 = vld [vmem:[%s18066_s6 + $0x3b8] sm:$0xff]  ;;  %18371 = vst [vmem:[#allocation41_spill] sm:$0xff] %v12552_v52 }
  0xd6   : > { %9435 = vmatprep.subr.bf16.mxu0 %v18088_v1  ;;  %v12529_v21 = vpack.c.bf16 %v1398_v9, %v1397_v8  ;;  %v1030_v8 = vrot.slane %v12142_v28, 7  ;;  %v9445_v9 = vpack.c.bf16 %v1332_v30, %v1331_v43  ;;  %v1033_v30 = vrot.slane %v12147_v31, 7 }
  0xd7   : > { %1530 = vmatmul.mubr.f32.gmra.mrb[14].mxu0 %v12488_v29 }
  0xd8   : > { %10416 = vmatpush1.bf16.msra.mxu1 %v12505_v48  ;;  %1534 = vmatprep.mubr.f32.mxu0 %v12110_v12  ;;  %18369 = vst [vmem:[#allocation39_spill] sm:$0xff] %v12529_v21 }
  0xd9   : > { %9437 = vmatpush1.bf16.msra.mxu0 %v9436_v32  ;;  %10401 = vmatprep.subr.bf16.mxu1 %v18088_v1  ;;  %v1028_v32 = vrot.slane %v12127_v19, 7 }
  0xda   : > { %9438 = vmatprep.subr.bf16.mxu0 %v18088_v1 }
  0xdb   : > { %1535 = vmatmul.mubr.f32.gmra.mrb[16].mxu0 %v12512_v50  ;;  %v12582_v43 = vsel %vm1001_vm1, %v1028_v32, %v1030_v8 }
  0xdc   : > { %10417 = vmatpush1.bf16.msra.mxu1 %v12529_v21  ;;  %1539 = vmatprep.mubr.f32.mxu0 %v12125_v18  ;;  %18374 = vst [vmem:[#allocation44_spill] sm:$0xff] %v12582_v43  ;;  %v1403_v21 = vld [vmem:[%s18066_s6 + $0x3e0] sm:$0xff] }
  0xdd   : > { %9440 = vmatpush1.bf16.msra.mxu0 %v9439_v54  ;;  %10402 = vmatprep.subr.bf16.mxu1 %v18088_v1  ;;  %v12559_v54 = vsel %vm1001_vm1, %v12310_v16, %v1028_v32  ;;  %v1336_v32 = vld [vmem:[%s18066_s6 + $0x1c8] sm:$0xff] }
  0xde   : > { %9441 = vmatprep.subr.bf16.mxu0 %v18088_v1  ;;  %18372 = vst [vmem:[#allocation42_spill] sm:$0xff] %v12559_v54 }
  0xdf   : > { %1540 = vmatmul.mubr.f32.gmra.mrb[18].mxu0 %v12535_v22 }
  0xe0   : > { %10418 = vmatpush1.bf16.msra.mxu1 %v12552_v52  ;;  %1544 = vmatprep.mubr.f32.mxu0 %v12127_v19  ;;  %v9448_v52 = vpack.c.bf16 %v1334_v2, %v1333_v36  ;;  %v1035_v36 = vrot.slane %v12160_v38, 7 }
  0xe1   : > { %9443 = vmatpush1.bf16.msra.mxu0 %v9442_v35  ;;  %10403 = vmatprep.subr.bf16.mxu1 %v18088_v1  ;;  %v12576_v35 = vpack.c.bf16 %v1402_v17, %v1401_v14  ;;  %v1404_v14 = vld [vmem:[%s18066_s6 + $0x3e8] sm:$0xff]  ;;  %v1335_v17 = vld [vmem:[%s18066_s6 + $0x1c0] sm:$0xff] }
  0xe2   : > { %9444 = vmatprep.subr.bf16.mxu0 %v18088_v1  ;;  %v12599_v8 = vpack.c.bf16 %v1404_v14, %v1403_v21  ;;  %v9451_v2 = vpack.c.bf16 %v1336_v32, %v1335_v17  ;;  %v1406_v21 = vld [vmem:[%s18066_s6 + $0x3f8] sm:$0xff]  ;;  %v18376_v14 = vmov 0.0|0.0   ;;  %v12629_v17 = vsel %vm1001_vm1, %v1033_v30, %v1035_v36  ;;  %v1341_v36 = vld [vmem:[%s18066_s6 + $0x1f0] sm:$0xff] }
  0xe3   : > { %18373 = vst [vmem:[#allocation43_spill] sm:$0xff] %v12576_v35  ;;  %1545 = vmatmul.mubr.f32.gmra.mrb[20].mxu0 %v12559_v54  ;;  %v1038_v32 = vrot.slane %v12162_v39, 7 }
  0xe4   : > { %10419 = vmatpush1.bf16.msra.mxu1 %v12576_v35  ;;  %1549 = vmatprep.mubr.f32.mxu0 %v12142_v28  ;;  %18375 = vst [vmem:[#allocation45_spill] sm:$0xff] %v12599_v8  ;;  %v1338_v35 = vld [vmem:[%s18066_s6 + $0x1d8] sm:$0xff] }
  0xe5   : > { %9446 = vmatpush1.bf16.msra.mxu0 %v9445_v9  ;;  %10404 = vmatprep.subr.bf16.mxu1 %v18088_v1  ;;  %v12606_v9 = vsel %vm1001_vm1, %v12310_v16, %v1033_v30  ;;  %v1040_v30 = vrot.slane %v12174_v46, 7 }
  0xe6   : > { %9447 = vmatprep.subr.bf16.mxu0 %v18088_v1  ;;  %v1405_v1 = vld [vmem:[%s18066_s6 + $0x3f0] sm:$0xff] }
  0xe7   : > { %1550 = vmatmul.mubr.f32.gmra.mrb[22].mxu0 %v12582_v43 }
  0xe8   : > { %10420 = vmatpush1.bf16.msra.mxu1 %v12599_v8  ;;  %1554 = vmatprep.mubr.f32.mxu0 %v12147_v31  ;;  %v1337_v8 = vld [vmem:[%s18066_s6 + $0x1d0] sm:$0xff] }
  0xe9   : > { %9449 = vmatpush1.bf16.msra.mxu0 %v9448_v52  ;;  %10405 = vmatprep.subr.bf16.mxu1 %v18376_v14  ;;  %v12623_v52 = vpack.c.bf16 %v1406_v21, %v1405_v1  ;;  %v9454_v48 = vpack.c.bf16 %v1338_v35, %v1337_v8  ;;  %v1339_v1 = vld [vmem:[%s18066_s6 + $0x1e0] sm:$0xff]  ;;  %v1340_v21 = vld [vmem:[%s18066_s6 + $0x1e8] sm:$0xff]  ;;  %v12645_v35 = vsel %vm1001_vm1, %v12310_v16, %v1038_v32 }
  0xea   : > { %9450 = vmatprep.subr.bf16.mxu0 %v18376_v14  ;;  %v9457_v8 = vpack.c.bf16 %v1340_v21, %v1339_v1  ;;  %v1043_v1 = vrot.slane %v12181_v53, 7 }
  0xeb   : > { %18377 = vst [vmem:[#allocation46_spill] sm:$0xff] %v12623_v52  ;;  %1555 = vmatmul.mubr.f32.gmra.mrb[24].mxu0 %v12606_v9 }
  0xec   : > { %10421 = vmatpush1.bf16.msra.mxu1 %v12623_v52  ;;  %1559 = vmatprep.mubr.f32.mxu0 %v12160_v38  ;;  %v12670_v52 = vsel %vm1001_vm1, %v12310_v16, %v1043_v1 }
  0xed   : > { %9452 = vmatpush1.bf16.msra.mxu0 %v9451_v2  ;;  %v1342_v2 = vld [vmem:[%s18066_s6 + $0x1f8] sm:$0xff] }
  0xee   : > { %9453 = vmatprep.subr.bf16.mxu0 %v18376_v14  ;;  %v9460_v21 = vpack.c.bf16 %v1342_v2, %v1341_v36  ;;  %v1050_v2 = vrot.slane %v12214_v15, 7 }
  0xef   : > { %2210 = vmatmul.mubr.f32.vlgmr.msra.gmra.mrb[0].mxu1 %v12606_v9  ;;  %1560 = vmatmul.mubr.f32.gmra.mrb[26].mxu0 %v12629_v17 }
  0xf0   : > { %2214 = vmatprep.mubr.f32.mxu1 %v12160_v38  ;;  %1564 = vmatprep.mubr.f32.mxu0 %v12162_v39 }
  0xf1   : > { %9455 = vmatpush1.bf16.msra.mxu0 %v9454_v48  ;;  %v12660_v48 = vsel %vm1001_vm1, %v1038_v32, %v1040_v30  ;;  %v1045_v32 = vrot.slane %v12196_v0, 7 }
  0xf2   : > { %9456 = vmatprep.subr.bf16.mxu0 %v18376_v14 }
  0xf3   : > { %2215 = vmatmul.mubr.f32.gmra.mrb[2].mxu1 %v12629_v17  ;;  %1565 = vmatmul.mubr.f32.gmra.mrb[28].mxu0 %v12645_v35  ;;  %v12679_v30 = vsel %vm1001_vm1, %v1043_v1, %v1045_v32 }
  0xf4   : > { %2219 = vmatprep.mubr.f32.mxu1 %v12162_v39  ;;  %1569 = vmatprep.mubr.f32.mxu0 %v12174_v46 }
  0xf5   : > { %9458 = vmatpush1.bf16.msra.mxu0 %v9457_v8  ;;  %v1048_v8 = vrot.slane %v12198_v3, 7 }
  0xf6   : > { %9459 = vmatprep.subr.bf16.mxu0 %v18376_v14 }
  0xf7   : > { %2220 = vmatmul.mubr.f32.gmra.mrb[4].mxu1 %v12645_v35  ;;  %1570 = vmatmul.mubr.f32.gmra.mrb[30].mxu0 %v12660_v48  ;;  %v12688_v36 = vsel %vm1001_vm1, %v12310_v16, %v1048_v8  ;;  %v12696_v1 = vsel %vm1001_vm1, %v1048_v8, %v1050_v2  ;;  %v1058_v2 = vrot.slane %v12233_v34, 7 }
  0xf8   : > { %2224 = vmatprep.mubr.f32.mxu1 %v12174_v46  ;;  %1574 = vmatprep.mubr.f32.mxu0 %v12181_v53 }
  0xf9   : > { %9461 = vmatpush1.bf16.msra.mxu0 %v9460_v21  ;;  %v1053_v21 = vrot.slane %v12217_v20, 7  ;;  %v12722_v55 = vsel %vm1001_vm1, %v12310_v16, %v1058_v2 }
  0xfa   : > { %9462 = vmatprep.subr.bf16.mxu0 %v18376_v14  ;;  %18380 = vst [vmem:[#allocation49_spill] sm:$0xff] %v12722_v55 }
  0xfb   : > { %2225 = vmatmul.mubr.f32.gmra.mrb[6].mxu1 %v12660_v48  ;;  %1575 = vmatmul.mubr.f32.gmra.mrb[32].mxu0 %v12670_v52  ;;  %v12705_v32 = vsel %vm1001_vm1, %v12310_v16, %v1053_v21  ;;  %v12713_v8 = vsel %vm1001_vm1, %v1053_v21, %v1055_v26  ;;  %v12730_v26 = vsel %vm1001_vm1, %v1058_v2, %v1060_v37  ;;  %v1063_v21 = vrot.slane %v12249_v42, 7 }
  0xfc   : > { %2229 = vmatprep.mubr.f32.mxu1 %v12181_v53  ;;  %1579 = vmatprep.mubr.f32.mxu0 %v12196_v0  ;;  %18378 = vst [vmem:[#allocation47_spill] sm:$0xff] %v12705_v32  ;;  %18379 = vst [vmem:[#allocation48_spill] sm:$0xff] %v12713_v8  ;;  %v1068_v2 = vrot.slane %v12258_v49, 7 }
  0xfd   : > { %18381 = vst [vmem:[#allocation50_spill] sm:$0xff] %v12730_v26  ;;  %v12739_v23 = vsel %vm1001_vm1, %v12310_v16, %v1063_v21  ;;  %v12747_v37 = vsel %vm1001_vm1, %v1063_v21, %v1065_v6  ;;  %v1073_v21 = vrot.slane %v12280_v58, 7 }
  0xfe   : > { %18382 = vst [vmem:[#allocation51_spill] sm:$0xff] %v12739_v23  ;;  %18383 = vst [vmem:[#allocation52_spill] sm:$0xff] %v12747_v37  ;;  %v12756_v44 = vsel %vm1001_vm1, %v12310_v16, %v1068_v2  ;;  %v12764_v6 = vsel %vm1001_vm1, %v1068_v2, %v1070_v33  ;;  %v1075_v33 = vrot.slane %v12282_v61, 7  ;;  %v710_v2 = vld [vmem:[%s12019_s13 + $0xf8] sm:$0xff]  ;;  %s18691_s13 = sld [smem:[#allocation75_spill]] }
  0xff   : > { %2230 = vmatmul.mubr.f32.gmra.mrb[8].mxu1 %v12670_v52  ;;  %1580 = vmatmul.mubr.f32.gmra.mrb[34].mxu0 %v12679_v30  ;;  %18384 = vst [vmem:[#allocation53_spill] sm:$0xff] %v12756_v44  ;;  %18385 = vst [vmem:[#allocation54_spill] sm:$0xff] %v12764_v6 }
 0x100   : > { %2234 = vmatprep.mubr.f32.mxu1 %v12196_v0  ;;  %1584 = vmatprep.mubr.f32.mxu0 %v12198_v3  ;;  %v12790_v10 = vsel %vm1001_vm1, %v1073_v21, %v1075_v33  ;;  %v1410_v33 = vld [vmem:[%s18066_s6 + $0x418] sm:$0xff] }
 0x101   : > { %18387 = vst [vmem:[#allocation56_spill] sm:$0xff] %v12790_v10 }
 0x103   : > { %2235 = vmatmul.mubr.f32.gmra.mrb[10].mxu1 %v12679_v30  ;;  %1585 = vmatmul.mubr.f32.gmra.mrb[36].mxu0 %v12688_v36 }
 0x104   : > { %2239 = vmatprep.mubr.f32.mxu1 %v12198_v3  ;;  %1589 = vmatprep.mubr.f32.mxu0 %v12214_v15 }
 0x107   : > { %2240 = vmatmul.mubr.f32.gmra.mrb[12].mxu1 %v12688_v36  ;;  %1590 = vmatmul.mubr.f32.gmra.mrb[38].mxu0 %v12696_v1 }
 0x108   : > { %2244 = vmatprep.mubr.f32.mxu1 %v12214_v15  ;;  %1594 = vmatprep.mubr.f32.mxu0 %v12217_v20 }
 0x10b   : > { %2245 = vmatmul.mubr.f32.gmra.mrb[14].mxu1 %v12696_v1  ;;  %1595 = vmatmul.mubr.f32.gmra.mrb[40].mxu0 %v12705_v32 }
 0x10c   : > { %2249 = vmatprep.mubr.f32.mxu1 %v12217_v20  ;;  %1599 = vmatprep.mubr.f32.mxu0 %v12228_v27 }
 0x10f   : > { %2250 = vmatmul.mubr.f32.gmra.mrb[16].mxu1 %v12705_v32  ;;  %1600 = vmatmul.mubr.f32.gmra.mrb[42].mxu0 %v12713_v8 }
 0x110   : > { %2254 = vmatprep.mubr.f32.mxu1 %v12228_v27  ;;  %1604 = vmatprep.mubr.f32.mxu0 %v12233_v34 }
 0x113   : > { %2255 = vmatmul.mubr.f32.gmra.mrb[18].mxu1 %v12713_v8  ;;  %1605 = vmatmul.mubr.f32.gmra.mrb[44].mxu0 %v12722_v55 }
 0x114   : > { %2259 = vmatprep.mubr.f32.mxu1 %v12233_v34  ;;  %1609 = vmatprep.mubr.f32.mxu0 %v12243_v41 }
 0x117   : > { %2260 = vmatmul.mubr.f32.gmra.mrb[20].mxu1 %v12722_v55  ;;  %1610 = vmatmul.mubr.f32.gmra.mrb[46].mxu0 %v12730_v26  ;;  %v1344_v55 = vld [vmem:[%s18066_s6 + $0x208] sm:$0xff] }
 0x118   : > { %2264 = vmatprep.mubr.f32.mxu1 %v12243_v41  ;;  %1614 = vmatprep.mubr.f32.mxu0 %v12249_v42 }
 0x11b   : > { %2265 = vmatmul.mubr.f32.gmra.mrb[22].mxu1 %v12730_v26  ;;  %1615 = vmatmul.mubr.f32.gmra.mrb[48].mxu0 %v12739_v23 }
 0x11c   : > { %2269 = vmatprep.mubr.f32.mxu1 %v12249_v42  ;;  %1619 = vmatprep.mubr.f32.mxu0 %v12255_v47 }
 0x11f   : > { %2270 = vmatmul.mubr.f32.gmra.mrb[24].mxu1 %v12739_v23  ;;  %1620 = vmatmul.mubr.f32.gmra.mrb[50].mxu0 %v12747_v37  ;;  %v742_v23 = vld [vmem:[%s12024_s14 + $0xf8] sm:$0xff] }
 0x120   : > { %2274 = vmatprep.mubr.f32.mxu1 %v12255_v47  ;;  %1624 = vmatprep.mubr.f32.mxu0 %v12258_v49  ;;  %v774_v26 = vadd.f32 %v742_v23, %v710_v2  ;;  %v1408_v23 = vld [vmem:[%s18066_s6 + $0x408] sm:$0xff] }
 0x121   : > { %v9558_v2 = vpack.c.bf16 %v1408_v23, %v1407_v56  ;;  %v12812_v56 = vsel %vm1001_vm1, %v12310_v16, %v1078_v24  ;;  %v1080_v23 = vrot.slane %v12307_v13, 7 }
 0x122   : > { %880 = vst.msk [vmem:[#allocation2 + $0x210] sm:$0xff] %vm848_vm0, %v774_v26  ;;  %v12800_v26 = vld [vmem:[#allocation2 + $0x8] sm:$0xff]  ;;  %18389 = vst [vmem:[#allocation58_spill] sm:$0xff] %v12812_v56 }
 0x123   : > { %2275 = vmatmul.mubr.f32.gmra.mrb[26].mxu1 %v12747_v37  ;;  %1625 = vmatmul.mubr.f32.gmra.mrb[52].mxu0 %v12756_v44  ;;  %v12776_v37 = vsel %vm1001_vm1, %v12310_v16, %v1073_v21  ;;  %v1409_v21 = vld [vmem:[%s18066_s6 + $0x410] sm:$0xff]  ;;  %v1411_v16 = vld [vmem:[%s18066_s6 + $0x420] sm:$0xff] }
 0x124   : > { %2279 = vmatprep.mubr.f32.mxu1 %v12258_v49  ;;  %1629 = vmatprep.mubr.f32.mxu0 %v12277_v57  ;;  %18386 = vst [vmem:[#allocation55_spill] sm:$0xff] %v12776_v37 }
 0x125   : > { %9559 = vmatprep.subr.bf16.mxu1 %v9558_v2 }
 0x126   : > { %9561 = vmatpush3.bf16.msra.mxu1 %v9558_v2  ;;  %v12826_v2 = vrot.slane %v12800_v26, 1 }
 0x127   : > { %2280 = vmatmul.mubr.f32.gmra.mrb[28].mxu1 %v12756_v44  ;;  %1630 = vmatmul.mubr.f32.gmra.mrb[54].mxu0 %v12764_v6 }
 0x128   : > { %2284 = vmatprep.mubr.f32.mxu1 %v12277_v57  ;;  %1634 = vmatprep.mubr.f32.mxu0 %v12280_v58  ;;  %18390 = vst [vmem:[#allocation59_spill] sm:$0xff] %v12826_v2 }
 0x129   : > { %v12817_v44 = vld [vmem:[#allocation2 + $0x210] sm:$0xff] }
 0x12a   : > { %2717 = vst [vmem:[#allocation2 + $0x210] sm:$0xff] %v12800_v26 }
 0x12b   : > { %2285 = vmatmul.mubr.f32.gmra.mrb[30].mxu1 %v12764_v6  ;;  %1635 = vmatmul.mubr.f32.gmra.mrb[56].mxu0 %v12776_v37  ;;  %v12797_v6 = vld [vmem:[#allocation2 + $0x208] sm:$0xff] }
 0x12c   : > { %2289 = vmatprep.mubr.f32.mxu1 %v12280_v58  ;;  %1639 = vmatprep.mubr.f32.mxu0 %v12282_v61  ;;  %18388 = vst [vmem:[#allocation57_spill] sm:$0xff] %v12797_v6  ;;  %2716 = vst [vmem:[#allocation2 + $0x208] sm:$0xff] %v12800_v26 }
 0x12f   : > { %2290 = vmatmul.mubr.f32.gmra.mrb[32].mxu1 %v12776_v37  ;;  %1640 = vmatmul.mubr.f32.gmra.mrb[58].mxu0 %v12790_v10  ;;  %v9562_v37 = vpack.c.bf16 %v1410_v33, %v1409_v21  ;;  %v12830_v21 = vsel %vm1001_vm1, %v1078_v24, %v1080_v23  ;;  %v1412_v33 = vld [vmem:[%s18066_s6 + $0x428] sm:$0xff]  ;;  %v1414_v24 = vld [vmem:[%s18066_s6 + $0x438] sm:$0xff] }
 0x130   : > { %1644 = vmatprep.mubr.f32.mxu0 %v12287_v63  ;;  %2294 = vmatprep.mubr.f32.mxu1 %v12282_v61  ;;  %18391 = vst [vmem:[#allocation60_spill] sm:$0xff] %v12830_v21  ;;  %v9566_v8 = vpack.c.bf16 %v1412_v33, %v1411_v16  ;;  %v1345_v16 = vld [vmem:[%s18066_s6 + $0x210] sm:$0xff]  ;;  %v1346_v33 = vld [vmem:[%s18066_s6 + $0x218] sm:$0xff] }
 0x131   : > { %9563 = vmatprep.subr.bf16.mxu1 %v9562_v37 }
 0x132   : > { %9565 = vmatpush3.bf16.msra.mxu1 %v9562_v37  ;;  %v1413_v37 = vld [vmem:[%s18066_s6 + $0x430] sm:$0xff] }
 0x133   : > { %2295 = vmatmul.mubr.f32.gmra.mrb[34].mxu1 %v12790_v10  ;;  %1645 = vmatmul.mubr.f32.gmra.mrb[60].mxu0 %v12812_v56  ;;  %v1343_v10 = vld [vmem:[%s18066_s6 + $0x200] sm:$0xff]  ;;  %v9570_v32 = vpack.c.bf16 %v1414_v24, %v1413_v37  ;;  %v1137_v37 = vrot.slane %v12087_v59, 1  ;;  %v9466_v24 = vpack.c.bf16 %v1346_v33, %v1345_v16  ;;  %v1417_v16 = vld [vmem:[%s18066_s6 + $0x450] sm:$0xff]  ;;  %v1418_v33 = vld [vmem:[%s18066_s6 + $0x458] sm:$0xff] }
 0x134   : > { %2299 = vmatprep.mubr.f32.mxu1 %v12287_v63  ;;  %1649 = vmatprep.mubr.f32.mxu0 %v12307_v13  ;;  %v9463_v23 = vpack.c.bf16 %v1344_v55, %v1343_v10  ;;  %v1247_v63 = vrot.slane %v12797_v6, 7  ;;  %v1415_v55 = vld [vmem:[%s18066_s6 + $0x440] sm:$0xff]  ;;  %v1136_v10 = vrot.slane %v12073_v51, 1  ;;  %v1350_v59 = vld [vmem:[%s18066_s6 + $0x238] sm:$0xff] }
 0x135   : > { %9567 = vmatprep.subr.bf16.mxu1 %v9566_v8 }
 0x136   : > { %9569 = vmatpush3.bf16.msra.mxu1 %v9566_v8  ;;  %v1416_v8 = vld [vmem:[%s18066_s6 + $0x448] sm:$0xff] }
 0x137   : > { %2300 = vmatmul.mubr.f32.gmra.mrb[36].mxu1 %v12812_v56  ;;  %1650 = vmatmul.mubr.f32.gmra.mrb[62].mxu0 %v12830_v21  ;;  %v12857_v56 = vrot.slane %v12800_v26, 7 }
 0x138   : > { %1719 = vmatprep.mubr.f32.mxu0 %v12371_v45  ;;  %2304 = vmatprep.mubr.f32.mxu1 %v12307_v13  ;;  %v1135_v45 = vsel %vm1130_vm2, %v12826_v2, %v12826_v2  ;;  %v1348_v13 = vld [vmem:[%s18066_s6 + $0x228] sm:$0xff] }
 0x139   : > { %9571 = vmatprep.subr.bf16.mxu1 %v9570_v32 }
 0x13a   : > { %9573 = vmatpush3.bf16.msra.mxu1 %v9570_v32 }
 0x13b   : > { %2305 = vmatmul.mubr.f32.gmra.mrb[38].mxu1 %v12830_v21  ;;  %1720 = vmatmul.mubr.f32.vlgmr.msra.gmra.mrb[0].mxu0 %v12826_v2  ;;  %v9574_v21 = vpack.c.bf16 %v1416_v8, %v1415_v55  ;;  %v12898_v55 = vsel %vm1130_vm2, %v1136_v10, %v1137_v37  ;;  %v9578_v8 = vpack.c.bf16 %v1418_v33, %v1417_v16  ;;  %v1142_v10 = vrot.slane %v12099_v4, 1  ;;  %v1352_v16 = vld [vmem:[%s18066_s6 + $0x248] sm:$0xff] }
 0x13c   : > { %2309 = vmatprep.mubr.f32.mxu1 %v12797_v6  ;;  %9464 = vmatpush1.bf16.msra.mxu0 %v9463_v23  ;;  %v1347_v6 = vld [vmem:[%s18066_s6 + $0x220] sm:$0xff]  ;;  %v12885_v23 = vsel %vm1001_vm1, %v12857_v56, %v1247_v63 }
 0x13d   : > { %1724 = vmatprep.mubr.f32.mxu0 %v12394_v7  ;;  %9465 = vmatprep.subr.bf16.mxu0 %v18376_v14  ;;  %v1249_v7 = vrot.slane %v12817_v44, 7  ;;  %v9469_v32 = vpack.c.bf16 %v1348_v13, %v1347_v6  ;;  %v12914_v13 = vsel %vm1130_vm2, %v1137_v37, %v12826_v2  ;;  %v1141_v6 = vrot.slane %v12089_v60, 1 }
 0x13e   : > { %9575 = vmatprep.subr.bf16.mxu1 %v9574_v21 }
 0x13f   : > { %2310 = vmatmul.mubr.f32.gmra.mrb[40].mxu1 %v12885_v23  ;;  %1725 = vmatmul.mubr.f32.gmra.mrb[2].mxu0 %v1135_v45  ;;  %v1349_v45 = vld [vmem:[%s18066_s6 + $0x230] sm:$0xff]  ;;  %v12908_v51 = vsel %vm1001_vm1, %v1247_v63, %v1249_v7  ;;  %v1419_v63 = vld [vmem:[%s18066_s6 + $0x460] sm:$0xff]  ;;  %v12936_v33 = vsel %vm1130_vm2, %v1141_v6, %v1142_v10 }
 0x140   : > { %2314 = vmatprep.mubr.f32.mxu1 %v12817_v44  ;;  %1729 = vmatprep.mubr.f32.mxu0 %v12418_v25  ;;  %v1351_v7 = vld [vmem:[%s18066_s6 + $0x240] sm:$0xff]  ;;  %v1353_v6 = vld [vmem:[%s18066_s6 + $0x250] sm:$0xff] }
 0x141   : > { %9467 = vmatpush1.bf16.msra.mxu0 %v9466_v24  ;;  %9577 = vmatpush3.bf16.msra.mxu1 %v9574_v21  ;;  %v1420_v21 = vld [vmem:[%s18066_s6 + $0x468] sm:$0xff]  ;;  %v9472_v24 = vpack.c.bf16 %v1350_v59, %v1349_v45  ;;  %v1421_v59 = vld [vmem:[%s18066_s6 + $0x470] sm:$0xff]  ;;  %v1367_v25 = vld [vmem:[%s18066_s6 + $0x2c0] sm:$0xff] }
 0x142   : > { %9468 = vmatprep.subr.bf16.mxu0 %v18376_v14  ;;  %9579 = vmatprep.subr.bf16.mxu1 %v9578_v8  ;;  %v9582_v37 = vpack.c.bf16 %v1420_v21, %v1419_v63  ;;  %v1354_v63 = vld [vmem:[%s18066_s6 + $0x258] sm:$0xff]  ;;  %v12959_v21 = vsel %vm1130_vm2, %v1142_v10, %v12826_v2 }
 0x143   : > { %2315 = vmatmul.mubr.f32.gmra.mrb[42].mxu1 %v12908_v51  ;;  %1730 = vmatmul.mubr.f32.gmra.mrb[4].mxu0 %v12898_v55 }
 0x144   : > { %2319 = vmatprep.mubr.f32.mxu1 %v12800_v26  ;;  %1734 = vmatprep.mubr.f32.mxu0 %v12441_v40  ;;  %v1365_v40 = vld [vmem:[%s18066_s6 + $0x2b0] sm:$0xff] }
 0x145   : > { %9470 = vmatpush1.bf16.msra.mxu0 %v9469_v32  ;;  %9581 = vmatpush3.bf16.msra.mxu1 %v9578_v8  ;;  %v1422_v32 = vld [vmem:[%s18066_s6 + $0x478] sm:$0xff]  ;;  %v9475_v8 = vpack.c.bf16 %v1352_v16, %v1351_v7  ;;  %v1147_v7 = vrot.slane %v12108_v11, 1  ;;  %v9478_v16 = vpack.c.bf16 %v1354_v63, %v1353_v6 }
 0x146   : > { %9471 = vmatprep.subr.bf16.mxu0 %v18376_v14  ;;  %9583 = vmatprep.subr.bf16.mxu1 %v9582_v37  ;;  %v9586_v45 = vpack.c.bf16 %v1422_v32, %v1421_v59  ;;  %v1151_v32 = vrot.slane %v12110_v12, 1  ;;  %v1358_v6 = vld [vmem:[%s18066_s6 + $0x278] sm:$0xff] }
 0x147   : > { %2320 = vmatmul.mubr.f32.gmra.mrb[44].mxu1 %v12857_v56  ;;  %1735 = vmatmul.mubr.f32.gmra.mrb[6].mxu0 %v12914_v13  ;;  %v12991_v63 = vsel %vm1130_vm2, %v1147_v7, %v12826_v2 }
 0x148   : > { %2324 = vmatprep.mubr.f32.mxu1 %v12800_v26  ;;  %1739 = vmatprep.mubr.f32.mxu0 %v12465_v62  ;;  %v1363_v62 = vld [vmem:[%s18066_s6 + $0x2a0] sm:$0xff] }
 0x149   : > { %9473 = vmatpush1.bf16.msra.mxu0 %v9472_v24  ;;  %9585 = vmatpush3.bf16.msra.mxu1 %v9582_v37  ;;  %v1146_v24 = vrot.slane %v12101_v5, 1  ;;  %v1356_v37 = vld [vmem:[%s18066_s6 + $0x268] sm:$0xff] }
 0x14a   : > { %9474 = vmatprep.subr.bf16.mxu0 %v18376_v14  ;;  %9587 = vmatprep.subr.bf16.mxu1 %v9586_v45 }
 0x14b   : > { %2325 = vmatmul.mubr.f32.gmra.mrb[46].mxu1 %v12857_v56  ;;  %1740 = vmatmul.mubr.f32.gmra.mrb[8].mxu0 %v12936_v33  ;;  %v1355_v56 = vld [vmem:[%s18066_s6 + $0x260] sm:$0xff]  ;;  %v12974_v10 = vsel %vm1130_vm2, %v1146_v24, %v1147_v7  ;;  %v1360_v7 = vld [vmem:[%s18066_s6 + $0x288] sm:$0xff] }
 0x14c   : > { %9158 = vmatprep.mubr.f32.mxu1 %v12936_v33  ;;  %1744 = vmatprep.mubr.f32.mxu0 %v12488_v29  ;;  %v9481_v59 = vpack.c.bf16 %v1356_v37, %v1355_v56  ;;  %v1156_v56 = vrot.slane %v12127_v19, 1  ;;  %v1157_v37 = vrot.slane %v12142_v28, 1  ;;  %v1361_v29 = vld [vmem:[%s18066_s6 + $0x290] sm:$0xff] }
 0x14d   : > { %9476 = vmatpush1.bf16.msra.mxu0 %v9475_v8  ;;  %9589 = vmatpush3.bf16.msra.mxu1 %v9586_v45  ;;  %v1152_v8 = vrot.slane %v12125_v18, 1  ;;  %v1357_v45 = vld [vmem:[%s18066_s6 + $0x270] sm:$0xff] }
 0x14e   : > { %9477 = vmatprep.subr.bf16.mxu0 %v18376_v14  ;;  %9590 = vmatprep.subr.bf16.mxu1 %v18376_v14  ;;  %v9484_v24 = vpack.c.bf16 %v1358_v6, %v1357_v45  ;;  %v13014_v45 = vsel %vm1130_vm2, %v1156_v56, %v1157_v37  ;;  %v1161_v6 = vrot.slane %v12147_v31, 1 }
 0x14f   : > { %1745 = vmatmul.mubr.f32.gmra.mrb[10].mxu0 %v12959_v21 }
 0x150   : > { %1749 = vmatprep.mubr.f32.mxu0 %v12512_v50  ;;  %9159 = vmatmul.mubr.f32.vlgmr.msra.gmra.mrb[48].mxu1 %v12959_v21  ;;  %v1359_v50 = vld [vmem:[%s18066_s6 + $0x280] sm:$0xff] }
 0x151   : > { %9479 = vmatpush1.bf16.msra.mxu0 %v9478_v16  ;;  %9161 = vmatprep.mubr.f32.mxu1 %v12974_v10  ;;  %v12994_v16 = vsel %vm1130_vm2, %v1151_v32, %v1152_v8  ;;  %v9487_v32 = vpack.c.bf16 %v1360_v7, %v1359_v50  ;;  %v13031_v50 = vsel %vm1130_vm2, %v1157_v37, %v12826_v2  ;;  %v1166_v7 = vrot.slane %v12162_v39, 1  ;;  %v1364_v37 = vld [vmem:[%s18066_s6 + $0x2a8] sm:$0xff] }
 0x152   : > { %9480 = vmatprep.subr.bf16.mxu0 %v18376_v14 }
 0x153   : > { %1750 = vmatmul.mubr.f32.gmra.mrb[12].mxu0 %v12974_v10 }
 0x154   : > { %1754 = vmatprep.mubr.f32.mxu0 %v12535_v22  ;;  %9162 = vmatmul.mubr.f32.gmra.mrb[50].mxu1 %v12991_v63  ;;  %v1162_v22 = vrot.slane %v12160_v38, 1 }
 0x155   : > { %9482 = vmatpush1.bf16.msra.mxu0 %v9481_v59  ;;  %9164 = vmatprep.mubr.f32.mxu1 %v12994_v16  ;;  %v13011_v59 = vsel %vm1130_vm2, %v1152_v8, %v12826_v2  ;;  %v1362_v8 = vld [vmem:[%s18066_s6 + $0x298] sm:$0xff] }
 0x156   : > { %9483 = vmatprep.subr.bf16.mxu0 %v18376_v14  ;;  %v13034_v56 = vsel %vm1130_vm2, %v1161_v6, %v1162_v22 }
 0x157   : > { %1755 = vmatmul.mubr.f32.gmra.mrb[14].mxu0 %v12991_v63 }
 0x158   : > { %1759 = vmatprep.mubr.f32.mxu0 %v12559_v54  ;;  %9165 = vmatmul.mubr.f32.gmra.mrb[52].mxu1 %v13011_v59  ;;  %v1167_v54 = vrot.slane %v12174_v46, 1 }
 0x159   : > { %9485 = vmatpush1.bf16.msra.mxu0 %v9484_v24  ;;  %9167 = vmatprep.mubr.f32.mxu1 %v13014_v45  ;;  %v9490_v24 = vpack.c.bf16 %v1362_v8, %v1361_v29  ;;  %v13051_v29 = vsel %vm1130_vm2, %v1162_v22, %v12826_v2  ;;  %v1171_v8 = vrot.slane %v12181_v53, 1  ;;  %v1366_v22 = vld [vmem:[%s18066_s6 + $0x2b8] sm:$0xff] }
 0x15a   : > { %9486 = vmatprep.subr.bf16.mxu0 %v18376_v14  ;;  %v13054_v6 = vsel %vm1130_vm2, %v1166_v7, %v1167_v54  ;;  %v1176_v7 = vrot.slane %v12198_v3, 1 }
 0x15b   : > { %1760 = vmatmul.mubr.f32.gmra.mrb[16].mxu0 %v12994_v16 }
 0x15c   : > { %1764 = vmatprep.mubr.f32.mxu0 %v12582_v43  ;;  %9168 = vmatmul.mubr.f32.gmra.mrb[54].mxu1 %v13031_v50  ;;  %v1172_v43 = vrot.slane %v12196_v0, 1 }
 0x15d   : > { %9488 = vmatpush1.bf16.msra.mxu0 %v9487_v32  ;;  %9170 = vmatprep.mubr.f32.mxu1 %v13034_v56  ;;  %v9493_v32 = vpack.c.bf16 %v1364_v37, %v1363_v62  ;;  %v13071_v62 = vsel %vm1130_vm2, %v1167_v54, %v12826_v2  ;;  %v1177_v37 = vrot.slane %v12214_v15, 1  ;;  %v1368_v54 = vld [vmem:[%s18066_s6 + $0x2c8] sm:$0xff]  ;;  %v1369_v15 = vld [vmem:[%s18066_s6 + $0x2d0] sm:$0xff] }
 0x15e   : > { %9489 = vmatprep.subr.bf16.mxu0 %v18376_v14 }
 0x15f   : > { %1765 = vmatmul.mubr.f32.gmra.mrb[18].mxu0 %v13011_v59 }
 0x160   : > { %1769 = vmatprep.mubr.f32.mxu0 %v12606_v9  ;;  %9171 = vmatmul.mubr.f32.gmra.mrb[56].mxu1 %v13051_v29  ;;  %v9496_v9 = vpack.c.bf16 %v1366_v22, %v1365_v40  ;;  %v13091_v40 = vsel %vm1130_vm2, %v1172_v43, %v12826_v2  ;;  %v1182_v22 = vrot.slane %v12228_v27, 1  ;;  %v1371_v27 = vld [vmem:[%s18066_s6 + $0x2e0] sm:$0xff] }
 0x161   : > { %9491 = vmatpush1.bf16.msra.mxu0 %v9490_v24  ;;  %9173 = vmatprep.mubr.f32.mxu1 %v13054_v6  ;;  %v13074_v24 = vsel %vm1130_vm2, %v1171_v8, %v1172_v43  ;;  %v1181_v8 = vrot.slane %v12217_v20, 1  ;;  %v1370_v43 = vld [vmem:[%s18066_s6 + $0x2d8] sm:$0xff] }
 0x162   : > { %9492 = vmatprep.subr.bf16.mxu0 %v18376_v14 }
 0x163   : > { %1770 = vmatmul.mubr.f32.gmra.mrb[20].mxu0 %v13014_v45 }
 0x164   : > { %1774 = vmatprep.mubr.f32.mxu0 %v12629_v17  ;;  %9174 = vmatmul.mubr.f32.gmra.mrb[58].mxu1 %v13071_v62  ;;  %v9499_v17 = vpack.c.bf16 %v1368_v54, %v1367_v25  ;;  %v13111_v25 = vsel %vm1130_vm2, %v1177_v37, %v12826_v2  ;;  %v1187_v54 = vrot.slane %v12243_v41, 1  ;;  %v1373_v41 = vld [vmem:[%s18066_s6 + $0x2f0] sm:$0xff] }
 0x165   : > { %9494 = vmatpush1.bf16.msra.mxu0 %v9493_v32  ;;  %9176 = vmatprep.mubr.f32.mxu1 %v13074_v24  ;;  %v13094_v32 = vsel %vm1130_vm2, %v1176_v7, %v1177_v37  ;;  %v1186_v7 = vrot.slane %v12233_v34, 1 }
 0x166   : > { %9495 = vmatprep.subr.bf16.mxu0 %v18376_v14 }
 0x167   : > { %1775 = vmatmul.mubr.f32.gmra.mrb[22].mxu0 %v13031_v50 }
 0x168   : > { %1779 = vmatprep.mubr.f32.mxu0 %v12645_v35  ;;  %9177 = vmatmul.mubr.f32.gmra.mrb[60].mxu1 %v13091_v40  ;;  %v9502_v35 = vpack.c.bf16 %v1370_v43, %v1369_v15  ;;  %v13131_v15 = vsel %vm1130_vm2, %v1182_v22, %v12826_v2  ;;  %v1192_v43 = vrot.slane %v12255_v47, 1 }
 0x169   : > { %9497 = vmatpush1.bf16.msra.mxu0 %v9496_v9  ;;  %9179 = vmatprep.mubr.f32.mxu1 %v13094_v32  ;;  %v13114_v9 = vsel %vm1130_vm2, %v1181_v8, %v1182_v22  ;;  %v1191_v8 = vrot.slane %v12249_v42, 1 }
 0x16a   : > { %9498 = vmatprep.subr.bf16.mxu0 %v18376_v14 }
 0x16b   : > { %1780 = vmatmul.mubr.f32.gmra.mrb[24].mxu0 %v13034_v56 }
 0x16c   : > { %1784 = vmatprep.mubr.f32.mxu0 %v12660_v48  ;;  %v1372_v48 = vld [vmem:[%s18066_s6 + $0x2e8] sm:$0xff]  ;;  %9180 = vmatmul.mubr.f32.gmra.mrb[62].mxu1 %v13111_v25 }
 0x16d   : > { %9500 = vmatpush1.bf16.msra.mxu0 %v9499_v17  ;;  %9182 = vmatprep.mubr.f32.mxu1 %v13114_v9  ;;  %v9505_v37 = vpack.c.bf16 %v1372_v48, %v1371_v27  ;;  %v13134_v17 = vsel %vm1130_vm2, %v1186_v7, %v1187_v54  ;;  %v13151_v27 = vsel %vm1130_vm2, %v1187_v54, %v12826_v2  ;;  %v1196_v7 = vrot.slane %v12258_v49, 1 }
 0x16e   : > { %9501 = vmatprep.subr.bf16.mxu0 %v18376_v14  ;;  %v1197_v48 = vrot.slane %v12277_v57, 1  ;;  %v1201_v54 = vrot.slane %v12280_v58, 1  ;;  %v18406_v57 = vld [vmem:[#allocation60_spill] sm:$0xff] }
 0x16f   : > { %1785 = vmatmul.mubr.f32.gmra.mrb[26].mxu0 %v13051_v29 }
 0x170   : > { %1789 = vmatprep.mubr.f32.mxu0 %v12670_v52  ;;  %v1374_v52 = vld [vmem:[%s18066_s6 + $0x2f8] sm:$0xff]  ;;  %9183 = vmatmul.mubr.f32.gmra.mrb[64].mxu1 %v13131_v15 }
 0x171   : > { %9503 = vmatpush1.bf16.msra.mxu0 %v9502_v35  ;;  %9185 = vmatprep.mubr.f32.mxu1 %v13134_v17  ;;  %v9508_v22 = vpack.c.bf16 %v1374_v52, %v1373_v41  ;;  %v13154_v35 = vsel %vm1130_vm2, %v1191_v8, %v1192_v43  ;;  %v13165_v41 = vsel %vm1130_vm2, %v1192_v43, %v12826_v2  ;;  %v18392_v43 = vld [vmem:[#allocation22_spill] sm:$0xff] }
 0x172   : > { %9504 = vmatprep.subr.bf16.mxu0 %v18376_v14  ;;  %v1206_v52 = vrot.slane %v18392_v43, 1  ;;  %v18401_v43 = vld [vmem:[#allocation54_spill] sm:$0xff] }
 0x173   : > { %1790 = vmatmul.mubr.f32.gmra.mrb[28].mxu0 %v13054_v6 }
 0x174   : > { %1794 = vmatprep.mubr.f32.mxu0 %v12679_v30  ;;  %9186 = vmatmul.mubr.f32.gmra.mrb[66].mxu1 %v13151_v27  ;;  %v13168_v30 = vsel %vm1130_vm2, %v1196_v7, %v1197_v48 }
 0x175   : > { %9506 = vmatpush1.bf16.msra.mxu0 %v9505_v37  ;;  %9188 = vmatprep.mubr.f32.mxu1 %v13154_v35  ;;  %v1202_v37 = vrot.slane %v12282_v61, 1  ;;  %v18394_v61 = vld [vmem:[#allocation47_spill] sm:$0xff] }
 0x176   : > { %9507 = vmatprep.subr.bf16.mxu0 %v18376_v14 }
 0x177   : > { %1795 = vmatmul.mubr.f32.gmra.mrb[30].mxu0 %v13071_v62  ;;  %v13182_v8 = vsel %vm1130_vm2, %v1201_v54, %v1202_v37  ;;  %v18395_v54 = vld [vmem:[#allocation48_spill] sm:$0xff] }
 0x178   : > { %1799 = vmatprep.mubr.f32.mxu0 %v12688_v36  ;;  %9189 = vmatmul.mubr.f32.gmra.mrb[68].mxu1 %v13165_v41  ;;  %v13179_v36 = vsel %vm1130_vm2, %v1197_v48, %v12826_v2 }
 0x179   : > { %9509 = vmatpush1.bf16.msra.mxu0 %v9508_v22  ;;  %9191 = vmatprep.mubr.f32.mxu1 %v13168_v30  ;;  %v18393_v22 = vld [vmem:[#allocation24_spill] sm:$0xff] }
 0x17a   : > { %9510 = vmatprep.subr.bf16.mxu0 %v18376_v14  ;;  %v1207_v7 = vrot.slane %v18393_v22, 1 }
 0x17b   : > { %1800 = vmatmul.mubr.f32.gmra.mrb[32].mxu0 %v13074_v24 }
 0x17c   : > { %1804 = vmatprep.mubr.f32.mxu0 %v12696_v1  ;;  %9192 = vmatmul.mubr.f32.gmra.mrb[70].mxu1 %v13179_v36  ;;  %v13192_v1 = vsel %vm1130_vm2, %v1202_v37, %v12826_v2  ;;  %v13195_v48 = vsel %vm1130_vm2, %v1206_v52, %v1207_v7  ;;  %v13203_v22 = vsel %vm1130_vm2, %v1207_v7, %v12826_v2  ;;  %v18397_v37 = vld [vmem:[#allocation50_spill] sm:$0xff]  ;;  %v18398_v52 = vld [vmem:[#allocation51_spill] sm:$0xff]  ;;  %v18400_v7 = vld [vmem:[#allocation53_spill] sm:$0xff] }
 0x17d   : > { %9194 = vmatprep.mubr.f32.mxu1 %v13182_v8 }
 0x17f   : > { %1805 = vmatmul.mubr.f32.gmra.mrb[34].mxu0 %v13091_v40 }
 0x180   : > { %1809 = vmatprep.mubr.f32.mxu0 %v18394_v61  ;;  %9195 = vmatmul.mubr.f32.gmra.mrb[72].mxu1 %v13192_v1  ;;  %v18396_v61 = vld [vmem:[#allocation49_spill] sm:$0xff] }
 0x181   : > { %9197 = vmatprep.mubr.f32.mxu1 %v13195_v48 }
 0x183   : > { %1810 = vmatmul.mubr.f32.gmra.mrb[36].mxu0 %v13094_v32 }
 0x184   : > { %1814 = vmatprep.mubr.f32.mxu0 %v18395_v54  ;;  %9198 = vmatmul.mubr.f32.gmra.mrb[74].mxu1 %v13203_v22  ;;  %v18399_v54 = vld [vmem:[#allocation52_spill] sm:$0xff] }
 0x187   : > { %1815 = vmatmul.mubr.f32.gmra.mrb[38].mxu0 %v13111_v25 }
 0x188   : > { %1819 = vmatprep.mubr.f32.mxu0 %v18396_v61  ;;  %v18402_v61 = vld [vmem:[#allocation55_spill] sm:$0xff] }
 0x18b   : > { %1820 = vmatmul.mubr.f32.gmra.mrb[40].mxu0 %v13114_v9 }
 0x18c   : > { %1824 = vmatprep.mubr.f32.mxu0 %v18397_v37  ;;  %v18403_v37 = vld [vmem:[#allocation56_spill] sm:$0xff] }
 0x18f   : > { %1825 = vmatmul.mubr.f32.gmra.mrb[42].mxu0 %v13131_v15 }
 0x190   : > { %1829 = vmatprep.mubr.f32.mxu0 %v18398_v52  ;;  %v18404_v52 = vld [vmem:[#allocation58_spill] sm:$0xff] }
 0x193   : > { %1830 = vmatmul.mubr.f32.gmra.mrb[44].mxu0 %v13134_v17 }
 0x194   : > { %1834 = vmatprep.mubr.f32.mxu0 %v18399_v54  ;;  %v18405_v54 = vld [vmem:[#allocation57_spill] sm:$0xff] }
 0x195   : > { %v1254_v58 = vrot.slane %v18405_v54, 1 }
 0x197   : > { %1835 = vmatmul.mubr.f32.gmra.mrb[46].mxu0 %v13151_v27 }
 0x198   : > { %1839 = vmatprep.mubr.f32.mxu0 %v18400_v7  ;;  %v1255_v7 = vrot.slane %v12817_v44, 1 }
 0x19b   : > { %1840 = vmatmul.mubr.f32.gmra.mrb[48].mxu0 %v13154_v35 }
 0x19c   : > { %1844 = vmatprep.mubr.f32.mxu0 %v18401_v43  ;;  %v13229_v43 = vsel %vm1130_vm2, %v1254_v58, %v1255_v7  ;;  %v18408_v58 = vld [vmem:[#allocation18_spill] sm:$0xff] }
 0x19d   : > { %9200 = vmatprep.mubr.f32.mxu1 %v13229_v43 }
 0x19f   : > { %1845 = vmatmul.mubr.f32.gmra.mrb[50].mxu0 %v13165_v41 }
 0x1a0   : > { %1849 = vmatprep.mubr.f32.mxu0 %v18402_v61  ;;  %v13234_v61 = vsel %vm1130_vm2, %v1255_v7, %v12826_v2  ;;  %v18417_v7 = vld [vmem:[#allocation33_spill] sm:$0xff] }
 0x1a1   : > { %9201 = vmatmul.mubr.f32.gmra.mrb[76].mxu1 %v13234_v61 }
 0x1a2   : > { %9203 = vmatprep.mubr.f32.mxu1 %v12826_v2 }
 0x1a3   : > { %1850 = vmatmul.mubr.f32.gmra.mrb[52].mxu0 %v13168_v30 }
 0x1a4   : > { %1854 = vmatprep.mubr.f32.mxu0 %v18403_v37 }
 0x1a5   : > { %9204 = vmatmul.mubr.f32.gmra.mrb[78].mxu1 %v12826_v2 }
 0x1a6   : > { %3367 = vmatprep.mubr.f32.mxu1 %v12800_v26  ;;  %v18411_v26 = vld [vmem:[#allocation25_spill] sm:$0xff] }
 0x1a7   : > { %1855 = vmatmul.mubr.f32.gmra.mrb[54].mxu0 %v13179_v36 }
 0x1a8   : > { %1859 = vmatprep.mubr.f32.mxu0 %v18404_v52 }
 0x1ab   : > { %1860 = vmatmul.mubr.f32.gmra.mrb[56].mxu0 %v13182_v8 }
 0x1ac   : > { %1864 = vmatprep.mubr.f32.mxu0 %v18406_v57  ;;  %v18407_v57 = vld [vmem:[#allocation13_spill] sm:$0xff] }
 0x1af   : > { %1865 = vmatmul.mubr.f32.gmra.mrb[58].mxu0 %v13192_v1 }
 0x1b0   : > { %1869 = vmatprep.mubr.f32.mxu0 %v12885_v23  ;;  %v18409_v23 = vld [vmem:[#allocation14_spill] sm:$0xff] }
 0x1b3   : > { %1870 = vmatmul.mubr.f32.gmra.mrb[60].mxu0 %v13195_v48 }
 0x1b4   : > { %1874 = vmatprep.mubr.f32.mxu0 %v12908_v51  ;;  %v18410_v51 = vld [vmem:[#allocation23_spill] sm:$0xff] }
 0x1b7   : > { %1875 = vmatmul.mubr.f32.gmra.mrb[62].mxu0 %v13203_v22 }
 0x1b8   : > { %1944 = vmatprep.mubr.f32.mxu0 %v12898_v55  ;;  %v18412_v55 = vld [vmem:[#allocation26_spill] sm:$0xff] }
 0x1bb   : > { %1945 = vmatmul.mubr.f32.vlgmr.msra.gmra.mrb[0].mxu0 %v18407_v57 }
 0x1bc   : > { %9512 = vmatpush1.bf16.msra.mxu0 %v18408_v58  ;;  %1949 = vmatprep.mubr.f32.mxu0 %v12914_v13  ;;  %v18413_v13 = vld [vmem:[#allocation27_spill] sm:$0xff] }
 0x1bd   : > { %9513 = vmatprep.subr.bf16.mxu0 %v18376_v14 }
 0x1bf   : > { %1950 = vmatmul.mubr.f32.gmra.mrb[2].mxu0 %v18409_v23 }
 0x1c0   : > { %1954 = vmatprep.mubr.f32.mxu0 %v12936_v33  ;;  %9515 = vmatpush1.bf16.msra.mxu0 %v18410_v51  ;;  %v18414_v33 = vld [vmem:[#allocation28_spill] sm:$0xff]  ;;  %v18418_v51 = vld [vmem:[#allocation35_spill] sm:$0xff] }
 0x1c1   : > { %9516 = vmatprep.subr.bf16.mxu0 %v18376_v14 }
 0x1c3   : > { %1955 = vmatmul.mubr.f32.gmra.mrb[4].mxu0 %v12089_v60 }
 0x1c4   : > { %1959 = vmatprep.mubr.f32.mxu0 %v12959_v21  ;;  %9518 = vmatpush1.bf16.msra.mxu0 %v18411_v26  ;;  %v18415_v21 = vld [vmem:[#allocation29_spill] sm:$0xff] }
 0x1c5   : > { %9519 = vmatprep.subr.bf16.mxu0 %v18376_v14 }
 0x1c7   : > { %1960 = vmatmul.mubr.f32.gmra.mrb[6].mxu0 %v12099_v4 }
 0x1c8   : > { %1964 = vmatprep.mubr.f32.mxu0 %v12974_v10  ;;  %9521 = vmatpush1.bf16.msra.mxu0 %v18412_v55  ;;  %v13275_v10 = vpop.f32.mrb[0].mxu1 }
 0x1c9   : > { %9522 = vmatprep.subr.bf16.mxu0 %v18376_v14 }
 0x1cb   : > { %1965 = vmatmul.mubr.f32.gmra.mrb[8].mxu0 %v12101_v5 }
 0x1cc   : > { %1969 = vmatprep.mubr.f32.mxu0 %v12991_v63  ;;  %9524 = vmatpush1.bf16.msra.mxu0 %v18413_v13  ;;  %v18416_v63 = vld [vmem:[#allocation31_spill] sm:$0xff] }
 0x1cd   : > { %9525 = vmatprep.subr.bf16.mxu0 %v18376_v14 }
 0x1cf   : > { %1970 = vmatmul.mubr.f32.gmra.mrb[10].mxu0 %v12108_v11 }
 0x1d0   : > { %1974 = vmatprep.mubr.f32.mxu0 %v12994_v16  ;;  %9527 = vmatpush1.bf16.msra.mxu0 %v18414_v33  ;;  %v2213_v16 = vpop.f32.mrb[1].mxu1  ;;  %v18419_v33 = vld [vmem:[#allocation37_spill] sm:$0xff] }
 0x1d1   : > { %9528 = vmatprep.subr.bf16.mxu0 %v18376_v14  ;;  %v13280_v37 = vpop.f32.mrb[2].mxu1 }
 0x1d2   : > { %v2218_v52 = vpop.f32.mrb[3].mxu1 }
 0x1d3   : > { %1975 = vmatmul.mubr.f32.gmra.mrb[12].mxu0 %v12110_v12  ;;  %v18420_v52 = vld [vmem:[#allocation39_spill] sm:$0xff] }
 0x1d4   : > { %1979 = vmatprep.mubr.f32.mxu0 %v13011_v59  ;;  %9530 = vmatpush1.bf16.msra.mxu0 %v18415_v21  ;;  %v13283_v59 = vpop.f32.mrb[4].mxu1 }
 0x1d5   : > { %9531 = vmatprep.subr.bf16.mxu0 %v18376_v14  ;;  %v2223_v57 = vpop.f32.mrb[5].mxu1 }
 0x1d7   : > { %1980 = vmatmul.mubr.f32.gmra.mrb[14].mxu0 %v12125_v18 }
 0x1d8   : > { %1984 = vmatprep.mubr.f32.mxu0 %v13014_v45  ;;  %9533 = vmatpush1.bf16.msra.mxu0 %v18416_v63  ;;  %v13288_v45 = vpop.f32.mrb[6].mxu1 }
 0x1d9   : > { %9534 = vmatprep.subr.bf16.mxu0 %v18376_v14  ;;  %v2228_v58 = vpop.f32.mrb[7].mxu1 }
 0x1da   : > { %v13291_v23 = vpop.f32.mrb[8].mxu1  ;;  %v18421_v58 = vld [vmem:[#allocation41_spill] sm:$0xff] }
 0x1db   : > { %1985 = vmatmul.mubr.f32.gmra.mrb[16].mxu0 %v12127_v19  ;;  %v2233_v26 = vpop.f32.mrb[9].mxu1 }
 0x1dc   : > { %1989 = vmatprep.mubr.f32.mxu0 %v13031_v50  ;;  %9536 = vmatpush1.bf16.msra.mxu0 %v18417_v7  ;;  %v13296_v50 = vpop.f32.mrb[10].mxu1  ;;  %v18422_v26 = vld [vmem:[#allocation43_spill] sm:$0xff] }
 0x1dd   : > { %9537 = vmatprep.subr.bf16.mxu0 %v18376_v14  ;;  %v2238_v55 = vpop.f32.mrb[11].mxu1 }
 0x1de   : > { %v13299_v13 = vpop.f32.mrb[12].mxu1 }
 0x1df   : > { %1990 = vmatmul.mubr.f32.gmra.mrb[18].mxu0 %v12142_v28  ;;  %v2243_v21 = vpop.f32.mrb[13].mxu1 }
 0x1e0   : > { %1994 = vmatprep.mubr.f32.mxu0 %v13034_v56  ;;  %9539 = vmatpush1.bf16.msra.mxu0 %v18418_v51  ;;  %v13304_v56 = vpop.f32.mrb[14].mxu1 }
 0x1e1   : > { %9540 = vmatprep.subr.bf16.mxu0 %v18376_v14  ;;  %v2248_v63 = vpop.f32.mrb[15].mxu1 }
 0x1e2   : > { %v13307_v16 = vpop.f32.mrb[16].mxu1 }
 0x1e3   : > { %1995 = vmatmul.mubr.f32.gmra.mrb[20].mxu0 %v12147_v31  ;;  %v2253_v31 = vpop.f32.mrb[17].mxu1 }
 0x1e4   : > { %1999 = vmatprep.mubr.f32.mxu0 %v13051_v29  ;;  %9542 = vmatpush1.bf16.msra.mxu0 %v18419_v33 }
 0x1e5   : > { %9543 = vmatprep.subr.bf16.mxu0 %v18376_v14 }
 0x1e6   : > { %v13312_v29 = vpop.f32.mrb[18].mxu1 }
 0x1e7   : > { %2000 = vmatmul.mubr.f32.gmra.mrb[22].mxu0 %v12160_v38  ;;  %v2258_v7 = vpop.f32.mrb[19].mxu1 }
 0x1e8   : > { %2004 = vmatprep.mubr.f32.mxu0 %v13054_v6  ;;  %9545 = vmatpush1.bf16.msra.mxu0 %v18420_v52  ;;  %v18425_v52 = vld [vmem:[#allocation15_spill] sm:$0xff] }
 0x1e9   : > { %9546 = vmatprep.subr.bf16.mxu0 %v18376_v14 }
 0x1ea   : > { %v13315_v57 = vpop.f32.mrb[20].mxu1 }
 0x1eb   : > { %2005 = vmatmul.mubr.f32.gmra.mrb[24].mxu0 %v12162_v39  ;;  %v2263_v38 = vpop.f32.mrb[21].mxu1 }
 0x1ec   : > { %2009 = vmatprep.mubr.f32.mxu0 %v13071_v62  ;;  %9548 = vmatpush1.bf16.msra.mxu0 %v18421_v58  ;;  %v18423_v62 = vld [vmem:[#allocation45_spill] sm:$0xff] }
 0x1ed   : > { %9549 = vmatprep.subr.bf16.mxu0 %v18376_v14 }
 0x1ee   : > { %v13320_v6 = vpop.f32.mrb[22].mxu1 }
 0x1ef   : > { %v2268_v51 = vpop.f32.mrb[23].mxu1  ;;  %2010 = vmatmul.mubr.f32.gmra.mrb[26].mxu0 %v12174_v46 }
 0x1f0   : > { %2014 = vmatprep.mubr.f32.mxu0 %v13074_v24  ;;  %9551 = vmatpush1.bf16.msra.mxu0 %v18422_v26  ;;  %v18424_v24 = vld [vmem:[#allocation46_spill] sm:$0xff] }
 0x1f1   : > { %9552 = vmatprep.subr.bf16.mxu0 %v18376_v14 }
 0x1f2   : > { %v13326_v39 = vpop.f32.mrb[24].mxu1 }
 0x1f3   : > { %v2273_v55 = vpop.f32.mrb[25].mxu1  ;;  %2015 = vmatmul.mubr.f32.gmra.mrb[28].mxu0 %v12181_v53 }
 0x1f4   : > { %2019 = vmatprep.mubr.f32.mxu0 %v13091_v40  ;;  %9554 = vmatpush1.bf16.msra.mxu0 %v18423_v62  ;;  %v18432_v62 = vld [vmem:[#allocation21_spill] sm:$0xff] }
 0x1f5   : > { %9555 = vmatprep.subr.bf16.mxu0 %v18376_v14 }
 0x1f6   : > { %v13332_v33 = vpop.f32.mrb[26].mxu1 }
 0x1f7   : > { %v2278_v46 = vpop.f32.mrb[27].mxu1  ;;  %2020 = vmatmul.mubr.f32.gmra.mrb[30].mxu0 %v12196_v0 }
 0x1f8   : > { %2024 = vmatprep.mubr.f32.mxu0 %v13094_v32  ;;  %9557 = vmatpush1.bf16.msra.mxu0 %v18424_v24  ;;  %v18435_v46 = vld [vmem:[#allocation22_spill] sm:$0xff] }
 0x1fa   : > { %v13337_v21 = vpop.f32.mrb[28].mxu1 }
 0x1fb   : > { %v2283_v63 = vpop.f32.mrb[29].mxu1  ;;  %2025 = vmatmul.mubr.f32.gmra.mrb[32].mxu0 %v12198_v3  ;;  %v18426_v3 = vld [vmem:[#allocation16_spill] sm:$0xff] }
 0x1fc   : > { %2029 = vmatprep.mubr.f32.mxu0 %v13111_v25 }
 0x1fe   : > { %v13341_v53 = vpop.f32.mrb[30].mxu1 }
 0x1ff   : > { %v2288_v40 = vpop.f32.mrb[31].mxu1  ;;  %2030 = vmatmul.mubr.f32.gmra.mrb[34].mxu0 %v18425_v52 }
 0x200   : > { %2034 = vmatprep.mubr.f32.mxu0 %v13114_v9 }
 0x202   : > { %v13345_v31 = vpop.f32.mrb[32].mxu1 }
 0x203   : > { %v2293_v0 = vpop.f32.mrb[33].mxu1  ;;  %2035 = vmatmul.mubr.f32.gmra.mrb[36].mxu0 %v12217_v20  ;;  %v18427_v20 = vld [vmem:[#allocation17_spill] sm:$0xff] }
 0x204   : > { %2039 = vmatprep.mubr.f32.mxu0 %v13131_v15 }
 0x206   : > { %v13349_v32 = vpop.f32.mrb[34].mxu1 }
 0x207   : > { %v2298_v7 = vpop.f32.mrb[35].mxu1  ;;  %2040 = vmatmul.mubr.f32.gmra.mrb[38].mxu0 %v18426_v3  ;;  %v18443_v3 = vld [vmem:[#allocation34_spill] sm:$0xff] }
 0x208   : > { %2044 = vmatprep.mubr.f32.mxu0 %v13134_v17  ;;  %v18442_v7 = vld [vmem:[#allocation32_spill] sm:$0xff] }
 0x20a   : > { %v13353_v25 = vpop.f32.mrb[36].mxu1 }
 0x20b   : > { %v2303_v58 = vpop.f32.mrb[37].mxu1  ;;  %2045 = vmatmul.mubr.f32.gmra.mrb[40].mxu0 %v12233_v34 }
 0x20c   : > { %2049 = vmatprep.mubr.f32.mxu0 %v13151_v27 }
 0x20e   : > { %v13357_v9 = vpop.f32.mrb[38].mxu1 }
 0x20f   : > { %v2308_v38 = vpop.f32.mrb[39].mxu1  ;;  %2050 = vmatmul.mubr.f32.gmra.mrb[42].mxu0 %v18427_v20 }
 0x210   : > { %2054 = vmatprep.mubr.f32.mxu0 %v13154_v35 }
 0x212   : > { %v13361_v15 = vpop.f32.mrb[40].mxu1 }
 0x213   : > { %v2313_v51 = vpop.f32.mrb[41].mxu1  ;;  %2055 = vmatmul.mubr.f32.gmra.mrb[44].mxu0 %v12249_v42  ;;  %v18428_v42 = vld [vmem:[#allocation19_spill] sm:$0xff] }
 0x214   : > { %2059 = vmatprep.mubr.f32.mxu0 %v13165_v41  ;;  %v18429_v41 = vld [vmem:[#allocation20_spill] sm:$0xff] }
 0x215   : > { %v3152_v51 = vld [vmem:[%s18068_s8] sm:$0xff] }
 0x216   : > { %v13365_v17 = vpop.f32.mrb[42].mxu1 }
 0x217   : > { %v2318_v26 = vpop.f32.mrb[43].mxu1  ;;  %2060 = vmatmul.mubr.f32.gmra.mrb[46].mxu0 %v12255_v47 }
 0x218   : > { %2064 = vmatprep.mubr.f32.mxu0 %v13168_v30 }
 0x21a   : > { %v13369_v34 = vpop.f32.mrb[44].mxu1 }
 0x21b   : > { %v2323_v27 = vpop.f32.mrb[45].mxu1  ;;  %2065 = vmatmul.mubr.f32.gmra.mrb[48].mxu0 %v12258_v49 }
 0x21c   : > { %2069 = vmatprep.mubr.f32.mxu0 %v13179_v36 }
 0x21e   : > { %v13373_v35 = vpop.f32.mrb[46].mxu1 }
 0x21f   : > { %v2328_v55 = vpop.f32.mrb[47].mxu1  ;;  %2070 = vmatmul.mubr.f32.gmra.mrb[50].mxu0 %v18428_v42 }
 0x220   : > { %2074 = vmatprep.mubr.f32.mxu0 %v13182_v8  ;;  %v3155_v55 = vld [vmem:[%s18068_s8 + $0x18] sm:$0xff] }
 0x223   : > { %2075 = vmatmul.mubr.f32.gmra.mrb[52].mxu0 %v18429_v41  ;;  %v13379_v47 = vpop.f32.mrb[48].mxu1  ;;  %v3156_v41 = vld [vmem:[%s18068_s8 + $0x20] sm:$0xff] }
 0x224   : > { %2079 = vmatprep.mubr.f32.mxu0 %v13192_v1  ;;  %18430 = vst [vmem:[#allocation47_spill] sm:$0xff] %v13379_v47  ;;  %v13381_v30 = vpop.f32.mrb[49].mxu1  ;;  %v18438_v1 = vld [vmem:[#allocation24_spill] sm:$0xff] }
 0x225   : > { %18431 = vst [vmem:[#allocation48_spill] sm:$0xff] %v13381_v30 }
 0x227   : > { %2080 = vmatmul.mubr.f32.gmra.mrb[54].mxu0 %v18432_v62  ;;  %v13385_v49 = vpop.f32.mrb[50].mxu1  ;;  %v3157_v62 = vld [vmem:[%s18068_s8 + $0x28] sm:$0xff] }
 0x228   : > { %2084 = vmatprep.mubr.f32.mxu0 %v13195_v48  ;;  %18433 = vst [vmem:[#allocation49_spill] sm:$0xff] %v13385_v49  ;;  %v13387_v36 = vpop.f32.mrb[51].mxu1 }
 0x229   : > { %18434 = vst [vmem:[#allocation50_spill] sm:$0xff] %v13387_v36 }
 0x22b   : > { %2085 = vmatmul.mubr.f32.gmra.mrb[56].mxu0 %v18435_v46  ;;  %v13391_v8 = vpop.f32.mrb[52].mxu1 }
 0x22c   : > { %2089 = vmatprep.mubr.f32.mxu0 %v13203_v22  ;;  %18436 = vst [vmem:[#allocation51_spill] sm:$0xff] %v13391_v8  ;;  %v13393_v24 = vpop.f32.mrb[53].mxu1  ;;  %v3184_v8 = vld [vmem:[%s18068_s8 + $0x100] sm:$0xff] }
 0x22d   : > { %18437 = vst [vmem:[#allocation52_spill] sm:$0xff] %v13393_v24 }
 0x22f   : > { %2090 = vmatmul.mubr.f32.gmra.mrb[58].mxu0 %v18438_v1  ;;  %v13397_v63 = vpop.f32.mrb[54].mxu1  ;;  %v9597_v1 = vpack.c.bf16 %v3157_v62, %v3156_v41 }
 0x230   : > { %2094 = vmatprep.mubr.f32.mxu0 %v13229_v43  ;;  %18439 = vst [vmem:[#allocation53_spill] sm:$0xff] %v13397_v63  ;;  %v13399_v40 = vpop.f32.mrb[55].mxu1  ;;  %v18441_v43 = vld [vmem:[#allocation30_spill] sm:$0xff] }
 0x231   : > { %18440 = vst [vmem:[#allocation54_spill] sm:$0xff] %v13399_v40  ;;  %v3181_v63 = vld [vmem:[%s18068_s8 + $0xe8] sm:$0xff]  ;;  %v3183_v40 = vld [vmem:[%s18068_s8 + $0xf8] sm:$0xff] }
 0x233   : > { %2095 = vmatmul.mubr.f32.gmra.mrb[60].mxu0 %v18405_v54  ;;  %v13403_v48 = vpop.f32.mrb[56].mxu1 }
 0x234   : > { %2099 = vmatprep.mubr.f32.mxu0 %v13234_v61  ;;  %v13405_v52 = vpop.f32.mrb[57].mxu1 }
 0x237   : > { %2100 = vmatmul.mubr.f32.gmra.mrb[62].mxu0 %v12817_v44  ;;  %v13409_v22 = vpop.f32.mrb[58].mxu1 }
 0x238   : > { %2169 = vmatprep.mubr.f32.mxu0 %v12089_v60  ;;  %v13411_v0 = vpop.f32.mrb[59].mxu1  ;;  %v18444_v60 = vld [vmem:[#allocation36_spill] sm:$0xff] }
 0x23b   : > { %2170 = vmatmul.mubr.f32.vlgmr.msra.gmra.mrb[0].mxu0 %v18441_v43  ;;  %v13417_v54 = vpop.f32.mrb[60].mxu1 }
 0x23c   : > { %2174 = vmatprep.mubr.f32.mxu0 %v12099_v4  ;;  %v13419_v61 = vpop.f32.mrb[61].mxu1  ;;  %v18445_v4 = vld [vmem:[#allocation38_spill] sm:$0xff] }
 0x23f   : > { %2175 = vmatmul.mubr.f32.gmra.mrb[2].mxu0 %v18442_v7  ;;  %v13425_v44 = vpop.f32.mrb[62].mxu1  ;;  %v3158_v7 = vld [vmem:[%s18068_s8 + $0x30] sm:$0xff] }
 0x240   : > { %2179 = vmatprep.mubr.f32.mxu0 %v12101_v5  ;;  %v13427_v58 = vpop.f32.mrb[63].mxu1  ;;  %v18446_v5 = vld [vmem:[#allocation40_spill] sm:$0xff] }
 0x243   : > { %2180 = vmatmul.mubr.f32.gmra.mrb[4].mxu0 %v18443_v3  ;;  %v13433_v38 = vpop.f32.mrb[64].mxu1  ;;  %v3159_v3 = vld [vmem:[%s18068_s8 + $0x38] sm:$0xff] }
 0x244   : > { %2184 = vmatprep.mubr.f32.mxu0 %v12108_v11  ;;  %v13435_v20 = vpop.f32.mrb[65].mxu1  ;;  %v18447_v11 = vld [vmem:[#allocation42_spill] sm:$0xff] }
 0x247   : > { %2185 = vmatmul.mubr.f32.gmra.mrb[6].mxu0 %v18444_v60  ;;  %v13446_v26 = vpop.f32.mrb[66].mxu1  ;;  %v9600_v60 = vpack.c.bf16 %v3159_v3, %v3158_v7  ;;  %v3166_v7 = vld [vmem:[%s18068_s8 + $0x70] sm:$0xff]  ;;  %v3167_v3 = vld [vmem:[%s18068_s8 + $0x78] sm:$0xff] }
 0x248   : > { %2189 = vmatprep.mubr.f32.mxu0 %v12110_v12  ;;  %v18448_v12 = vld [vmem:[#allocation44_spill] sm:$0xff]  ;;  %v13448_v27 = vpop.f32.mrb[67].mxu1 }
 0x24b   : > { %2190 = vmatmul.mubr.f32.gmra.mrb[8].mxu0 %v18445_v4  ;;  %v13464_v46 = vpop.f32.mrb[68].mxu1  ;;  %v3160_v4 = vld [vmem:[%s18068_s8 + $0x40] sm:$0xff] }
 0x24c   : > { %2194 = vmatprep.mubr.f32.mxu0 %v12125_v18  ;;  %v3153_v18 = vld [vmem:[%s18068_s8 + $0x8] sm:$0xff]  ;;  %v13466_v43 = vpop.f32.mrb[69].mxu1 }
 0x24f   : > { %2195 = vmatmul.mubr.f32.gmra.mrb[10].mxu0 %v18446_v5  ;;  %v3161_v5 = vld [vmem:[%s18068_s8 + $0x48] sm:$0xff] }
 0x250   : > { %2199 = vmatprep.mubr.f32.mxu0 %v12127_v19  ;;  %v9591_v19 = vpack.c.bf16 %v3153_v18, %v3152_v51  ;;  %v3162_v18 = vld [vmem:[%s18068_s8 + $0x50] sm:$0xff] }
 0x252   : > { %9592 = vmatpush1.bf16.msra.mxu1 %v9591_v19  ;;  %v3163_v19 = vld [vmem:[%s18068_s8 + $0x58] sm:$0xff] }
 0x253   : > { %2200 = vmatmul.mubr.f32.gmra.mrb[12].mxu0 %v18447_v11  ;;  %9593 = vmatprep.subr.bf16.mxu1 %v18376_v14  ;;  %v13482_v11 = vpop.f32.mrb[70].mxu1 }
 0x254   : > { %2204 = vmatprep.mubr.f32.mxu0 %v12142_v28  ;;  %v3154_v28 = vld [vmem:[%s18068_s8 + $0x10] sm:$0xff]  ;;  %v13484_v51 = vpop.f32.mrb[71].mxu1 }
 0x255   : > { %v9594_v42 = vpack.c.bf16 %v3155_v55, %v3154_v28  ;;  %v9606_v28 = vpack.c.bf16 %v3163_v19, %v3162_v18  ;;  %v3164_v55 = vld [vmem:[%s18068_s8 + $0x60] sm:$0xff]  ;;  %v13500_v41 = vpop.f32.mrb[72].mxu1 }
 0x257   : > { %2205 = vmatmul.mubr.f32.gmra.mrb[14].mxu0 %v18448_v12  ;;  %9595 = vmatpush1.bf16.msra.mxu1 %v9594_v42  ;;  %v9603_v12 = vpack.c.bf16 %v3161_v5, %v3160_v4  ;;  %v3165_v42 = vld [vmem:[%s18068_s8 + $0x68] sm:$0xff]  ;;  %v3168_v4 = vld [vmem:[%s18068_s8 + $0x80] sm:$0xff] }
 0x258   : > { %9596 = vmatprep.subr.bf16.mxu1 %v18376_v14  ;;  %v9609_v62 = vpack.c.bf16 %v3165_v42, %v3164_v55  ;;  %v3169_v5 = vld [vmem:[%s18068_s8 + $0x88] sm:$0xff]  ;;  %v3171_v55 = vld [vmem:[%s18068_s8 + $0x98] sm:$0xff] }
 0x259   : > { %v9615_v18 = vpack.c.bf16 %v3169_v5, %v3168_v4  ;;  %v3174_v5 = vld [vmem:[%s18068_s8 + $0xb0] sm:$0xff] }
 0x25b   : > { %9598 = vmatpush1.bf16.msra.mxu1 %v9597_v1  ;;  %v13502_v1 = vpop.f32.mrb[73].mxu1 }
 0x25c   : > { %9599 = vmatprep.subr.bf16.mxu1 %v18376_v14 }
 0x25f   : > { %9601 = vmatpush1.bf16.msra.mxu1 %v9600_v60  ;;  %v9612_v60 = vpack.c.bf16 %v3167_v3, %v3166_v7  ;;  %v3173_v7 = vld [vmem:[%s18068_s8 + $0xa8] sm:$0xff] }
 0x260   : > { %9602 = vmatprep.subr.bf16.mxu1 %v18376_v14 }
 0x263   : > { %9604 = vmatpush1.bf16.msra.mxu1 %v9603_v12  ;;  %v13518_v12 = vpop.f32.mrb[74].mxu1 }
 0x264   : > { %9605 = vmatprep.subr.bf16.mxu1 %v18376_v14  ;;  %v13520_v19 = vpop.f32.mrb[75].mxu1 }
 0x267   : > { %9607 = vmatpush1.bf16.msra.mxu1 %v9606_v28  ;;  %v3170_v28 = vld [vmem:[%s18068_s8 + $0x90] sm:$0xff] }
 0x268   : > { %9608 = vmatprep.subr.bf16.mxu1 %v18376_v14  ;;  %v9618_v42 = vpack.c.bf16 %v3171_v55, %v3170_v28  ;;  %v3176_v55 = vld [vmem:[%s18068_s8 + $0xc0] sm:$0xff] }
 0x26b   : > { %9610 = vmatpush1.bf16.msra.mxu1 %v9609_v62  ;;  %v3172_v62 = vld [vmem:[%s18068_s8 + $0xa0] sm:$0xff] }
 0x26c   : > { %9611 = vmatprep.subr.bf16.mxu1 %v18376_v14 }
 0x26f   : > { %9613 = vmatpush1.bf16.msra.mxu1 %v9612_v60  ;;  %v9621_v60 = vpack.c.bf16 %v3173_v7, %v3172_v62 }
 0x270   : > { %9614 = vmatprep.subr.bf16.mxu1 %v18376_v14 }
 0x273   : > { %9616 = vmatpush1.bf16.msra.mxu1 %v9615_v18  ;;  %v3175_v18 = vld [vmem:[%s18068_s8 + $0xb8] sm:$0xff] }
 0x274   : > { %9617 = vmatprep.subr.bf16.mxu1 %v18376_v14  ;;  %v13536_v3 = vpop.f32.mrb[76].mxu1  ;;  %v9624_v28 = vpack.c.bf16 %v3175_v18, %v3174_v5  ;;  %v3178_v5 = vld [vmem:[%s18068_s8 + $0xd0] sm:$0xff]  ;;  %v3179_v18 = vld [vmem:[%s18068_s8 + $0xd8] sm:$0xff] }
 0x275   : > { %v13538_v4 = vpop.f32.mrb[77].mxu1  ;;  %v9630_v2 = vpack.c.bf16 %v3179_v18, %v3178_v5  ;;  %v3282_v5 = vld [vmem:[%s18068_s8 + $0x410] sm:$0xff] }
 0x277   : > { %9619 = vmatpush1.bf16.msra.mxu1 %v9618_v42  ;;  %v3177_v42 = vld [vmem:[%s18068_s8 + $0xc8] sm:$0xff] }
 0x278   : > { %9620 = vmatprep.subr.bf16.mxu1 %v18376_v14  ;;  %v13554_v62 = vpop.f32.mrb[78].mxu1  ;;  %v9627_v7 = vpack.c.bf16 %v3177_v42, %v3176_v55  ;;  %v3281_v55 = vld [vmem:[%s18068_s8 + $0x408] sm:$0xff] }
 0x279   : > { %18449 = vst [vmem:[#allocation55_spill] sm:$0xff] %v13554_v62 }
 0x27b   : > { %9622 = vmatpush1.bf16.msra.mxu1 %v9621_v60  ;;  %v13556_v60 = vpop.f32.mrb[79].mxu1 }
 0x27c   : > { %9623 = vmatprep.subr.bf16.mxu1 %v18376_v14 }
 0x27f   : > { %9625 = vmatpush1.bf16.msra.mxu1 %v9624_v28  ;;  %v3280_v28 = vld [vmem:[%s18068_s8 + $0x400] sm:$0xff] }
 0x280   : > { %9626 = vmatprep.subr.bf16.mxu1 %v18376_v14  ;;  %v9782_v42 = vpack.c.bf16 %v3281_v55, %v3280_v28  ;;  %v3182_v55 = vld [vmem:[%s18068_s8 + $0xf0] sm:$0xff] }
 0x282   : > { %9783 = vmatprep.subr.bf16.mxu0 %v9782_v42 }
 0x283   : > { %9628 = vmatpush1.bf16.msra.mxu1 %v9627_v7  ;;  %v3180_v7 = vld [vmem:[%s18068_s8 + $0xe0] sm:$0xff]  ;;  %9785 = vmatpush3.bf16.msra.mxu0 %v9782_v42  ;;  %v9636_v42 = vpack.c.bf16 %v3183_v40, %v3182_v55  ;;  %v3286_v40 = vld [vmem:[%s18068_s8 + $0x430] sm:$0xff] }
 0x284   : > { %9629 = vmatprep.subr.bf16.mxu1 %v18376_v14  ;;  %v9633_v18 = vpack.c.bf16 %v3181_v63, %v3180_v7  ;;  %v3284_v63 = vld [vmem:[%s18068_s8 + $0x420] sm:$0xff]  ;;  %v3285_v7 = vld [vmem:[%s18068_s8 + $0x428] sm:$0xff] }
 0x287   : > { %9631 = vmatpush1.bf16.msra.mxu1 %v9630_v2  ;;  %v3283_v2 = vld [vmem:[%s18068_s8 + $0x418] sm:$0xff] }
 0x288   : > { %9632 = vmatprep.subr.bf16.mxu1 %v18376_v14  ;;  %v9786_v28 = vpack.c.bf16 %v3283_v2, %v3282_v5  ;;  %v9790_v5 = vpack.c.bf16 %v3285_v7, %v3284_v63  ;;  %v3289_v63 = vld [vmem:[%s18068_s8 + $0x448] sm:$0xff] }
 0x28a   : > { %9787 = vmatprep.subr.bf16.mxu0 %v9786_v28 }
 0x28b   : > { %9634 = vmatpush1.bf16.msra.mxu1 %v9633_v18  ;;  %9789 = vmatpush3.bf16.msra.mxu0 %v9786_v28  ;;  %v13597_v18 = vld [vmem:[#allocation2 + $0x8] sm:$0xff]  ;;  %v3287_v28 = vld [vmem:[%s18068_s8 + $0x438] sm:$0xff] }
 0x28c   : > { %9635 = vmatprep.subr.bf16.mxu1 %v18376_v14  ;;  %v13600_v2 = vrot.slane %v13597_v18, 7  ;;  %9791 = vmatprep.subr.bf16.mxu0 %v9790_v5  ;;  %v9794_v55 = vpack.c.bf16 %v3287_v28, %v3286_v40  ;;  %v3291_v40 = vld [vmem:[%s18068_s8 + $0x458] sm:$0xff] }
 0x28e   : > { %18450 = vst [vmem:[#allocation56_spill] sm:$0xff] %v13600_v2 }
 0x28f   : > { %9637 = vmatpush1.bf16.msra.mxu1 %v9636_v42  ;;  %9793 = vmatpush3.bf16.msra.mxu0 %v9790_v5  ;;  %v3288_v42 = vld [vmem:[%s18068_s8 + $0x440] sm:$0xff]  ;;  %v3290_v5 = vld [vmem:[%s18068_s8 + $0x450] sm:$0xff] }
 0x290   : > { %9638 = vmatprep.subr.bf16.mxu1 %v18376_v14  ;;  %9795 = vmatprep.subr.bf16.mxu0 %v9794_v55  ;;  %v9798_v7 = vpack.c.bf16 %v3289_v63, %v3288_v42  ;;  %v9802_v28 = vpack.c.bf16 %v3291_v40, %v3290_v5  ;;  %v3292_v63 = vld [vmem:[%s18068_s8 + $0x460] sm:$0xff]  ;;  %v3294_v5 = vld [vmem:[%s18068_s8 + $0x470] sm:$0xff] }
 0x292   : > { %3368 = vmatmul.mubr.f32.vlgmr.msra.gmra.mrb[80].mxu1 %v13600_v2 }
 0x293   : > { %3372 = vmatprep.mubr.f32.mxu1 %v13597_v18  ;;  %9797 = vmatpush3.bf16.msra.mxu0 %v9794_v55  ;;  %v3185_v55 = vld [vmem:[%s18068_s8 + $0x108] sm:$0xff] }
 0x294   : > { %9799 = vmatprep.subr.bf16.mxu0 %v9798_v7  ;;  %v9639_v42 = vpack.c.bf16 %v3185_v55, %v3184_v8  ;;  %v3295_v8 = vld [vmem:[%s18068_s8 + $0x478] sm:$0xff]  ;;  %v3186_v55 = vld [vmem:[%s18068_s8 + $0x110] sm:$0xff] }
 0x295   : > { %v9810_v40 = vpack.c.bf16 %v3295_v8, %v3294_v5 }
 0x296   : > { %3373 = vmatmul.mubr.f32.gmra.mrb[82].mxu1 %v13600_v2  ;;  %v3293_v2 = vld [vmem:[%s18068_s8 + $0x468] sm:$0xff] }
 0x297   : > { %9801 = vmatpush3.bf16.msra.mxu0 %v9798_v7  ;;  %v9806_v7 = vpack.c.bf16 %v3293_v2, %v3292_v63  ;;  %9640 = vmatpush1.bf16.msra.mxu1 %v9639_v42  ;;  %v3187_v2 = vld [vmem:[%s18068_s8 + $0x118] sm:$0xff] }
 0x298   : > { %9803 = vmatprep.subr.bf16.mxu0 %v9802_v28  ;;  %9641 = vmatprep.subr.bf16.mxu1 %v18376_v14  ;;  %v9642_v42 = vpack.c.bf16 %v3187_v2, %v3186_v55  ;;  %v3188_v55 = vld [vmem:[%s18068_s8 + $0x120] sm:$0xff]  ;;  %v3190_v2 = vld [vmem:[%s18068_s8 + $0x130] sm:$0xff] }
 0x29b   : > { %9805 = vmatpush3.bf16.msra.mxu0 %v9802_v28  ;;  %v13652_v28 = vld [vmem:[%s18067_s7] ss:$0 sm:$0xff]  ;;  %9643 = vmatpush1.bf16.msra.mxu1 %v9642_v42 }
 0x29c   : > { %9807 = vmatprep.subr.bf16.mxu0 %v9806_v7  ;;  %9644 = vmatprep.subr.bf16.mxu1 %v18376_v14 }
 0x29f   : > { %9809 = vmatpush3.bf16.msra.mxu0 %v9806_v7 }
 0x2a0   : > { %9811 = vmatprep.subr.bf16.mxu0 %v9810_v40 }
 0x2a3   : > { %9813 = vmatpush3.bf16.msra.mxu0 %v9810_v40  ;;  %v3189_v40 = vld [vmem:[%s18068_s8 + $0x128] sm:$0xff] }
 0x2a4   : > { %v9645_v42 = vpack.c.bf16 %v3189_v40, %v3188_v55  ;;  %v2596_v55 = vld [vmem:[%s11935_s5 + $0x48] sm:$0xff] }
 0x2a6   : > { %9646 = vmatpush1.bf16.msra.mxu1 %v9645_v42  ;;  %v3193_v42 = vld [vmem:[%s18068_s8 + $0x148] sm:$0xff] }
 0x2a7   : > { %9647 = vmatprep.subr.bf16.mxu1 %v18376_v14 }
 0x2ae   : > { %v1986_v63 = vpop.f32.mrb[16].mxu0 }
 0x2af   : > { %v10430_v7 = vadd.f32 %v13652_v28, %v1986_v63  ;;  %v1988_v5 = vpop.f32.mrb[17].mxu0 }
 0x2b1   : > { %v10431_v8 = vadd.f32 %v10430_v7, %v13275_v10  ;;  %v2595_v10 = vld [vmem:[%s11935_s5 + $0x40] sm:$0xff] }
 0x2b2   : > { %v1991_v24 = vpop.f32.mrb[18].mxu0 }
 0x2b3   : > { %v10432_v49 = vadd.f32 %v13652_v28, %v1991_v24  ;;  %v2437_v36 = vadd.f32 %v10431_v8, %v13405_v52  ;;  %v1993_v47 = vpop.f32.mrb[19].mxu0  ;;  %v3191_v24 = vld [vmem:[%s18068_s8 + $0x138] sm:$0xff] }
 0x2b4   : > { %v9648_v7 = vpack.c.bf16 %v3191_v24, %v3190_v2 }
 0x2b5   : > { %v10433_v47 = vadd.f32 %v10432_v49, %v13280_v37  ;;  %v2563_v52 = vmax.f32 %v2437_v36, 0.0 }
 0x2b6   : > { %v1996_v63 = vpop.f32.mrb[20].mxu0  ;;  %9649 = vmatpush1.bf16.msra.mxu1 %v9648_v7 }
 0x2b7   : > { %v2442_v5 = vadd.f32 %v10433_v47, %v13403_v48  ;;  %v2627_v8 = vadd.f32 %v2595_v10, %v2563_v52  ;;  %v10434_v30 = vadd.f32 %v13652_v28, %v1996_v63  ;;  %v1998_v62 = vpop.f32.mrb[21].mxu0  ;;  %9650 = vmatprep.subr.bf16.mxu1 %v18376_v14 }
 0x2b8   : > { %v3192_v62 = vld [vmem:[%s18068_s8 + $0x140] sm:$0xff] }
 0x2b9   : > { %v2564_v40 = vmax.f32 %v2442_v5, 0.0  ;;  %2732 = vst.msk [vmem:[#allocation2 + $0xa8] sm:$0xff] %vm2723_vm3, %v2627_v8  ;;  %v10435_v37 = vadd.f32 %v10434_v30, %v13283_v59  ;;  %v2597_v59 = vld [vmem:[%s11935_s5 + $0x50] sm:$0xff]  ;;  %v9651_v30 = vpack.c.bf16 %v3193_v42, %v3192_v62  ;;  %v2598_v8 = vld [vmem:[%s11935_s5 + $0x58] sm:$0xff]  ;;  %v2599_v62 = vld [vmem:[%s11935_s5 + $0x60] sm:$0xff] }
 0x2ba   : > { %v2001_v49 = vpop.f32.mrb[22].mxu0 }
 0x2bb   : > { %v2628_v36 = vadd.f32 %v2596_v55, %v2564_v40  ;;  %v10436_v2 = vadd.f32 %v13652_v28, %v2001_v49  ;;  %v2447_v48 = vadd.f32 %v10435_v37, %v13411_v0  ;;  %v2003_v10 = vpop.f32.mrb[23].mxu0  ;;  %9652 = vmatpush1.bf16.msra.mxu1 %v9651_v30 }
 0x2bc   : > { %9653 = vmatprep.subr.bf16.mxu1 %v18376_v14  ;;  %v3195_v10 = vld [vmem:[%s18068_s8 + $0x158] sm:$0xff] }
 0x2bd   : > { %2733 = vst.msk [vmem:[#allocation2 + $0xb0] sm:$0xff] %vm2723_vm3, %v2628_v36  ;;  %v10437_v24 = vadd.f32 %v10436_v2, %v13288_v45  ;;  %v2565_v47 = vmax.f32 %v2447_v48, 0.0  ;;  %v3194_v48 = vld [vmem:[%s18068_s8 + $0x150] sm:$0xff] }
 0x2be   : > { %v2006_v0 = vpop.f32.mrb[24].mxu0  ;;  %v9654_v42 = vpack.c.bf16 %v3195_v10, %v3194_v48 }
 0x2bf   : > { %v2452_v52 = vadd.f32 %v10437_v24, %v13409_v22  ;;  %v2629_v63 = vadd.f32 %v2597_v59, %v2565_v47  ;;  %v10438_v7 = vadd.f32 %v13652_v28, %v2006_v0  ;;  %v2008_v5 = vpop.f32.mrb[25].mxu0 }
 0x2c0   : > { %v13695_v55 = vld [vmem:[#allocation2 + $0xa8] sm:$0xff]  ;;  %9655 = vmatpush1.bf16.msra.mxu1 %v9654_v42 }
 0x2c1   : > { %18451 = vst [vmem:[#allocation58_spill] sm:$0xff] %v13695_v55  ;;  %v2566_v40 = vmax.f32 %v2452_v52, 0.0  ;;  %2734 = vst.msk [vmem:[#allocation2 + $0xc8] sm:$0xff] %vm2723_vm3, %v2629_v63  ;;  %v10439_v45 = vadd.f32 %v10438_v7, %v13291_v23  ;;  %9656 = vmatprep.subr.bf16.mxu1 %v18376_v14  ;;  %v2600_v7 = vld [vmem:[%s11935_s5 + $0x68] sm:$0xff] }
 0x2c2   : > { %4545 = vst [vmem:[#allocation2 + $0xa8] sm:$0xff] %v13597_v18  ;;  %v2011_v37 = vpop.f32.mrb[26].mxu0 }
 0x2c3   : > { %v2630_v49 = vadd.f32 %v2598_v8, %v2566_v40  ;;  %v10440_v22 = vadd.f32 %v13652_v28, %v2011_v37  ;;  %v2457_v36 = vadd.f32 %v10439_v45, %v13419_v61  ;;  %v2013_v2 = vpop.f32.mrb[27].mxu0 }
 0x2c4   : > { %v13709_v23 = vld [vmem:[#allocation2 + $0xb0] sm:$0xff] }
 0x2c5   : > { %18452 = vst [vmem:[#allocation57_spill] sm:$0xff] %v13709_v23  ;;  %2735 = vst.msk [vmem:[#allocation2 + $0xd0] sm:$0xff] %vm2723_vm3, %v2630_v49  ;;  %v10441_v59 = vadd.f32 %v10440_v22, %v13296_v50  ;;  %v2567_v30 = vmax.f32 %v2457_v36, 0.0  ;;  %v3196_v49 = vld [vmem:[%s18068_s8 + $0x160] sm:$0xff]  ;;  %v3197_v22 = vld [vmem:[%s18068_s8 + $0x168] sm:$0xff] }
 0x2c6   : > { %4546 = vst [vmem:[#allocation2 + $0xb0] sm:$0xff] %v13597_v18  ;;  %v2016_v61 = vpop.f32.mrb[28].mxu0  ;;  %v2601_v36 = vld [vmem:[%s11935_s5 + $0x70] sm:$0xff] }
 0x2c7   : > { %v2462_v24 = vadd.f32 %v10441_v59, %v13417_v54  ;;  %v2631_v47 = vadd.f32 %v2599_v62, %v2567_v30  ;;  %v10442_v0 = vadd.f32 %v13652_v28, %v2016_v61  ;;  %v2018_v52 = vpop.f32.mrb[29].mxu0 }
 0x2c8   : > { %v13717_v63 = vld [vmem:[#allocation2 + $0xc8] sm:$0xff] }
 0x2c9   : > { %18453 = vst [vmem:[#allocation60_spill] sm:$0xff] %v13717_v63  ;;  %4549 = vst [vmem:[#allocation2 + $0xc8] sm:$0xff] %v13597_v18  ;;  %v2568_v50 = vmax.f32 %v2462_v24, 0.0  ;;  %v10443_v5 = vadd.f32 %v10442_v0, %v13299_v13  ;;  %v9657_v13 = vpack.c.bf16 %v3197_v22, %v3196_v49  ;;  %v2602_v24 = vld [vmem:[%s11935_s5 + $0x78] sm:$0xff] }
 0x2ca   : > { %2736 = vst.msk [vmem:[#allocation2 + $0xe8] sm:$0xff] %vm2723_vm3, %v2631_v47  ;;  %v2021_v8 = vpop.f32.mrb[30].mxu0 }
 0x2cb   : > { %v2632_v40 = vadd.f32 %v2600_v7, %v2568_v50  ;;  %v10444_v54 = vadd.f32 %v13652_v28, %v2021_v8  ;;  %v2467_v45 = vadd.f32 %v10443_v5, %v13427_v58  ;;  %v2023_v37 = vpop.f32.mrb[31].mxu0  ;;  %9658 = vmatpush1.bf16.msra.mxu1 %v9657_v13  ;;  %v3198_v5 = vld [vmem:[%s18068_s8 + $0x170] sm:$0xff]  ;;  %v3199_v8 = vld [vmem:[%s18068_s8 + $0x178] sm:$0xff] }
 0x2cc   : > { %v13732_v2 = vld [vmem:[#allocation2 + $0xd0] sm:$0xff]  ;;  %9659 = vmatprep.subr.bf16.mxu1 %v18376_v14 }
 0x2cd   : > { %18454 = vst [vmem:[#allocation13_spill] sm:$0xff] %v13732_v2  ;;  %2737 = vst.msk [vmem:[#allocation2 + $0xf0] sm:$0xff] %vm2723_vm3, %v2632_v40  ;;  %v10445_v48 = vadd.f32 %v10444_v54, %v13304_v56  ;;  %v2569_v10 = vmax.f32 %v2467_v45, 0.0  ;;  %v2603_v40 = vld [vmem:[%s11935_s5 + $0x80] sm:$0xff] }
 0x2ce   : > { %4550 = vst [vmem:[#allocation2 + $0xd0] sm:$0xff] %v13597_v18  ;;  %v2026_v58 = vpop.f32.mrb[32].mxu0 }
 0x2cf   : > { %v2472_v62 = vadd.f32 %v10445_v48, %v13425_v44  ;;  %v2633_v42 = vadd.f32 %v2601_v36, %v2569_v10  ;;  %v10446_v59 = vadd.f32 %v13652_v28, %v2026_v58  ;;  %v2028_v30 = vpop.f32.mrb[33].mxu0  ;;  %v2604_v10 = vld [vmem:[%s11935_s5 + $0x88] sm:$0xff] }
 0x2d1   : > { %v13740_v61 = vld [vmem:[#allocation2 + $0xe8] sm:$0xff]  ;;  %v2570_v56 = vmax.f32 %v2472_v62, 0.0  ;;  %2738 = vst.msk [vmem:[#allocation2 + $0x108] sm:$0xff] %vm2723_vm3, %v2633_v42  ;;  %v10447_v47 = vadd.f32 %v10446_v59, %v13307_v16  ;;  %v9660_v16 = vpack.c.bf16 %v3199_v8, %v3198_v5 }
 0x2d2   : > { %18455 = vst [vmem:[#allocation18_spill] sm:$0xff] %v13740_v61  ;;  %4553 = vst [vmem:[#allocation2 + $0xe8] sm:$0xff] %v13597_v18  ;;  %v2031_v0 = vpop.f32.mrb[34].mxu0 }
 0x2d3   : > { %v2634_v52 = vadd.f32 %v2602_v24, %v2570_v56  ;;  %v10448_v44 = vadd.f32 %v13652_v28, %v2031_v0  ;;  %v2477_v7 = vadd.f32 %v10447_v47, %v13435_v20  ;;  %v2033_v50 = vpop.f32.mrb[35].mxu0  ;;  %9661 = vmatpush1.bf16.msra.mxu1 %v9660_v16  ;;  %v3200_v24 = vld [vmem:[%s18068_s8 + $0x180] sm:$0xff]  ;;  %v3201_v56 = vld [vmem:[%s18068_s8 + $0x188] sm:$0xff]  ;;  %v2605_v47 = vld [vmem:[%s11935_s5 + $0x90] sm:$0xff] }
 0x2d4   : > { %v13755_v54 = vld [vmem:[#allocation2 + $0xf0] sm:$0xff]  ;;  %9662 = vmatprep.subr.bf16.mxu1 %v18376_v14  ;;  %v2606_v16 = vld [vmem:[%s11935_s5 + $0x98] sm:$0xff] }
 0x2d5   : > { %18456 = vst [vmem:[#allocation14_spill] sm:$0xff] %v13755_v54  ;;  %2739 = vst.msk [vmem:[#allocation2 + $0x110] sm:$0xff] %vm2723_vm3, %v2634_v52  ;;  %v10449_v45 = vadd.f32 %v10448_v44, %v13312_v29  ;;  %v2571_v37 = vmax.f32 %v2477_v7, 0.0 }
 0x2d6   : > { %4554 = vst [vmem:[#allocation2 + $0xf0] sm:$0xff] %v13597_v18  ;;  %v2036_v20 = vpop.f32.mrb[36].mxu0 }
 0x2d7   : > { %v2482_v49 = vadd.f32 %v10449_v45, %v13433_v38  ;;  %v2635_v22 = vadd.f32 %v2603_v40, %v2571_v37  ;;  %v10450_v36 = vadd.f32 %v13652_v28, %v2036_v20  ;;  %v2038_v13 = vpop.f32.mrb[37].mxu0 }
 0x2d8   : > { %v13763_v48 = vld [vmem:[#allocation2 + $0x108] sm:$0xff]  ;;  %v3203_v13 = vld [vmem:[%s18068_s8 + $0x198] sm:$0xff] }
 0x2d9   : > { %18457 = vst [vmem:[#allocation23_spill] sm:$0xff] %v13763_v48  ;;  %4557 = vst [vmem:[#allocation2 + $0x108] sm:$0xff] %v13597_v18  ;;  %v2572_v29 = vmax.f32 %v2482_v49, 0.0  ;;  %v10451_v58 = vadd.f32 %v10450_v36, %v13315_v57  ;;  %v9663_v57 = vpack.c.bf16 %v3201_v56, %v3200_v24  ;;  %v3202_v36 = vld [vmem:[%s18068_s8 + $0x190] sm:$0xff] }
 0x2da   : > { %2740 = vst.msk [vmem:[#allocation2 + $0x128] sm:$0xff] %vm2723_vm3, %v2635_v22  ;;  %v2041_v62 = vpop.f32.mrb[38].mxu0  ;;  %v2608_v56 = vld [vmem:[%s11935_s5 + $0xa8] sm:$0xff] }
 0x2db   : > { %v2636_v42 = vadd.f32 %v2604_v10, %v2572_v29  ;;  %v10452_v38 = vadd.f32 %v13652_v28, %v2041_v62  ;;  %v2487_v59 = vadd.f32 %v10451_v58, %v13448_v27  ;;  %v2043_v30 = vpop.f32.mrb[39].mxu0  ;;  %9664 = vmatpush1.bf16.msra.mxu1 %v9663_v57  ;;  %v2607_v10 = vld [vmem:[%s11935_s5 + $0xa0] sm:$0xff] }
 0x2dc   : > { %v13778_v0 = vld [vmem:[#allocation2 + $0x110] sm:$0xff]  ;;  %9665 = vmatprep.subr.bf16.mxu1 %v18376_v14 }
 0x2dd   : > { %18458 = vst [vmem:[#allocation25_spill] sm:$0xff] %v13778_v0  ;;  %2741 = vst.msk [vmem:[#allocation2 + $0x130] sm:$0xff] %vm2723_vm3, %v2636_v42  ;;  %v10453_v52 = vadd.f32 %v10452_v38, %v13320_v6  ;;  %v2573_v44 = vmax.f32 %v2487_v59, 0.0 }
 0x2de   : > { %4558 = vst [vmem:[#allocation2 + $0x110] sm:$0xff] %v13597_v18  ;;  %v2046_v27 = vpop.f32.mrb[40].mxu0 }
 0x2df   : > { %v2492_v7 = vadd.f32 %v10453_v52, %v13446_v26  ;;  %v2637_v50 = vadd.f32 %v2605_v47, %v2573_v44  ;;  %v10454_v5 = vadd.f32 %v13652_v28, %v2046_v27  ;;  %v2048_v8 = vpop.f32.mrb[41].mxu0 }
 0x2e1   : > { %v13786_v40 = vld [vmem:[#allocation2 + $0x128] sm:$0xff]  ;;  %v2574_v6 = vmax.f32 %v2492_v7, 0.0  ;;  %2742 = vst.msk [vmem:[#allocation2 + $0x148] sm:$0xff] %vm2723_vm3, %v2637_v50  ;;  %v10455_v45 = vadd.f32 %v10454_v5, %v13326_v39  ;;  %v9666_v39 = vpack.c.bf16 %v3203_v13, %v3202_v36  ;;  %v3204_v7 = vld [vmem:[%s18068_s8 + $0x1a0] sm:$0xff]  ;;  %v2609_v5 = vld [vmem:[%s11935_s5 + $0xb0] sm:$0xff] }
 0x2e2   : > { %18459 = vst [vmem:[#allocation26_spill] sm:$0xff] %v13786_v40  ;;  %4561 = vst [vmem:[#allocation2 + $0x128] sm:$0xff] %v13597_v18  ;;  %v2051_v37 = vpop.f32.mrb[42].mxu0  ;;  %v3205_v50 = vld [vmem:[%s18068_s8 + $0x1a8] sm:$0xff] }
 0x2e3   : > { %v2638_v20 = vadd.f32 %v2606_v16, %v2574_v6  ;;  %v10456_v26 = vadd.f32 %v13652_v28, %v2051_v37  ;;  %v2497_v49 = vadd.f32 %v10455_v45, %v13466_v43  ;;  %v2053_v22 = vpop.f32.mrb[43].mxu0  ;;  %9667 = vmatpush1.bf16.msra.mxu1 %v9666_v39 }
 0x2e4   : > { %v13801_v29 = vld [vmem:[#allocation2 + $0x130] sm:$0xff]  ;;  %9668 = vmatprep.subr.bf16.mxu1 %v18376_v14  ;;  %v2610_v22 = vld [vmem:[%s11935_s5 + $0xb8] sm:$0xff] }
 0x2e5   : > { %18460 = vst [vmem:[#allocation27_spill] sm:$0xff] %v13801_v29  ;;  %2743 = vst.msk [vmem:[#allocation2 + $0x150] sm:$0xff] %vm2723_vm3, %v2638_v20  ;;  %v10457_v58 = vadd.f32 %v10456_v26, %v13332_v33  ;;  %v2575_v62 = vmax.f32 %v2497_v49, 0.0 }
 0x2e6   : > { %4562 = vst [vmem:[#allocation2 + $0x130] sm:$0xff] %v13597_v18  ;;  %v2056_v43 = vpop.f32.mrb[44].mxu0 }
 0x2e7   : > { %v2502_v42 = vadd.f32 %v10457_v58, %v13464_v46  ;;  %v2639_v38 = vadd.f32 %v2607_v10, %v2575_v62  ;;  %v10458_v59 = vadd.f32 %v13652_v28, %v2056_v43  ;;  %v2058_v30 = vpop.f32.mrb[45].mxu0  ;;  %v3206_v62 = vld [vmem:[%s18068_s8 + $0x1b0] sm:$0xff]  ;;  %v3207_v43 = vld [vmem:[%s18068_s8 + $0x1b8] sm:$0xff] }
 0x2e8   : > { %v13809_v24 = vld [vmem:[#allocation2 + $0x148] sm:$0xff] }
 0x2e9   : > { %18461 = vst [vmem:[#allocation28_spill] sm:$0xff] %v13809_v24  ;;  %4565 = vst [vmem:[#allocation2 + $0x148] sm:$0xff] %v13597_v18  ;;  %v2576_v33 = vmax.f32 %v2502_v42, 0.0  ;;  %v10459_v47 = vadd.f32 %v10458_v59, %v13337_v21  ;;  %v9669_v21 = vpack.c.bf16 %v3205_v50, %v3204_v7  ;;  %v2611_v42 = vld [vmem:[%s11935_s5 + $0xc0] sm:$0xff] }
 0x2ea   : > { %2744 = vst.msk [vmem:[#allocation2 + $0x168] sm:$0xff] %vm2723_vm3, %v2639_v38  ;;  %v2061_v57 = vpop.f32.mrb[46].mxu0 }
 0x2eb   : > { %v2640_v52 = vadd.f32 %v2608_v56, %v2576_v33  ;;  %v10460_v46 = vadd.f32 %v13652_v28, %v2061_v57  ;;  %v2507_v44 = vadd.f32 %v10459_v47, %v13484_v51  ;;  %v2063_v27 = vpop.f32.mrb[47].mxu0  ;;  %9670 = vmatpush1.bf16.msra.mxu1 %v9669_v21  ;;  %v3208_v21 = vld [vmem:[%s18068_s8 + $0x1c0] sm:$0xff] }
 0x2ec   : > { %v13824_v8 = vld [vmem:[#allocation2 + $0x150] sm:$0xff]  ;;  %9671 = vmatprep.subr.bf16.mxu1 %v18376_v14 }
 0x2ed   : > { %2745 = vst.msk [vmem:[#allocation2 + $0x170] sm:$0xff] %vm2723_vm3, %v2640_v52  ;;  %v10461_v16 = vadd.f32 %v10460_v46, %v13341_v53  ;;  %v2577_v6 = vmax.f32 %v2507_v44, 0.0  ;;  %4566 = vst [vmem:[#allocation2 + $0x150] sm:$0xff] %v13597_v18  ;;  %v2612_v46 = vld [vmem:[%s11935_s5 + $0xc8] sm:$0xff] }
 0x2ee   : > { %v2066_v51 = vpop.f32.mrb[48].mxu0 }
 0x2ef   : > { %v2512_v45 = vadd.f32 %v10461_v16, %v13482_v11  ;;  %v2641_v37 = vadd.f32 %v2609_v5, %v2577_v6  ;;  %v10462_v20 = vadd.f32 %v13652_v28, %v2066_v51  ;;  %v2068_v26 = vpop.f32.mrb[49].mxu0  ;;  %v3209_v16 = vld [vmem:[%s18068_s8 + $0x1c8] sm:$0xff]  ;;  %v2613_v6 = vld [vmem:[%s11935_s5 + $0xd0] sm:$0xff] }
 0x2f1   : > { %v13832_v49 = vld [vmem:[#allocation2 + $0x168] sm:$0xff]  ;;  %v2578_v53 = vmax.f32 %v2512_v45, 0.0  ;;  %2746 = vst.msk [vmem:[#allocation2 + $0x188] sm:$0xff] %vm2723_vm3, %v2641_v37  ;;  %v10463_v36 = vadd.f32 %v10462_v20, %v13345_v31  ;;  %v9672_v31 = vpack.c.bf16 %v3207_v43, %v3206_v62  ;;  %v3210_v43 = vld [vmem:[%s18068_s8 + $0x1d0] sm:$0xff] }
 0x2f2   : > { %18462 = vst [vmem:[#allocation29_spill] sm:$0xff] %v13832_v49  ;;  %4569 = vst [vmem:[#allocation2 + $0x168] sm:$0xff] %v13597_v18  ;;  %v2071_v13 = vpop.f32.mrb[50].mxu0 }
 0x2f3   : > { %v2642_v10 = vadd.f32 %v2610_v22, %v2578_v53  ;;  %v10464_v11 = vadd.f32 %v13652_v28, %v2071_v13  ;;  %v2517_v39 = vadd.f32 %v10463_v36, %v13502_v1  ;;  %v2073_v58 = vpop.f32.mrb[51].mxu0  ;;  %9673 = vmatpush1.bf16.msra.mxu1 %v9672_v31  ;;  %v2614_v13 = vld [vmem:[%s11935_s5 + $0xd8] sm:$0xff]  ;;  %v2615_v31 = vld [vmem:[%s11935_s5 + $0xe0] sm:$0xff] }
 0x2f4   : > { %v13847_v38 = vld [vmem:[#allocation2 + $0x170] sm:$0xff]  ;;  %9674 = vmatprep.subr.bf16.mxu1 %v18376_v14 }
 0x2f5   : > { %18463 = vst [vmem:[#allocation31_spill] sm:$0xff] %v13847_v38  ;;  %2747 = vst.msk [vmem:[#allocation2 + $0x190] sm:$0xff] %vm2723_vm3, %v2642_v10  ;;  %v10465_v59 = vadd.f32 %v10464_v11, %v13349_v32  ;;  %v2579_v30 = vmax.f32 %v2517_v39, 0.0 }
 0x2f6   : > { %4570 = vst [vmem:[#allocation2 + $0x170] sm:$0xff] %v13597_v18  ;;  %v2076_v1 = vpop.f32.mrb[52].mxu0 }
 0x2f7   : > { %v2522_v56 = vadd.f32 %v10465_v59, %v13500_v41  ;;  %v2643_v33 = vadd.f32 %v2611_v42, %v2579_v30  ;;  %v10466_v47 = vadd.f32 %v13652_v28, %v2076_v1  ;;  %v2078_v57 = vpop.f32.mrb[53].mxu0  ;;  %v3211_v42 = vld [vmem:[%s18068_s8 + $0x1d8] sm:$0xff] }
 0x2f8   : > { %v13855_v52 = vld [vmem:[#allocation2 + $0x188] sm:$0xff] }
 0x2f9   : > { %18464 = vst [vmem:[#allocation33_spill] sm:$0xff] %v13855_v52  ;;  %4573 = vst [vmem:[#allocation2 + $0x188] sm:$0xff] %v13597_v18  ;;  %v2580_v32 = vmax.f32 %v2522_v56, 0.0  ;;  %v10467_v44 = vadd.f32 %v10466_v47, %v13353_v25  ;;  %v9675_v25 = vpack.c.bf16 %v3209_v16, %v3208_v21  ;;  %v3213_v21 = vld [vmem:[%s18068_s8 + $0x1e8] sm:$0xff]  ;;  %v2617_v16 = vld [vmem:[%s11935_s5 + $0xf0] sm:$0xff] }
 0x2fa   : > { %2748 = vst.msk [vmem:[#allocation2 + $0x1a8] sm:$0xff] %vm2723_vm3, %v2643_v33  ;;  %v2081_v27 = vpop.f32.mrb[54].mxu0 }
 0x2fb   : > { %v2644_v7 = vadd.f32 %v2612_v46, %v2580_v32  ;;  %v10468_v41 = vadd.f32 %v13652_v28, %v2081_v27  ;;  %v2527_v50 = vadd.f32 %v10467_v44, %v13520_v19  ;;  %v2083_v5 = vpop.f32.mrb[55].mxu0  ;;  %9676 = vmatpush1.bf16.msra.mxu1 %v9675_v25  ;;  %v2616_v32 = vld [vmem:[%s11935_s5 + $0xe8] sm:$0xff] }
 0x2fc   : > { %v13870_v51 = vld [vmem:[#allocation2 + $0x190] sm:$0xff]  ;;  %9677 = vmatprep.subr.bf16.mxu1 %v18376_v14  ;;  %v3212_v5 = vld [vmem:[%s18068_s8 + $0x1e0] sm:$0xff] }
 0x2fd   : > { %18465 = vst [vmem:[#allocation35_spill] sm:$0xff] %v13870_v51  ;;  %2749 = vst.msk [vmem:[#allocation2 + $0x1b0] sm:$0xff] %vm2723_vm3, %v2644_v7  ;;  %v10469_v45 = vadd.f32 %v10468_v41, %v13357_v9  ;;  %v2581_v37 = vmax.f32 %v2527_v50, 0.0 }
 0x2fe   : > { %4574 = vst [vmem:[#allocation2 + $0x190] sm:$0xff] %v13597_v18  ;;  %v2086_v19 = vpop.f32.mrb[56].mxu0 }
 0x2ff   : > { %v2532_v20 = vadd.f32 %v10469_v45, %v13518_v12  ;;  %v2645_v26 = vadd.f32 %v2613_v6, %v2581_v37  ;;  %v10470_v22 = vadd.f32 %v13652_v28, %v2086_v19  ;;  %v2088_v53 = vpop.f32.mrb[57].mxu0  ;;  %v18470_v37 = vld [vmem:[#allocation55_spill] sm:$0xff] }
 0x301   : > { %v13878_v36 = vld [vmem:[#allocation2 + $0x1a8] sm:$0xff]  ;;  %v2582_v9 = vmax.f32 %v2532_v20, 0.0  ;;  %2750 = vst.msk [vmem:[#allocation2 + $0x1c8] sm:$0xff] %vm2723_vm3, %v2645_v26  ;;  %v10471_v10 = vadd.f32 %v10470_v22, %v13361_v15  ;;  %v9678_v15 = vpack.c.bf16 %v3211_v42, %v3210_v43  ;;  %v3214_v42 = vld [vmem:[%s18068_s8 + $0x1f0] sm:$0xff] }
 0x302   : > { %18466 = vst [vmem:[#allocation37_spill] sm:$0xff] %v13878_v36  ;;  %4577 = vst [vmem:[#allocation2 + $0x1a8] sm:$0xff] %v13597_v18  ;;  %v2091_v11 = vpop.f32.mrb[58].mxu0 }
 0x303   : > { %v2646_v39 = vadd.f32 %v2614_v13, %v2582_v9  ;;  %v10472_v12 = vadd.f32 %v13652_v28, %v2091_v11  ;;  %v2537_v58 = vadd.f32 %v10471_v10, %v13538_v4  ;;  %v2093_v62 = vpop.f32.mrb[59].mxu0  ;;  %9679 = vmatpush1.bf16.msra.mxu1 %v9678_v15  ;;  %v2618_v13 = vld [vmem:[%s11935_s5 + $0xf8] sm:$0xff]  ;;  %v2587_v11 = vld [vmem:[%s11935_s5] sm:$0xff] }
 0x304   : > { %v13893_v59 = vld [vmem:[#allocation2 + $0x1b0] sm:$0xff]  ;;  %9680 = vmatprep.subr.bf16.mxu1 %v18376_v14  ;;  %v18472_v9 = vld [vmem:[#allocation48_spill] sm:$0xff] }
 0x305   : > { %18467 = vst [vmem:[#allocation39_spill] sm:$0xff] %v13893_v59  ;;  %2751 = vst.msk [vmem:[#allocation2 + $0x1d0] sm:$0xff] %vm2723_vm3, %v2646_v39  ;;  %v10473_v30 = vadd.f32 %v10472_v12, %v13365_v17  ;;  %v2583_v1 = vmax.f32 %v2537_v58, 0.0 }
 0x306   : > { %4578 = vst [vmem:[#allocation2 + $0x1b0] sm:$0xff] %v13597_v18  ;;  %v2096_v4 = vpop.f32.mrb[60].mxu0 }
 0x307   : > { %v2542_v56 = vadd.f32 %v10473_v30, %v13536_v3  ;;  %v2647_v33 = vadd.f32 %v2615_v31, %v2583_v1  ;;  %v10474_v47 = vadd.f32 %v13652_v28, %v2096_v4  ;;  %v2098_v57 = vpop.f32.mrb[61].mxu0  ;;  %v3215_v31 = vld [vmem:[%s18068_s8 + $0x1f8] sm:$0xff] }
 0x308   : > { %v13901_v46 = vld [vmem:[#allocation2 + $0x1c8] sm:$0xff]  ;;  %v9684_v30 = vpack.c.bf16 %v3215_v31, %v3214_v42  ;;  %v18474_v4 = vld [vmem:[#allocation47_spill] sm:$0xff] }
 0x309   : > { %18468 = vst [vmem:[#allocation41_spill] sm:$0xff] %v13901_v46  ;;  %4581 = vst [vmem:[#allocation2 + $0x1c8] sm:$0xff] %v13597_v18  ;;  %v2584_v17 = vmax.f32 %v2542_v56, 0.0  ;;  %v10475_v44 = vadd.f32 %v10474_v47, %v13369_v34  ;;  %v9681_v34 = vpack.c.bf16 %v3213_v21, %v3212_v5 }
 0x30a   : > { %2752 = vst.msk [vmem:[#allocation2 + $0x1e8] sm:$0xff] %vm2723_vm3, %v2647_v33  ;;  %v2101_v27 = vpop.f32.mrb[62].mxu0  ;;  %v2588_v33 = vld [vmem:[%s11935_s5 + $0x8] sm:$0xff] }
 0x30b   : > { %v2648_v7 = vadd.f32 %v2616_v32, %v2584_v17  ;;  %v10476_v3 = vadd.f32 %v13652_v28, %v2101_v27  ;;  %v2547_v41 = vadd.f32 %v10475_v44, %v13556_v60  ;;  %v2103_v50 = vpop.f32.mrb[63].mxu0  ;;  %9682 = vmatpush1.bf16.msra.mxu1 %v9681_v34 }
 0x30c   : > { %v13916_v6 = vld [vmem:[#allocation2 + $0x1d0] sm:$0xff]  ;;  %9683 = vmatprep.subr.bf16.mxu1 %v18376_v14 }
 0x30d   : > { %18469 = vst [vmem:[#allocation43_spill] sm:$0xff] %v13916_v6  ;;  %2753 = vst.msk [vmem:[#allocation2 + $0x1f0] sm:$0xff] %vm2723_vm3, %v2648_v7  ;;  %v10477_v25 = vadd.f32 %v10476_v3, %v13373_v35  ;;  %v2585_v60 = vmax.f32 %v2547_v41, 0.0  ;;  %v18475_v7 = vld [vmem:[#allocation50_spill] sm:$0xff]  ;;  %v2589_v41 = vld [vmem:[%s11935_s5 + $0x10] sm:$0xff] }
 0x30e   : > { %4582 = vst [vmem:[#allocation2 + $0x1d0] sm:$0xff] %v13597_v18  ;;  %v2171_v45 = vpop.f32.mrb[0].mxu0 }
 0x30f   : > { %v2552_v19 = vadd.f32 %v10477_v25, %v18470_v37  ;;  %v2649_v20 = vadd.f32 %v2617_v16, %v2585_v60  ;;  %v10422_v26 = vadd.f32 %v13652_v28, %v2171_v45  ;;  %v2173_v22 = vpop.f32.mrb[1].mxu0  ;;  %9685 = vmatpush1.bf16.msra.mxu1 %v9684_v30  ;;  %v18477_v60 = vld [vmem:[#allocation49_spill] sm:$0xff]  ;;  %v2590_v37 = vld [vmem:[%s11935_s5 + $0x18] sm:$0xff] }
 0x310   : > { %9686 = vmatprep.subr.bf16.mxu1 %v18376_v14 }
 0x311   : > { %v13924_v53 = vld [vmem:[#allocation2 + $0x1e8] sm:$0xff]  ;;  %v2586_v35 = vmax.f32 %v2552_v19, 0.0  ;;  %2754 = vst.msk [vmem:[#allocation2 + $0x208] sm:$0xff] %vm2723_vm3, %v2649_v20  ;;  %v2397_v10 = vadd.f32 %v10422_v26, %v18472_v9 }
 0x312   : > { %18471 = vst [vmem:[#allocation45_spill] sm:$0xff] %v13924_v53  ;;  %4585 = vst [vmem:[#allocation2 + $0x1e8] sm:$0xff] %v13597_v18  ;;  %v2176_v39 = vpop.f32.mrb[2].mxu0 }
 0x313   : > { %v2650_v12 = vadd.f32 %v2618_v13, %v2586_v35  ;;  %v2555_v58 = vmax.f32 %v2397_v10, 0.0  ;;  %v10423_v62 = vadd.f32 %v13652_v28, %v2176_v39  ;;  %v2178_v43 = vpop.f32.mrb[3].mxu0  ;;  %v18478_v10 = vld [vmem:[#allocation52_spill] sm:$0xff] }
 0x314   : > { %v13938_v15 = vld [vmem:[#allocation2 + $0x1f0] sm:$0xff]  ;;  %v18479_v39 = vld [vmem:[#allocation56_spill] sm:$0xff] }
 0x315   : > { %18473 = vst [vmem:[#allocation46_spill] sm:$0xff] %v13938_v15  ;;  %2755 = vst.msk [vmem:[#allocation2 + $0x210] sm:$0xff] %vm2723_vm3, %v2650_v12  ;;  %v2619_v1 = vadd.f32 %v2587_v11, %v2555_v58  ;;  %v2402_v56 = vadd.f32 %v10423_v62, %v18474_v4  ;;  %v2591_v58 = vld [vmem:[%s11935_s5 + $0x20] sm:$0xff] }
 0x316   : > { %4586 = vst [vmem:[#allocation2 + $0x1f0] sm:$0xff] %v13597_v18  ;;  %v2181_v47 = vpop.f32.mrb[4].mxu0 }
 0x317   : > { %2724 = vst.msk [vmem:[#allocation2 + $0x28] sm:$0xff] %vm2723_vm3, %v2619_v1  ;;  %v2556_v57 = vmax.f32 %v2402_v56, 0.0  ;;  %v10424_v32 = vadd.f32 %v13652_v28, %v2181_v47  ;;  %v2183_v17 = vpop.f32.mrb[5].mxu0  ;;  %v18480_v56 = vld [vmem:[#allocation51_spill] sm:$0xff] }
 0x318   : > { %v13947_v44 = vld [vmem:[#allocation2 + $0x208] sm:$0xff] }
 0x319   : > { %v2620_v27 = vadd.f32 %v2588_v33, %v2556_v57  ;;  %v2407_v3 = vadd.f32 %v10424_v32, %v18475_v7  ;;  %4589 = vst [vmem:[#allocation2 + $0x208] sm:$0xff] %v13597_v18  ;;  %v2592_v57 = vld [vmem:[%s11935_s5 + $0x28] sm:$0xff] }
 0x31a   : > { %v2186_v50 = vpop.f32.mrb[6].mxu0 }
 0x31b   : > { %2725 = vst.msk [vmem:[#allocation2 + $0x30] sm:$0xff] %vm2723_vm3, %v2620_v27  ;;  %v2557_v5 = vmax.f32 %v2407_v3, 0.0  ;;  %v10425_v21 = vadd.f32 %v13652_v28, %v2186_v50  ;;  %v2188_v16 = vpop.f32.mrb[7].mxu0 }
 0x31c   : > { %v13954_v34 = vld [vmem:[#allocation2 + $0x210] sm:$0xff] }
 0x31d   : > { %18476 = vst [vmem:[#allocation15_spill] sm:$0xff] %v13954_v34  ;;  %v2621_v25 = vadd.f32 %v2589_v41, %v2557_v5  ;;  %v2412_v45 = vadd.f32 %v10425_v21, %v18477_v60  ;;  %4590 = vst [vmem:[#allocation2 + $0x210] sm:$0xff] %v13597_v18  ;;  %v18482_v5 = vld [vmem:[#allocation54_spill] sm:$0xff] }
 0x31e   : > { %v2191_v19 = vpop.f32.mrb[8].mxu0  ;;  %v13959_v20 = vld [vmem:[#allocation2 + $0x28] sm:$0xff] }
 0x31f   : > { %2726 = vst.msk [vmem:[#allocation2 + $0x48] sm:$0xff] %vm2723_vm3, %v2621_v25  ;;  %v2558_v26 = vmax.f32 %v2412_v45, 0.0  ;;  %v10426_v22 = vadd.f32 %v13652_v28, %v2191_v19  ;;  %v2193_v13 = vpop.f32.mrb[9].mxu0  ;;  %3377 = vmatprep.mubr.f32.mxu1 %v13959_v20  ;;  %4529 = vst [vmem:[#allocation2 + $0x28] sm:$0xff] %v13597_v18  ;;  %v2882_v35 = vrot.slane %v13959_v20, 7  ;;  %v2593_v25 = vld [vmem:[%s11935_s5 + $0x30] sm:$0xff] }
 0x321   : > { %v2622_v9 = vadd.f32 %v2590_v37, %v2558_v26  ;;  %v2417_v11 = vadd.f32 %v10426_v22, %v18478_v10  ;;  %v13969_v12 = vsel %vm1001_vm1, %v18479_v39, %v2882_v35 }
 0x322   : > { %v2196_v62 = vpop.f32.mrb[10].mxu0  ;;  %3378 = vmatmul.mubr.f32.gmra.mrb[84].mxu1 %v13969_v12  ;;  %v13973_v43 = vld [vmem:[#allocation2 + $0x30] sm:$0xff] }
 0x323   : > { %2727 = vst.msk [vmem:[#allocation2 + $0x50] sm:$0xff] %vm2723_vm3, %v2622_v9  ;;  %v2559_v42 = vmax.f32 %v2417_v11, 0.0  ;;  %v10427_v31 = vadd.f32 %v13652_v28, %v2196_v62  ;;  %v2198_v30 = vpop.f32.mrb[11].mxu0  ;;  %3382 = vmatprep.mubr.f32.mxu1 %v13973_v43  ;;  %4530 = vst [vmem:[#allocation2 + $0x30] sm:$0xff] %v13597_v18  ;;  %v2884_v1 = vrot.slane %v13973_v43, 7  ;;  %v14010_v9 = vrot.slane %v13597_v18, 1 }
 0x324   : > { %v18484_v11 = vld [vmem:[#allocation53_spill] sm:$0xff] }
 0x325   : > { %v2623_v4 = vadd.f32 %v2591_v58, %v2559_v42  ;;  %v2422_v33 = vadd.f32 %v10427_v31, %v18480_v56  ;;  %v13982_v47 = vsel %vm1001_vm1, %v2882_v35, %v2884_v1  ;;  %v2594_v42 = vld [vmem:[%s11935_s5 + $0x38] sm:$0xff] }
 0x326   : > { %v2201_v32 = vpop.f32.mrb[12].mxu0  ;;  %3383 = vmatmul.mubr.f32.gmra.mrb[86].mxu1 %v13982_v47  ;;  %v13986_v17 = vld [vmem:[#allocation2 + $0x48] sm:$0xff] }
 0x327   : > { %18481 = vst [vmem:[#allocation16_spill] sm:$0xff] %v13986_v17  ;;  %2728 = vst.msk [vmem:[#allocation2 + $0x68] sm:$0xff] %vm2723_vm3, %v2623_v4  ;;  %v2560_v27 = vmax.f32 %v2422_v33, 0.0  ;;  %v10428_v7 = vadd.f32 %v13652_v28, %v2201_v32  ;;  %v2203_v3 = vpop.f32.mrb[13].mxu0  ;;  %3387 = vmatprep.mubr.f32.mxu1 %v13986_v17  ;;  %v2887_v41 = vrot.slane %v13986_v17, 7  ;;  %v3014_v37 = vrot.slane %v13986_v17, 1 }
 0x328   : > { %4533 = vst [vmem:[#allocation2 + $0x48] sm:$0xff] %v13597_v18  ;;  %v3070_v17 = vrot.slane %v13893_v59, 1 }
 0x329   : > { %v2624_v50 = vadd.f32 %v2592_v57, %v2560_v27  ;;  %v2427_v21 = vadd.f32 %v10428_v7, %v18482_v5  ;;  %v13996_v16 = vsel %vm1001_vm1, %v18479_v39, %v2887_v41 }
 0x32a   : > { %v2206_v60 = vpop.f32.mrb[14].mxu0  ;;  %3388 = vmatmul.mubr.f32.gmra.mrb[88].mxu1 %v13996_v16  ;;  %v14000_v45 = vld [vmem:[#allocation2 + $0x50] sm:$0xff] }
 0x32b   : > { %18483 = vst [vmem:[#allocation17_spill] sm:$0xff] %v14000_v45  ;;  %2729 = vst.msk [vmem:[#allocation2 + $0x70] sm:$0xff] %vm2723_vm3, %v2624_v50  ;;  %v2561_v19 = vmax.f32 %v2427_v21, 0.0  ;;  %v10429_v26 = vadd.f32 %v13652_v28, %v2206_v60  ;;  %v2208_v22 = vpop.f32.mrb[15].mxu0  ;;  %3392 = vmatprep.mubr.f32.mxu1 %v14000_v45  ;;  %v2889_v13 = vrot.slane %v14000_v45, 7  ;;  %v3015_v35 = vrot.slane %v14000_v45, 1 }
 0x32c   : > { %4534 = vst [vmem:[#allocation2 + $0x50] sm:$0xff] %v13597_v18  ;;  %v3030_v22 = vrot.slane %v13709_v23, 1  ;;  %v2917_v45 = vrot.slane %v13763_v48, 7 }
 0x32d   : > { %v2625_v10 = vadd.f32 %v2593_v25, %v2561_v19  ;;  %v2432_v58 = vadd.f32 %v10429_v26, %v18484_v11  ;;  %v14014_v62 = vsel %vm1001_vm1, %v2887_v41, %v2889_v13  ;;  %v14017_v28 = vsel %vm1130_vm2, %v3014_v37, %v3015_v35 }
 0x32e   : > { %3393 = vmatmul.mubr.f32.gmra.mrb[90].mxu1 %v14014_v62  ;;  %9238 = vmatprep.mubr.f32.mxu0 %v14017_v28  ;;  %v14022_v31 = vld [vmem:[#allocation2 + $0x68] sm:$0xff]  ;;  %v14026_v30 = vsel %vm1130_vm2, %v3015_v35, %v14010_v9  ;;  %v3029_v13 = vrot.slane %v13695_v55, 1 }
 0x32f   : > { %18485 = vst [vmem:[#allocation19_spill] sm:$0xff] %v14022_v31  ;;  %2730 = vst.msk [vmem:[#allocation2 + $0x88] sm:$0xff] %vm2723_vm3, %v2625_v10  ;;  %v2562_v1 = vmax.f32 %v2432_v58, 0.0  ;;  %3397 = vmatprep.mubr.f32.mxu1 %v14022_v31  ;;  %9239 = vmatmul.mubr.f32.vlgmr.msra.gmra.mrb[64].mxu0 %v14026_v30  ;;  %v2892_v4 = vrot.slane %v14022_v31, 7  ;;  %v3019_v27 = vrot.slane %v14022_v31, 1  ;;  %v3059_v31 = vrot.slane %v13832_v49, 1 }
 0x330   : > { %4537 = vst [vmem:[#allocation2 + $0x68] sm:$0xff] %v13597_v18  ;;  %v14094_v58 = vsel %vm1130_vm2, %v3029_v13, %v3030_v22  ;;  %v3045_v13 = vrot.slane %v13778_v0, 1 }
 0x331   : > { %v2626_v56 = vadd.f32 %v2594_v42, %v2562_v1  ;;  %v14035_v33 = vsel %vm1001_vm1, %v18479_v39, %v2892_v4  ;;  %v3035_v42 = vrot.slane %v13732_v2, 1 }
 0x332   : > { %3398 = vmatmul.mubr.f32.gmra.mrb[92].mxu1 %v14035_v33  ;;  %v14038_v57 = vld [vmem:[#allocation2 + $0x70] sm:$0xff] }
 0x333   : > { %18486 = vst [vmem:[#allocation20_spill] sm:$0xff] %v14038_v57  ;;  %2731 = vst.msk [vmem:[#allocation2 + $0x90] sm:$0xff] %vm2723_vm3, %v2626_v56  ;;  %3402 = vmatprep.mubr.f32.mxu1 %v14038_v57  ;;  %v2894_v32 = vrot.slane %v14038_v57, 7  ;;  %v3020_v7 = vrot.slane %v14038_v57, 1  ;;  %v2904_v56 = vrot.slane %v13709_v23, 7 }
 0x334   : > { %4538 = vst [vmem:[#allocation2 + $0x70] sm:$0xff] %v13597_v18 }
 0x335   : > { %v14047_v3 = vsel %vm1001_vm1, %v2892_v4, %v2894_v32  ;;  %v14050_v41 = vsel %vm1130_vm2, %v3019_v27, %v3020_v7  ;;  %v14054_v50 = vsel %vm1130_vm2, %v3020_v7, %v14010_v9  ;;  %v3034_v4 = vrot.slane %v13717_v63, 1 }
 0x336   : > { %3403 = vmatmul.mubr.f32.gmra.mrb[94].mxu1 %v14047_v3  ;;  %9241 = vmatprep.mubr.f32.mxu0 %v14050_v41  ;;  %v14058_v5 = vld [vmem:[#allocation2 + $0x88] sm:$0xff]  ;;  %v14107_v32 = vsel %vm1130_vm2, %v3030_v22, %v14010_v9  ;;  %v3040_v7 = vrot.slane %v13755_v54, 1 }
 0x337   : > { %18487 = vst [vmem:[#allocation21_spill] sm:$0xff] %v14058_v5  ;;  %3407 = vmatprep.mubr.f32.mxu1 %v14058_v5  ;;  %4541 = vst [vmem:[#allocation2 + $0x88] sm:$0xff] %v13597_v18  ;;  %9242 = vmatmul.mubr.f32.gmra.mrb[66].mxu0 %v14054_v50  ;;  %v2897_v21 = vrot.slane %v14058_v5, 7  ;;  %v3024_v19 = vrot.slane %v14058_v5, 1  ;;  %v14112_v27 = vsel %vm1130_vm2, %v3034_v4, %v3035_v42  ;;  %v3044_v4 = vrot.slane %v13763_v48, 1 }
 0x338   : > { %v3060_v5 = vrot.slane %v13847_v38, 1 }
 0x339   : > { %v14066_v25 = vsel %vm1001_vm1, %v18479_v39, %v2897_v21 }
 0x33a   : > { %3408 = vmatmul.mubr.f32.gmra.mrb[96].mxu1 %v14066_v25  ;;  %v14069_v60 = vld [vmem:[#allocation2 + $0x90] sm:$0xff] }
 0x33b   : > { %18488 = vst [vmem:[#allocation22_spill] sm:$0xff] %v14069_v60  ;;  %3412 = vmatprep.mubr.f32.mxu1 %v14069_v60  ;;  %4542 = vst [vmem:[#allocation2 + $0x90] sm:$0xff] %v13597_v18  ;;  %v2899_v37 = vrot.slane %v14069_v60, 7  ;;  %v3025_v26 = vrot.slane %v14069_v60, 1  ;;  %v2902_v18 = vrot.slane %v13695_v55, 7  ;;  %v2912_v60 = vrot.slane %v13740_v61, 7 }
 0x33d   : > { %v14079_v35 = vsel %vm1001_vm1, %v2897_v21, %v2899_v37  ;;  %v14082_v10 = vsel %vm1130_vm2, %v3024_v19, %v3025_v26  ;;  %v14086_v11 = vsel %vm1130_vm2, %v3025_v26, %v14010_v9  ;;  %v14100_v1 = vsel %vm1001_vm1, %v18479_v39, %v2902_v18 }
 0x33e   : > { %3413 = vmatmul.mubr.f32.gmra.mrb[98].mxu1 %v14079_v35  ;;  %9244 = vmatprep.mubr.f32.mxu0 %v14082_v10  ;;  %v14117_v21 = vsel %vm1001_vm1, %v2902_v18, %v2904_v56  ;;  %v3039_v37 = vrot.slane %v13740_v61, 1  ;;  %v2907_v19 = vrot.slane %v13717_v63, 7  ;;  %v14124_v26 = vsel %vm1130_vm2, %v3035_v42, %v14010_v9 }
 0x33f   : > { %3417 = vmatprep.mubr.f32.mxu1 %v13695_v55  ;;  %9245 = vmatmul.mubr.f32.gmra.mrb[68].mxu0 %v14086_v11  ;;  %v2909_v42 = vrot.slane %v13732_v2, 7  ;;  %v14142_v56 = vsel %vm1130_vm2, %v3040_v7, %v14010_v9  ;;  %v3049_v55 = vrot.slane %v13786_v40, 1 }
 0x340   : > { %9247 = vmatprep.mubr.f32.mxu0 %v14094_v58  ;;  %v14129_v22 = vsel %vm1130_vm2, %v3039_v37, %v3040_v7  ;;  %v14135_v18 = vsel %vm1001_vm1, %v18479_v39, %v2907_v19  ;;  %v14147_v37 = vsel %vm1130_vm2, %v3044_v4, %v3045_v13  ;;  %v14159_v7 = vsel %vm1130_vm2, %v3045_v13, %v14010_v9 }
 0x341   : > { %v2914_v13 = vrot.slane %v13755_v54, 7 }
 0x342   : > { %3418 = vmatmul.mubr.f32.gmra.mrb[100].mxu1 %v14100_v1 }
 0x343   : > { %3422 = vmatprep.mubr.f32.mxu1 %v13709_v23  ;;  %9248 = vmatmul.mubr.f32.gmra.mrb[70].mxu0 %v14107_v32  ;;  %v14152_v23 = vsel %vm1001_vm1, %v2907_v19, %v2909_v42  ;;  %v3055_v19 = vrot.slane %v13824_v8, 1  ;;  %v14170_v42 = vsel %vm1001_vm1, %v18479_v39, %v2912_v60  ;;  %v14187_v57 = vsel %vm1001_vm1, %v2912_v60, %v2914_v13 }
 0x344   : > { %9250 = vmatprep.mubr.f32.mxu0 %v14112_v27  ;;  %v3065_v60 = vrot.slane %v13870_v51, 1  ;;  %v14205_v13 = vsel %vm1001_vm1, %v18479_v39, %v2917_v45 }
 0x346   : > { %3423 = vmatmul.mubr.f32.gmra.mrb[102].mxu1 %v14117_v21 }
 0x347   : > { %3427 = vmatprep.mubr.f32.mxu1 %v13717_v63  ;;  %9251 = vmatmul.mubr.f32.gmra.mrb[72].mxu0 %v14124_v26  ;;  %v3050_v63 = vrot.slane %v13801_v29, 1 }
 0x348   : > { %9253 = vmatprep.mubr.f32.mxu0 %v14129_v22 }
 0x349   : > { %v14164_v4 = vsel %vm1130_vm2, %v3049_v55, %v3050_v63 }
 0x34a   : > { %3428 = vmatmul.mubr.f32.gmra.mrb[104].mxu1 %v14135_v18 }
 0x34b   : > { %3432 = vmatprep.mubr.f32.mxu1 %v13732_v2  ;;  %9254 = vmatmul.mubr.f32.gmra.mrb[74].mxu0 %v14142_v56  ;;  %v3054_v2 = vrot.slane %v13809_v24, 1 }
 0x34c   : > { %9256 = vmatprep.mubr.f32.mxu0 %v14147_v37 }
 0x34d   : > { %v14182_v55 = vsel %vm1130_vm2, %v3054_v2, %v3055_v19  ;;  %v14199_v2 = vsel %vm1130_vm2, %v3059_v31, %v3060_v5 }
 0x34e   : > { %3433 = vmatmul.mubr.f32.gmra.mrb[106].mxu1 %v14152_v23  ;;  %18489 = vst [vmem:[#allocation24_spill] sm:$0xff] %v14182_v55  ;;  %18491 = vst [vmem:[#allocation32_spill] sm:$0xff] %v14199_v2 }
 0x34f   : > { %3437 = vmatprep.mubr.f32.mxu1 %v13740_v61  ;;  %9257 = vmatmul.mubr.f32.gmra.mrb[76].mxu0 %v14159_v7  ;;  %v14177_v61 = vsel %vm1130_vm2, %v3050_v63, %v14010_v9  ;;  %v14194_v63 = vsel %vm1130_vm2, %v3055_v19, %v14010_v9  ;;  %v2919_v19 = vrot.slane %v13778_v0, 7 }
 0x350   : > { %9259 = vmatprep.mubr.f32.mxu0 %v14164_v4  ;;  %18490 = vst [vmem:[#allocation30_spill] sm:$0xff] %v14194_v63 }
 0x352   : > { %3438 = vmatmul.mubr.f32.gmra.mrb[108].mxu1 %v14170_v42 }
 0x353   : > { %3442 = vmatprep.mubr.f32.mxu1 %v13755_v54  ;;  %9260 = vmatmul.mubr.f32.gmra.mrb[78].mxu0 %v14177_v61  ;;  %v3064_v54 = vrot.slane %v13855_v52, 1 }
 0x354   : > { %9262 = vmatprep.mubr.f32.mxu0 %v14182_v55  ;;  %v2922_v55 = vrot.slane %v13786_v40, 7 }
 0x355   : > { %v14217_v31 = vsel %vm1130_vm2, %v3064_v54, %v3065_v60 }
 0x356   : > { %3443 = vmatmul.mubr.f32.gmra.mrb[110].mxu1 %v14187_v57  ;;  %18493 = vst [vmem:[#allocation36_spill] sm:$0xff] %v14217_v31 }
 0x357   : > { %3447 = vmatprep.mubr.f32.mxu1 %v13763_v48  ;;  %9263 = vmatmul.mubr.f32.gmra.mrb[80].mxu0 %v14194_v63  ;;  %v14212_v48 = vsel %vm1130_vm2, %v3060_v5, %v14010_v9  ;;  %v3069_v63 = vrot.slane %v13878_v36, 1  ;;  %v14229_v5 = vsel %vm1130_vm2, %v3065_v60, %v14010_v9  ;;  %v2924_v60 = vrot.slane %v13801_v29, 7 }
 0x358   : > { %9265 = vmatprep.mubr.f32.mxu0 %v14199_v2  ;;  %18492 = vst [vmem:[#allocation34_spill] sm:$0xff] %v14212_v48  ;;  %v14222_v2 = vsel %vm1001_vm1, %v2917_v45, %v2919_v19  ;;  %18494 = vst [vmem:[#allocation38_spill] sm:$0xff] %v14229_v5  ;;  %v3075_v45 = vrot.slane %v13916_v6, 1  ;;  %v14240_v19 = vsel %vm1001_vm1, %v18479_v39, %v2922_v55 }
 0x359   : > { %v14234_v54 = vsel %vm1130_vm2, %v3069_v63, %v3070_v17 }
 0x35a   : > { %3448 = vmatmul.mubr.f32.gmra.mrb[112].mxu1 %v14205_v13  ;;  %18495 = vst [vmem:[#allocation40_spill] sm:$0xff] %v14234_v54 }
 0x35b   : > { %3452 = vmatprep.mubr.f32.mxu1 %v13778_v0  ;;  %9266 = vmatmul.mubr.f32.gmra.mrb[82].mxu0 %v14212_v48  ;;  %v3074_v0 = vrot.slane %v13901_v46, 1  ;;  %v2927_v48 = vrot.slane %v13809_v24, 7 }
 0x35c   : > { %9268 = vmatprep.mubr.f32.mxu0 %v14217_v31  ;;  %v3079_v31 = vrot.slane %v13924_v53, 1 }
 0x35d   : > { %v14252_v63 = vsel %vm1130_vm2, %v3074_v0, %v3075_v45 }
 0x35e   : > { %3453 = vmatmul.mubr.f32.gmra.mrb[114].mxu1 %v14222_v2 }
 0x35f   : > { %3457 = vmatprep.mubr.f32.mxu1 %v13786_v40  ;;  %9269 = vmatmul.mubr.f32.gmra.mrb[84].mxu0 %v14229_v5  ;;  %v14247_v40 = vsel %vm1130_vm2, %v3070_v17, %v14010_v9  ;;  %v14257_v5 = vsel %vm1001_vm1, %v2922_v55, %v2924_v60  ;;  %v14264_v17 = vsel %vm1130_vm2, %v3075_v45, %v14010_v9  ;;  %v3128_v55 = vrot.slane %v13954_v34, 1 }
 0x360   : > { %9271 = vmatprep.mubr.f32.mxu0 %v14234_v54  ;;  %v3080_v54 = vrot.slane %v13938_v15, 1  ;;  %v14275_v60 = vsel %vm1001_vm1, %v18479_v39, %v2927_v48  ;;  %v2929_v45 = vrot.slane %v13824_v8, 7  ;;  %v2932_v34 = vrot.slane %v13832_v49, 7 }
 0x362   : > { %3458 = vmatmul.mubr.f32.gmra.mrb[116].mxu1 %v14240_v19  ;;  %v14269_v0 = vsel %vm1130_vm2, %v3079_v31, %v3080_v54 }
 0x363   : > { %3462 = vmatprep.mubr.f32.mxu1 %v13801_v29  ;;  %9272 = vmatmul.mubr.f32.gmra.mrb[86].mxu0 %v14247_v40  ;;  %18496 = vst [vmem:[#allocation42_spill] sm:$0xff] %v14269_v0  ;;  %v3127_v29 = vrot.slane %v13947_v44, 1 }
 0x364   : > { %9274 = vmatprep.mubr.f32.mxu0 %v14252_v63 }
 0x365   : > { %v14287_v31 = vsel %vm1130_vm2, %v3127_v29, %v3128_v55  ;;  %v14303_v29 = vsel %vm1001_vm1, %v18479_v39, %v2932_v34 }
 0x366   : > { %3463 = vmatmul.mubr.f32.gmra.mrb[118].mxu1 %v14257_v5  ;;  %18497 = vst [vmem:[#allocation44_spill] sm:$0xff] %v14287_v31 }
 0x367   : > { %3467 = vmatprep.mubr.f32.mxu1 %v13809_v24  ;;  %9275 = vmatmul.mubr.f32.gmra.mrb[88].mxu0 %v14264_v17  ;;  %v14282_v24 = vsel %vm1130_vm2, %v3080_v54, %v14010_v9  ;;  %v14297_v54 = vsel %vm1130_vm2, %v3128_v55, %v14010_v9  ;;  %v2937_v55 = vrot.slane %v13855_v52, 7 }
 0x368   : > { %9277 = vmatprep.mubr.f32.mxu0 %v14269_v0  ;;  %v14291_v0 = vsel %vm1001_vm1, %v2927_v48, %v2929_v45  ;;  %18498 = vst [vmem:[#allocation55_spill] sm:$0xff] %v14297_v54 }
 0x369   : > { %v14316_v45 = vsel %vm1001_vm1, %v18479_v39, %v2937_v55 }
 0x36a   : > { %3468 = vmatmul.mubr.f32.gmra.mrb[120].mxu1 %v14275_v60  ;;  %18500 = vst [vmem:[#allocation47_spill] sm:$0xff] %v14316_v45 }
 0x36b   : > { %3472 = vmatprep.mubr.f32.mxu1 %v13824_v8  ;;  %9278 = vmatmul.mubr.f32.gmra.mrb[90].mxu0 %v14282_v24 }
 0x36c   : > { %9280 = vmatprep.mubr.f32.mxu0 %v14287_v31  ;;  %v2934_v31 = vrot.slane %v13847_v38, 7 }
 0x36e   : > { %3473 = vmatmul.mubr.f32.gmra.mrb[122].mxu1 %v14291_v0  ;;  %v14309_v48 = vsel %vm1001_vm1, %v2932_v34, %v2934_v31  ;;  %v2942_v34 = vrot.slane %v13878_v36, 7 }
 0x36f   : > { %3477 = vmatprep.mubr.f32.mxu1 %v13832_v49  ;;  %9281 = vmatmul.mubr.f32.gmra.mrb[92].mxu0 %v14297_v54  ;;  %18499 = vst [vmem:[#allocation48_spill] sm:$0xff] %v14309_v48  ;;  %v2939_v54 = vrot.slane %v13870_v51, 7  ;;  %v18508_v49 = vld [vmem:[#allocation59_spill] sm:$0xff] }
 0x370   : > { %v14329_v31 = vsel %vm1001_vm1, %v18479_v39, %v2942_v34 }
 0x371   : > { %18502 = vst [vmem:[#allocation49_spill] sm:$0xff] %v14329_v31 }
 0x372   : > { %3478 = vmatmul.mubr.f32.gmra.mrb[124].mxu1 %v14303_v29 }
 0x373   : > { %3482 = vmatprep.mubr.f32.mxu1 %v13847_v38  ;;  %v14322_v38 = vsel %vm1001_vm1, %v2937_v55, %v2939_v54  ;;  %v2947_v54 = vrot.slane %v13901_v46, 7 }
 0x374   : > { %18501 = vst [vmem:[#allocation50_spill] sm:$0xff] %v14322_v38 }
 0x375   : > { %v14342_v55 = vsel %vm1001_vm1, %v18479_v39, %v2947_v54 }
 0x376   : > { %3483 = vmatmul.mubr.f32.gmra.mrb[126].mxu1 %v14309_v48  ;;  %18504 = vst [vmem:[#allocation56_spill] sm:$0xff] %v14342_v55 }
 0x377   : > { %3487 = vmatprep.mubr.f32.mxu1 %v13855_v52  ;;  %v2944_v52 = vrot.slane %v13893_v59, 7 }
 0x37a   : > { %3488 = vmatmul.mubr.f32.gmra.mrb[128].mxu1 %v14316_v45 }
 0x37b   : > { %3492 = vmatprep.mubr.f32.mxu1 %v13870_v51  ;;  %v14335_v51 = vsel %vm1001_vm1, %v2942_v34, %v2944_v52  ;;  %v2952_v52 = vrot.slane %v13924_v53, 7 }
 0x37c   : > { %18503 = vst [vmem:[#allocation52_spill] sm:$0xff] %v14335_v51 }
 0x37d   : > { %v14355_v34 = vsel %vm1001_vm1, %v18479_v39, %v2952_v52 }
 0x37e   : > { %3493 = vmatmul.mubr.f32.gmra.mrb[130].mxu1 %v14322_v38  ;;  %18506 = vst [vmem:[#allocation54_spill] sm:$0xff] %v14355_v34 }
 0x37f   : > { %3497 = vmatprep.mubr.f32.mxu1 %v13878_v36  ;;  %v2949_v36 = vrot.slane %v13916_v6, 7 }
 0x382   : > { %3498 = vmatmul.mubr.f32.gmra.mrb[132].mxu1 %v14329_v31 }
 0x383   : > { %3502 = vmatprep.mubr.f32.mxu1 %v13893_v59  ;;  %v14348_v59 = vsel %vm1001_vm1, %v2947_v54, %v2949_v36  ;;  %v3216_v36 = vld [vmem:[%s18068_s8 + $0x200] sm:$0xff]  ;;  %v3217_v54 = vld [vmem:[%s18068_s8 + $0x208] sm:$0xff] }
 0x384   : > { %18505 = vst [vmem:[#allocation51_spill] sm:$0xff] %v14348_v59  ;;  %v9687_v39 = vpack.c.bf16 %v3217_v54, %v3216_v36  ;;  %v3221_v36 = vld [vmem:[%s18068_s8 + $0x228] sm:$0xff]  ;;  %v3010_v54 = vrot.slane %v13973_v43, 1 }
 0x386   : > { %3503 = vmatmul.mubr.f32.gmra.mrb[134].mxu1 %v14335_v51 }
 0x387   : > { %3507 = vmatprep.mubr.f32.mxu1 %v13901_v46  ;;  %v2954_v46 = vrot.slane %v13938_v15, 7 }
 0x38a   : > { %3508 = vmatmul.mubr.f32.gmra.mrb[136].mxu1 %v14342_v55 }
 0x38b   : > { %3512 = vmatprep.mubr.f32.mxu1 %v13916_v6  ;;  %v3219_v6 = vld [vmem:[%s18068_s8 + $0x218] sm:$0xff] }
 0x38e   : > { %3513 = vmatmul.mubr.f32.gmra.mrb[138].mxu1 %v14348_v59 }
 0x38f   : > { %3517 = vmatprep.mubr.f32.mxu1 %v13924_v53  ;;  %v14367_v53 = vsel %vm1001_vm1, %v2952_v52, %v2954_v46  ;;  %v3008_v46 = vsel %vm1130_vm2, %v18508_v49, %v14010_v9 }
 0x390   : > { %18507 = vst [vmem:[#allocation53_spill] sm:$0xff] %v14367_v53 }
 0x392   : > { %3518 = vmatmul.mubr.f32.gmra.mrb[140].mxu1 %v14355_v34 }
 0x393   : > { %3522 = vmatprep.mubr.f32.mxu1 %v13938_v15  ;;  %v3218_v15 = vld [vmem:[%s18068_s8 + $0x210] sm:$0xff] }
 0x394   : > { %v9690_v52 = vpack.c.bf16 %v3219_v6, %v3218_v15  ;;  %v3222_v6 = vld [vmem:[%s18068_s8 + $0x230] sm:$0xff]  ;;  %v3223_v15 = vld [vmem:[%s18068_s8 + $0x238] sm:$0xff] }
 0x396   : > { %3523 = vmatmul.mubr.f32.gmra.mrb[142].mxu1 %v14367_v53 }
 0x397   : > { %3592 = vmatprep.mubr.f32.mxu1 %v13969_v12  ;;  %v3220_v12 = vld [vmem:[%s18068_s8 + $0x220] sm:$0xff] }
 0x39a   : > { %3593 = vmatmul.mubr.f32.vlgmr.msra.gmra.mrb[80].mxu1 %v18508_v49  ;;  %v9693_v49 = vpack.c.bf16 %v3221_v36, %v3220_v12  ;;  %v3225_v12 = vld [vmem:[%s18068_s8 + $0x248] sm:$0xff]  ;;  %v14413_v36 = vsel %vm1130_vm2, %v3010_v54, %v14010_v9 }
 0x39b   : > { %3597 = vmatprep.mubr.f32.mxu1 %v13982_v47  ;;  %9688 = vmatpush1.bf16.msra.mxu1 %v9687_v39  ;;  %v3009_v47 = vrot.slane %v13959_v20, 1 }
 0x39c   : > { %9689 = vmatprep.subr.bf16.mxu1 %v18376_v14 }
 0x39d   : > { %v14400_v39 = vsel %vm1130_vm2, %v3009_v47, %v3010_v54  ;;  %v3228_v54 = vld [vmem:[%s18068_s8 + $0x260] sm:$0xff] }
 0x39e   : > { %3598 = vmatmul.mubr.f32.gmra.mrb[82].mxu1 %v3008_v46  ;;  %v9696_v46 = vpack.c.bf16 %v3223_v15, %v3222_v6  ;;  %v3227_v6 = vld [vmem:[%s18068_s8 + $0x258] sm:$0xff]  ;;  %v3229_v15 = vld [vmem:[%s18068_s8 + $0x268] sm:$0xff] }
 0x39f   : > { %3602 = vmatprep.mubr.f32.mxu1 %v13996_v16  ;;  %9691 = vmatpush1.bf16.msra.mxu1 %v9690_v52  ;;  %v3224_v52 = vld [vmem:[%s18068_s8 + $0x240] sm:$0xff] }
 0x3a0   : > { %9692 = vmatprep.subr.bf16.mxu1 %v18376_v14  ;;  %v9699_v47 = vpack.c.bf16 %v3225_v12, %v3224_v52  ;;  %v3230_v52 = vld [vmem:[%s18068_s8 + $0x270] sm:$0xff]  ;;  %v3231_v12 = vld [vmem:[%s18068_s8 + $0x278] sm:$0xff] }
 0x3a2   : > { %3603 = vmatmul.mubr.f32.gmra.mrb[84].mxu1 %v14400_v39 }
 0x3a3   : > { %3607 = vmatprep.mubr.f32.mxu1 %v14014_v62  ;;  %9694 = vmatpush1.bf16.msra.mxu1 %v9693_v49  ;;  %v3226_v49 = vld [vmem:[%s18068_s8 + $0x250] sm:$0xff] }
 0x3a4   : > { %9695 = vmatprep.subr.bf16.mxu1 %v18376_v14  ;;  %v9702_v9 = vpack.c.bf16 %v3227_v6, %v3226_v49  ;;  %v3232_v49 = vld [vmem:[%s18068_s8 + $0x280] sm:$0xff]  ;;  %v3233_v6 = vld [vmem:[%s18068_s8 + $0x288] sm:$0xff] }
 0x3a6   : > { %3608 = vmatmul.mubr.f32.gmra.mrb[86].mxu1 %v14413_v36 }
 0x3a7   : > { %3612 = vmatprep.mubr.f32.mxu1 %v14035_v33  ;;  %9697 = vmatpush1.bf16.msra.mxu1 %v9696_v46  ;;  %v9705_v46 = vpack.c.bf16 %v3229_v15, %v3228_v54  ;;  %v3234_v54 = vld [vmem:[%s18068_s8 + $0x290] sm:$0xff]  ;;  %v3235_v15 = vld [vmem:[%s18068_s8 + $0x298] sm:$0xff] }
 0x3a8   : > { %9698 = vmatprep.subr.bf16.mxu1 %v18376_v14 }
 0x3aa   : > { %3613 = vmatmul.mubr.f32.gmra.mrb[88].mxu1 %v14017_v28 }
 0x3ab   : > { %3617 = vmatprep.mubr.f32.mxu1 %v14047_v3  ;;  %9700 = vmatpush1.bf16.msra.mxu1 %v9699_v47  ;;  %v9708_v47 = vpack.c.bf16 %v3231_v12, %v3230_v52  ;;  %v3236_v52 = vld [vmem:[%s18068_s8 + $0x2a0] sm:$0xff]  ;;  %v3237_v12 = vld [vmem:[%s18068_s8 + $0x2a8] sm:$0xff] }
 0x3ac   : > { %9701 = vmatprep.subr.bf16.mxu1 %v18376_v14 }
 0x3ae   : > { %3618 = vmatmul.mubr.f32.gmra.mrb[90].mxu1 %v14026_v30 }
 0x3af   : > { %3622 = vmatprep.mubr.f32.mxu1 %v14066_v25  ;;  %9703 = vmatpush1.bf16.msra.mxu1 %v9702_v9  ;;  %v9711_v9 = vpack.c.bf16 %v3233_v6, %v3232_v49  ;;  %v3238_v49 = vld [vmem:[%s18068_s8 + $0x2b0] sm:$0xff]  ;;  %v3239_v6 = vld [vmem:[%s18068_s8 + $0x2b8] sm:$0xff] }
 0x3b0   : > { %9704 = vmatprep.subr.bf16.mxu1 %v18376_v14 }
 0x3b2   : > { %3623 = vmatmul.mubr.f32.gmra.mrb[92].mxu1 %v14050_v41 }
 0x3b3   : > { %3627 = vmatprep.mubr.f32.mxu1 %v14079_v35  ;;  %9706 = vmatpush1.bf16.msra.mxu1 %v9705_v46  ;;  %v9714_v46 = vpack.c.bf16 %v3235_v15, %v3234_v54  ;;  %v3240_v54 = vld [vmem:[%s18068_s8 + $0x2c0] sm:$0xff]  ;;  %v3241_v15 = vld [vmem:[%s18068_s8 + $0x2c8] sm:$0xff] }
 0x3b4   : > { %9707 = vmatprep.subr.bf16.mxu1 %v18376_v14 }
 0x3b6   : > { %3628 = vmatmul.mubr.f32.gmra.mrb[94].mxu1 %v14054_v50 }
 0x3b7   : > { %3632 = vmatprep.mubr.f32.mxu1 %v14100_v1  ;;  %9709 = vmatpush1.bf16.msra.mxu1 %v9708_v47  ;;  %v9717_v47 = vpack.c.bf16 %v3237_v12, %v3236_v52  ;;  %v3242_v52 = vld [vmem:[%s18068_s8 + $0x2d0] sm:$0xff]  ;;  %v3243_v12 = vld [vmem:[%s18068_s8 + $0x2d8] sm:$0xff] }
 0x3b8   : > { %9710 = vmatprep.subr.bf16.mxu1 %v18376_v14 }
 0x3ba   : > { %3633 = vmatmul.mubr.f32.gmra.mrb[96].mxu1 %v14082_v10 }
 0x3bb   : > { %3637 = vmatprep.mubr.f32.mxu1 %v14117_v21  ;;  %9712 = vmatpush1.bf16.msra.mxu1 %v9711_v9  ;;  %v9720_v9 = vpack.c.bf16 %v3239_v6, %v3238_v49  ;;  %v3244_v49 = vld [vmem:[%s18068_s8 + $0x2e0] sm:$0xff]  ;;  %v3245_v6 = vld [vmem:[%s18068_s8 + $0x2e8] sm:$0xff] }
 0x3bc   : > { %9713 = vmatprep.subr.bf16.mxu1 %v18376_v14 }
 0x3be   : > { %3638 = vmatmul.mubr.f32.gmra.mrb[98].mxu1 %v14086_v11 }
 0x3bf   : > { %3642 = vmatprep.mubr.f32.mxu1 %v14135_v18  ;;  %9715 = vmatpush1.bf16.msra.mxu1 %v9714_v46  ;;  %v9723_v46 = vpack.c.bf16 %v3241_v15, %v3240_v54  ;;  %v3246_v54 = vld [vmem:[%s18068_s8 + $0x2f0] sm:$0xff]  ;;  %v3247_v15 = vld [vmem:[%s18068_s8 + $0x2f8] sm:$0xff] }
 0x3c0   : > { %9716 = vmatprep.subr.bf16.mxu1 %v18376_v14 }
 0x3c2   : > { %3643 = vmatmul.mubr.f32.gmra.mrb[100].mxu1 %v14094_v58 }
 0x3c3   : > { %3647 = vmatprep.mubr.f32.mxu1 %v14152_v23  ;;  %9718 = vmatpush1.bf16.msra.mxu1 %v9717_v47  ;;  %v9726_v47 = vpack.c.bf16 %v3243_v12, %v3242_v52  ;;  %v18509_v52 = vld [vmem:[#allocation24_spill] sm:$0xff]  ;;  %v18510_v12 = vld [vmem:[#allocation30_spill] sm:$0xff] }
 0x3c4   : > { %9719 = vmatprep.subr.bf16.mxu1 %v18376_v14 }
 0x3c6   : > { %3648 = vmatmul.mubr.f32.gmra.mrb[102].mxu1 %v14107_v32 }
 0x3c7   : > { %3652 = vmatprep.mubr.f32.mxu1 %v14170_v42  ;;  %9721 = vmatpush1.bf16.msra.mxu1 %v9720_v9  ;;  %v9729_v9 = vpack.c.bf16 %v3245_v6, %v3244_v49  ;;  %v18512_v49 = vld [vmem:[#allocation34_spill] sm:$0xff]  ;;  %v18513_v6 = vld [vmem:[#allocation36_spill] sm:$0xff] }
 0x3c8   : > { %9722 = vmatprep.subr.bf16.mxu1 %v18376_v14 }
 0x3ca   : > { %3653 = vmatmul.mubr.f32.gmra.mrb[104].mxu1 %v14112_v27 }
 0x3cb   : > { %3657 = vmatprep.mubr.f32.mxu1 %v14187_v57  ;;  %9724 = vmatpush1.bf16.msra.mxu1 %v9723_v46  ;;  %v9732_v46 = vpack.c.bf16 %v3247_v15, %v3246_v54  ;;  %v18515_v54 = vld [vmem:[#allocation40_spill] sm:$0xff] }
 0x3cc   : > { %9725 = vmatprep.subr.bf16.mxu1 %v18376_v14 }
 0x3ce   : > { %3658 = vmatmul.mubr.f32.gmra.mrb[106].mxu1 %v14124_v26 }
 0x3cf   : > { %3662 = vmatprep.mubr.f32.mxu1 %v14205_v13  ;;  %9727 = vmatpush1.bf16.msra.mxu1 %v9726_v47  ;;  %v18511_v47 = vld [vmem:[#allocation32_spill] sm:$0xff] }
 0x3d0   : > { %9728 = vmatprep.subr.bf16.mxu1 %v18376_v14 }
 0x3d2   : > { %3663 = vmatmul.mubr.f32.gmra.mrb[108].mxu1 %v14129_v22 }
 0x3d3   : > { %3667 = vmatprep.mubr.f32.mxu1 %v14222_v2  ;;  %9730 = vmatpush1.bf16.msra.mxu1 %v9729_v9  ;;  %v18514_v9 = vld [vmem:[#allocation38_spill] sm:$0xff] }
 0x3d4   : > { %9731 = vmatprep.subr.bf16.mxu1 %v18376_v14 }
 0x3d6   : > { %3668 = vmatmul.mubr.f32.gmra.mrb[110].mxu1 %v14142_v56 }
 0x3d7   : > { %3672 = vmatprep.mubr.f32.mxu1 %v14240_v19  ;;  %9733 = vmatpush1.bf16.msra.mxu1 %v9732_v46 }
 0x3d8   : > { %9734 = vmatprep.subr.bf16.mxu1 %v18376_v14 }
 0x3da   : > { %3673 = vmatmul.mubr.f32.gmra.mrb[112].mxu1 %v14147_v37 }
 0x3db   : > { %3677 = vmatprep.mubr.f32.mxu1 %v14257_v5 }
 0x3de   : > { %3678 = vmatmul.mubr.f32.gmra.mrb[114].mxu1 %v14159_v7 }
 0x3df   : > { %3682 = vmatprep.mubr.f32.mxu1 %v14275_v60 }
 0x3e2   : > { %3683 = vmatmul.mubr.f32.gmra.mrb[116].mxu1 %v14164_v4 }
 0x3e3   : > { %3687 = vmatprep.mubr.f32.mxu1 %v14291_v0 }
 0x3e6   : > { %3688 = vmatmul.mubr.f32.gmra.mrb[118].mxu1 %v14177_v61 }
 0x3e7   : > { %3692 = vmatprep.mubr.f32.mxu1 %v14303_v29 }
 0x3ea   : > { %3693 = vmatmul.mubr.f32.gmra.mrb[120].mxu1 %v18509_v52 }
 0x3eb   : > { %3697 = vmatprep.mubr.f32.mxu1 %v14309_v48 }
 0x3ee   : > { %3698 = vmatmul.mubr.f32.gmra.mrb[122].mxu1 %v18510_v12 }
 0x3ef   : > { %3702 = vmatprep.mubr.f32.mxu1 %v14316_v45 }
 0x3f2   : > { %3703 = vmatmul.mubr.f32.gmra.mrb[124].mxu1 %v18511_v47 }
 0x3f3   : > { %3707 = vmatprep.mubr.f32.mxu1 %v14322_v38  ;;  %v3120_v38 = vrot.slane %v13947_v44, 7 }
 0x3f6   : > { %3708 = vmatmul.mubr.f32.gmra.mrb[126].mxu1 %v18512_v49 }
 0x3f7   : > { %3712 = vmatprep.mubr.f32.mxu1 %v14329_v31 }
 0x3fa   : > { %3713 = vmatmul.mubr.f32.gmra.mrb[128].mxu1 %v18513_v6 }
 0x3fb   : > { %3717 = vmatprep.mubr.f32.mxu1 %v14335_v51  ;;  %v14551_v51 = vld [vmem:[#allocation2 + $0x8] sm:$0xff] }
 0x3fe   : > { %3718 = vmatmul.mubr.f32.gmra.mrb[130].mxu1 %v18514_v9 }
 0x3ff   : > { %3722 = vmatprep.mubr.f32.mxu1 %v14342_v55  ;;  %v14554_v55 = vrot.slane %v14551_v51, 7 }
 0x401   : > { %18519 = vst [vmem:[#allocation32_spill] sm:$0xff] %v14554_v55 }
 0x402   : > { %3723 = vmatmul.mubr.f32.gmra.mrb[132].mxu1 %v18515_v54  ;;  %v14541_v15 = vpop.f32.mrb[64].mxu0 }
 0x403   : > { %18516 = vst [vmem:[#allocation59_spill] sm:$0xff] %v14541_v15  ;;  %3727 = vmatprep.mubr.f32.mxu1 %v14348_v59  ;;  %v14544_v46 = vpop.f32.mrb[65].mxu0 }
 0x404   : > { %18517 = vst [vmem:[#allocation24_spill] sm:$0xff] %v14544_v46  ;;  %v14563_v46 = vsel %vm1001_vm1, %v14554_v55, %v3120_v38  ;;  %v3248_v55 = vld [vmem:[%s18068_s8 + $0x300] sm:$0xff] }
 0x405   : > { %18521 = vst [vmem:[#allocation36_spill] sm:$0xff] %v14563_v46 }
 0x406   : > { %3728 = vmatmul.mubr.f32.gmra.mrb[134].mxu1 %v14247_v40 }
 0x407   : > { %3732 = vmatprep.mubr.f32.mxu1 %v14355_v34  ;;  %v18522_v34 = vld [vmem:[#allocation15_spill] sm:$0xff] }
 0x408   : > { %v3122_v59 = vrot.slane %v18522_v34, 7 }
 0x40a   : > { %3733 = vmatmul.mubr.f32.gmra.mrb[136].mxu1 %v14252_v63  ;;  %v14549_v31 = vpop.f32.mrb[66].mxu0  ;;  %v14571_v48 = vsel %vm1001_vm1, %v3120_v38, %v3122_v59 }
 0x40b   : > { %18518 = vst [vmem:[#allocation30_spill] sm:$0xff] %v14549_v31  ;;  %3737 = vmatprep.mubr.f32.mxu1 %v14367_v53  ;;  %v14558_v15 = vpop.f32.mrb[67].mxu0  ;;  %v18523_v31 = vld [vmem:[#allocation42_spill] sm:$0xff]  ;;  %18525 = vst [vmem:[#allocation40_spill] sm:$0xff] %v14571_v48 }
 0x40c   : > { %18520 = vst [vmem:[#allocation34_spill] sm:$0xff] %v14558_v15  ;;  %v3249_v53 = vld [vmem:[%s18068_s8 + $0x308] sm:$0xff] }
 0x40d   : > { %v9735_v59 = vpack.c.bf16 %v3249_v53, %v3248_v55  ;;  %v3252_v53 = vld [vmem:[%s18068_s8 + $0x320] sm:$0xff]  ;;  %v3253_v55 = vld [vmem:[%s18068_s8 + $0x328] sm:$0xff] }
 0x40e   : > { %3738 = vmatmul.mubr.f32.gmra.mrb[138].mxu1 %v14264_v17 }
 0x40f   : > { %3742 = vmatprep.mubr.f32.mxu1 %v14563_v46 }
 0x412   : > { %3743 = vmatmul.mubr.f32.gmra.mrb[140].mxu1 %v18523_v31  ;;  %v14568_v45 = vpop.f32.mrb[68].mxu0 }
 0x413   : > { %18524 = vst [vmem:[#allocation38_spill] sm:$0xff] %v14568_v45  ;;  %3747 = vmatprep.mubr.f32.mxu1 %v14571_v48  ;;  %v14574_v15 = vpop.f32.mrb[69].mxu0  ;;  %v3250_v45 = vld [vmem:[%s18068_s8 + $0x310] sm:$0xff] }
 0x414   : > { %18526 = vst [vmem:[#allocation15_spill] sm:$0xff] %v14574_v15  ;;  %v3251_v15 = vld [vmem:[%s18068_s8 + $0x318] sm:$0xff] }
 0x416   : > { %3748 = vmatmul.mubr.f32.gmra.mrb[142].mxu1 %v14282_v24  ;;  %v14583_v46 = vpop.f32.mrb[70].mxu0 }
 0x417   : > { %18527 = vst [vmem:[#allocation42_spill] sm:$0xff] %v14583_v46  ;;  %3817 = vmatprep.mubr.f32.mxu1 %v14400_v39  ;;  %v14586_v38 = vpop.f32.mrb[71].mxu0  ;;  %v9738_v39 = vpack.c.bf16 %v3251_v15, %v3250_v45  ;;  %v9741_v45 = vpack.c.bf16 %v3253_v55, %v3252_v53  ;;  %v3254_v15 = vld [vmem:[%s18068_s8 + $0x330] sm:$0xff]  ;;  %v3256_v53 = vld [vmem:[%s18068_s8 + $0x340] sm:$0xff]  ;;  %v3257_v55 = vld [vmem:[%s18068_s8 + $0x348] sm:$0xff] }
 0x41a   : > { %3818 = vmatmul.mubr.f32.vlgmr.msra.gmra.mrb[80].mxu1 %v13959_v20  ;;  %v14595_v48 = vpop.f32.mrb[72].mxu0 }
 0x41b   : > { %18528 = vst [vmem:[#allocation61_spill] sm:$0xff] %v14595_v48  ;;  %3822 = vmatprep.mubr.f32.mxu1 %v14413_v36  ;;  %9736 = vmatpush1.bf16.msra.mxu1 %v9735_v59  ;;  %v14598_v46 = vpop.f32.mrb[73].mxu0  ;;  %v3255_v59 = vld [vmem:[%s18068_s8 + $0x338] sm:$0xff] }
 0x41c   : > { %9737 = vmatprep.subr.bf16.mxu1 %v18376_v14  ;;  %v18531_v48 = vld [vmem:[#allocation16_spill] sm:$0xff] }
 0x41e   : > { %3823 = vmatmul.mubr.f32.gmra.mrb[82].mxu1 %v13973_v43  ;;  %v14608_v20 = vpop.f32.mrb[74].mxu0 }
 0x41f   : > { %18529 = vst [vmem:[#allocation62_spill] sm:$0xff] %v14608_v20  ;;  %3827 = vmatprep.mubr.f32.mxu1 %v14017_v28  ;;  %v14611_v36 = vpop.f32.mrb[75].mxu0  ;;  %9739 = vmatpush1.bf16.msra.mxu1 %v9738_v39  ;;  %v9744_v39 = vpack.c.bf16 %v3255_v59, %v3254_v15  ;;  %v18534_v20 = vld [vmem:[#allocation17_spill] sm:$0xff]  ;;  %v3258_v15 = vld [vmem:[%s18068_s8 + $0x350] sm:$0xff]  ;;  %v3259_v59 = vld [vmem:[%s18068_s8 + $0x358] sm:$0xff] }
 0x420   : > { %18530 = vst [vmem:[#allocation63_spill] sm:$0xff] %v14611_v36  ;;  %9740 = vmatprep.subr.bf16.mxu1 %v18376_v14 }
 0x422   : > { %3828 = vmatmul.mubr.f32.gmra.mrb[84].mxu1 %v18531_v48  ;;  %v14621_v43 = vpop.f32.mrb[76].mxu0 }
 0x423   : > { %18532 = vst [vmem:[#allocation16_spill] sm:$0xff] %v14621_v43  ;;  %3832 = vmatprep.mubr.f32.mxu1 %v14026_v30  ;;  %v14624_v28 = vpop.f32.mrb[77].mxu0  ;;  %9742 = vmatpush1.bf16.msra.mxu1 %v9741_v45  ;;  %v9747_v45 = vpack.c.bf16 %v3257_v55, %v3256_v53  ;;  %v18537_v43 = vld [vmem:[#allocation19_spill] sm:$0xff]  ;;  %v3260_v53 = vld [vmem:[%s18068_s8 + $0x360] sm:$0xff]  ;;  %v3261_v55 = vld [vmem:[%s18068_s8 + $0x368] sm:$0xff] }
 0x424   : > { %18533 = vst [vmem:[#allocation64_spill] sm:$0xff] %v14624_v28  ;;  %9743 = vmatprep.subr.bf16.mxu1 %v18376_v14 }
 0x426   : > { %3833 = vmatmul.mubr.f32.gmra.mrb[86].mxu1 %v18534_v20  ;;  %v14634_v36 = vpop.f32.mrb[78].mxu0 }
 0x427   : > { %18535 = vst [vmem:[#allocation17_spill] sm:$0xff] %v14634_v36  ;;  %3837 = vmatprep.mubr.f32.mxu1 %v14050_v41  ;;  %v14637_v30 = vpop.f32.mrb[79].mxu0  ;;  %9745 = vmatpush1.bf16.msra.mxu1 %v9744_v39  ;;  %v9750_v39 = vpack.c.bf16 %v3259_v59, %v3258_v15  ;;  %v18540_v36 = vld [vmem:[#allocation20_spill] sm:$0xff]  ;;  %v3262_v15 = vld [vmem:[%s18068_s8 + $0x370] sm:$0xff] }
 0x428   : > { %18536 = vst [vmem:[#allocation65_spill] sm:$0xff] %v14637_v30  ;;  %9746 = vmatprep.subr.bf16.mxu1 %v18376_v14  ;;  %v3263_v59 = vld [vmem:[%s18068_s8 + $0x378] sm:$0xff] }
 0x42a   : > { %3838 = vmatmul.mubr.f32.gmra.mrb[88].mxu1 %v18537_v43  ;;  %v14647_v28 = vpop.f32.mrb[80].mxu0 }
 0x42b   : > { %18538 = vst [vmem:[#allocation19_spill] sm:$0xff] %v14647_v28  ;;  %3842 = vmatprep.mubr.f32.mxu1 %v14054_v50  ;;  %v14650_v41 = vpop.f32.mrb[81].mxu0  ;;  %9748 = vmatpush1.bf16.msra.mxu1 %v9747_v45  ;;  %v9753_v45 = vpack.c.bf16 %v3261_v55, %v3260_v53  ;;  %v18543_v28 = vld [vmem:[#allocation21_spill] sm:$0xff] }
 0x42c   : > { %18539 = vst [vmem:[#allocation66_spill] sm:$0xff] %v14650_v41  ;;  %9749 = vmatprep.subr.bf16.mxu1 %v18376_v14  ;;  %v3264_v53 = vld [vmem:[%s18068_s8 + $0x380] sm:$0xff]  ;;  %v3265_v55 = vld [vmem:[%s18068_s8 + $0x388] sm:$0xff] }
 0x42e   : > { %3843 = vmatmul.mubr.f32.gmra.mrb[90].mxu1 %v18540_v36  ;;  %v14660_v30 = vpop.f32.mrb[82].mxu0 }
 0x42f   : > { %18541 = vst [vmem:[#allocation20_spill] sm:$0xff] %v14660_v30  ;;  %3847 = vmatprep.mubr.f32.mxu1 %v14082_v10  ;;  %v14663_v50 = vpop.f32.mrb[83].mxu0  ;;  %9751 = vmatpush1.bf16.msra.mxu1 %v9750_v39  ;;  %v9756_v39 = vpack.c.bf16 %v3263_v59, %v3262_v15  ;;  %v18546_v30 = vld [vmem:[#allocation22_spill] sm:$0xff]  ;;  %v3267_v59 = vld [vmem:[%s18068_s8 + $0x398] sm:$0xff] }
 0x430   : > { %18542 = vst [vmem:[#allocation67_spill] sm:$0xff] %v14663_v50  ;;  %9752 = vmatprep.subr.bf16.mxu1 %v18376_v14  ;;  %v3266_v15 = vld [vmem:[%s18068_s8 + $0x390] sm:$0xff] }
 0x432   : > { %3848 = vmatmul.mubr.f32.gmra.mrb[92].mxu1 %v18543_v28  ;;  %v14673_v41 = vpop.f32.mrb[84].mxu0 }
 0x433   : > { %18544 = vst [vmem:[#allocation21_spill] sm:$0xff] %v14673_v41  ;;  %3852 = vmatprep.mubr.f32.mxu1 %v14086_v11  ;;  %v14676_v10 = vpop.f32.mrb[85].mxu0  ;;  %9754 = vmatpush1.bf16.msra.mxu1 %v9753_v45  ;;  %v9759_v45 = vpack.c.bf16 %v3265_v55, %v3264_v53  ;;  %v18549_v41 = vld [vmem:[#allocation58_spill] sm:$0xff]  ;;  %v3268_v53 = vld [vmem:[%s18068_s8 + $0x3a0] sm:$0xff] }
 0x434   : > { %18545 = vst [vmem:[#allocation68_spill] sm:$0xff] %v14676_v10  ;;  %9755 = vmatprep.subr.bf16.mxu1 %v18376_v14  ;;  %v3269_v55 = vld [vmem:[%s18068_s8 + $0x3a8] sm:$0xff] }
 0x436   : > { %3853 = vmatmul.mubr.f32.gmra.mrb[94].mxu1 %v18546_v30  ;;  %v14686_v50 = vpop.f32.mrb[86].mxu0 }
 0x437   : > { %18547 = vst [vmem:[#allocation22_spill] sm:$0xff] %v14686_v50  ;;  %3857 = vmatprep.mubr.f32.mxu1 %v14094_v58  ;;  %v14689_v11 = vpop.f32.mrb[87].mxu0  ;;  %9757 = vmatpush1.bf16.msra.mxu1 %v9756_v39  ;;  %v9762_v39 = vpack.c.bf16 %v3267_v59, %v3266_v15  ;;  %v18552_v50 = vld [vmem:[#allocation57_spill] sm:$0xff]  ;;  %v3270_v15 = vld [vmem:[%s18068_s8 + $0x3b0] sm:$0xff]  ;;  %v3271_v59 = vld [vmem:[%s18068_s8 + $0x3b8] sm:$0xff] }
 0x438   : > { %18548 = vst [vmem:[#allocation69_spill] sm:$0xff] %v14689_v11  ;;  %9758 = vmatprep.subr.bf16.mxu1 %v18376_v14 }
 0x43a   : > { %3858 = vmatmul.mubr.f32.gmra.mrb[96].mxu1 %v18549_v41  ;;  %v14699_v10 = vpop.f32.mrb[88].mxu0 }
 0x43b   : > { %18550 = vst [vmem:[#allocation58_spill] sm:$0xff] %v14699_v10  ;;  %3862 = vmatprep.mubr.f32.mxu1 %v14107_v32  ;;  %v14702_v58 = vpop.f32.mrb[89].mxu0  ;;  %9760 = vmatpush1.bf16.msra.mxu1 %v9759_v45  ;;  %v9765_v45 = vpack.c.bf16 %v3269_v55, %v3268_v53  ;;  %v18554_v10 = vld [vmem:[#allocation60_spill] sm:$0xff]  ;;  %v3273_v55 = vld [vmem:[%s18068_s8 + $0x3c8] sm:$0xff] }
 0x43c   : > { %18551 = vst [vmem:[#allocation70_spill] sm:$0xff] %v14702_v58  ;;  %9761 = vmatprep.subr.bf16.mxu1 %v18376_v14  ;;  %v3272_v53 = vld [vmem:[%s18068_s8 + $0x3c0] sm:$0xff] }
 0x43e   : > { %3863 = vmatmul.mubr.f32.gmra.mrb[98].mxu1 %v18552_v50  ;;  %v14712_v11 = vpop.f32.mrb[90].mxu0 }
 0x43f   : > { %18553 = vst [vmem:[#allocation57_spill] sm:$0xff] %v14712_v11  ;;  %3867 = vmatprep.mubr.f32.mxu1 %v14112_v27  ;;  %v14715_v32 = vpop.f32.mrb[91].mxu0  ;;  %9763 = vmatpush1.bf16.msra.mxu1 %v9762_v39  ;;  %v9768_v39 = vpack.c.bf16 %v3271_v59, %v3270_v15  ;;  %v18556_v11 = vld [vmem:[#allocation13_spill] sm:$0xff]  ;;  %v3275_v15 = vld [vmem:[%s18068_s8 + $0x3d8] sm:$0xff]  ;;  %v18557_v59 = vld [vmem:[#allocation18_spill] sm:$0xff] }
 0x440   : > { %9764 = vmatprep.subr.bf16.mxu1 %v18376_v14 }
 0x442   : > { %3868 = vmatmul.mubr.f32.gmra.mrb[100].mxu1 %v18554_v10  ;;  %v14725_v58 = vpop.f32.mrb[92].mxu0 }
 0x443   : > { %18555 = vst [vmem:[#allocation60_spill] sm:$0xff] %v14725_v58  ;;  %3872 = vmatprep.mubr.f32.mxu1 %v14124_v26  ;;  %v14728_v27 = vpop.f32.mrb[93].mxu0  ;;  %9766 = vmatpush1.bf16.msra.mxu1 %v9765_v45  ;;  %v9771_v26 = vpack.c.bf16 %v3273_v55, %v3272_v53  ;;  %v3274_v45 = vld [vmem:[%s18068_s8 + $0x3d0] sm:$0xff] }
 0x444   : > { %9767 = vmatprep.subr.bf16.mxu1 %v18376_v14  ;;  %v9774_v58 = vpack.c.bf16 %v3275_v15, %v3274_v45  ;;  %v18558_v53 = vld [vmem:[#allocation14_spill] sm:$0xff]  ;;  %v18559_v45 = vld [vmem:[#allocation23_spill] sm:$0xff] }
 0x446   : > { %3873 = vmatmul.mubr.f32.gmra.mrb[102].mxu1 %v18556_v11 }
 0x447   : > { %3877 = vmatprep.mubr.f32.mxu1 %v14129_v22  ;;  %9769 = vmatpush1.bf16.msra.mxu1 %v9768_v39  ;;  %v3276_v22 = vld [vmem:[%s18068_s8 + $0x3e0] sm:$0xff]  ;;  %v3277_v39 = vld [vmem:[%s18068_s8 + $0x3e8] sm:$0xff] }
 0x448   : > { %9770 = vmatprep.subr.bf16.mxu1 %v18376_v14  ;;  %v9777_v55 = vpack.c.bf16 %v3277_v39, %v3276_v22  ;;  %v18562_v22 = vld [vmem:[#allocation27_spill] sm:$0xff] }
 0x449   : > { %v18565_v39 = vld [vmem:[#allocation31_spill] sm:$0xff] }
 0x44a   : > { %3878 = vmatmul.mubr.f32.gmra.mrb[104].mxu1 %v18557_v59 }
 0x44b   : > { %3882 = vmatprep.mubr.f32.mxu1 %v14142_v56  ;;  %9772 = vmatpush1.bf16.msra.mxu1 %v9771_v26  ;;  %v3278_v56 = vld [vmem:[%s18068_s8 + $0x3f0] sm:$0xff]  ;;  %v3279_v26 = vld [vmem:[%s18068_s8 + $0x3f8] sm:$0xff] }
 0x44c   : > { %9773 = vmatprep.subr.bf16.mxu1 %v18376_v14  ;;  %v9780_v15 = vpack.c.bf16 %v3279_v26, %v3278_v56  ;;  %v5027_v56 = vld [vmem:[%s18070_s10 + $0x10] sm:$0xff]  ;;  %v5028_v26 = vld [vmem:[%s18070_s10 + $0x18] sm:$0xff] }
 0x44e   : > { %3883 = vmatmul.mubr.f32.gmra.mrb[106].mxu1 %v18558_v53 }
 0x44f   : > { %3887 = vmatprep.mubr.f32.mxu1 %v14147_v37  ;;  %9775 = vmatpush1.bf16.msra.mxu1 %v9774_v58  ;;  %v18560_v37 = vld [vmem:[#allocation25_spill] sm:$0xff]  ;;  %v18561_v58 = vld [vmem:[#allocation26_spill] sm:$0xff] }
 0x450   : > { %9776 = vmatprep.subr.bf16.mxu1 %v18376_v14 }
 0x452   : > { %3888 = vmatmul.mubr.f32.gmra.mrb[108].mxu1 %v18559_v45 }
 0x453   : > { %3892 = vmatprep.mubr.f32.mxu1 %v14159_v7  ;;  %9778 = vmatpush1.bf16.msra.mxu1 %v9777_v55  ;;  %v18563_v7 = vld [vmem:[#allocation28_spill] sm:$0xff] }
 0x454   : > { %9779 = vmatprep.subr.bf16.mxu1 %v18376_v14  ;;  %v18574_v55 = vld [vmem:[#allocation44_spill] sm:$0xff] }
 0x456   : > { %3893 = vmatmul.mubr.f32.gmra.mrb[110].mxu1 %v18560_v37 }
 0x457   : > { %3897 = vmatprep.mubr.f32.mxu1 %v14164_v4  ;;  %9781 = vmatpush1.bf16.msra.mxu1 %v9780_v15  ;;  %v18564_v4 = vld [vmem:[#allocation29_spill] sm:$0xff]  ;;  %v9818_v15 = vpack.c.bf16 %v5028_v26, %v5027_v56  ;;  %v5040_v56 = vld [vmem:[%s18070_s10 + $0x78] sm:$0xff] }
 0x458   : > { %9814 = vmatprep.subr.bf16.mxu1 %v18376_v14  ;;  %v5042_v26 = vld [vmem:[%s18070_s10 + $0x88] sm:$0xff] }
 0x45a   : > { %3898 = vmatmul.mubr.f32.gmra.mrb[112].mxu1 %v18561_v58 }
 0x45b   : > { %3902 = vmatprep.mubr.f32.mxu1 %v14177_v61  ;;  %v18566_v61 = vld [vmem:[#allocation33_spill] sm:$0xff] }
 0x45e   : > { %3903 = vmatmul.mubr.f32.gmra.mrb[114].mxu1 %v18562_v22 }
 0x45f   : > { %3907 = vmatprep.mubr.f32.mxu1 %v18509_v52  ;;  %v18567_v52 = vld [vmem:[#allocation35_spill] sm:$0xff] }
 0x462   : > { %3908 = vmatmul.mubr.f32.gmra.mrb[116].mxu1 %v18563_v7 }
 0x463   : > { %3912 = vmatprep.mubr.f32.mxu1 %v18510_v12  ;;  %v18568_v12 = vld [vmem:[#allocation37_spill] sm:$0xff] }
 0x466   : > { %3913 = vmatmul.mubr.f32.gmra.mrb[118].mxu1 %v13824_v8 }
 0x467   : > { %3917 = vmatprep.mubr.f32.mxu1 %v18511_v47  ;;  %v18569_v47 = vld [vmem:[#allocation39_spill] sm:$0xff] }
 0x46a   : > { %3918 = vmatmul.mubr.f32.gmra.mrb[120].mxu1 %v18564_v4 }
 0x46b   : > { %3922 = vmatprep.mubr.f32.mxu1 %v18512_v49  ;;  %v18570_v49 = vld [vmem:[#allocation41_spill] sm:$0xff] }
 0x46e   : > { %3923 = vmatmul.mubr.f32.gmra.mrb[122].mxu1 %v18565_v39 }
 0x46f   : > { %3927 = vmatprep.mubr.f32.mxu1 %v18513_v6  ;;  %v18571_v6 = vld [vmem:[#allocation43_spill] sm:$0xff] }
 0x472   : > { %3928 = vmatmul.mubr.f32.gmra.mrb[124].mxu1 %v18566_v61 }
 0x473   : > { %3932 = vmatprep.mubr.f32.mxu1 %v18514_v9  ;;  %v18572_v9 = vld [vmem:[#allocation45_spill] sm:$0xff] }
 0x476   : > { %3933 = vmatmul.mubr.f32.gmra.mrb[126].mxu1 %v18567_v52 }
 0x477   : > { %3937 = vmatprep.mubr.f32.mxu1 %v18515_v54  ;;  %v18573_v54 = vld [vmem:[#allocation46_spill] sm:$0xff] }
 0x47a   : > { %3938 = vmatmul.mubr.f32.gmra.mrb[128].mxu1 %v18568_v12 }
 0x47b   : > { %3942 = vmatprep.mubr.f32.mxu1 %v14247_v40  ;;  %v14799_v40 = vrot.slane %v14551_v51, 1 }
 0x47d   : > { %9283 = vmatprep.mubr.f32.mxu0 %v14799_v40 }
 0x47e   : > { %3943 = vmatmul.mubr.f32.gmra.mrb[130].mxu1 %v18569_v47  ;;  %9284 = vmatmul.mubr.f32.gmra.mrb[94].mxu0 %v14799_v40 }
 0x47f   : > { %3947 = vmatprep.mubr.f32.mxu1 %v14252_v63  ;;  %v18575_v63 = vld [vmem:[#allocation55_spill] sm:$0xff] }
 0x482   : > { %3948 = vmatmul.mubr.f32.gmra.mrb[132].mxu1 %v18570_v49 }
 0x483   : > { %3952 = vmatprep.mubr.f32.mxu1 %v14264_v17  ;;  %v5025_v17 = vld [vmem:[%s18070_s10] sm:$0xff] }
 0x486   : > { %3953 = vmatmul.mubr.f32.gmra.mrb[134].mxu1 %v18571_v6 }
 0x487   : > { %3957 = vmatprep.mubr.f32.mxu1 %v18523_v31 }
 0x48a   : > { %3958 = vmatmul.mubr.f32.gmra.mrb[136].mxu1 %v18572_v9 }
 0x48b   : > { %3962 = vmatprep.mubr.f32.mxu1 %v14282_v24  ;;  %v5026_v24 = vld [vmem:[%s18070_s10 + $0x8] sm:$0xff] }
 0x48c   : > { %v9815_v31 = vpack.c.bf16 %v5026_v24, %v5025_v17  ;;  %v5034_v17 = vld [vmem:[%s18070_s10 + $0x48] sm:$0xff]  ;;  %v5036_v24 = vld [vmem:[%s18070_s10 + $0x58] sm:$0xff] }
 0x48e   : > { %3963 = vmatmul.mubr.f32.gmra.mrb[138].mxu1 %v18573_v54 }
 0x48f   : > { %3967 = vmatprep.mubr.f32.mxu1 %v18574_v55  ;;  %v5030_v55 = vld [vmem:[%s18070_s10 + $0x28] sm:$0xff] }
 0x492   : > { %3968 = vmatmul.mubr.f32.gmra.mrb[140].mxu1 %v13947_v44 }
 0x493   : > { %3972 = vmatprep.mubr.f32.mxu1 %v18575_v63  ;;  %v5032_v63 = vld [vmem:[%s18070_s10 + $0x38] sm:$0xff] }
 0x496   : > { %3973 = vmatmul.mubr.f32.gmra.mrb[142].mxu1 %v18522_v34 }
 0x497   : > { %4042 = vmatprep.mubr.f32.mxu1 %v18531_v48  ;;  %v5029_v48 = vld [vmem:[%s18070_s10 + $0x20] sm:$0xff] }
 0x49a   : > { %4043 = vmatmul.mubr.f32.vlgmr.msra.gmra.mrb[80].mxu1 %v13996_v16  ;;  %v9821_v16 = vpack.c.bf16 %v5030_v55, %v5029_v48  ;;  %v5046_v48 = vld [vmem:[%s18070_s10 + $0xa8] sm:$0xff]  ;;  %v5048_v55 = vld [vmem:[%s18070_s10 + $0xb8] sm:$0xff] }
 0x49b   : > { %4047 = vmatprep.mubr.f32.mxu1 %v18534_v20  ;;  %9816 = vmatpush1.bf16.msra.mxu1 %v9815_v31  ;;  %v5031_v20 = vld [vmem:[%s18070_s10 + $0x30] sm:$0xff]  ;;  %v5038_v31 = vld [vmem:[%s18070_s10 + $0x68] sm:$0xff] }
 0x49c   : > { %9817 = vmatprep.subr.bf16.mxu1 %v18376_v14 }
 0x49e   : > { %4048 = vmatmul.mubr.f32.gmra.mrb[82].mxu1 %v14014_v62  ;;  %v9824_v62 = vpack.c.bf16 %v5032_v63, %v5031_v20  ;;  %v5052_v20 = vld [vmem:[%s18070_s10 + $0xd8] sm:$0xff]  ;;  %v5054_v63 = vld [vmem:[%s18070_s10 + $0xe8] sm:$0xff] }
 0x49f   : > { %4052 = vmatprep.mubr.f32.mxu1 %v18537_v43  ;;  %9819 = vmatpush1.bf16.msra.mxu1 %v9818_v15  ;;  %v5033_v43 = vld [vmem:[%s18070_s10 + $0x40] sm:$0xff]  ;;  %v5044_v15 = vld [vmem:[%s18070_s10 + $0x98] sm:$0xff] }
 0x4a0   : > { %9820 = vmatprep.subr.bf16.mxu1 %v18376_v14 }
 0x4a2   : > { %4053 = vmatmul.mubr.f32.gmra.mrb[84].mxu1 %v14035_v33  ;;  %v9827_v33 = vpack.c.bf16 %v5034_v17, %v5033_v43  ;;  %v5160_v43 = vld [vmem:[%s18070_s10 + $0x438] sm:$0xff] }
 0x4a3   : > { %4057 = vmatprep.mubr.f32.mxu1 %v18540_v36  ;;  %9822 = vmatpush1.bf16.msra.mxu1 %v9821_v16  ;;  %v5035_v36 = vld [vmem:[%s18070_s10 + $0x50] sm:$0xff]  ;;  %v5050_v16 = vld [vmem:[%s18070_s10 + $0xc8] sm:$0xff] }
 0x4a4   : > { %9823 = vmatprep.subr.bf16.mxu1 %v18376_v14 }
 0x4a6   : > { %4058 = vmatmul.mubr.f32.gmra.mrb[86].mxu1 %v14047_v3  ;;  %v9830_v3 = vpack.c.bf16 %v5036_v24, %v5035_v36  ;;  %v5162_v36 = vld [vmem:[%s18070_s10 + $0x448] sm:$0xff] }
 0x4a7   : > { %4062 = vmatprep.mubr.f32.mxu1 %v18543_v28  ;;  %9825 = vmatpush1.bf16.msra.mxu1 %v9824_v62  ;;  %v5037_v28 = vld [vmem:[%s18070_s10 + $0x60] sm:$0xff]  ;;  %v5159_v62 = vld [vmem:[%s18070_s10 + $0x430] sm:$0xff] }
 0x4a8   : > { %9826 = vmatprep.subr.bf16.mxu1 %v18376_v14  ;;  %v10018_v17 = vpack.c.bf16 %v5160_v43, %v5159_v62  ;;  %v5081_v62 = vld [vmem:[%s18070_s10 + $0x1c0] sm:$0xff]  ;;  %v5082_v43 = vld [vmem:[%s18070_s10 + $0x1c8] sm:$0xff] }
 0x4aa   : > { %4063 = vmatmul.mubr.f32.gmra.mrb[88].mxu1 %v14066_v25  ;;  %v9833_v25 = vpack.c.bf16 %v5038_v31, %v5037_v28  ;;  %v5164_v28 = vld [vmem:[%s18070_s10 + $0x458] sm:$0xff] }
 0x4ab   : > { %4067 = vmatprep.mubr.f32.mxu1 %v18546_v30  ;;  %9828 = vmatpush1.bf16.msra.mxu1 %v9827_v33  ;;  %v5039_v30 = vld [vmem:[%s18070_s10 + $0x70] sm:$0xff]  ;;  %v18581_v33 = vld [vmem:[#allocation56_spill] sm:$0xff] }
 0x4ac   : > { %9829 = vmatprep.subr.bf16.mxu1 %v18376_v14 }
 0x4ae   : > { %4068 = vmatmul.mubr.f32.gmra.mrb[90].mxu1 %v14079_v35  ;;  %v9836_v35 = vpack.c.bf16 %v5040_v56, %v5039_v30  ;;  %v5166_v30 = vld [vmem:[%s18070_s10 + $0x468] sm:$0xff] }
 0x4af   : > { %4072 = vmatprep.mubr.f32.mxu1 %v18549_v41  ;;  %9831 = vmatpush1.bf16.msra.mxu1 %v9830_v3  ;;  %v5041_v41 = vld [vmem:[%s18070_s10 + $0x80] sm:$0xff]  ;;  %v18582_v3 = vld [vmem:[#allocation51_spill] sm:$0xff] }
 0x4b0   : > { %9832 = vmatprep.subr.bf16.mxu1 %v18376_v14 }
 0x4b2   : > { %4073 = vmatmul.mubr.f32.gmra.mrb[92].mxu1 %v14100_v1  ;;  %v9839_v1 = vpack.c.bf16 %v5042_v26, %v5041_v41  ;;  %v5168_v41 = vld [vmem:[%s18070_s10 + $0x478] sm:$0xff] }
 0x4b3   : > { %4077 = vmatprep.mubr.f32.mxu1 %v18552_v50  ;;  %9834 = vmatpush1.bf16.msra.mxu1 %v9833_v25  ;;  %v5043_v50 = vld [vmem:[%s18070_s10 + $0x90] sm:$0xff] }
 0x4b4   : > { %9835 = vmatprep.subr.bf16.mxu1 %v18376_v14  ;;  %v18583_v25 = vld [vmem:[#allocation54_spill] sm:$0xff] }
 0x4b6   : > { %4078 = vmatmul.mubr.f32.gmra.mrb[94].mxu1 %v14117_v21  ;;  %v9842_v21 = vpack.c.bf16 %v5044_v15, %v5043_v50  ;;  %v18586_v50 = vld [vmem:[#allocation40_spill] sm:$0xff] }
 0x4b7   : > { %4082 = vmatprep.mubr.f32.mxu1 %v18554_v10  ;;  %9837 = vmatpush1.bf16.msra.mxu1 %v9836_v35  ;;  %v5045_v10 = vld [vmem:[%s18070_s10 + $0xa0] sm:$0xff] }
 0x4b8   : > { %9838 = vmatprep.subr.bf16.mxu1 %v18376_v14  ;;  %v18584_v35 = vld [vmem:[#allocation53_spill] sm:$0xff] }
 0x4b9   : > { %v5057_v15 = vld [vmem:[%s18070_s10 + $0x100] sm:$0xff] }
 0x4ba   : > { %4083 = vmatmul.mubr.f32.gmra.mrb[96].mxu1 %v14135_v18  ;;  %v9845_v18 = vpack.c.bf16 %v5046_v48, %v5045_v10  ;;  %v5059_v10 = vld [vmem:[%s18070_s10 + $0x110] sm:$0xff]  ;;  %v5060_v48 = vld [vmem:[%s18070_s10 + $0x118] sm:$0xff] }
 0x4bb   : > { %4087 = vmatprep.mubr.f32.mxu1 %v18556_v11  ;;  %9840 = vmatpush1.bf16.msra.mxu1 %v9839_v1  ;;  %v5047_v11 = vld [vmem:[%s18070_s10 + $0xb0] sm:$0xff]  ;;  %v18585_v1 = vld [vmem:[#allocation36_spill] sm:$0xff] }
 0x4bc   : > { %9841 = vmatprep.subr.bf16.mxu1 %v18376_v14 }
 0x4be   : > { %4088 = vmatmul.mubr.f32.gmra.mrb[98].mxu1 %v14152_v23  ;;  %v9848_v23 = vpack.c.bf16 %v5048_v55, %v5047_v11  ;;  %v5061_v11 = vld [vmem:[%s18070_s10 + $0x120] sm:$0xff]  ;;  %v5062_v55 = vld [vmem:[%s18070_s10 + $0x128] sm:$0xff] }
 0x4bf   : > { %4092 = vmatprep.mubr.f32.mxu1 %v18557_v59  ;;  %9843 = vmatpush1.bf16.msra.mxu1 %v9842_v21  ;;  %v5049_v59 = vld [vmem:[%s18070_s10 + $0xc0] sm:$0xff]  ;;  %v5058_v21 = vld [vmem:[%s18070_s10 + $0x108] sm:$0xff] }
 0x4c0   : > { %9844 = vmatprep.subr.bf16.mxu1 %v18376_v14 }
 0x4c2   : > { %4093 = vmatmul.mubr.f32.gmra.mrb[100].mxu1 %v14170_v42  ;;  %v9851_v42 = vpack.c.bf16 %v5050_v16, %v5049_v59  ;;  %v5064_v59 = vld [vmem:[%s18070_s10 + $0x138] sm:$0xff] }
 0x4c3   : > { %4097 = vmatprep.mubr.f32.mxu1 %v18558_v53  ;;  %9846 = vmatpush1.bf16.msra.mxu1 %v9845_v18  ;;  %v5051_v53 = vld [vmem:[%s18070_s10 + $0xd0] sm:$0xff]  ;;  %v9866_v18 = vpack.c.bf16 %v5060_v48, %v5059_v10 }
 0x4c4   : > { %9847 = vmatprep.subr.bf16.mxu1 %v18376_v14 }
 0x4c6   : > { %4098 = vmatmul.mubr.f32.gmra.mrb[102].mxu1 %v14187_v57  ;;  %v9854_v57 = vpack.c.bf16 %v5052_v20, %v5051_v53  ;;  %v5066_v53 = vld [vmem:[%s18070_s10 + $0x148] sm:$0xff] }
 0x4c7   : > { %4102 = vmatprep.mubr.f32.mxu1 %v18559_v45  ;;  %9849 = vmatpush1.bf16.msra.mxu1 %v9848_v23  ;;  %v5053_v45 = vld [vmem:[%s18070_s10 + $0xe0] sm:$0xff]  ;;  %v9869_v23 = vpack.c.bf16 %v5062_v55, %v5061_v11  ;;  %v4461_v55 = vld [vmem:[%s11943_s29 + $0x8] sm:$0xff] }
 0x4c8   : > { %9850 = vmatprep.subr.bf16.mxu1 %v18376_v14 }
 0x4ca   : > { %4103 = vmatmul.mubr.f32.gmra.mrb[104].mxu1 %v14205_v13  ;;  %v9857_v13 = vpack.c.bf16 %v5054_v63, %v5053_v45  ;;  %v5068_v45 = vld [vmem:[%s18070_s10 + $0x158] sm:$0xff] }
 0x4cb   : > { %4107 = vmatprep.mubr.f32.mxu1 %v18560_v37  ;;  %9852 = vmatpush1.bf16.msra.mxu1 %v9851_v42  ;;  %v5156_v37 = vld [vmem:[%s18070_s10 + $0x418] sm:$0xff]  ;;  %v5065_v42 = vld [vmem:[%s18070_s10 + $0x140] sm:$0xff] }
 0x4cc   : > { %9853 = vmatprep.subr.bf16.mxu1 %v18376_v14  ;;  %v9875_v20 = vpack.c.bf16 %v5066_v53, %v5065_v42  ;;  %v18590_v53 = vld [vmem:[#allocation34_spill] sm:$0xff] }
 0x4ce   : > { %4108 = vmatmul.mubr.f32.gmra.mrb[106].mxu1 %v14222_v2  ;;  %v18576_v2 = vld [vmem:[#allocation48_spill] sm:$0xff] }
 0x4cf   : > { %4112 = vmatprep.mubr.f32.mxu1 %v18561_v58  ;;  %9855 = vmatpush1.bf16.msra.mxu1 %v9854_v57  ;;  %v5067_v57 = vld [vmem:[%s18070_s10 + $0x150] sm:$0xff] }
 0x4d0   : > { %9856 = vmatprep.subr.bf16.mxu1 %v18376_v14  ;;  %v9878_v63 = vpack.c.bf16 %v5068_v45, %v5067_v57  ;;  %v4462_v57 = vld [vmem:[%s11943_s29 + $0x10] sm:$0xff] }
 0x4d2   : > { %4113 = vmatmul.mubr.f32.gmra.mrb[108].mxu1 %v14240_v19  ;;  %v18577_v19 = vld [vmem:[#allocation47_spill] sm:$0xff] }
 0x4d3   : > { %4117 = vmatprep.mubr.f32.mxu1 %v18562_v22  ;;  %9858 = vmatpush1.bf16.msra.mxu1 %v9857_v13  ;;  %v18579_v22 = vld [vmem:[#allocation49_spill] sm:$0xff] }
 0x4d4   : > { %9859 = vmatprep.subr.bf16.mxu1 %v18376_v14  ;;  %v5069_v13 = vld [vmem:[%s18070_s10 + $0x160] sm:$0xff] }
 0x4d6   : > { %4118 = vmatmul.mubr.f32.gmra.mrb[110].mxu1 %v14257_v5  ;;  %v5154_v5 = vld [vmem:[%s18070_s10 + $0x408] sm:$0xff] }
 0x4d7   : > { %4122 = vmatprep.mubr.f32.mxu1 %v18563_v7  ;;  %v5055_v7 = vld [vmem:[%s18070_s10 + $0xf0] sm:$0xff] }
 0x4da   : > { %4123 = vmatmul.mubr.f32.gmra.mrb[112].mxu1 %v14275_v60  ;;  %v18578_v60 = vld [vmem:[#allocation50_spill] sm:$0xff] }
 0x4db   : > { %4127 = vmatprep.mubr.f32.mxu1 %v13824_v8  ;;  %v5153_v8 = vld [vmem:[%s18070_s10 + $0x400] sm:$0xff] }
 0x4de   : > { %4128 = vmatmul.mubr.f32.gmra.mrb[114].mxu1 %v14291_v0  ;;  %v10006_v0 = vpack.c.bf16 %v5154_v5, %v5153_v8  ;;  %v5071_v8 = vld [vmem:[%s18070_s10 + $0x170] sm:$0xff]  ;;  %v5072_v5 = vld [vmem:[%s18070_s10 + $0x178] sm:$0xff] }
 0x4df   : > { %4132 = vmatprep.mubr.f32.mxu1 %v18564_v4  ;;  %v5056_v4 = vld [vmem:[%s18070_s10 + $0xf8] sm:$0xff] }
 0x4e0   : > { %10007 = vmatprep.subr.bf16.mxu0 %v10006_v0 }
 0x4e1   : > { %10009 = vmatpush3.bf16.msra.mxu0 %v10006_v0  ;;  %v9884_v0 = vpack.c.bf16 %v5072_v5, %v5071_v8  ;;  %v18591_v8 = vld [vmem:[#allocation30_spill] sm:$0xff] }
 0x4e2   : > { %4133 = vmatmul.mubr.f32.gmra.mrb[116].mxu1 %v14303_v29  ;;  %v5155_v29 = vld [vmem:[%s18070_s10 + $0x410] sm:$0xff] }
 0x4e3   : > { %4137 = vmatprep.mubr.f32.mxu1 %v18565_v39  ;;  %v10010_v58 = vpack.c.bf16 %v5156_v37, %v5155_v29  ;;  %v5157_v39 = vld [vmem:[%s18070_s10 + $0x420] sm:$0xff]  ;;  %v5074_v29 = vld [vmem:[%s18070_s10 + $0x188] sm:$0xff] }
 0x4e5   : > { %10011 = vmatprep.subr.bf16.mxu0 %v10010_v58 }
 0x4e6   : > { %4138 = vmatmul.mubr.f32.gmra.mrb[118].mxu1 %v18576_v2  ;;  %10013 = vmatpush3.bf16.msra.mxu0 %v10010_v58  ;;  %v5070_v2 = vld [vmem:[%s18070_s10 + $0x168] sm:$0xff]  ;;  %v5075_v58 = vld [vmem:[%s18070_s10 + $0x190] sm:$0xff] }
 0x4e7   : > { %4142 = vmatprep.mubr.f32.mxu1 %v18566_v61  ;;  %v9860_v61 = vpack.c.bf16 %v5056_v4, %v5055_v7  ;;  %v5077_v4 = vld [vmem:[%s18070_s10 + $0x1a0] sm:$0xff] }
 0x4e9   : > { %9861 = vmatpush1.bf16.msra.mxu1 %v9860_v61 }
 0x4ea   : > { %4143 = vmatmul.mubr.f32.gmra.mrb[120].mxu1 %v18577_v19  ;;  %9862 = vmatprep.subr.bf16.mxu1 %v18376_v14  ;;  %v9881_v19 = vpack.c.bf16 %v5070_v2, %v5069_v13 }
 0x4eb   : > { %4147 = vmatprep.mubr.f32.mxu1 %v18567_v52  ;;  %v5158_v52 = vld [vmem:[%s18070_s10 + $0x428] sm:$0xff] }
 0x4ee   : > { %4148 = vmatmul.mubr.f32.gmra.mrb[122].mxu1 %v18578_v60  ;;  %v5073_v60 = vld [vmem:[%s18070_s10 + $0x180] sm:$0xff] }
 0x4ef   : > { %4152 = vmatprep.mubr.f32.mxu1 %v18568_v12  ;;  %v18580_v12 = vld [vmem:[#allocation52_spill] sm:$0xff]  ;;  %v9887_v37 = vpack.c.bf16 %v5074_v29, %v5073_v60 }
 0x4f2   : > { %4153 = vmatmul.mubr.f32.gmra.mrb[124].mxu1 %v18579_v22  ;;  %v5076_v22 = vld [vmem:[%s18070_s10 + $0x198] sm:$0xff] }
 0x4f3   : > { %4157 = vmatprep.mubr.f32.mxu1 %v18569_v47  ;;  %v10014_v47 = vpack.c.bf16 %v5158_v52, %v5157_v39  ;;  %v9890_v7 = vpack.c.bf16 %v5076_v22, %v5075_v58  ;;  %v5078_v39 = vld [vmem:[%s18070_s10 + $0x1a8] sm:$0xff]  ;;  %v5079_v52 = vld [vmem:[%s18070_s10 + $0x1b0] sm:$0xff] }
 0x4f4   : > { %v9893_v61 = vpack.c.bf16 %v5078_v39, %v5077_v4  ;;  %v18592_v39 = vld [vmem:[#allocation15_spill] sm:$0xff] }
 0x4f5   : > { %10015 = vmatprep.subr.bf16.mxu0 %v10014_v47 }
 0x4f6   : > { %4158 = vmatmul.mubr.f32.gmra.mrb[126].mxu1 %v18580_v12  ;;  %10017 = vmatpush3.bf16.msra.mxu0 %v10014_v47  ;;  %v5080_v12 = vld [vmem:[%s18070_s10 + $0x1b8] sm:$0xff] }
 0x4f7   : > { %4162 = vmatprep.mubr.f32.mxu1 %v18570_v49  ;;  %10019 = vmatprep.subr.bf16.mxu0 %v10018_v17  ;;  %v5161_v49 = vld [vmem:[%s18070_s10 + $0x440] sm:$0xff]  ;;  %v9896_v47 = vpack.c.bf16 %v5080_v12, %v5079_v52 }
 0x4f8   : > { %v10022_v24 = vpack.c.bf16 %v5162_v36, %v5161_v49  ;;  %v5083_v36 = vld [vmem:[%s18070_s10 + $0x1d0] sm:$0xff]  ;;  %v4464_v12 = vld [vmem:[%s11943_s29 + $0x20] sm:$0xff] }
 0x4fa   : > { %4163 = vmatmul.mubr.f32.gmra.mrb[128].mxu1 %v18581_v33  ;;  %10021 = vmatpush3.bf16.msra.mxu0 %v10018_v17  ;;  %v9899_v17 = vpack.c.bf16 %v5082_v43, %v5081_v62 }
 0x4fb   : > { %4167 = vmatprep.mubr.f32.mxu1 %v18571_v6  ;;  %10023 = vmatprep.subr.bf16.mxu0 %v10022_v24  ;;  %v5163_v6 = vld [vmem:[%s18070_s10 + $0x450] sm:$0xff] }
 0x4fc   : > { %v10026_v31 = vpack.c.bf16 %v5164_v28, %v5163_v6 }
 0x4fe   : > { %4168 = vmatmul.mubr.f32.gmra.mrb[130].mxu1 %v18582_v3  ;;  %10025 = vmatpush3.bf16.msra.mxu0 %v10022_v24  ;;  %v5084_v24 = vld [vmem:[%s18070_s10 + $0x1d8] sm:$0xff]  ;;  %v15138_v3 = vld [vmem:[%s18069_s9] ss:$0 sm:$0xff] }
 0x4ff   : > { %4172 = vmatprep.mubr.f32.mxu1 %v18572_v9  ;;  %10027 = vmatprep.subr.bf16.mxu0 %v10026_v31  ;;  %v5165_v9 = vld [vmem:[%s18070_s10 + $0x460] sm:$0xff]  ;;  %v9902_v6 = vpack.c.bf16 %v5084_v24, %v5083_v36 }
 0x500   : > { %v10030_v56 = vpack.c.bf16 %v5166_v30, %v5165_v9  ;;  %v18588_v9 = vld [vmem:[#allocation24_spill] sm:$0xff] }
 0x502   : > { %4173 = vmatmul.mubr.f32.gmra.mrb[132].mxu1 %v18583_v25  ;;  %10029 = vmatpush3.bf16.msra.mxu0 %v10026_v31 }
 0x503   : > { %4177 = vmatprep.mubr.f32.mxu1 %v18573_v54  ;;  %10031 = vmatprep.subr.bf16.mxu0 %v10030_v56  ;;  %v5167_v54 = vld [vmem:[%s18070_s10 + $0x470] sm:$0xff] }
 0x504   : > { %v10034_v26 = vpack.c.bf16 %v5168_v41, %v5167_v54  ;;  %v4460_v54 = vld [vmem:[%s11943_s29] sm:$0xff] }
 0x506   : > { %4178 = vmatmul.mubr.f32.gmra.mrb[134].mxu1 %v18584_v35  ;;  %10033 = vmatpush3.bf16.msra.mxu0 %v10030_v56  ;;  %v5085_v56 = vld [vmem:[%s18070_s10 + $0x1e0] sm:$0xff]  ;;  %v5086_v35 = vld [vmem:[%s18070_s10 + $0x1e8] sm:$0xff] }
 0x507   : > { %4182 = vmatprep.mubr.f32.mxu1 %v13947_v44  ;;  %10035 = vmatprep.subr.bf16.mxu0 %v10034_v26  ;;  %v18587_v44 = vld [vmem:[#allocation32_spill] sm:$0xff] }
 0x50a   : > { %4183 = vmatmul.mubr.f32.gmra.mrb[136].mxu1 %v18585_v1  ;;  %10037 = vmatpush3.bf16.msra.mxu0 %v10034_v26  ;;  %v9905_v26 = vpack.c.bf16 %v5086_v35, %v5085_v56 }
 0x50b   : > { %4187 = vmatprep.mubr.f32.mxu1 %v18522_v34  ;;  %v9863_v34 = vpack.c.bf16 %v5058_v21, %v5057_v15  ;;  %v5087_v21 = vld [vmem:[%s18070_s10 + $0x1f0] sm:$0xff] }
 0x50e   : > { %4188 = vmatmul.mubr.f32.gmra.mrb[138].mxu1 %v18586_v50 }
 0x50f   : > { %4192 = vmatprep.mubr.f32.mxu1 %v14551_v51 }
 0x512   : > { %4193 = vmatmul.mubr.f32.gmra.mrb[140].mxu1 %v18587_v44 }
 0x513   : > { %4197 = vmatprep.mubr.f32.mxu1 %v14551_v51 }
 0x516   : > { %4198 = vmatmul.mubr.f32.gmra.mrb[142].mxu1 %v18587_v44 }
 0x517   : > { %5240 = vmatprep.mubr.f32.mxu1 %v14551_v51 }
 0x51a   : > { %5241 = vmatmul.mubr.f32.vlgmr.msra.gmra.mrb[144].mxu1 %v18587_v44 }
 0x51b   : > { %9864 = vmatpush1.bf16.msra.mxu1 %v9863_v34  ;;  %5245 = vmatprep.mubr.f32.mxu1 %v14551_v51  ;;  %v5063_v51 = vld [vmem:[%s18070_s10 + $0x130] sm:$0xff]  ;;  %v5088_v34 = vld [vmem:[%s18070_s10 + $0x1f8] sm:$0xff] }
 0x51c   : > { %9865 = vmatprep.subr.bf16.mxu1 %v18376_v14  ;;  %v9872_v16 = vpack.c.bf16 %v5064_v59, %v5063_v51  ;;  %v9908_v10 = vpack.c.bf16 %v5088_v34, %v5087_v21  ;;  %v4466_v21 = vld [vmem:[%s11943_s29 + $0x30] sm:$0xff] }
 0x51e   : > { %5246 = vmatmul.mubr.f32.gmra.mrb[146].mxu1 %v18587_v44 }
 0x51f   : > { %9867 = vmatpush1.bf16.msra.mxu1 %v9866_v18  ;;  %v18589_v18 = vld [vmem:[#allocation59_spill] sm:$0xff] }
 0x520   : > { %9868 = vmatprep.subr.bf16.mxu1 %v18376_v14 }
 0x523   : > { %9870 = vmatpush1.bf16.msra.mxu1 %v9869_v23 }
 0x524   : > { %9871 = vmatprep.subr.bf16.mxu1 %v18376_v14 }
 0x527   : > { %9873 = vmatpush1.bf16.msra.mxu1 %v9872_v16 }
 0x528   : > { %9874 = vmatprep.subr.bf16.mxu1 %v18376_v14 }
 0x52b   : > { %9876 = vmatpush1.bf16.msra.mxu1 %v9875_v20 }
 0x52c   : > { %9877 = vmatprep.subr.bf16.mxu1 %v18376_v14 }
 0x52f   : > { %9879 = vmatpush1.bf16.msra.mxu1 %v9878_v63 }
 0x530   : > { %9880 = vmatprep.subr.bf16.mxu1 %v18376_v14 }
 0x533   : > { %9882 = vmatpush1.bf16.msra.mxu1 %v9881_v19 }
 0x534   : > { %9883 = vmatprep.subr.bf16.mxu1 %v18376_v14 }
 0x537   : > { %9885 = vmatpush1.bf16.msra.mxu1 %v9884_v0  ;;  %v4463_v0 = vld [vmem:[%s11943_s29 + $0x18] sm:$0xff] }
 0x538   : > { %9886 = vmatprep.subr.bf16.mxu1 %v18376_v14 }
 0x53b   : > { %9888 = vmatpush1.bf16.msra.mxu1 %v9887_v37 }
 0x53c   : > { %9889 = vmatprep.subr.bf16.mxu1 %v18376_v14 }
 0x53f   : > { %9891 = vmatpush1.bf16.msra.mxu1 %v9890_v7 }
 0x540   : > { %9892 = vmatprep.subr.bf16.mxu1 %v18376_v14 }
 0x543   : > { %9894 = vmatpush1.bf16.msra.mxu1 %v9893_v61 }
 0x544   : > { %9895 = vmatprep.subr.bf16.mxu1 %v18376_v14 }
 0x547   : > { %9897 = vmatpush1.bf16.msra.mxu1 %v9896_v47 }
 0x548   : > { %9898 = vmatprep.subr.bf16.mxu1 %v18376_v14 }
 0x54b   : > { %9900 = vmatpush1.bf16.msra.mxu1 %v9899_v17 }
 0x54c   : > { %9901 = vmatprep.subr.bf16.mxu1 %v18376_v14 }
 0x54f   : > { %9903 = vmatpush1.bf16.msra.mxu1 %v9902_v6 }
 0x550   : > { %9904 = vmatprep.subr.bf16.mxu1 %v18376_v14 }
 0x551   : > { %v15125_v33 = vpop.f32.mrb[94].mxu0 }
 0x552   : > { %v15127_v49 = vpop.f32.mrb[95].mxu0 }
 0x553   : > { %9906 = vmatpush1.bf16.msra.mxu1 %v9905_v26 }
 0x554   : > { %9907 = vmatprep.subr.bf16.mxu1 %v18376_v14 }
 0x557   : > { %9909 = vmatpush1.bf16.msra.mxu1 %v9908_v10 }
 0x558   : > { %9910 = vmatprep.subr.bf16.mxu1 %v18376_v14 }
 0x56d   : > { %v4044_v28 = vpop.f32.mrb[80].mxu1 }
 0x56e   : > { %v10478_v31 = vadd.f32 %v15138_v3, %v4044_v28  ;;  %v4046_v25 = vpop.f32.mrb[81].mxu1  ;;  %v18593_v28 = vld [vmem:[#allocation38_spill] sm:$0xff] }
 0x570   : > { %v4270_v30 = vadd.f32 %v10478_v31, %v18588_v9  ;;  %v4465_v9 = vld [vmem:[%s11943_s29 + $0x28] sm:$0xff] }
 0x571   : > { %v4049_v41 = vpop.f32.mrb[82].mxu1 }
 0x572   : > { %v4428_v1 = vmax.f32 %v4270_v30, 0.0  ;;  %v10479_v50 = vadd.f32 %v15138_v3, %v4049_v41  ;;  %v4051_v15 = vpop.f32.mrb[83].mxu1 }
 0x574   : > { %v4492_v48 = vadd.f32 %v4460_v54, %v4428_v1  ;;  %v4275_v11 = vadd.f32 %v10479_v50, %v18589_v18 }
 0x575   : > { %v4054_v23 = vpop.f32.mrb[84].mxu1 }
 0x576   : > { %4597 = vst.msk [vmem:[#allocation2 + $0x28] sm:$0xff] %vm4596_vm4, %v4492_v48  ;;  %v4429_v51 = vmax.f32 %v4275_v11, 0.0  ;;  %v10480_v59 = vadd.f32 %v15138_v3, %v4054_v23  ;;  %v4056_v16 = vpop.f32.mrb[85].mxu1 }
 0x577   : > { %v18595_v16 = vld [vmem:[#allocation42_spill] sm:$0xff] }
 0x578   : > { %v4493_v42 = vadd.f32 %v4461_v55, %v4429_v51  ;;  %v4280_v20 = vadd.f32 %v10480_v59, %v18590_v53  ;;  %v15205_v51 = vld [vmem:[#allocation2 + $0x8] sm:$0xff] }
 0x579   : > { %v4059_v45 = vpop.f32.mrb[86].mxu1 }
 0x57a   : > { %4598 = vst.msk [vmem:[#allocation2 + $0x30] sm:$0xff] %vm4596_vm4, %v4493_v42  ;;  %v4430_v63 = vmax.f32 %v4280_v20, 0.0  ;;  %v10481_v13 = vadd.f32 %v15138_v3, %v4059_v45  ;;  %v4061_v2 = vpop.f32.mrb[87].mxu1 }
 0x57c   : > { %v4494_v19 = vadd.f32 %v4462_v57, %v4430_v63  ;;  %v4285_v5 = vadd.f32 %v10481_v13, %v18591_v8  ;;  %v4467_v57 = vld [vmem:[%s11943_s29 + $0x38] sm:$0xff] }
 0x57d   : > { %v4064_v60 = vpop.f32.mrb[88].mxu1  ;;  %v15169_v29 = vld [vmem:[#allocation2 + $0x28] sm:$0xff] }
 0x57e   : > { %4599 = vst.msk [vmem:[#allocation2 + $0x48] sm:$0xff] %vm4596_vm4, %v4494_v19  ;;  %v4431_v37 = vmax.f32 %v4285_v5, 0.0  ;;  %v10482_v58 = vadd.f32 %v15138_v3, %v4064_v60  ;;  %v4066_v22 = vpop.f32.mrb[89].mxu1  ;;  %5250 = vmatprep.mubr.f32.mxu1 %v15169_v29  ;;  %v4755_v7 = vrot.slane %v15169_v29, 7 }
 0x580   : > { %v4495_v4 = vadd.f32 %v4463_v0, %v4431_v37  ;;  %v4290_v61 = vadd.f32 %v10482_v58, %v18592_v39  ;;  %v15178_v52 = vsel %vm1001_vm1, %v18587_v44, %v4755_v7  ;;  %v4468_v58 = vld [vmem:[%s11943_s29 + $0x40] sm:$0xff] }
 0x581   : > { %v4069_v47 = vpop.f32.mrb[90].mxu1  ;;  %5251 = vmatmul.mubr.f32.gmra.mrb[148].mxu1 %v15178_v52  ;;  %v15182_v62 = vld [vmem:[#allocation2 + $0x30] sm:$0xff] }
 0x582   : > { %4600 = vst.msk [vmem:[#allocation2 + $0x50] sm:$0xff] %vm4596_vm4, %v4495_v4  ;;  %v4432_v43 = vmax.f32 %v4290_v61, 0.0  ;;  %v10483_v17 = vadd.f32 %v15138_v3, %v4069_v47  ;;  %v4071_v36 = vpop.f32.mrb[91].mxu1  ;;  %5255 = vmatprep.mubr.f32.mxu1 %v15182_v62  ;;  %v4757_v24 = vrot.slane %v15182_v62, 7 }
 0x584   : > { %v4496_v6 = vadd.f32 %v4464_v12, %v4432_v43  ;;  %v4295_v31 = vadd.f32 %v10483_v17, %v18593_v28  ;;  %v15190_v25 = vsel %vm1001_vm1, %v4755_v7, %v4757_v24  ;;  %v18596_v17 = vld [vmem:[#allocation61_spill] sm:$0xff]  ;;  %v4469_v28 = vld [vmem:[%s11943_s29 + $0x48] sm:$0xff] }
 0x585   : > { %v4074_v30 = vpop.f32.mrb[92].mxu1  ;;  %5256 = vmatmul.mubr.f32.gmra.mrb[150].mxu1 %v15190_v25  ;;  %v4638_v56 = vld [vmem:[#allocation2 + $0x48] sm:$0xff] }
 0x586   : > { %4601 = vst.msk [vmem:[#allocation2 + $0x68] sm:$0xff] %vm4596_vm4, %v4496_v6  ;;  %v4433_v35 = vmax.f32 %v4295_v31, 0.0  ;;  %v10484_v54 = vadd.f32 %v15138_v3, %v4074_v30  ;;  %v4076_v41 = vpop.f32.mrb[93].mxu1  ;;  %5260 = vmatprep.mubr.f32.mxu1 %v4638_v56  ;;  %v4760_v26 = vrot.slane %v4638_v56, 7  ;;  %v4887_v48 = vrot.slane %v4638_v56, 1 }
 0x588   : > { %v4497_v1 = vadd.f32 %v4465_v9, %v4433_v35  ;;  %v4300_v50 = vadd.f32 %v10484_v54, %v14586_v38  ;;  %v15199_v15 = vsel %vm1001_vm1, %v18587_v44, %v4760_v26  ;;  %v15208_v44 = vrot.slane %v15205_v51, 7 }
 0x589   : > { %v4079_v34 = vpop.f32.mrb[94].mxu1  ;;  %5261 = vmatmul.mubr.f32.gmra.mrb[152].mxu1 %v15199_v15  ;;  %v4639_v10 = vld [vmem:[#allocation2 + $0x50] sm:$0xff] }
 0x58a   : > { %4602 = vst.msk [vmem:[#allocation2 + $0x70] sm:$0xff] %vm4596_vm4, %v4497_v1  ;;  %v4434_v18 = vmax.f32 %v4300_v50, 0.0  ;;  %v10485_v11 = vadd.f32 %v15138_v3, %v4079_v34  ;;  %v4081_v55 = vpop.f32.mrb[95].mxu1  ;;  %5265 = vmatprep.mubr.f32.mxu1 %v4639_v10  ;;  %v4762_v23 = vrot.slane %v4639_v10, 7  ;;  %v4888_v38 = vrot.slane %v4639_v10, 1  ;;  %18594 = vst [vmem:[#allocation13_spill] sm:$0xff] %v15208_v44 }
 0x58b   : > { %v18597_v1 = vld [vmem:[#allocation63_spill] sm:$0xff] }
 0x58c   : > { %v4498_v59 = vadd.f32 %v4466_v21, %v4434_v18  ;;  %v4305_v42 = vadd.f32 %v10485_v11, %v18595_v16  ;;  %v15212_v53 = vsel %vm1001_vm1, %v4760_v26, %v4762_v23  ;;  %v15215_v20 = vsel %vm1130_vm2, %v4887_v48, %v4888_v38  ;;  %v4470_v34 = vld [vmem:[%s11943_s29 + $0x50] sm:$0xff] }
 0x58d   : > { %v4084_v45 = vpop.f32.mrb[96].mxu1  ;;  %5266 = vmatmul.mubr.f32.gmra.mrb[154].mxu1 %v15212_v53  ;;  %9318 = vmatprep.mubr.f32.mxu0 %v15215_v20  ;;  %v4642_v63 = vld [vmem:[#allocation2 + $0x68] sm:$0xff]  ;;  %v15222_v13 = vsel %vm1130_vm2, %v4888_v38, %v14799_v40 }
 0x58e   : > { %4603 = vst.msk [vmem:[#allocation2 + $0x88] sm:$0xff] %vm4596_vm4, %v4498_v59  ;;  %v4435_v2 = vmax.f32 %v4305_v42, 0.0  ;;  %v10486_v19 = vadd.f32 %v15138_v3, %v4084_v45  ;;  %v4086_v8 = vpop.f32.mrb[97].mxu1  ;;  %5270 = vmatprep.mubr.f32.mxu1 %v4642_v63  ;;  %9319 = vmatmul.mubr.f32.vlgmr.msra.gmra.mrb[96].mxu0 %v15222_v13  ;;  %v4765_v5 = vrot.slane %v4642_v63, 7  ;;  %v4892_v4 = vrot.slane %v4642_v63, 1  ;;  %v18598_v42 = vld [vmem:[#allocation62_spill] sm:$0xff] }
 0x590   : > { %v4499_v0 = vadd.f32 %v4467_v57, %v4435_v2  ;;  %v4310_v60 = vadd.f32 %v10486_v19, %v14598_v46  ;;  %v15230_v37 = vsel %vm1001_vm1, %v15208_v44, %v4765_v5  ;;  %v4471_v2 = vld [vmem:[%s11943_s29 + $0x58] sm:$0xff] }
 0x591   : > { %v4089_v22 = vpop.f32.mrb[98].mxu1  ;;  %5271 = vmatmul.mubr.f32.gmra.mrb[156].mxu1 %v15230_v37  ;;  %v4643_v7 = vld [vmem:[#allocation2 + $0x70] sm:$0xff] }
 0x592   : > { %4604 = vst.msk [vmem:[#allocation2 + $0x90] sm:$0xff] %vm4596_vm4, %v4499_v0  ;;  %v4436_v39 = vmax.f32 %v4310_v60, 0.0  ;;  %v10487_v61 = vadd.f32 %v15138_v3, %v4089_v22  ;;  %v4091_v12 = vpop.f32.mrb[99].mxu1  ;;  %5275 = vmatprep.mubr.f32.mxu1 %v4643_v7  ;;  %v4767_v47 = vrot.slane %v4643_v7, 7  ;;  %v4893_v46 = vrot.slane %v4643_v7, 1 }
 0x593   : > { %v4472_v12 = vld [vmem:[%s11943_s29 + $0x60] sm:$0xff] }
 0x594   : > { %v4500_v43 = vadd.f32 %v4468_v58, %v4436_v39  ;;  %v4315_v36 = vadd.f32 %v10487_v61, %v18596_v17  ;;  %v15238_v24 = vsel %vm1001_vm1, %v4765_v5, %v4767_v47  ;;  %v15241_v6 = vsel %vm1130_vm2, %v4892_v4, %v4893_v46  ;;  %v18599_v4 = vld [vmem:[#allocation64_spill] sm:$0xff] }
 0x595   : > { %v4094_v31 = vpop.f32.mrb[100].mxu1  ;;  %5276 = vmatmul.mubr.f32.gmra.mrb[158].mxu1 %v15238_v24  ;;  %9321 = vmatprep.mubr.f32.mxu0 %v15241_v6  ;;  %v4646_v9 = vld [vmem:[#allocation2 + $0x88] sm:$0xff]  ;;  %v15248_v30 = vsel %vm1130_vm2, %v4893_v46, %v14799_v40 }
 0x596   : > { %4605 = vst.msk [vmem:[#allocation2 + $0xa8] sm:$0xff] %vm4596_vm4, %v4500_v43  ;;  %v4437_v56 = vmax.f32 %v4315_v36, 0.0  ;;  %v10488_v35 = vadd.f32 %v15138_v3, %v4094_v31  ;;  %v4096_v54 = vpop.f32.mrb[101].mxu1  ;;  %5280 = vmatprep.mubr.f32.mxu1 %v4646_v9  ;;  %9322 = vmatmul.mubr.f32.gmra.mrb[98].mxu0 %v15248_v30  ;;  %v4770_v41 = vrot.slane %v4646_v9, 7  ;;  %v4897_v18 = vrot.slane %v4646_v9, 1 }
 0x598   : > { %v4501_v26 = vadd.f32 %v4469_v28, %v4437_v56  ;;  %v4320_v50 = vadd.f32 %v10488_v35, %v18597_v1  ;;  %v15256_v21 = vsel %vm1001_vm1, %v15208_v44, %v4770_v41  ;;  %v18600_v35 = vld [vmem:[#allocation16_spill] sm:$0xff]  ;;  %v4473_v1 = vld [vmem:[%s11943_s29 + $0x68] sm:$0xff] }
 0x599   : > { %v4099_v10 = vpop.f32.mrb[102].mxu1  ;;  %5281 = vmatmul.mubr.f32.gmra.mrb[160].mxu1 %v15256_v21  ;;  %v4647_v48 = vld [vmem:[#allocation2 + $0x90] sm:$0xff] }
 0x59a   : > { %4606 = vst.msk [vmem:[#allocation2 + $0xb0] sm:$0xff] %vm4596_vm4, %v4501_v26  ;;  %v4438_v11 = vmax.f32 %v4320_v50, 0.0  ;;  %v10489_v55 = vadd.f32 %v15138_v3, %v4099_v10  ;;  %v4101_v23 = vpop.f32.mrb[103].mxu1  ;;  %5285 = vmatprep.mubr.f32.mxu1 %v4647_v48  ;;  %v4772_v38 = vrot.slane %v4647_v48, 7  ;;  %v4898_v59 = vrot.slane %v4647_v48, 1 }
 0x59c   : > { %v4502_v16 = vadd.f32 %v4470_v34, %v4438_v11  ;;  %v4325_v57 = vadd.f32 %v10489_v55, %v18598_v42  ;;  %v15264_v45 = vsel %vm1001_vm1, %v4770_v41, %v4772_v38  ;;  %v15267_v63 = vsel %vm1130_vm2, %v4897_v18, %v4898_v59  ;;  %v18601_v38 = vld [vmem:[#allocation65_spill] sm:$0xff]  ;;  %v4474_v42 = vld [vmem:[%s11943_s29 + $0x70] sm:$0xff] }
 0x59d   : > { %v4104_v19 = vpop.f32.mrb[104].mxu1  ;;  %5286 = vmatmul.mubr.f32.gmra.mrb[162].mxu1 %v15264_v45  ;;  %9324 = vmatprep.mubr.f32.mxu0 %v15267_v63  ;;  %v4650_v8 = vld [vmem:[#allocation2 + $0xa8] sm:$0xff]  ;;  %v15274_v5 = vsel %vm1130_vm2, %v4898_v59, %v14799_v40 }
 0x59e   : > { %4607 = vst.msk [vmem:[#allocation2 + $0xc8] sm:$0xff] %vm4596_vm4, %v4502_v16  ;;  %v4439_v0 = vmax.f32 %v4325_v57, 0.0  ;;  %v10490_v60 = vadd.f32 %v15138_v3, %v4104_v19  ;;  %v4106_v58 = vpop.f32.mrb[105].mxu1  ;;  %5290 = vmatprep.mubr.f32.mxu1 %v4650_v8  ;;  %9325 = vmatmul.mubr.f32.gmra.mrb[100].mxu0 %v15274_v5  ;;  %v4775_v22 = vrot.slane %v4650_v8, 7  ;;  %v4902_v43 = vrot.slane %v4650_v8, 1 }
 0x5a0   : > { %v4503_v7 = vadd.f32 %v4471_v2, %v4439_v0  ;;  %v4330_v39 = vadd.f32 %v10490_v60, %v18599_v4  ;;  %v15282_v61 = vsel %vm1001_vm1, %v15208_v44, %v4775_v22  ;;  %v18602_v4 = vld [vmem:[#allocation17_spill] sm:$0xff] }
 0x5a1   : > { %v4109_v47 = vpop.f32.mrb[106].mxu1  ;;  %5291 = vmatmul.mubr.f32.gmra.mrb[164].mxu1 %v15282_v61  ;;  %v4651_v46 = vld [vmem:[#allocation2 + $0xb0] sm:$0xff] }
 0x5a2   : > { %4608 = vst.msk [vmem:[#allocation2 + $0xd0] sm:$0xff] %vm4596_vm4, %v4503_v7  ;;  %v4440_v17 = vmax.f32 %v4330_v39, 0.0  ;;  %v10491_v36 = vadd.f32 %v15138_v3, %v4109_v47  ;;  %v4111_v28 = vpop.f32.mrb[107].mxu1  ;;  %5295 = vmatprep.mubr.f32.mxu1 %v4651_v46  ;;  %v4777_v31 = vrot.slane %v4651_v46, 7  ;;  %v4903_v9 = vrot.slane %v4651_v46, 1  ;;  %v4475_v46 = vld [vmem:[%s11943_s29 + $0x78] sm:$0xff] }
 0x5a4   : > { %v4504_v56 = vadd.f32 %v4472_v12, %v4440_v17  ;;  %v4335_v54 = vadd.f32 %v10491_v36, %v18600_v35  ;;  %v15290_v41 = vsel %vm1001_vm1, %v4775_v22, %v4777_v31  ;;  %v15293_v26 = vsel %vm1130_vm2, %v4902_v43, %v4903_v9 }
 0x5a5   : > { %v4114_v50 = vpop.f32.mrb[108].mxu1  ;;  %5296 = vmatmul.mubr.f32.gmra.mrb[166].mxu1 %v15290_v41  ;;  %9327 = vmatprep.mubr.f32.mxu0 %v15293_v26  ;;  %v4654_v34 = vld [vmem:[#allocation2 + $0xc8] sm:$0xff]  ;;  %v15300_v10 = vsel %vm1130_vm2, %v4903_v9, %v14799_v40 }
 0x5a6   : > { %4609 = vst.msk [vmem:[#allocation2 + $0xe8] sm:$0xff] %vm4596_vm4, %v4504_v56  ;;  %v4441_v48 = vmax.f32 %v4335_v54, 0.0  ;;  %v10492_v18 = vadd.f32 %v15138_v3, %v4114_v50  ;;  %v4116_v11 = vpop.f32.mrb[109].mxu1  ;;  %5300 = vmatprep.mubr.f32.mxu1 %v4654_v34  ;;  %9328 = vmatmul.mubr.f32.gmra.mrb[102].mxu0 %v15300_v10  ;;  %v4780_v55 = vrot.slane %v4654_v34, 7  ;;  %v4907_v19 = vrot.slane %v4654_v34, 1  ;;  %v18603_v54 = vld [vmem:[#allocation66_spill] sm:$0xff] }
 0x5a7   : > { %v4476_v34 = vld [vmem:[%s11943_s29 + $0x80] sm:$0xff] }
 0x5a8   : > { %v4505_v23 = vadd.f32 %v4473_v1, %v4441_v48  ;;  %v4340_v59 = vadd.f32 %v10492_v18, %v18601_v38  ;;  %v15308_v16 = vsel %vm1001_vm1, %v15208_v44, %v4780_v55 }
 0x5a9   : > { %v4119_v57 = vpop.f32.mrb[110].mxu1  ;;  %5301 = vmatmul.mubr.f32.gmra.mrb[168].mxu1 %v15308_v16  ;;  %v4655_v2 = vld [vmem:[#allocation2 + $0xd0] sm:$0xff] }
 0x5aa   : > { %4610 = vst.msk [vmem:[#allocation2 + $0xf0] sm:$0xff] %vm4596_vm4, %v4505_v23  ;;  %v4442_v8 = vmax.f32 %v4340_v59, 0.0  ;;  %v10493_v0 = vadd.f32 %v15138_v3, %v4119_v57  ;;  %v4121_v60 = vpop.f32.mrb[111].mxu1  ;;  %5305 = vmatprep.mubr.f32.mxu1 %v4655_v2  ;;  %v4782_v58 = vrot.slane %v4655_v2, 7  ;;  %v4908_v22 = vrot.slane %v4655_v2, 1  ;;  %v18604_v2 = vld [vmem:[#allocation19_spill] sm:$0xff] }
 0x5ab   : > { %v4477_v60 = vld [vmem:[%s11943_s29 + $0x88] sm:$0xff] }
 0x5ac   : > { %v4506_v7 = vadd.f32 %v4474_v42, %v4442_v8  ;;  %v4345_v39 = vadd.f32 %v10493_v0, %v18602_v4  ;;  %v15316_v12 = vsel %vm1001_vm1, %v4780_v55, %v4782_v58  ;;  %v15319_v47 = vsel %vm1130_vm2, %v4907_v19, %v4908_v22 }
 0x5ad   : > { %v4124_v43 = vpop.f32.mrb[112].mxu1  ;;  %5306 = vmatmul.mubr.f32.gmra.mrb[170].mxu1 %v15316_v12  ;;  %9330 = vmatprep.mubr.f32.mxu0 %v15319_v47  ;;  %v4658_v17 = vld [vmem:[#allocation2 + $0xe8] sm:$0xff]  ;;  %v15326_v36 = vsel %vm1130_vm2, %v4908_v22, %v14799_v40 }
 0x5ae   : > { %4611 = vst.msk [vmem:[#allocation2 + $0x108] sm:$0xff] %vm4596_vm4, %v4506_v7  ;;  %v4443_v28 = vmax.f32 %v4345_v39, 0.0  ;;  %v10494_v31 = vadd.f32 %v15138_v3, %v4124_v43  ;;  %v4126_v9 = vpop.f32.mrb[113].mxu1  ;;  %5310 = vmatprep.mubr.f32.mxu1 %v4658_v17  ;;  %9331 = vmatmul.mubr.f32.gmra.mrb[104].mxu0 %v15326_v36  ;;  %v4785_v56 = vrot.slane %v4658_v17, 7  ;;  %v4912_v11 = vrot.slane %v4658_v17, 1 }
 0x5b0   : > { %v4507_v35 = vadd.f32 %v4475_v46, %v4443_v28  ;;  %v4350_v1 = vadd.f32 %v10494_v31, %v18603_v54  ;;  %v15334_v50 = vsel %vm1001_vm1, %v15208_v44, %v4785_v56  ;;  %v18605_v28 = vld [vmem:[#allocation67_spill] sm:$0xff] }
 0x5b1   : > { %v4129_v48 = vpop.f32.mrb[114].mxu1  ;;  %5311 = vmatmul.mubr.f32.gmra.mrb[172].mxu1 %v15334_v50  ;;  %v4659_v18 = vld [vmem:[#allocation2 + $0xf0] sm:$0xff] }
 0x5b2   : > { %4612 = vst.msk [vmem:[#allocation2 + $0x110] sm:$0xff] %vm4596_vm4, %v4507_v35  ;;  %v4444_v55 = vmax.f32 %v4350_v1, 0.0  ;;  %v10495_v23 = vadd.f32 %v15138_v3, %v4129_v48  ;;  %v4131_v38 = vpop.f32.mrb[115].mxu1  ;;  %5315 = vmatprep.mubr.f32.mxu1 %v4659_v18  ;;  %v4787_v59 = vrot.slane %v4659_v18, 7  ;;  %v4913_v42 = vrot.slane %v4659_v18, 1 }
 0x5b4   : > { %v4508_v57 = vadd.f32 %v4476_v34, %v4444_v55  ;;  %v4355_v19 = vadd.f32 %v10495_v23, %v18604_v2  ;;  %v15342_v8 = vsel %vm1001_vm1, %v4785_v56, %v4787_v59  ;;  %v15345_v0 = vsel %vm1130_vm2, %v4912_v11, %v4913_v42  ;;  %v4478_v56 = vld [vmem:[%s11943_s29 + $0x90] sm:$0xff]  ;;  %v18606_v59 = vld [vmem:[#allocation20_spill] sm:$0xff] }
 0x5b5   : > { %v4134_v58 = vpop.f32.mrb[116].mxu1  ;;  %5316 = vmatmul.mubr.f32.gmra.mrb[174].mxu1 %v15342_v8  ;;  %9333 = vmatprep.mubr.f32.mxu0 %v15345_v0  ;;  %v4662_v22 = vld [vmem:[#allocation2 + $0x108] sm:$0xff]  ;;  %v15352_v7 = vsel %vm1130_vm2, %v4913_v42, %v14799_v40  ;;  %v15367_v23 = vrot.slane %v15205_v51, 1 }
 0x5b6   : > { %4613 = vst.msk [vmem:[#allocation2 + $0x128] sm:$0xff] %vm4596_vm4, %v4508_v57  ;;  %v4445_v4 = vmax.f32 %v4355_v19, 0.0  ;;  %v10496_v39 = vadd.f32 %v15138_v3, %v4134_v58  ;;  %v4136_v46 = vpop.f32.mrb[117].mxu1  ;;  %5320 = vmatprep.mubr.f32.mxu1 %v4662_v22  ;;  %9334 = vmatmul.mubr.f32.gmra.mrb[106].mxu0 %v15352_v7  ;;  %v4790_v43 = vrot.slane %v4662_v22, 7  ;;  %v4917_v1 = vrot.slane %v4662_v22, 1  ;;  %v4479_v19 = vld [vmem:[%s11943_s29 + $0x98] sm:$0xff] }
 0x5b8   : > { %v4509_v17 = vadd.f32 %v4477_v60, %v4445_v4  ;;  %v4360_v31 = vadd.f32 %v10496_v39, %v18605_v28  ;;  %v15360_v9 = vsel %vm1001_vm1, %v15208_v44, %v4790_v43 }
 0x5b9   : > { %v4139_v35 = vpop.f32.mrb[118].mxu1  ;;  %5321 = vmatmul.mubr.f32.gmra.mrb[176].mxu1 %v15360_v9  ;;  %v4663_v54 = vld [vmem:[#allocation2 + $0x110] sm:$0xff] }
 0x5ba   : > { %4614 = vst.msk [vmem:[#allocation2 + $0x130] sm:$0xff] %vm4596_vm4, %v4509_v17  ;;  %v4446_v34 = vmax.f32 %v4360_v31, 0.0  ;;  %v10497_v48 = vadd.f32 %v15138_v3, %v4139_v35  ;;  %v4141_v18 = vpop.f32.mrb[119].mxu1  ;;  %5325 = vmatprep.mubr.f32.mxu1 %v4663_v54  ;;  %v4792_v11 = vrot.slane %v4663_v54, 7  ;;  %v4918_v55 = vrot.slane %v4663_v54, 1  ;;  %v18608_v17 = vld [vmem:[#allocation68_spill] sm:$0xff] }
 0x5bc   : > { %v4510_v38 = vadd.f32 %v4478_v56, %v4446_v34  ;;  %v4365_v42 = vadd.f32 %v10497_v48, %v18606_v59  ;;  %v15371_v57 = vsel %vm1001_vm1, %v4790_v43, %v4792_v11  ;;  %v15374_v2 = vsel %vm1130_vm2, %v4917_v1, %v4918_v55  ;;  %v4480_v56 = vld [vmem:[%s11943_s29 + $0xa0] sm:$0xff] }
 0x5bd   : > { %v4144_v60 = vpop.f32.mrb[120].mxu1  ;;  %5326 = vmatmul.mubr.f32.gmra.mrb[178].mxu1 %v15371_v57  ;;  %9336 = vmatprep.mubr.f32.mxu0 %v15374_v2  ;;  %v15379_v58 = vld [vmem:[#allocation2 + $0x128] sm:$0xff]  ;;  %v15383_v51 = vsel %vm1130_vm2, %v4918_v55, %v15367_v23 }
 0x5be   : > { %18607 = vst [vmem:[#allocation18_spill] sm:$0xff] %v15379_v58  ;;  %4615 = vst.msk [vmem:[#allocation2 + $0x148] sm:$0xff] %vm4596_vm4, %v4510_v38  ;;  %v4447_v22 = vmax.f32 %v4365_v42, 0.0  ;;  %v10498_v4 = vadd.f32 %v15138_v3, %v4144_v60  ;;  %v4146_v39 = vpop.f32.mrb[121].mxu1  ;;  %5330 = vmatprep.mubr.f32.mxu1 %v15379_v58  ;;  %9337 = vmatmul.mubr.f32.gmra.mrb[108].mxu0 %v15383_v51  ;;  %v4795_v46 = vrot.slane %v15379_v58, 7  ;;  %v4922_v1 = vrot.slane %v15379_v58, 1 }
 0x5bf   : > { %v18610_v59 = vld [vmem:[#allocation21_spill] sm:$0xff] }
 0x5c0   : > { %v4511_v43 = vadd.f32 %v4479_v19, %v4447_v22  ;;  %v4370_v28 = vadd.f32 %v10498_v4, %v18608_v17  ;;  %v15393_v31 = vsel %vm1001_vm1, %v15208_v44, %v4795_v46  ;;  %v4481_v22 = vld [vmem:[%s11943_s29 + $0xa8] sm:$0xff] }
 0x5c1   : > { %v4149_v35 = vpop.f32.mrb[122].mxu1  ;;  %5331 = vmatmul.mubr.f32.gmra.mrb[180].mxu1 %v15393_v31  ;;  %v15397_v54 = vld [vmem:[#allocation2 + $0x130] sm:$0xff] }
 0x5c2   : > { %18609 = vst [vmem:[#allocation14_spill] sm:$0xff] %v15397_v54  ;;  %4616 = vst.msk [vmem:[#allocation2 + $0x150] sm:$0xff] %vm4596_vm4, %v4511_v43  ;;  %v4448_v34 = vmax.f32 %v4370_v28, 0.0  ;;  %v10499_v48 = vadd.f32 %v15138_v3, %v4149_v35  ;;  %v4151_v18 = vpop.f32.mrb[123].mxu1  ;;  %5335 = vmatprep.mubr.f32.mxu1 %v15397_v54  ;;  %v4797_v11 = vrot.slane %v15397_v54, 7  ;;  %v4923_v55 = vrot.slane %v15397_v54, 1 }
 0x5c3   : > { %v4482_v18 = vld [vmem:[%s11943_s29 + $0xb0] sm:$0xff] }
 0x5c4   : > { %v4512_v38 = vadd.f32 %v4480_v56, %v4448_v34  ;;  %v4375_v42 = vadd.f32 %v10499_v48, %v18610_v59  ;;  %v15407_v19 = vsel %vm1001_vm1, %v4795_v46, %v4797_v11  ;;  %v15410_v60 = vsel %vm1130_vm2, %v4922_v1, %v4923_v55  ;;  %v18612_v1 = vld [vmem:[#allocation69_spill] sm:$0xff] }
 0x5c5   : > { %v4154_v4 = vpop.f32.mrb[124].mxu1  ;;  %5336 = vmatmul.mubr.f32.gmra.mrb[182].mxu1 %v15407_v19  ;;  %9339 = vmatprep.mubr.f32.mxu0 %v15410_v60  ;;  %v15415_v39 = vld [vmem:[#allocation2 + $0x148] sm:$0xff]  ;;  %v15419_v43 = vsel %vm1130_vm2, %v4923_v55, %v15367_v23 }
 0x5c6   : > { %18611 = vst [vmem:[#allocation23_spill] sm:$0xff] %v15415_v39  ;;  %4617 = vst.msk [vmem:[#allocation2 + $0x168] sm:$0xff] %vm4596_vm4, %v4512_v38  ;;  %v4449_v46 = vmax.f32 %v4375_v42, 0.0  ;;  %v10500_v17 = vadd.f32 %v15138_v3, %v4154_v4  ;;  %v4156_v28 = vpop.f32.mrb[125].mxu1  ;;  %5340 = vmatprep.mubr.f32.mxu1 %v15415_v39  ;;  %9340 = vmatmul.mubr.f32.gmra.mrb[110].mxu0 %v15419_v43  ;;  %v4800_v56 = vrot.slane %v15415_v39, 7  ;;  %v4927_v38 = vrot.slane %v15415_v39, 1 }
 0x5c7   : > { %v18614_v28 = vld [vmem:[#allocation22_spill] sm:$0xff] }
 0x5c8   : > { %v4513_v35 = vadd.f32 %v4481_v22, %v4449_v46  ;;  %v4380_v34 = vadd.f32 %v10500_v17, %v18612_v1  ;;  %v15429_v48 = vsel %vm1001_vm1, %v15208_v44, %v4800_v56 }
 0x5c9   : > { %v4159_v11 = vpop.f32.mrb[126].mxu1  ;;  %5341 = vmatmul.mubr.f32.gmra.mrb[184].mxu1 %v15429_v48  ;;  %v15433_v55 = vld [vmem:[#allocation2 + $0x150] sm:$0xff] }
 0x5ca   : > { %18613 = vst [vmem:[#allocation25_spill] sm:$0xff] %v15433_v55  ;;  %4618 = vst.msk [vmem:[#allocation2 + $0x170] sm:$0xff] %vm4596_vm4, %v4513_v35  ;;  %v4450_v59 = vmax.f32 %v4380_v34, 0.0  ;;  %v10501_v42 = vadd.f32 %v15138_v3, %v4159_v11  ;;  %v4161_v22 = vpop.f32.mrb[127].mxu1  ;;  %5345 = vmatprep.mubr.f32.mxu1 %v15433_v55  ;;  %v4802_v4 = vrot.slane %v15433_v55, 7  ;;  %v4928_v46 = vrot.slane %v15433_v55, 1 }
 0x5cb   : > { %v4483_v35 = vld [vmem:[%s11943_s29 + $0xb8] sm:$0xff] }
 0x5cc   : > { %v4514_v17 = vadd.f32 %v4482_v18, %v4450_v59  ;;  %v4385_v1 = vadd.f32 %v10501_v42, %v18614_v28  ;;  %v15443_v54 = vsel %vm1001_vm1, %v4800_v56, %v4802_v4  ;;  %v15446_v39 = vsel %vm1130_vm2, %v4927_v38, %v4928_v46  ;;  %v18618_v4 = vld [vmem:[#allocation70_spill] sm:$0xff] }
 0x5cd   : > { %18615 = vst [vmem:[#allocation26_spill] sm:$0xff] %v15446_v39  ;;  %v4164_v34 = vpop.f32.mrb[128].mxu1  ;;  %5346 = vmatmul.mubr.f32.gmra.mrb[186].mxu1 %v15443_v54  ;;  %9342 = vmatprep.mubr.f32.mxu0 %v15446_v39  ;;  %v15451_v11 = vld [vmem:[#allocation2 + $0x168] sm:$0xff]  ;;  %v15455_v18 = vsel %vm1130_vm2, %v4928_v46, %v15367_v23 }
 0x5ce   : > { %18616 = vst [vmem:[#allocation27_spill] sm:$0xff] %v15451_v11  ;;  %18617 = vst [vmem:[#allocation28_spill] sm:$0xff] %v15455_v18  ;;  %v4451_v56 = vmax.f32 %v4385_v1, 0.0  ;;  %v10502_v59 = vadd.f32 %v15138_v3, %v4164_v34  ;;  %v4166_v38 = vpop.f32.mrb[129].mxu1  ;;  %5350 = vmatprep.mubr.f32.mxu1 %v15451_v11  ;;  %9343 = vmatmul.mubr.f32.gmra.mrb[112].mxu0 %v15455_v18  ;;  %v4805_v42 = vrot.slane %v15451_v11, 7  ;;  %v4484_v46 = vld [vmem:[%s11943_s29 + $0xc0] sm:$0xff] }
 0x5cf   : > { %4619 = vst.msk [vmem:[#allocation2 + $0x188] sm:$0xff] %vm4596_vm4, %v4514_v17  ;;  %v4932_v34 = vrot.slane %v15451_v11, 1  ;;  %v18621_v18 = vld [vmem:[#allocation58_spill] sm:$0xff] }
 0x5d0   : > { %v4515_v22 = vadd.f32 %v4483_v35, %v4451_v56  ;;  %v4390_v28 = vadd.f32 %v10502_v59, %v18618_v4  ;;  %v15465_v55 = vsel %vm1001_vm1, %v15208_v44, %v4805_v42 }
 0x5d1   : > { %18619 = vst [vmem:[#allocation29_spill] sm:$0xff] %v15465_v55  ;;  %v4169_v17 = vpop.f32.mrb[130].mxu1  ;;  %5351 = vmatmul.mubr.f32.gmra.mrb[188].mxu1 %v15465_v55  ;;  %v15469_v1 = vld [vmem:[#allocation2 + $0x170] sm:$0xff] }
 0x5d2   : > { %18620 = vst [vmem:[#allocation31_spill] sm:$0xff] %v15469_v1  ;;  %4620 = vst.msk [vmem:[#allocation2 + $0x190] sm:$0xff] %vm4596_vm4, %v4515_v22  ;;  %v4452_v38 = vmax.f32 %v4390_v28, 0.0  ;;  %v10503_v35 = vadd.f32 %v15138_v3, %v4169_v17  ;;  %v4171_v56 = vpop.f32.mrb[131].mxu1  ;;  %5355 = vmatprep.mubr.f32.mxu1 %v15469_v1  ;;  %v4807_v59 = vrot.slane %v15469_v1, 7  ;;  %v4933_v4 = vrot.slane %v15469_v1, 1 }
 0x5d3   : > { %v4485_v22 = vld [vmem:[%s11943_s29 + $0xc8] sm:$0xff] }
 0x5d4   : > { %v4516_v58 = vadd.f32 %v4484_v46, %v4452_v38  ;;  %v4395_v39 = vadd.f32 %v10503_v35, %v18621_v18  ;;  %v15479_v55 = vsel %vm1001_vm1, %v4805_v42, %v4807_v59  ;;  %v15482_v11 = vsel %vm1130_vm2, %v4932_v34, %v4933_v4 }
 0x5d5   : > { %18622 = vst [vmem:[#allocation33_spill] sm:$0xff] %v15479_v55  ;;  %18623 = vst [vmem:[#allocation35_spill] sm:$0xff] %v15482_v11  ;;  %v4174_v28 = vpop.f32.mrb[132].mxu1  ;;  %5356 = vmatmul.mubr.f32.gmra.mrb[190].mxu1 %v15479_v55  ;;  %9345 = vmatprep.mubr.f32.mxu0 %v15482_v11  ;;  %v15491_v46 = vsel %vm1130_vm2, %v4933_v4, %v15367_v23  ;;  %v4486_v4 = vld [vmem:[%s11943_s29 + $0xd0] sm:$0xff] }
 0x5d6   : > { %v15487_v17 = vld [vmem:[#allocation2 + $0x188] sm:$0xff]  ;;  %18625 = vst [vmem:[#allocation39_spill] sm:$0xff] %v15491_v46  ;;  %4621 = vst.msk [vmem:[#allocation2 + $0x1a8] sm:$0xff] %vm4596_vm4, %v4516_v58  ;;  %v4453_v18 = vmax.f32 %v4395_v39, 0.0  ;;  %v10504_v42 = vadd.f32 %v15138_v3, %v4174_v28  ;;  %v4176_v34 = vpop.f32.mrb[133].mxu1  ;;  %9346 = vmatmul.mubr.f32.gmra.mrb[114].mxu0 %v15491_v46 }
 0x5d7   : > { %18624 = vst [vmem:[#allocation37_spill] sm:$0xff] %v15487_v17  ;;  %5360 = vmatprep.mubr.f32.mxu1 %v15487_v17  ;;  %v4810_v38 = vrot.slane %v15487_v17, 7  ;;  %v4937_v28 = vrot.slane %v15487_v17, 1  ;;  %v18628_v46 = vld [vmem:[#allocation57_spill] sm:$0xff] }
 0x5d8   : > { %v4517_v35 = vadd.f32 %v4485_v22, %v4453_v18  ;;  %v4400_v56 = vadd.f32 %v10504_v42, %v14715_v32 }
 0x5d9   : > { %v15501_v59 = vsel %vm1001_vm1, %v15208_v44, %v4810_v38  ;;  %v4179_v58 = vpop.f32.mrb[134].mxu1  ;;  %v15505_v39 = vld [vmem:[#allocation2 + $0x190] sm:$0xff] }
 0x5da   : > { %18626 = vst [vmem:[#allocation41_spill] sm:$0xff] %v15501_v59  ;;  %5361 = vmatmul.mubr.f32.gmra.mrb[192].mxu1 %v15501_v59  ;;  %18627 = vst [vmem:[#allocation43_spill] sm:$0xff] %v15505_v39  ;;  %v4454_v34 = vmax.f32 %v4400_v56, 0.0  ;;  %v10505_v22 = vadd.f32 %v15138_v3, %v4179_v58  ;;  %v4181_v18 = vpop.f32.mrb[135].mxu1  ;;  %v4812_v32 = vrot.slane %v15505_v39, 7  ;;  %v4938_v42 = vrot.slane %v15505_v39, 1 }
 0x5db   : > { %4622 = vst.msk [vmem:[#allocation2 + $0x1b0] sm:$0xff] %vm4596_vm4, %v4517_v35  ;;  %5365 = vmatprep.mubr.f32.mxu1 %v15505_v39  ;;  %v4487_v35 = vld [vmem:[%s11943_s29 + $0xd8] sm:$0xff] }
 0x5dc   : > { %v4518_v1 = vadd.f32 %v4486_v4, %v4454_v34  ;;  %v4405_v11 = vadd.f32 %v10505_v22, %v18628_v46  ;;  %v15515_v59 = vsel %vm1001_vm1, %v4810_v38, %v4812_v32  ;;  %v15518_v17 = vsel %vm1130_vm2, %v4937_v28, %v4938_v42 }
 0x5dd   : > { %18629 = vst [vmem:[#allocation45_spill] sm:$0xff] %v15515_v59  ;;  %18630 = vst [vmem:[#allocation46_spill] sm:$0xff] %v15518_v17  ;;  %v4184_v56 = vpop.f32.mrb[136].mxu1  ;;  %9348 = vmatprep.mubr.f32.mxu0 %v15518_v17  ;;  %v15523_v58 = vld [vmem:[#allocation2 + $0x1a8] sm:$0xff]  ;;  %v15527_v4 = vsel %vm1130_vm2, %v4938_v42, %v15367_v23 }
 0x5de   : > { %5366 = vmatmul.mubr.f32.gmra.mrb[194].mxu1 %v15515_v59  ;;  %18631 = vst [vmem:[#allocation44_spill] sm:$0xff] %v15523_v58  ;;  %18632 = vst [vmem:[#allocation55_spill] sm:$0xff] %v15527_v4  ;;  %v4455_v46 = vmax.f32 %v4405_v11, 0.0  ;;  %v10506_v38 = vadd.f32 %v15138_v3, %v4184_v56  ;;  %v4186_v28 = vpop.f32.mrb[137].mxu1  ;;  %9349 = vmatmul.mubr.f32.gmra.mrb[116].mxu0 %v15527_v4  ;;  %v4815_v34 = vrot.slane %v15523_v58, 7  ;;  %v4488_v42 = vld [vmem:[%s11943_s29 + $0xe0] sm:$0xff] }
 0x5df   : > { %4623 = vst.msk [vmem:[#allocation2 + $0x1c8] sm:$0xff] %vm4596_vm4, %v4518_v1  ;;  %5370 = vmatprep.mubr.f32.mxu1 %v15523_v58  ;;  %v4942_v56 = vrot.slane %v15523_v58, 1  ;;  %v18635_v4 = vld [vmem:[#allocation60_spill] sm:$0xff] }
 0x5e0   : > { %v4519_v22 = vadd.f32 %v4487_v35, %v4455_v46  ;;  %v4410_v18 = vadd.f32 %v10506_v38, %v14728_v27  ;;  %v15537_v32 = vsel %vm1001_vm1, %v15208_v44, %v4815_v34 }
 0x5e1   : > { %18633 = vst [vmem:[#allocation48_spill] sm:$0xff] %v15537_v32  ;;  %v4189_v1 = vpop.f32.mrb[138].mxu1 }
 0x5e2   : > { %5371 = vmatmul.mubr.f32.gmra.mrb[196].mxu1 %v15537_v32  ;;  %v15541_v11 = vld [vmem:[#allocation2 + $0x1b0] sm:$0xff]  ;;  %4624 = vst.msk [vmem:[#allocation2 + $0x1d0] sm:$0xff] %vm4596_vm4, %v4519_v22  ;;  %v4456_v28 = vmax.f32 %v4410_v18, 0.0  ;;  %v10507_v35 = vadd.f32 %v15138_v3, %v4189_v1  ;;  %v4191_v46 = vpop.f32.mrb[139].mxu1 }
 0x5e3   : > { %18634 = vst [vmem:[#allocation47_spill] sm:$0xff] %v15541_v11  ;;  %5375 = vmatprep.mubr.f32.mxu1 %v15541_v11  ;;  %v4817_v27 = vrot.slane %v15541_v11, 7  ;;  %v4943_v38 = vrot.slane %v15541_v11, 1  ;;  %v4489_v22 = vld [vmem:[%s11943_s29 + $0xe8] sm:$0xff] }
 0x5e4   : > { %v4520_v39 = vadd.f32 %v4488_v42, %v4456_v28  ;;  %v4415_v17 = vadd.f32 %v10507_v35, %v18635_v4 }
 0x5e5   : > { %v15551_v32 = vsel %vm1001_vm1, %v4815_v34, %v4817_v27  ;;  %v15554_v58 = vsel %vm1130_vm2, %v4942_v56, %v4943_v38  ;;  %v4194_v18 = vpop.f32.mrb[140].mxu1  ;;  %v15563_v42 = vsel %vm1130_vm2, %v4943_v38, %v15367_v23  ;;  %v4490_v38 = vld [vmem:[%s11943_s29 + $0xf0] sm:$0xff] }
 0x5e6   : > { %18636 = vst [vmem:[#allocation50_spill] sm:$0xff] %v15551_v32  ;;  %18637 = vst [vmem:[#allocation49_spill] sm:$0xff] %v15554_v58  ;;  %5376 = vmatmul.mubr.f32.gmra.mrb[198].mxu1 %v15551_v32  ;;  %9351 = vmatprep.mubr.f32.mxu0 %v15554_v58  ;;  %v15559_v1 = vld [vmem:[#allocation2 + $0x1c8] sm:$0xff]  ;;  %v4457_v4 = vmax.f32 %v4415_v17, 0.0  ;;  %v10508_v34 = vadd.f32 %v15138_v3, %v4194_v18  ;;  %v4196_v56 = vpop.f32.mrb[141].mxu1 }
 0x5e7   : > { %18638 = vst [vmem:[#allocation52_spill] sm:$0xff] %v15559_v1  ;;  %18639 = vst [vmem:[#allocation56_spill] sm:$0xff] %v15563_v42  ;;  %5380 = vmatprep.mubr.f32.mxu1 %v15559_v1  ;;  %9352 = vmatmul.mubr.f32.gmra.mrb[118].mxu0 %v15563_v42  ;;  %v4820_v28 = vrot.slane %v15559_v1, 7  ;;  %v4947_v18 = vrot.slane %v15559_v1, 1 }
 0x5e8   : > { %4625 = vst.msk [vmem:[#allocation2 + $0x1e8] sm:$0xff] %vm4596_vm4, %v4520_v39  ;;  %v4521_v35 = vadd.f32 %v4489_v22, %v4457_v4  ;;  %v4420_v46 = vadd.f32 %v10508_v34, %v15127_v49 }
 0x5e9   : > { %v15573_v27 = vsel %vm1001_vm1, %v15208_v44, %v4820_v28  ;;  %v4199_v39 = vpop.f32.mrb[142].mxu1  ;;  %v15577_v17 = vld [vmem:[#allocation2 + $0x1d0] sm:$0xff] }
 0x5ea   : > { %18640 = vst [vmem:[#allocation51_spill] sm:$0xff] %v15573_v27  ;;  %5381 = vmatmul.mubr.f32.gmra.mrb[200].mxu1 %v15573_v27  ;;  %4626 = vst.msk [vmem:[#allocation2 + $0x1f0] sm:$0xff] %vm4596_vm4, %v4521_v35  ;;  %v4458_v56 = vmax.f32 %v4420_v46, 0.0  ;;  %v10509_v22 = vadd.f32 %v15138_v3, %v4199_v39  ;;  %v4201_v4 = vpop.f32.mrb[143].mxu1  ;;  %v4822_v49 = vrot.slane %v15577_v17, 7  ;;  %v4948_v34 = vrot.slane %v15577_v17, 1 }
 0x5eb   : > { %5385 = vmatprep.mubr.f32.mxu1 %v15577_v17  ;;  %v4491_v35 = vld [vmem:[%s11943_s29 + $0xf8] sm:$0xff]  ;;  %v5090_v4 = vld [vmem:[%s18070_s10 + $0x208] sm:$0xff] }
 0x5ec   : > { %v4522_v11 = vadd.f32 %v4490_v38, %v4458_v56  ;;  %v4425_v42 = vadd.f32 %v10509_v22, %v15125_v33  ;;  %v15587_v58 = vsel %vm1001_vm1, %v4820_v28, %v4822_v49  ;;  %v15590_v1 = vsel %vm1130_vm2, %v4947_v18, %v4948_v34  ;;  %v5089_v22 = vld [vmem:[%s18070_s10 + $0x200] sm:$0xff] }
 0x5ed   : > { %18641 = vst [vmem:[#allocation54_spill] sm:$0xff] %v15587_v58  ;;  %9354 = vmatprep.mubr.f32.mxu0 %v15590_v1  ;;  %v15599_v46 = vsel %vm1130_vm2, %v4948_v34, %v15367_v23 }
 0x5ee   : > { %5386 = vmatmul.mubr.f32.gmra.mrb[202].mxu1 %v15587_v58  ;;  %4627 = vst.msk [vmem:[#allocation2 + $0x208] sm:$0xff] %vm4596_vm4, %v4522_v11  ;;  %v4459_v33 = vmax.f32 %v4425_v42, 0.0  ;;  %9355 = vmatmul.mubr.f32.gmra.mrb[120].mxu0 %v15599_v46 }
 0x5ef   : > { %v15595_v3 = vld [vmem:[#allocation2 + $0x1e8] sm:$0xff] }
 0x5f0   : > { %18642 = vst [vmem:[#allocation53_spill] sm:$0xff] %v15595_v3  ;;  %5390 = vmatprep.mubr.f32.mxu1 %v15595_v3  ;;  %v4825_v28 = vrot.slane %v15595_v3, 7  ;;  %v4523_v38 = vadd.f32 %v4491_v35, %v4459_v33  ;;  %v4952_v42 = vrot.slane %v15595_v3, 1  ;;  %v9911_v33 = vpack.c.bf16 %v5090_v4, %v5089_v22 }
 0x5f1   : > { %v15610_v18 = vld [vmem:[#allocation2 + $0x1f0] sm:$0xff] }
 0x5f2   : > { %v15607_v39 = vsel %vm1001_vm1, %v15208_v44, %v4825_v28  ;;  %18644 = vst [vmem:[#allocation40_spill] sm:$0xff] %v15610_v18  ;;  %4628 = vst.msk [vmem:[#allocation2 + $0x210] sm:$0xff] %vm4596_vm4, %v4523_v38  ;;  %v4827_v11 = vrot.slane %v15610_v18, 7  ;;  %v4953_v56 = vrot.slane %v15610_v18, 1 }
 0x5f3   : > { %18643 = vst [vmem:[#allocation36_spill] sm:$0xff] %v15607_v39  ;;  %5391 = vmatmul.mubr.f32.gmra.mrb[204].mxu1 %v15607_v39 }
 0x5f4   : > { %5395 = vmatprep.mubr.f32.mxu1 %v15610_v18  ;;  %v15624_v49 = vsel %vm1001_vm1, %v4825_v28, %v4827_v11  ;;  %v15627_v34 = vsel %vm1130_vm2, %v4952_v42, %v4953_v56  ;;  %v15631_v35 = vsel %vm1130_vm2, %v4953_v56, %v15367_v23  ;;  %v5091_v28 = vld [vmem:[%s18070_s10 + $0x210] sm:$0xff]  ;;  %v5092_v11 = vld [vmem:[%s18070_s10 + $0x218] sm:$0xff] }
 0x5f5   : > { %18645 = vst [vmem:[#allocation32_spill] sm:$0xff] %v15624_v49  ;;  %9357 = vmatprep.mubr.f32.mxu0 %v15627_v34  ;;  %v15637_v38 = vld [vmem:[#allocation2 + $0x208] sm:$0xff]  ;;  %v9914_v4 = vpack.c.bf16 %v5092_v11, %v5091_v28  ;;  %v4882_v28 = vrot.slane %v15169_v29, 1 }
 0x5f6   : > { %9358 = vmatmul.mubr.f32.gmra.mrb[122].mxu0 %v15631_v35  ;;  %v5000_v56 = vrot.slane %v15637_v38, 1 }
 0x5f7   : > { %5396 = vmatmul.mubr.f32.gmra.mrb[206].mxu1 %v15624_v49 }
 0x5f8   : > { %5465 = vmatprep.mubr.f32.mxu1 %v15178_v52  ;;  %v4881_v52 = vsel %vm1130_vm2, %v14799_v40, %v15367_v23 }
 0x5f9   : > { %v15646_v42 = vld [vmem:[#allocation2 + $0x210] sm:$0xff] }
 0x5fa   : > { %v5001_v22 = vrot.slane %v15646_v42, 1 }
 0x5fb   : > { %5466 = vmatmul.mubr.f32.vlgmr.msra.gmra.mrb[144].mxu1 %v14799_v40  ;;  %v5093_v40 = vld [vmem:[%s18070_s10 + $0x220] sm:$0xff] }
 0x5fc   : > { %5470 = vmatprep.mubr.f32.mxu1 %v15190_v25  ;;  %9912 = vmatpush1.bf16.msra.mxu1 %v9911_v33  ;;  %v15656_v18 = vsel %vm1130_vm2, %v5000_v56, %v5001_v22  ;;  %v15660_v3 = vsel %vm1130_vm2, %v5001_v22, %v15367_v23  ;;  %v4883_v25 = vrot.slane %v15182_v62, 1  ;;  %v5094_v33 = vld [vmem:[%s18070_s10 + $0x228] sm:$0xff]  ;;  %v5095_v56 = vld [vmem:[%s18070_s10 + $0x230] sm:$0xff] }
 0x5fd   : > { %9913 = vmatprep.subr.bf16.mxu1 %v18376_v14  ;;  %9360 = vmatprep.mubr.f32.mxu0 %v15656_v18  ;;  %v9917_v11 = vpack.c.bf16 %v5094_v33, %v5093_v40  ;;  %v5098_v40 = vld [vmem:[%s18070_s10 + $0x248] sm:$0xff] }
 0x5fe   : > { %9361 = vmatmul.mubr.f32.gmra.mrb[124].mxu0 %v15660_v3  ;;  %v15674_v62 = vsel %vm1130_vm2, %v4882_v28, %v4883_v25  ;;  %v15687_v22 = vsel %vm1130_vm2, %v4883_v25, %v15367_v23  ;;  %v5099_v23 = vld [vmem:[%s18070_s10 + $0x250] sm:$0xff]  ;;  %v5100_v25 = vld [vmem:[%s18070_s10 + $0x258] sm:$0xff] }
 0x5ff   : > { %5471 = vmatmul.mubr.f32.gmra.mrb[146].mxu1 %v4881_v52  ;;  %v5096_v52 = vld [vmem:[%s18070_s10 + $0x238] sm:$0xff]  ;;  %v9926_v28 = vpack.c.bf16 %v5100_v25, %v5099_v23  ;;  %v5106_v23 = vld [vmem:[%s18070_s10 + $0x288] sm:$0xff] }
 0x600   : > { %5475 = vmatprep.mubr.f32.mxu1 %v15199_v15  ;;  %9915 = vmatpush1.bf16.msra.mxu1 %v9914_v4  ;;  %v9920_v29 = vpack.c.bf16 %v5096_v52, %v5095_v56  ;;  %v5097_v4 = vld [vmem:[%s18070_s10 + $0x240] sm:$0xff]  ;;  %v5102_v56 = vld [vmem:[%s18070_s10 + $0x268] sm:$0xff] }
 0x601   : > { %9916 = vmatprep.subr.bf16.mxu1 %v18376_v14  ;;  %v9923_v33 = vpack.c.bf16 %v5098_v40, %v5097_v4  ;;  %v5104_v4 = vld [vmem:[%s18070_s10 + $0x278] sm:$0xff] }
 0x603   : > { %5476 = vmatmul.mubr.f32.gmra.mrb[148].mxu1 %v15674_v62 }
 0x604   : > { %5480 = vmatprep.mubr.f32.mxu1 %v15212_v53  ;;  %9918 = vmatpush1.bf16.msra.mxu1 %v9917_v11  ;;  %v5101_v11 = vld [vmem:[%s18070_s10 + $0x260] sm:$0xff] }
 0x605   : > { %9919 = vmatprep.subr.bf16.mxu1 %v18376_v14  ;;  %v9929_v52 = vpack.c.bf16 %v5102_v56, %v5101_v11  ;;  %v5108_v11 = vld [vmem:[%s18070_s10 + $0x298] sm:$0xff] }
 0x607   : > { %5481 = vmatmul.mubr.f32.gmra.mrb[150].mxu1 %v15687_v22 }
 0x608   : > { %5485 = vmatprep.mubr.f32.mxu1 %v15230_v37  ;;  %9921 = vmatpush1.bf16.msra.mxu1 %v9920_v29  ;;  %v5103_v29 = vld [vmem:[%s18070_s10 + $0x270] sm:$0xff] }
 0x609   : > { %9922 = vmatprep.subr.bf16.mxu1 %v18376_v14  ;;  %v9932_v40 = vpack.c.bf16 %v5104_v4, %v5103_v29  ;;  %v5110_v29 = vld [vmem:[%s18070_s10 + $0x2a8] sm:$0xff] }
 0x60b   : > { %5486 = vmatmul.mubr.f32.gmra.mrb[152].mxu1 %v15215_v20 }
 0x60c   : > { %5490 = vmatprep.mubr.f32.mxu1 %v15238_v24  ;;  %9924 = vmatpush1.bf16.msra.mxu1 %v9923_v33  ;;  %v5105_v33 = vld [vmem:[%s18070_s10 + $0x280] sm:$0xff] }
 0x60d   : > { %9925 = vmatprep.subr.bf16.mxu1 %v18376_v14  ;;  %v9935_v25 = vpack.c.bf16 %v5106_v23, %v5105_v33  ;;  %v5112_v33 = vld [vmem:[%s18070_s10 + $0x2b8] sm:$0xff] }
 0x60f   : > { %5491 = vmatmul.mubr.f32.gmra.mrb[154].mxu1 %v15222_v13 }
 0x610   : > { %5495 = vmatprep.mubr.f32.mxu1 %v15256_v21  ;;  %9927 = vmatpush1.bf16.msra.mxu1 %v9926_v28  ;;  %v5107_v28 = vld [vmem:[%s18070_s10 + $0x290] sm:$0xff] }
 0x611   : > { %9928 = vmatprep.subr.bf16.mxu1 %v18376_v14  ;;  %v9938_v56 = vpack.c.bf16 %v5108_v11, %v5107_v28  ;;  %v5114_v28 = vld [vmem:[%s18070_s10 + $0x2c8] sm:$0xff] }
 0x613   : > { %5496 = vmatmul.mubr.f32.gmra.mrb[156].mxu1 %v15241_v6 }
 0x614   : > { %5500 = vmatprep.mubr.f32.mxu1 %v15264_v45  ;;  %9930 = vmatpush1.bf16.msra.mxu1 %v9929_v52  ;;  %v5109_v52 = vld [vmem:[%s18070_s10 + $0x2a0] sm:$0xff] }
 0x615   : > { %9931 = vmatprep.subr.bf16.mxu1 %v18376_v14  ;;  %v9941_v4 = vpack.c.bf16 %v5110_v29, %v5109_v52  ;;  %v5116_v52 = vld [vmem:[%s18070_s10 + $0x2d8] sm:$0xff] }
 0x617   : > { %5501 = vmatmul.mubr.f32.gmra.mrb[158].mxu1 %v15248_v30 }
 0x618   : > { %5505 = vmatprep.mubr.f32.mxu1 %v15282_v61  ;;  %9933 = vmatpush1.bf16.msra.mxu1 %v9932_v40  ;;  %v5111_v40 = vld [vmem:[%s18070_s10 + $0x2b0] sm:$0xff] }
 0x619   : > { %9934 = vmatprep.subr.bf16.mxu1 %v18376_v14  ;;  %v9944_v23 = vpack.c.bf16 %v5112_v33, %v5111_v40  ;;  %v5118_v40 = vld [vmem:[%s18070_s10 + $0x2e8] sm:$0xff] }
 0x61b   : > { %5506 = vmatmul.mubr.f32.gmra.mrb[160].mxu1 %v15267_v63 }
 0x61c   : > { %5510 = vmatprep.mubr.f32.mxu1 %v15290_v41  ;;  %9936 = vmatpush1.bf16.msra.mxu1 %v9935_v25  ;;  %v5113_v25 = vld [vmem:[%s18070_s10 + $0x2c0] sm:$0xff] }
 0x61d   : > { %9937 = vmatprep.subr.bf16.mxu1 %v18376_v14  ;;  %v9947_v11 = vpack.c.bf16 %v5114_v28, %v5113_v25  ;;  %v5120_v25 = vld [vmem:[%s18070_s10 + $0x2f8] sm:$0xff] }
 0x61f   : > { %5511 = vmatmul.mubr.f32.gmra.mrb[162].mxu1 %v15274_v5 }
 0x620   : > { %5515 = vmatprep.mubr.f32.mxu1 %v15308_v16  ;;  %9939 = vmatpush1.bf16.msra.mxu1 %v9938_v56  ;;  %v5115_v56 = vld [vmem:[%s18070_s10 + $0x2d0] sm:$0xff] }
 0x621   : > { %9940 = vmatprep.subr.bf16.mxu1 %v18376_v14  ;;  %v9950_v29 = vpack.c.bf16 %v5116_v52, %v5115_v56  ;;  %v18647_v56 = vld [vmem:[#allocation26_spill] sm:$0xff]  ;;  %v18648_v52 = vld [vmem:[#allocation28_spill] sm:$0xff] }
 0x623   : > { %5516 = vmatmul.mubr.f32.gmra.mrb[164].mxu1 %v15293_v26 }
 0x624   : > { %5520 = vmatprep.mubr.f32.mxu1 %v15316_v12  ;;  %9942 = vmatpush1.bf16.msra.mxu1 %v9941_v4  ;;  %v5117_v4 = vld [vmem:[%s18070_s10 + $0x2e0] sm:$0xff] }
 0x625   : > { %9943 = vmatprep.subr.bf16.mxu1 %v18376_v14  ;;  %v9953_v33 = vpack.c.bf16 %v5118_v40, %v5117_v4  ;;  %v18650_v4 = vld [vmem:[#allocation35_spill] sm:$0xff] }
 0x626   : > { %v18651_v40 = vld [vmem:[#allocation39_spill] sm:$0xff] }
 0x627   : > { %5521 = vmatmul.mubr.f32.gmra.mrb[166].mxu1 %v15300_v10 }
 0x628   : > { %5525 = vmatprep.mubr.f32.mxu1 %v15334_v50  ;;  %9945 = vmatpush1.bf16.msra.mxu1 %v9944_v23  ;;  %v5119_v23 = vld [vmem:[%s18070_s10 + $0x2f0] sm:$0xff] }
 0x629   : > { %9946 = vmatprep.subr.bf16.mxu1 %v18376_v14  ;;  %v9956_v28 = vpack.c.bf16 %v5120_v25, %v5119_v23  ;;  %v18653_v23 = vld [vmem:[#allocation46_spill] sm:$0xff]  ;;  %v18654_v25 = vld [vmem:[#allocation55_spill] sm:$0xff] }
 0x62b   : > { %5526 = vmatmul.mubr.f32.gmra.mrb[168].mxu1 %v15319_v47 }
 0x62c   : > { %5530 = vmatprep.mubr.f32.mxu1 %v15342_v8  ;;  %9948 = vmatpush1.bf16.msra.mxu1 %v9947_v11  ;;  %v18646_v11 = vld [vmem:[#allocation29_spill] sm:$0xff] }
 0x62d   : > { %9949 = vmatprep.subr.bf16.mxu1 %v18376_v14 }
 0x62f   : > { %5531 = vmatmul.mubr.f32.gmra.mrb[170].mxu1 %v15326_v36 }
 0x630   : > { %5535 = vmatprep.mubr.f32.mxu1 %v15360_v9  ;;  %9951 = vmatpush1.bf16.msra.mxu1 %v9950_v29  ;;  %v18649_v29 = vld [vmem:[#allocation41_spill] sm:$0xff] }
 0x631   : > { %9952 = vmatprep.subr.bf16.mxu1 %v18376_v14 }
 0x633   : > { %5536 = vmatmul.mubr.f32.gmra.mrb[172].mxu1 %v15345_v0 }
 0x634   : > { %5540 = vmatprep.mubr.f32.mxu1 %v15371_v57  ;;  %9954 = vmatpush1.bf16.msra.mxu1 %v9953_v33  ;;  %v18652_v33 = vld [vmem:[#allocation48_spill] sm:$0xff] }
 0x635   : > { %9955 = vmatprep.subr.bf16.mxu1 %v18376_v14 }
 0x637   : > { %5541 = vmatmul.mubr.f32.gmra.mrb[174].mxu1 %v15352_v7 }
 0x638   : > { %5545 = vmatprep.mubr.f32.mxu1 %v15393_v31  ;;  %9957 = vmatpush1.bf16.msra.mxu1 %v9956_v28  ;;  %v18655_v28 = vld [vmem:[#allocation49_spill] sm:$0xff] }
 0x639   : > { %9958 = vmatprep.subr.bf16.mxu1 %v18376_v14 }
 0x63b   : > { %5546 = vmatmul.mubr.f32.gmra.mrb[176].mxu1 %v15374_v2 }
 0x63c   : > { %5550 = vmatprep.mubr.f32.mxu1 %v15407_v19 }
 0x63f   : > { %5551 = vmatmul.mubr.f32.gmra.mrb[178].mxu1 %v15383_v51 }
 0x640   : > { %5555 = vmatprep.mubr.f32.mxu1 %v15429_v48 }
 0x643   : > { %5556 = vmatmul.mubr.f32.gmra.mrb[180].mxu1 %v15410_v60 }
 0x644   : > { %5560 = vmatprep.mubr.f32.mxu1 %v15443_v54 }
 0x647   : > { %5561 = vmatmul.mubr.f32.gmra.mrb[182].mxu1 %v15419_v43 }
 0x648   : > { %5565 = vmatprep.mubr.f32.mxu1 %v18646_v11 }
 0x64b   : > { %5566 = vmatmul.mubr.f32.gmra.mrb[184].mxu1 %v18647_v56 }
 0x64c   : > { %5570 = vmatprep.mubr.f32.mxu1 %v15479_v55 }
 0x64f   : > { %5571 = vmatmul.mubr.f32.gmra.mrb[186].mxu1 %v18648_v52 }
 0x650   : > { %5575 = vmatprep.mubr.f32.mxu1 %v18649_v29 }
 0x653   : > { %5576 = vmatmul.mubr.f32.gmra.mrb[188].mxu1 %v18650_v4 }
 0x654   : > { %5580 = vmatprep.mubr.f32.mxu1 %v15515_v59  ;;  %v18658_v59 = vld [vmem:[#allocation56_spill] sm:$0xff] }
 0x657   : > { %5581 = vmatmul.mubr.f32.gmra.mrb[190].mxu1 %v18651_v40 }
 0x658   : > { %5585 = vmatprep.mubr.f32.mxu1 %v18652_v33 }
 0x65b   : > { %5586 = vmatmul.mubr.f32.gmra.mrb[192].mxu1 %v18653_v23 }
 0x65c   : > { %5590 = vmatprep.mubr.f32.mxu1 %v15551_v32  ;;  %v4993_v32 = vrot.slane %v15637_v38, 7 }
 0x65f   : > { %5591 = vmatmul.mubr.f32.gmra.mrb[194].mxu1 %v18654_v25 }
 0x660   : > { %5595 = vmatprep.mubr.f32.mxu1 %v15573_v27 }
 0x661   : > { %v15822_v55 = vpop.f32.mrb[96].mxu0 }
 0x662   : > { %18656 = vst [vmem:[#allocation24_spill] sm:$0xff] %v15822_v55  ;;  %v15825_v29 = vpop.f32.mrb[97].mxu0  ;;  %v15839_v55 = vsel %vm1001_vm1, %v15208_v44, %v4993_v32  ;;  %v5121_v44 = vld [vmem:[%s18070_s10 + $0x300] sm:$0xff] }
 0x663   : > { %5596 = vmatmul.mubr.f32.gmra.mrb[196].mxu1 %v18655_v28  ;;  %18657 = vst [vmem:[#allocation59_spill] sm:$0xff] %v15825_v29  ;;  %18661 = vst [vmem:[#allocation15_spill] sm:$0xff] %v15839_v55  ;;  %v4995_v29 = vrot.slane %v15646_v42, 7 }
 0x664   : > { %5600 = vmatprep.mubr.f32.mxu1 %v15587_v58 }
 0x667   : > { %5601 = vmatmul.mubr.f32.gmra.mrb[198].mxu1 %v18658_v59 }
 0x668   : > { %5605 = vmatprep.mubr.f32.mxu1 %v15607_v39 }
 0x669   : > { %v15830_v33 = vpop.f32.mrb[98].mxu0 }
 0x66a   : > { %18659 = vst [vmem:[#allocation34_spill] sm:$0xff] %v15830_v33  ;;  %v15834_v27 = vpop.f32.mrb[99].mxu0  ;;  %v15847_v33 = vsel %vm1001_vm1, %v4993_v32, %v4995_v29  ;;  %v5123_v32 = vld [vmem:[%s18070_s10 + $0x310] sm:$0xff]  ;;  %v5124_v29 = vld [vmem:[%s18070_s10 + $0x318] sm:$0xff] }
 0x66b   : > { %5606 = vmatmul.mubr.f32.gmra.mrb[200].mxu1 %v15590_v1  ;;  %18660 = vst [vmem:[#allocation30_spill] sm:$0xff] %v15834_v27  ;;  %18663 = vst [vmem:[#allocation42_spill] sm:$0xff] %v15847_v33  ;;  %v9962_v58 = vpack.c.bf16 %v5124_v29, %v5123_v32  ;;  %v15886_v32 = vld [vmem:[#allocation2 + $0x48] sm:$0xff] }
 0x66c   : > { %5610 = vmatprep.mubr.f32.mxu1 %v15624_v49  ;;  %v5122_v49 = vld [vmem:[%s18070_s10 + $0x308] sm:$0xff] }
 0x66f   : > { %5611 = vmatmul.mubr.f32.gmra.mrb[202].mxu1 %v15599_v46 }
 0x670   : > { %5615 = vmatprep.mubr.f32.mxu1 %v15839_v55 }
 0x671   : > { %v15844_v39 = vpop.f32.mrb[100].mxu0 }
 0x672   : > { %18662 = vst [vmem:[#allocation38_spill] sm:$0xff] %v15844_v39  ;;  %v15850_v27 = vpop.f32.mrb[101].mxu0  ;;  %v9959_v39 = vpack.c.bf16 %v5122_v49, %v5121_v44  ;;  %v5125_v44 = vld [vmem:[%s18070_s10 + $0x320] sm:$0xff]  ;;  %v5126_v49 = vld [vmem:[%s18070_s10 + $0x328] sm:$0xff] }
 0x673   : > { %5616 = vmatmul.mubr.f32.gmra.mrb[204].mxu1 %v15627_v34  ;;  %18664 = vst [vmem:[#allocation61_spill] sm:$0xff] %v15850_v27  ;;  %v11458_v27 = vld [vmem:[#allocation2 + $0x28] sm:$0xff] }
 0x674   : > { %5620 = vmatprep.mubr.f32.mxu1 %v15847_v33 }
 0x677   : > { %5621 = vmatmul.mubr.f32.gmra.mrb[206].mxu1 %v15631_v35 }
 0x678   : > { %5690 = vmatprep.mubr.f32.mxu1 %v15674_v62  ;;  %v11459_v62 = vld [vmem:[#allocation2 + $0x30] sm:$0xff] }
 0x679   : > { %v15866_v33 = vpop.f32.mrb[102].mxu0 }
 0x67a   : > { %v15869_v55 = vpop.f32.mrb[103].mxu0 }
 0x67b   : > { %5691 = vmatmul.mubr.f32.vlgmr.msra.gmra.mrb[144].mxu1 %v11458_v27  ;;  %v9965_v27 = vpack.c.bf16 %v5126_v49, %v5125_v44  ;;  %v5129_v44 = vld [vmem:[%s18070_s10 + $0x340] sm:$0xff]  ;;  %v5130_v49 = vld [vmem:[%s18070_s10 + $0x348] sm:$0xff] }
 0x67c   : > { %5695 = vmatprep.mubr.f32.mxu1 %v15687_v22  ;;  %9960 = vmatpush1.bf16.msra.mxu1 %v9959_v39  ;;  %v5127_v39 = vld [vmem:[%s18070_s10 + $0x330] sm:$0xff]  ;;  %v5128_v22 = vld [vmem:[%s18070_s10 + $0x338] sm:$0xff] }
 0x67d   : > { %9961 = vmatprep.subr.bf16.mxu1 %v18376_v14 }
 0x67f   : > { %5696 = vmatmul.mubr.f32.gmra.mrb[146].mxu1 %v11459_v62  ;;  %v15901_v62 = vld [vmem:[#allocation2 + $0x50] sm:$0xff] }
 0x680   : > { %5700 = vmatprep.mubr.f32.mxu1 %v15215_v20  ;;  %9963 = vmatpush1.bf16.msra.mxu1 %v9962_v58  ;;  %v9968_v58 = vpack.c.bf16 %v5128_v22, %v5127_v39  ;;  %v5132_v39 = vld [vmem:[%s18070_s10 + $0x358] sm:$0xff]  ;;  %v15912_v22 = vld [vmem:[#allocation2 + $0x68] sm:$0xff] }
 0x681   : > { %9964 = vmatprep.subr.bf16.mxu1 %v18376_v14  ;;  %v15889_v29 = vpop.f32.mrb[104].mxu0 }
 0x682   : > { %18665 = vst [vmem:[#allocation63_spill] sm:$0xff] %v15889_v29  ;;  %v15892_v20 = vpop.f32.mrb[105].mxu0 }
 0x683   : > { %5701 = vmatmul.mubr.f32.gmra.mrb[148].mxu1 %v15886_v32  ;;  %18666 = vst [vmem:[#allocation62_spill] sm:$0xff] %v15892_v20  ;;  %v15927_v20 = vld [vmem:[#allocation2 + $0x70] sm:$0xff] }
 0x684   : > { %5705 = vmatprep.mubr.f32.mxu1 %v15222_v13  ;;  %9966 = vmatpush1.bf16.msra.mxu1 %v9965_v27  ;;  %v9971_v13 = vpack.c.bf16 %v5130_v49, %v5129_v44  ;;  %v5131_v27 = vld [vmem:[%s18070_s10 + $0x350] sm:$0xff]  ;;  %v5133_v44 = vld [vmem:[%s18070_s10 + $0x360] sm:$0xff]  ;;  %v5134_v49 = vld [vmem:[%s18070_s10 + $0x368] sm:$0xff] }
 0x685   : > { %9967 = vmatprep.subr.bf16.mxu1 %v18376_v14 }
 0x687   : > { %5706 = vmatmul.mubr.f32.gmra.mrb[150].mxu1 %v15901_v62 }
 0x688   : > { %5710 = vmatprep.mubr.f32.mxu1 %v15241_v6  ;;  %9969 = vmatpush1.bf16.msra.mxu1 %v9968_v58  ;;  %v9974_v58 = vpack.c.bf16 %v5132_v39, %v5131_v27  ;;  %v5136_v27 = vld [vmem:[%s18070_s10 + $0x378] sm:$0xff]  ;;  %v15938_v39 = vld [vmem:[#allocation2 + $0x88] sm:$0xff] }
 0x689   : > { %9970 = vmatprep.subr.bf16.mxu1 %v18376_v14  ;;  %v15915_v29 = vpop.f32.mrb[106].mxu0 }
 0x68a   : > { %18667 = vst [vmem:[#allocation64_spill] sm:$0xff] %v15915_v29  ;;  %v15918_v6 = vpop.f32.mrb[107].mxu0 }
 0x68b   : > { %5711 = vmatmul.mubr.f32.gmra.mrb[152].mxu1 %v15912_v22  ;;  %18668 = vst [vmem:[#allocation16_spill] sm:$0xff] %v15918_v6  ;;  %v15953_v6 = vld [vmem:[#allocation2 + $0x90] sm:$0xff] }
 0x68c   : > { %5715 = vmatprep.mubr.f32.mxu1 %v15248_v30  ;;  %9972 = vmatpush1.bf16.msra.mxu1 %v9971_v13  ;;  %v9977_v30 = vpack.c.bf16 %v5134_v49, %v5133_v44  ;;  %v5135_v13 = vld [vmem:[%s18070_s10 + $0x370] sm:$0xff]  ;;  %v5137_v44 = vld [vmem:[%s18070_s10 + $0x380] sm:$0xff]  ;;  %v5138_v49 = vld [vmem:[%s18070_s10 + $0x388] sm:$0xff] }
 0x68d   : > { %9973 = vmatprep.subr.bf16.mxu1 %v18376_v14 }
 0x68f   : > { %5716 = vmatmul.mubr.f32.gmra.mrb[154].mxu1 %v15927_v20 }
 0x690   : > { %5720 = vmatprep.mubr.f32.mxu1 %v15267_v63  ;;  %9975 = vmatpush1.bf16.msra.mxu1 %v9974_v58  ;;  %v9980_v58 = vpack.c.bf16 %v5136_v27, %v5135_v13  ;;  %v5140_v13 = vld [vmem:[%s18070_s10 + $0x398] sm:$0xff]  ;;  %v15964_v27 = vld [vmem:[#allocation2 + $0xa8] sm:$0xff] }
 0x691   : > { %9976 = vmatprep.subr.bf16.mxu1 %v18376_v14  ;;  %v15941_v29 = vpop.f32.mrb[108].mxu0 }
 0x692   : > { %18669 = vst [vmem:[#allocation65_spill] sm:$0xff] %v15941_v29  ;;  %v15944_v63 = vpop.f32.mrb[109].mxu0 }
 0x693   : > { %5721 = vmatmul.mubr.f32.gmra.mrb[156].mxu1 %v15938_v39  ;;  %18670 = vst [vmem:[#allocation17_spill] sm:$0xff] %v15944_v63  ;;  %v15979_v63 = vld [vmem:[#allocation2 + $0xb0] sm:$0xff] }
 0x694   : > { %5725 = vmatprep.mubr.f32.mxu1 %v15274_v5  ;;  %9978 = vmatpush1.bf16.msra.mxu1 %v9977_v30  ;;  %v9983_v5 = vpack.c.bf16 %v5138_v49, %v5137_v44  ;;  %v5139_v30 = vld [vmem:[%s18070_s10 + $0x390] sm:$0xff]  ;;  %v5141_v44 = vld [vmem:[%s18070_s10 + $0x3a0] sm:$0xff]  ;;  %v5142_v49 = vld [vmem:[%s18070_s10 + $0x3a8] sm:$0xff] }
 0x695   : > { %9979 = vmatprep.subr.bf16.mxu1 %v18376_v14 }
 0x697   : > { %5726 = vmatmul.mubr.f32.gmra.mrb[158].mxu1 %v15953_v6 }
 0x698   : > { %5730 = vmatprep.mubr.f32.mxu1 %v15293_v26  ;;  %9981 = vmatpush1.bf16.msra.mxu1 %v9980_v58  ;;  %v9986_v58 = vpack.c.bf16 %v5140_v13, %v5139_v30  ;;  %v5144_v30 = vld [vmem:[%s18070_s10 + $0x3b8] sm:$0xff]  ;;  %v15990_v13 = vld [vmem:[#allocation2 + $0xc8] sm:$0xff] }
 0x699   : > { %9982 = vmatprep.subr.bf16.mxu1 %v18376_v14  ;;  %v15967_v29 = vpop.f32.mrb[110].mxu0 }
 0x69a   : > { %18671 = vst [vmem:[#allocation66_spill] sm:$0xff] %v15967_v29  ;;  %v15970_v26 = vpop.f32.mrb[111].mxu0 }
 0x69b   : > { %5731 = vmatmul.mubr.f32.gmra.mrb[160].mxu1 %v15964_v27  ;;  %18672 = vst [vmem:[#allocation19_spill] sm:$0xff] %v15970_v26  ;;  %v16005_v26 = vld [vmem:[#allocation2 + $0xd0] sm:$0xff] }
 0x69c   : > { %5735 = vmatprep.mubr.f32.mxu1 %v15300_v10  ;;  %9984 = vmatpush1.bf16.msra.mxu1 %v9983_v5  ;;  %v9989_v10 = vpack.c.bf16 %v5142_v49, %v5141_v44  ;;  %v5143_v5 = vld [vmem:[%s18070_s10 + $0x3b0] sm:$0xff]  ;;  %v5145_v44 = vld [vmem:[%s18070_s10 + $0x3c0] sm:$0xff]  ;;  %v5146_v49 = vld [vmem:[%s18070_s10 + $0x3c8] sm:$0xff] }
 0x69d   : > { %9985 = vmatprep.subr.bf16.mxu1 %v18376_v14 }
 0x69f   : > { %5736 = vmatmul.mubr.f32.gmra.mrb[162].mxu1 %v15979_v63 }
 0x6a0   : > { %5740 = vmatprep.mubr.f32.mxu1 %v15319_v47  ;;  %9987 = vmatpush1.bf16.msra.mxu1 %v9986_v58  ;;  %v9992_v58 = vpack.c.bf16 %v5144_v30, %v5143_v5  ;;  %v5148_v5 = vld [vmem:[%s18070_s10 + $0x3d8] sm:$0xff]  ;;  %v16016_v30 = vld [vmem:[#allocation2 + $0xe8] sm:$0xff] }
 0x6a1   : > { %9988 = vmatprep.subr.bf16.mxu1 %v18376_v14  ;;  %v15993_v29 = vpop.f32.mrb[112].mxu0 }
 0x6a2   : > { %18673 = vst [vmem:[#allocation67_spill] sm:$0xff] %v15993_v29  ;;  %v15996_v47 = vpop.f32.mrb[113].mxu0 }
 0x6a3   : > { %5741 = vmatmul.mubr.f32.gmra.mrb[164].mxu1 %v15990_v13  ;;  %18674 = vst [vmem:[#allocation20_spill] sm:$0xff] %v15996_v47  ;;  %v16031_v47 = vld [vmem:[#allocation2 + $0xf0] sm:$0xff] }
 0x6a4   : > { %5745 = vmatprep.mubr.f32.mxu1 %v15326_v36  ;;  %9990 = vmatpush1.bf16.msra.mxu1 %v9989_v10  ;;  %v9995_v36 = vpack.c.bf16 %v5146_v49, %v5145_v44  ;;  %v5147_v10 = vld [vmem:[%s18070_s10 + $0x3d0] sm:$0xff]  ;;  %v5149_v44 = vld [vmem:[%s18070_s10 + $0x3e0] sm:$0xff]  ;;  %v5150_v49 = vld [vmem:[%s18070_s10 + $0x3e8] sm:$0xff] }
 0x6a5   : > { %9991 = vmatprep.subr.bf16.mxu1 %v18376_v14 }
 0x6a7   : > { %5746 = vmatmul.mubr.f32.gmra.mrb[166].mxu1 %v16005_v26 }
 0x6a8   : > { %5750 = vmatprep.mubr.f32.mxu1 %v15345_v0  ;;  %9993 = vmatpush1.bf16.msra.mxu1 %v9992_v58  ;;  %v9998_v58 = vpack.c.bf16 %v5148_v5, %v5147_v10  ;;  %v5152_v10 = vld [vmem:[%s18070_s10 + $0x3f8] sm:$0xff]  ;;  %v16042_v5 = vld [vmem:[#allocation2 + $0x108] sm:$0xff] }
 0x6a9   : > { %9994 = vmatprep.subr.bf16.mxu1 %v18376_v14  ;;  %v16019_v29 = vpop.f32.mrb[114].mxu0 }
 0x6aa   : > { %18675 = vst [vmem:[#allocation68_spill] sm:$0xff] %v16019_v29  ;;  %v16022_v0 = vpop.f32.mrb[115].mxu0 }
 0x6ab   : > { %5751 = vmatmul.mubr.f32.gmra.mrb[168].mxu1 %v16016_v30  ;;  %18676 = vst [vmem:[#allocation21_spill] sm:$0xff] %v16022_v0 }
 0x6ac   : > { %5755 = vmatprep.mubr.f32.mxu1 %v15352_v7  ;;  %9996 = vmatpush1.bf16.msra.mxu1 %v9995_v36  ;;  %v10001_v7 = vpack.c.bf16 %v5150_v49, %v5149_v44  ;;  %v5151_v36 = vld [vmem:[%s18070_s10 + $0x3f0] sm:$0xff] }
 0x6ad   : > { %9997 = vmatprep.subr.bf16.mxu1 %v18376_v14  ;;  %v16051_v44 = vld [vmem:[#allocation2 + $0x110] sm:$0xff] }
 0x6ae   : > { %v18678_v49 = vld [vmem:[#allocation18_spill] sm:$0xff] }
 0x6af   : > { %5756 = vmatmul.mubr.f32.gmra.mrb[170].mxu1 %v16031_v47 }
 0x6b0   : > { %5760 = vmatprep.mubr.f32.mxu1 %v15374_v2  ;;  %9999 = vmatpush1.bf16.msra.mxu1 %v9998_v58  ;;  %v10004_v58 = vpack.c.bf16 %v5152_v10, %v5151_v36  ;;  %v18681_v36 = vld [vmem:[#allocation25_spill] sm:$0xff]  ;;  %v18682_v10 = vld [vmem:[#allocation27_spill] sm:$0xff] }
 0x6b1   : > { %10000 = vmatprep.subr.bf16.mxu1 %v18376_v14  ;;  %v16045_v29 = vpop.f32.mrb[116].mxu0 }
 0x6b2   : > { %18677 = vst [vmem:[#allocation69_spill] sm:$0xff] %v16045_v29  ;;  %v16048_v2 = vpop.f32.mrb[117].mxu0  ;;  %v18679_v29 = vld [vmem:[#allocation14_spill] sm:$0xff] }
 0x6b3   : > { %5761 = vmatmul.mubr.f32.gmra.mrb[172].mxu1 %v16042_v5 }
 0x6b4   : > { %5765 = vmatprep.mubr.f32.mxu1 %v15383_v51  ;;  %10002 = vmatpush1.bf16.msra.mxu1 %v10001_v7 }
 0x6b5   : > { %10003 = vmatprep.subr.bf16.mxu1 %v18376_v14  ;;  %v18680_v14 = vld [vmem:[#allocation23_spill] sm:$0xff] }
 0x6b7   : > { %5766 = vmatmul.mubr.f32.gmra.mrb[174].mxu1 %v16051_v44 }
 0x6b8   : > { %5770 = vmatprep.mubr.f32.mxu1 %v15410_v60  ;;  %10005 = vmatpush1.bf16.msra.mxu1 %v10004_v58  ;;  %v18684_v58 = vld [vmem:[#allocation37_spill] sm:$0xff] }
 0x6ba   : > { %v16056_v0 = vpop.f32.mrb[118].mxu0 }
 0x6bb   : > { %5771 = vmatmul.mubr.f32.gmra.mrb[176].mxu1 %v18678_v49  ;;  %v16059_v51 = vpop.f32.mrb[119].mxu0 }
 0x6bc   : > { %5775 = vmatprep.mubr.f32.mxu1 %v15419_v43 }
 0x6bf   : > { %5776 = vmatmul.mubr.f32.gmra.mrb[178].mxu1 %v18679_v29 }
 0x6c0   : > { %5780 = vmatprep.mubr.f32.mxu1 %v18647_v56  ;;  %v18683_v56 = vld [vmem:[#allocation31_spill] sm:$0xff] }
 0x6c1   : > { %v16064_v7 = vpop.f32.mrb[120].mxu0 }
 0x6c2   : > { %v16067_v60 = vpop.f32.mrb[121].mxu0 }
 0x6c3   : > { %5781 = vmatmul.mubr.f32.gmra.mrb[180].mxu1 %v18680_v14  ;;  %v18686_v14 = vld [vmem:[#allocation44_spill] sm:$0xff] }
 0x6c4   : > { %5785 = vmatprep.mubr.f32.mxu1 %v18648_v52 }
 0x6c7   : > { %5786 = vmatmul.mubr.f32.gmra.mrb[182].mxu1 %v18681_v36 }
 0x6c8   : > { %5790 = vmatprep.mubr.f32.mxu1 %v18650_v4  ;;  %v18685_v4 = vld [vmem:[#allocation43_spill] sm:$0xff] }
 0x6c9   : > { %v16072_v43 = vpop.f32.mrb[122].mxu0 }
 0x6ca   : > { %v16075_v29 = vpop.f32.mrb[123].mxu0 }
 0x6cb   : > { %5791 = vmatmul.mubr.f32.gmra.mrb[184].mxu1 %v18682_v10  ;;  %v6901_v10 = vld [vmem:[%s18691_s13 + $0x20] sm:$0xff] }
 0x6cc   : > { %5795 = vmatprep.mubr.f32.mxu1 %v18651_v40  ;;  %v18687_v40 = vld [vmem:[#allocation47_spill] sm:$0xff] }
 0x6cf   : > { %5796 = vmatmul.mubr.f32.gmra.mrb[186].mxu1 %v18683_v56  ;;  %v6906_v56 = vld [vmem:[%s18691_s13 + $0x48] sm:$0xff] }
 0x6d0   : > { %5800 = vmatprep.mubr.f32.mxu1 %v18653_v23  ;;  %v18688_v23 = vld [vmem:[#allocation52_spill] sm:$0xff] }
 0x6d1   : > { %v16080_v52 = vpop.f32.mrb[124].mxu0 }
 0x6d2   : > { %v16083_v49 = vpop.f32.mrb[125].mxu0 }
 0x6d3   : > { %5801 = vmatmul.mubr.f32.gmra.mrb[188].mxu1 %v18684_v58  ;;  %v6908_v58 = vld [vmem:[%s18691_s13 + $0x58] sm:$0xff] }
 0x6d4   : > { %5805 = vmatprep.mubr.f32.mxu1 %v18654_v25  ;;  %v18689_v25 = vld [vmem:[#allocation53_spill] sm:$0xff] }
 0x6d7   : > { %5806 = vmatmul.mubr.f32.gmra.mrb[190].mxu1 %v18685_v4 }
 0x6d8   : > { %5810 = vmatprep.mubr.f32.mxu1 %v18655_v28  ;;  %v18690_v28 = vld [vmem:[#allocation40_spill] sm:$0xff] }
 0x6db   : > { %5811 = vmatmul.mubr.f32.gmra.mrb[192].mxu1 %v18686_v14  ;;  %v10046_v14 = vpack.c.bf16 %v6908_v58, %v6906_v56  ;;  %v6921_v58 = vld [vmem:[%s18691_s13 + $0xc0] sm:$0xff] }
 0x6dc   : > { %5815 = vmatprep.mubr.f32.mxu1 %v18658_v59  ;;  %v16099_v59 = vld [vmem:[#allocation2 + $0x8] sm:$0xff] }
 0x6df   : > { %5816 = vmatmul.mubr.f32.gmra.mrb[194].mxu1 %v18687_v40  ;;  %v6905_v40 = vld [vmem:[%s18691_s13 + $0x40] sm:$0xff] }
 0x6e0   : > { %5820 = vmatprep.mubr.f32.mxu1 %v15590_v1  ;;  %v16102_v1 = vrot.slane %v16099_v59, 1 }
 0x6e2   : > { %9363 = vmatprep.mubr.f32.mxu0 %v16102_v1 }
 0x6e3   : > { %5821 = vmatmul.mubr.f32.gmra.mrb[196].mxu1 %v18688_v23  ;;  %9364 = vmatmul.mubr.f32.gmra.mrb[126].mxu0 %v16102_v1  ;;  %v6907_v23 = vld [vmem:[%s18691_s13 + $0x50] sm:$0xff] }
 0x6e4   : > { %5825 = vmatprep.mubr.f32.mxu1 %v15599_v46  ;;  %7261 = vmatprep.mubr.f32.mxu0 %v16099_v59  ;;  %v6900_v46 = vld [vmem:[%s18691_s13 + $0x18] sm:$0xff] }
 0x6e7   : > { %5826 = vmatmul.mubr.f32.gmra.mrb[198].mxu1 %v15577_v17  ;;  %v6898_v17 = vld [vmem:[%s18691_s13 + $0x8] sm:$0xff] }
 0x6e8   : > { %5830 = vmatprep.mubr.f32.mxu1 %v15627_v34  ;;  %v6899_v34 = vld [vmem:[%s18691_s13 + $0x10] sm:$0xff] }
 0x6eb   : > { %5831 = vmatmul.mubr.f32.gmra.mrb[200].mxu1 %v18689_v25  ;;  %v6910_v25 = vld [vmem:[%s18691_s13 + $0x68] sm:$0xff] }
 0x6ec   : > { %5835 = vmatprep.mubr.f32.mxu1 %v15631_v35  ;;  %v6902_v35 = vld [vmem:[%s18691_s13 + $0x28] sm:$0xff] }
 0x6ef   : > { %5836 = vmatmul.mubr.f32.gmra.mrb[202].mxu1 %v18690_v28 }
 0x6f0   : > { %5840 = vmatprep.mubr.f32.mxu1 %v15656_v18  ;;  %v10038_v18 = vpack.c.bf16 %v6900_v46, %v6898_v17  ;;  %v6909_v17 = vld [vmem:[%s18691_s13 + $0x60] sm:$0xff]  ;;  %v6911_v46 = vld [vmem:[%s18691_s13 + $0x70] sm:$0xff] }
 0x6f2   : > { %10039 = vmatprep.subr.bf16.mxu0 %v10038_v18 }
 0x6f3   : > { %5841 = vmatmul.mubr.f32.gmra.mrb[204].mxu1 %v15637_v38  ;;  %v6904_v38 = vld [vmem:[%s18691_s13 + $0x38] sm:$0xff] }
 0x6f4   : > { %5845 = vmatprep.mubr.f32.mxu1 %v15660_v3  ;;  %v6897_v3 = vld [vmem:[%s18691_s13] sm:$0xff]  ;;  %v10042_v36 = vpack.c.bf16 %v6904_v38, %v6902_v35  ;;  %v6915_v35 = vld [vmem:[%s18691_s13 + $0x90] sm:$0xff]  ;;  %v6918_v38 = vld [vmem:[%s18691_s13 + $0xa8] sm:$0xff] }
 0x6f7   : > { %5846 = vmatmul.mubr.f32.gmra.mrb[206].mxu1 %v15646_v42  ;;  %v10040_v42 = vpack.c.bf16 %v6899_v34, %v6897_v3  ;;  %v6914_v3 = vld [vmem:[%s18691_s13 + $0x88] sm:$0xff]  ;;  %v6913_v34 = vld [vmem:[%s18691_s13 + $0x80] sm:$0xff] }
 0x6f8   : > { %5915 = vmatprep.mubr.f32.mxu1 %v15886_v32  ;;  %v6903_v32 = vld [vmem:[%s18691_s13 + $0x30] sm:$0xff] }
 0x6f9   : > { %10041 = vmatpush1.bf16.msra.mxu0 %v10040_v42  ;;  %v10044_v4 = vpack.c.bf16 %v6903_v32, %v6901_v10  ;;  %v6919_v10 = vld [vmem:[%s18691_s13 + $0xb0] sm:$0xff]  ;;  %v6922_v32 = vld [vmem:[%s18691_s13 + $0xc8] sm:$0xff] }
 0x6fa   : > { %10043 = vmatprep.subr.bf16.mxu0 %v10042_v36  ;;  %v6917_v36 = vld [vmem:[%s18691_s13 + $0xa0] sm:$0xff] }
 0x6fb   : > { %5916 = vmatmul.mubr.f32.vlgmr.msra.gmra.mrb[144].mxu1 %v15199_v15  ;;  %v6912_v15 = vld [vmem:[%s18691_s13 + $0x78] sm:$0xff] }
 0x6fc   : > { %5920 = vmatprep.mubr.f32.mxu1 %v15901_v62  ;;  %v10048_v62 = vpack.c.bf16 %v6907_v23, %v6905_v40  ;;  %v10050_v28 = vpack.c.bf16 %v6912_v15, %v6910_v25  ;;  %v6925_v23 = vld [vmem:[%s18691_s13 + $0xe0] sm:$0xff]  ;;  %v6927_v25 = vld [vmem:[%s18691_s13 + $0xf0] sm:$0xff]  ;;  %v6930_v15 = vld [vmem:[%s18691_s13 + $0x108] sm:$0xff] }
 0x6fd   : > { %10045 = vmatpush1.bf16.msra.mxu0 %v10044_v4  ;;  %v6923_v4 = vld [vmem:[%s18691_s13 + $0xd0] sm:$0xff] }
 0x6fe   : > { %10047 = vmatprep.subr.bf16.mxu0 %v10046_v14  ;;  %v6926_v14 = vld [vmem:[%s18691_s13 + $0xe8] sm:$0xff] }
 0x6ff   : > { %5921 = vmatmul.mubr.f32.gmra.mrb[146].mxu1 %v15212_v53  ;;  %v6916_v53 = vld [vmem:[%s18691_s13 + $0x98] sm:$0xff] }
 0x700   : > { %5925 = vmatprep.mubr.f32.mxu1 %v15912_v22  ;;  %v10052_v22 = vpack.c.bf16 %v6911_v46, %v6909_v17  ;;  %v10054_v18 = vpack.c.bf16 %v6916_v53, %v6914_v3  ;;  %v6931_v17 = vld [vmem:[%s18691_s13 + $0x110] sm:$0xff]  ;;  %v6934_v46 = vld [vmem:[%s18691_s13 + $0x128] sm:$0xff]  ;;  %v6933_v53 = vld [vmem:[%s18691_s13 + $0x120] sm:$0xff] }
 0x701   : > { %10049 = vmatpush1.bf16.msra.mxu0 %v10048_v62 }
 0x702   : > { %10051 = vmatprep.subr.bf16.mxu0 %v10050_v28  ;;  %v6929_v28 = vld [vmem:[%s18691_s13 + $0x100] sm:$0xff] }
 0x703   : > { %5926 = vmatmul.mubr.f32.gmra.mrb[148].mxu1 %v15230_v37  ;;  %v6920_v37 = vld [vmem:[%s18691_s13 + $0xb8] sm:$0xff] }
 0x704   : > { %5930 = vmatprep.mubr.f32.mxu1 %v15927_v20  ;;  %v10056_v20 = vpack.c.bf16 %v6915_v35, %v6913_v34  ;;  %v10058_v42 = vpack.c.bf16 %v6920_v37, %v6918_v38  ;;  %v6937_v35 = vld [vmem:[%s18691_s13 + $0x140] sm:$0xff]  ;;  %v6939_v38 = vld [vmem:[%s18691_s13 + $0x150] sm:$0xff]  ;;  %v6942_v37 = vld [vmem:[%s18691_s13 + $0x168] sm:$0xff] }
 0x705   : > { %10053 = vmatpush1.bf16.msra.mxu0 %v10052_v22  ;;  %v6935_v22 = vld [vmem:[%s18691_s13 + $0x130] sm:$0xff] }
 0x706   : > { %10055 = vmatprep.subr.bf16.mxu0 %v10054_v18  ;;  %v6938_v18 = vld [vmem:[%s18691_s13 + $0x148] sm:$0xff] }
 0x707   : > { %5931 = vmatmul.mubr.f32.gmra.mrb[150].mxu1 %v15238_v24  ;;  %v6924_v24 = vld [vmem:[%s18691_s13 + $0xd8] sm:$0xff] }
 0x708   : > { %5935 = vmatprep.mubr.f32.mxu1 %v15938_v39  ;;  %v10060_v39 = vpack.c.bf16 %v6919_v10, %v6917_v36  ;;  %v10062_v56 = vpack.c.bf16 %v6924_v24, %v6922_v32  ;;  %v6943_v36 = vld [vmem:[%s18691_s13 + $0x170] sm:$0xff]  ;;  %v6946_v10 = vld [vmem:[%s18691_s13 + $0x188] sm:$0xff]  ;;  %v6945_v24 = vld [vmem:[%s18691_s13 + $0x180] sm:$0xff] }
 0x709   : > { %10057 = vmatpush1.bf16.msra.mxu0 %v10056_v20 }
 0x70a   : > { %10059 = vmatprep.subr.bf16.mxu0 %v10058_v42  ;;  %v6941_v42 = vld [vmem:[%s18691_s13 + $0x160] sm:$0xff] }
 0x70b   : > { %5936 = vmatmul.mubr.f32.gmra.mrb[152].mxu1 %v15256_v21  ;;  %v6928_v21 = vld [vmem:[%s18691_s13 + $0xf8] sm:$0xff] }
 0x70c   : > { %5940 = vmatprep.mubr.f32.mxu1 %v15953_v6  ;;  %v10064_v6 = vpack.c.bf16 %v6923_v4, %v6921_v58  ;;  %v10066_v40 = vpack.c.bf16 %v6928_v21, %v6926_v14  ;;  %v18692_v58 = vld [vmem:[#allocation33_spill] sm:$0xff]  ;;  %v6956_v21 = vld [vmem:[%s18691_s13 + $0x1d8] sm:$0xff] }
 0x70d   : > { %10061 = vmatpush1.bf16.msra.mxu0 %v10060_v39  ;;  %v6947_v39 = vld [vmem:[%s18691_s13 + $0x190] sm:$0xff]  ;;  %v11481_v4 = vld [vmem:[#allocation2 + $0x188] sm:$0xff] }
 0x70e   : > { %10063 = vmatprep.subr.bf16.mxu0 %v10062_v56  ;;  %v10088_v56 = vpack.c.bf16 %v6947_v39, %v6945_v24  ;;  %v6954_v14 = vld [vmem:[%s18691_s13 + $0x1c8] sm:$0xff]  ;;  %v18701_v39 = vld [vmem:[#allocation15_spill] sm:$0xff] }
 0x70f   : > { %5941 = vmatmul.mubr.f32.gmra.mrb[154].mxu1 %v15264_v45  ;;  %v6932_v45 = vld [vmem:[%s18691_s13 + $0x118] sm:$0xff]  ;;  %v11489_v24 = vld [vmem:[#allocation2 + $0x208] sm:$0xff] }
 0x710   : > { %5945 = vmatprep.mubr.f32.mxu1 %v15964_v27  ;;  %v10068_v27 = vpack.c.bf16 %v6927_v25, %v6925_v23  ;;  %v10070_v62 = vpack.c.bf16 %v6932_v45, %v6930_v15  ;;  %v6955_v23 = vld [vmem:[%s18691_s13 + $0x1d0] sm:$0xff]  ;;  %v18693_v15 = vld [vmem:[#allocation41_spill] sm:$0xff] }
 0x711   : > { %10065 = vmatpush1.bf16.msra.mxu0 %v10064_v6  ;;  %v10094_v6 = vpack.c.bf16 %v6956_v21, %v6954_v14  ;;  %v11482_v45 = vld [vmem:[#allocation2 + $0x190] sm:$0xff]  ;;  %v6974_v14 = vld [vmem:[%s18691_s13 + $0x268] sm:$0xff]  ;;  %v6976_v21 = vld [vmem:[%s18691_s13 + $0x278] sm:$0xff] }
 0x712   : > { %10067 = vmatprep.subr.bf16.mxu0 %v10066_v40  ;;  %v6953_v40 = vld [vmem:[%s18691_s13 + $0x1c0] sm:$0xff] }
 0x713   : > { %5946 = vmatmul.mubr.f32.gmra.mrb[156].mxu1 %v15282_v61  ;;  %v6936_v61 = vld [vmem:[%s18691_s13 + $0x138] sm:$0xff]  ;;  %v10096_v25 = vpack.c.bf16 %v6955_v23, %v6953_v40  ;;  %v6975_v40 = vld [vmem:[%s18691_s13 + $0x270] sm:$0xff] }
 0x714   : > { %5950 = vmatprep.mubr.f32.mxu1 %v15979_v63  ;;  %v10072_v63 = vpack.c.bf16 %v6931_v17, %v6929_v28  ;;  %v10074_v3 = vpack.c.bf16 %v6936_v61, %v6934_v46  ;;  %v6957_v17 = vld [vmem:[%s18691_s13 + $0x1e0] sm:$0xff]  ;;  %v6959_v46 = vld [vmem:[%s18691_s13 + $0x1f0] sm:$0xff] }
 0x715   : > { %10069 = vmatpush1.bf16.msra.mxu0 %v10068_v27  ;;  %v6958_v27 = vld [vmem:[%s18691_s13 + $0x1e8] sm:$0xff]  ;;  %v10100_v61 = vpack.c.bf16 %v6959_v46, %v6957_v17  ;;  %v6984_v46 = vld [vmem:[%s18691_s13 + $0x2b8] sm:$0xff] }
 0x716   : > { %10071 = vmatprep.subr.bf16.mxu0 %v10070_v62  ;;  %v6960_v62 = vld [vmem:[%s18691_s13 + $0x1f8] sm:$0xff]  ;;  %v6982_v17 = vld [vmem:[%s18691_s13 + $0x2a8] sm:$0xff] }
 0x717   : > { %5951 = vmatmul.mubr.f32.gmra.mrb[158].mxu1 %v15290_v41  ;;  %v6940_v41 = vld [vmem:[%s18691_s13 + $0x158] sm:$0xff]  ;;  %v10098_v28 = vpack.c.bf16 %v6960_v62, %v6958_v27  ;;  %v6979_v62 = vld [vmem:[%s18691_s13 + $0x290] sm:$0xff] }
 0x718   : > { %5955 = vmatprep.mubr.f32.mxu1 %v15990_v13  ;;  %v10076_v13 = vpack.c.bf16 %v6935_v22, %v6933_v53  ;;  %v10078_v34 = vpack.c.bf16 %v6940_v41, %v6938_v18  ;;  %v16339_v53 = vrot.slane %v16099_v59, 7  ;;  %v18695_v22 = vld [vmem:[#allocation48_spill] sm:$0xff]  ;;  %v11484_v18 = vld [vmem:[#allocation2 + $0x1b0] sm:$0xff] }
 0x719   : > { %10073 = vmatpush1.bf16.msra.mxu0 %v10072_v63  ;;  %v18694_v63 = vld [vmem:[#allocation45_spill] sm:$0xff]  ;;  %v18696_v41 = vld [vmem:[#allocation50_spill] sm:$0xff] }
 0x71a   : > { %10075 = vmatprep.subr.bf16.mxu0 %v10074_v3  ;;  %v11483_v3 = vld [vmem:[#allocation2 + $0x1a8] sm:$0xff] }
 0x71b   : > { %5956 = vmatmul.mubr.f32.gmra.mrb[160].mxu1 %v15308_v16  ;;  %v6944_v16 = vld [vmem:[%s18691_s13 + $0x178] sm:$0xff] }
 0x71c   : > { %5960 = vmatprep.mubr.f32.mxu1 %v16005_v26  ;;  %v10080_v26 = vpack.c.bf16 %v6939_v38, %v6937_v35  ;;  %v10082_v20 = vpack.c.bf16 %v6944_v16, %v6942_v37  ;;  %v11486_v35 = vld [vmem:[#allocation2 + $0x1d0] sm:$0xff]  ;;  %v11487_v37 = vld [vmem:[#allocation2 + $0x1e8] sm:$0xff]  ;;  %v18699_v16 = vld [vmem:[#allocation36_spill] sm:$0xff] }
 0x71d   : > { %10077 = vmatpush1.bf16.msra.mxu0 %v10076_v13  ;;  %v11485_v13 = vld [vmem:[#allocation2 + $0x1c8] sm:$0xff] }
 0x71e   : > { %10079 = vmatprep.subr.bf16.mxu0 %v10078_v34  ;;  %v18697_v34 = vld [vmem:[#allocation51_spill] sm:$0xff]  ;;  %v18698_v38 = vld [vmem:[#allocation54_spill] sm:$0xff] }
 0x71f   : > { %5961 = vmatmul.mubr.f32.gmra.mrb[162].mxu1 %v15316_v12  ;;  %v6948_v12 = vld [vmem:[%s18691_s13 + $0x198] sm:$0xff] }
 0x720   : > { %5965 = vmatprep.mubr.f32.mxu1 %v16016_v30  ;;  %v10084_v30 = vpack.c.bf16 %v6943_v36, %v6941_v42  ;;  %v10086_v32 = vpack.c.bf16 %v6948_v12, %v6946_v10  ;;  %v6961_v42 = vld [vmem:[%s18691_s13 + $0x200] sm:$0xff]  ;;  %v11488_v36 = vld [vmem:[#allocation2 + $0x1f0] sm:$0xff] }
 0x721   : > { %10081 = vmatpush1.bf16.msra.mxu0 %v10080_v26  ;;  %v6962_v26 = vld [vmem:[%s18691_s13 + $0x208] sm:$0xff]  ;;  %v6963_v12 = vld [vmem:[%s18691_s13 + $0x210] sm:$0xff] }
 0x722   : > { %10083 = vmatprep.subr.bf16.mxu0 %v10082_v20  ;;  %v6964_v20 = vld [vmem:[%s18691_s13 + $0x218] sm:$0xff] }
 0x723   : > { %5966 = vmatmul.mubr.f32.gmra.mrb[164].mxu1 %v15334_v50  ;;  %v11475_v50 = vld [vmem:[#allocation2 + $0x128] sm:$0xff]  ;;  %v10102_v10 = vpack.c.bf16 %v6964_v20, %v6962_v26  ;;  %v6989_v26 = vld [vmem:[%s18691_s13 + $0x2e0] sm:$0xff] }
 0x724   : > { %5970 = vmatprep.mubr.f32.mxu1 %v16031_v47  ;;  %v11476_v47 = vld [vmem:[#allocation2 + $0x130] sm:$0xff] }
 0x725   : > { %10085 = vmatpush1.bf16.msra.mxu0 %v10084_v30  ;;  %v10104_v30 = vpack.c.bf16 %v6963_v12, %v6961_v42  ;;  %v6991_v42 = vld [vmem:[%s18691_s13 + $0x2f0] sm:$0xff]  ;;  %v6996_v12 = vld [vmem:[%s18691_s13 + $0x318] sm:$0xff] }
 0x726   : > { %10087 = vmatprep.subr.bf16.mxu0 %v10086_v32  ;;  %v18700_v32 = vld [vmem:[#allocation32_spill] sm:$0xff] }
 0x727   : > { %5971 = vmatmul.mubr.f32.gmra.mrb[166].mxu1 %v15342_v8  ;;  %v11477_v8 = vld [vmem:[#allocation2 + $0x148] sm:$0xff] }
 0x728   : > { %5975 = vmatprep.mubr.f32.mxu1 %v16042_v5  ;;  %v11478_v5 = vld [vmem:[#allocation2 + $0x150] sm:$0xff] }
 0x729   : > { %10089 = vmatpush1.bf16.msra.mxu0 %v10088_v56  ;;  %v6966_v56 = vld [vmem:[%s18691_s13 + $0x228] sm:$0xff] }
 0x72b   : > { %5976 = vmatmul.mubr.f32.gmra.mrb[168].mxu1 %v15360_v9  ;;  %v11479_v9 = vld [vmem:[#allocation2 + $0x168] sm:$0xff] }
 0x72c   : > { %5980 = vmatprep.mubr.f32.mxu1 %v16051_v44 }
 0x72f   : > { %5981 = vmatmul.mubr.f32.gmra.mrb[170].mxu1 %v15371_v57  ;;  %v11480_v57 = vld [vmem:[#allocation2 + $0x170] sm:$0xff] }
 0x730   : > { %5985 = vmatprep.mubr.f32.mxu1 %v11475_v50  ;;  %v6968_v50 = vld [vmem:[%s18691_s13 + $0x238] sm:$0xff] }
 0x733   : > { %5986 = vmatmul.mubr.f32.gmra.mrb[172].mxu1 %v15393_v31  ;;  %v6950_v31 = vld [vmem:[%s18691_s13 + $0x1a8] sm:$0xff] }
 0x734   : > { %5990 = vmatprep.mubr.f32.mxu1 %v11476_v47  ;;  %v6965_v47 = vld [vmem:[%s18691_s13 + $0x220] sm:$0xff] }
 0x737   : > { %5991 = vmatmul.mubr.f32.gmra.mrb[174].mxu1 %v15407_v19  ;;  %v6952_v19 = vld [vmem:[%s18691_s13 + $0x1b8] sm:$0xff] }
 0x738   : > { %5995 = vmatprep.mubr.f32.mxu1 %v11477_v8  ;;  %v10090_v44 = vpack.c.bf16 %v6952_v19, %v6950_v31  ;;  %v11490_v8 = vld [vmem:[#allocation2 + $0x210] sm:$0xff]  ;;  %v18703_v19 = vld [vmem:[#allocation13_spill] sm:$0xff] }
 0x739   : > { %v18702_v31 = vld [vmem:[#allocation42_spill] sm:$0xff] }
 0x73a   : > { %10091 = vmatprep.subr.bf16.mxu0 %v10090_v44  ;;  %v6970_v44 = vld [vmem:[%s18691_s13 + $0x248] sm:$0xff] }
 0x73b   : > { %5996 = vmatmul.mubr.f32.gmra.mrb[176].mxu1 %v15429_v48  ;;  %v6949_v48 = vld [vmem:[%s18691_s13 + $0x1a0] sm:$0xff] }
 0x73c   : > { %6000 = vmatprep.mubr.f32.mxu1 %v11478_v5  ;;  %v10106_v5 = vpack.c.bf16 %v6968_v50, %v6966_v56  ;;  %v6998_v56 = vld [vmem:[%s18691_s13 + $0x328] sm:$0xff]  ;;  %v7000_v50 = vld [vmem:[%s18691_s13 + $0x338] sm:$0xff] }
 0x73f   : > { %6001 = vmatmul.mubr.f32.gmra.mrb[178].mxu1 %v15443_v54  ;;  %v6951_v54 = vld [vmem:[%s18691_s13 + $0x1b0] sm:$0xff] }
 0x740   : > { %6005 = vmatprep.mubr.f32.mxu1 %v11479_v9  ;;  %v6967_v9 = vld [vmem:[%s18691_s13 + $0x230] sm:$0xff] }
 0x743   : > { %6006 = vmatmul.mubr.f32.gmra.mrb[180].mxu1 %v18646_v11  ;;  %v10092_v11 = vpack.c.bf16 %v6951_v54, %v6949_v48  ;;  %v6972_v48 = vld [vmem:[%s18691_s13 + $0x258] sm:$0xff]  ;;  %v6969_v54 = vld [vmem:[%s18691_s13 + $0x240] sm:$0xff] }
 0x744   : > { %6010 = vmatprep.mubr.f32.mxu1 %v11480_v57  ;;  %v10108_v57 = vpack.c.bf16 %v6967_v9, %v6965_v47  ;;  %v6997_v47 = vld [vmem:[%s18691_s13 + $0x320] sm:$0xff] }
 0x745   : > { %10093 = vmatpush1.bf16.msra.mxu0 %v10092_v11  ;;  %v10110_v11 = vpack.c.bf16 %v6972_v48, %v6970_v44  ;;  %v7003_v48 = vld [vmem:[%s18691_s13 + $0x350] sm:$0xff] }
 0x746   : > { %10095 = vmatprep.subr.bf16.mxu0 %v10094_v6  ;;  %v10114_v6 = vpack.c.bf16 %v6976_v21, %v6974_v14  ;;  %v7007_v21 = vld [vmem:[%s18691_s13 + $0x370] sm:$0xff] }
 0x747   : > { %6011 = vmatmul.mubr.f32.gmra.mrb[182].mxu1 %v18692_v58  ;;  %v6971_v58 = vld [vmem:[%s18691_s13 + $0x250] sm:$0xff] }
 0x748   : > { %6015 = vmatprep.mubr.f32.mxu1 %v11481_v4  ;;  %v10112_v4 = vpack.c.bf16 %v6971_v58, %v6969_v54  ;;  %v7008_v58 = vld [vmem:[%s18691_s13 + $0x378] sm:$0xff] }
 0x749   : > { %10097 = vmatpush1.bf16.msra.mxu0 %v10096_v25  ;;  %v6978_v25 = vld [vmem:[%s18691_s13 + $0x288] sm:$0xff] }
 0x74a   : > { %10099 = vmatprep.subr.bf16.mxu0 %v10098_v28 }
 0x74b   : > { %6016 = vmatmul.mubr.f32.gmra.mrb[184].mxu1 %v18693_v15  ;;  %v6980_v15 = vld [vmem:[%s18691_s13 + $0x298] sm:$0xff] }
 0x74c   : > { %6020 = vmatprep.mubr.f32.mxu1 %v11482_v45  ;;  %v6977_v45 = vld [vmem:[%s18691_s13 + $0x280] sm:$0xff]  ;;  %v10118_v27 = vpack.c.bf16 %v6980_v15, %v6978_v25  ;;  %v7011_v15 = vld [vmem:[%s18691_s13 + $0x390] sm:$0xff] }
 0x74d   : > { %10101 = vmatpush1.bf16.msra.mxu0 %v10100_v61  ;;  %v10120_v28 = vpack.c.bf16 %v6979_v62, %v6977_v45  ;;  %v6981_v61 = vld [vmem:[%s18691_s13 + $0x2a0] sm:$0xff]  ;;  %v7016_v62 = vld [vmem:[%s18691_s13 + $0x3b8] sm:$0xff] }
 0x74e   : > { %10103 = vmatprep.subr.bf16.mxu0 %v10102_v10  ;;  %v6994_v10 = vld [vmem:[%s18691_s13 + $0x308] sm:$0xff]  ;;  %v7009_v25 = vld [vmem:[%s18691_s13 + $0x380] sm:$0xff] }
 0x74f   : > { %6021 = vmatmul.mubr.f32.gmra.mrb[186].mxu1 %v18694_v63  ;;  %v10122_v63 = vpack.c.bf16 %v6984_v46, %v6982_v17  ;;  %v10152_v45 = vpack.c.bf16 %v7011_v15, %v7009_v25  ;;  %v7013_v17 = vld [vmem:[%s18691_s13 + $0x3a0] sm:$0xff]  ;;  %v7015_v46 = vld [vmem:[%s18691_s13 + $0x3b0] sm:$0xff] }
 0x750   : > { %6025 = vmatprep.mubr.f32.mxu1 %v11483_v3  ;;  %7262 = vmatmul.mubr.f32.vlgmr.msra.gmra.mrb[128].mxu0 %v16339_v53  ;;  %v6983_v3 = vld [vmem:[%s18691_s13 + $0x2b0] sm:$0xff] }
 0x751   : > { %7267 = vmatprep.mubr.f32.mxu0 %v16099_v59  ;;  %10105 = vmatpush1.bf16.msra.mxu0 %v10104_v30  ;;  %v6993_v30 = vld [vmem:[%s18691_s13 + $0x300] sm:$0xff] }
 0x752   : > { %10107 = vmatprep.subr.bf16.mxu0 %v10106_v5  ;;  %v6999_v5 = vld [vmem:[%s18691_s13 + $0x330] sm:$0xff] }
 0x753   : > { %6026 = vmatmul.mubr.f32.gmra.mrb[188].mxu1 %v18695_v22  ;;  %v10124_v22 = vpack.c.bf16 %v6983_v3, %v6981_v61  ;;  %v10140_v9 = vpack.c.bf16 %v6999_v5, %v6997_v47  ;;  %v10156_v61 = vpack.c.bf16 %v7015_v46, %v7013_v17  ;;  %v7018_v3 = vld [vmem:[%s18691_s13 + $0x3c8] sm:$0xff] }
 0x754   : > { %6030 = vmatprep.mubr.f32.mxu1 %v11484_v18  ;;  %7268 = vmatmul.mubr.f32.gmra.mrb[130].mxu0 %v16339_v53  ;;  %v6986_v18 = vld [vmem:[%s18691_s13 + $0x2c8] sm:$0xff] }
 0x755   : > { %10109 = vmatpush1.bf16.msra.mxu0 %v10108_v57  ;;  %v7002_v57 = vld [vmem:[%s18691_s13 + $0x348] sm:$0xff] }
 0x756   : > { %10111 = vmatprep.subr.bf16.mxu0 %v10110_v11  ;;  %v7006_v11 = vld [vmem:[%s18691_s13 + $0x368] sm:$0xff] }
 0x757   : > { %6031 = vmatmul.mubr.f32.gmra.mrb[190].mxu1 %v18696_v41  ;;  %v6988_v41 = vld [vmem:[%s18691_s13 + $0x2d8] sm:$0xff]  ;;  %v10146_v14 = vpack.c.bf16 %v7008_v58, %v7006_v11  ;;  %v7026_v5 = vld [vmem:[%s18691_s13 + $0x408] sm:$0xff] }
 0x758   : > { %6035 = vmatprep.mubr.f32.mxu1 %v11485_v13  ;;  %v6985_v13 = vld [vmem:[%s18691_s13 + $0x2c0] sm:$0xff]  ;;  %v18708_v17 = vld [vmem:[#allocation34_spill] sm:$0xff] }
 0x759   : > { %10113 = vmatpush1.bf16.msra.mxu0 %v10112_v4  ;;  %v7005_v4 = vld [vmem:[%s18691_s13 + $0x360] sm:$0xff] }
 0x75a   : > { %10115 = vmatprep.subr.bf16.mxu0 %v10114_v6  ;;  %v7010_v6 = vld [vmem:[%s18691_s13 + $0x388] sm:$0xff] }
 0x75b   : > { %6036 = vmatmul.mubr.f32.gmra.mrb[192].mxu1 %v18697_v34  ;;  %v10126_v34 = vpack.c.bf16 %v6988_v41, %v6986_v18 }
 0x75c   : > { %6040 = vmatprep.mubr.f32.mxu1 %v11486_v35  ;;  %v6987_v35 = vld [vmem:[%s18691_s13 + $0x2d0] sm:$0xff] }
 0x75f   : > { %6041 = vmatmul.mubr.f32.gmra.mrb[194].mxu1 %v18698_v38  ;;  %v10128_v38 = vpack.c.bf16 %v6987_v35, %v6985_v13  ;;  %v7017_v13 = vld [vmem:[%s18691_s13 + $0x3c0] sm:$0xff] }
 0x760   : > { %6045 = vmatprep.mubr.f32.mxu1 %v11487_v37  ;;  %v6990_v37 = vld [vmem:[%s18691_s13 + $0x2e8] sm:$0xff] }
 0x763   : > { %6046 = vmatmul.mubr.f32.gmra.mrb[196].mxu1 %v18699_v16  ;;  %v6992_v16 = vld [vmem:[%s18691_s13 + $0x2f8] sm:$0xff] }
 0x764   : > { %6050 = vmatprep.mubr.f32.mxu1 %v11488_v36  ;;  %v10130_v20 = vpack.c.bf16 %v6992_v16, %v6990_v37  ;;  %v10132_v36 = vpack.c.bf16 %v6991_v42, %v6989_v26  ;;  %v7022_v37 = vld [vmem:[%s18691_s13 + $0x3e8] sm:$0xff]  ;;  %v7024_v16 = vld [vmem:[%s18691_s13 + $0x3f8] sm:$0xff]  ;;  %v7023_v42 = vld [vmem:[%s18691_s13 + $0x3f0] sm:$0xff] }
 0x765   : > { %v10162_v26 = vpack.c.bf16 %v7024_v16, %v7022_v37  ;;  %v18709_v16 = vld [vmem:[#allocation61_spill] sm:$0xff] }
 0x767   : > { %6051 = vmatmul.mubr.f32.gmra.mrb[198].mxu1 %v18700_v32  ;;  %v10134_v32 = vpack.c.bf16 %v6996_v12, %v6994_v10 }
 0x768   : > { %6055 = vmatprep.mubr.f32.mxu1 %v11489_v24  ;;  %v6995_v24 = vld [vmem:[%s18691_s13 + $0x310] sm:$0xff] }
 0x76b   : > { %6056 = vmatmul.mubr.f32.gmra.mrb[200].mxu1 %v18701_v39  ;;  %v10136_v39 = vpack.c.bf16 %v6995_v24, %v6993_v30 }
 0x76c   : > { %6060 = vmatprep.mubr.f32.mxu1 %v11490_v8  ;;  %v10138_v8 = vpack.c.bf16 %v7000_v50, %v6998_v56 }
 0x76f   : > { %6061 = vmatmul.mubr.f32.gmra.mrb[202].mxu1 %v18702_v31  ;;  %v7004_v31 = vld [vmem:[%s18691_s13 + $0x358] sm:$0xff] }
 0x770   : > { %6065 = vmatprep.mubr.f32.mxu1 %v16099_v59  ;;  %v10142_v44 = vpack.c.bf16 %v7004_v31, %v7002_v57 }
 0x773   : > { %6066 = vmatmul.mubr.f32.gmra.mrb[204].mxu1 %v18703_v19 }
 0x774   : > { %6070 = vmatprep.mubr.f32.mxu1 %v16099_v59  ;;  %v6973_v59 = vld [vmem:[%s18691_s13 + $0x260] sm:$0xff] }
 0x775   : > { %v10116_v23 = vpack.c.bf16 %v6975_v40, %v6973_v59  ;;  %v10148_v59 = vpack.c.bf16 %v7007_v21, %v7005_v4  ;;  %v7012_v40 = vld [vmem:[%s18691_s13 + $0x398] sm:$0xff] }
 0x777   : > { %6071 = vmatmul.mubr.f32.gmra.mrb[206].mxu1 %v18703_v19  ;;  %10117 = vmatpush1.bf16.msra.mxu0 %v10116_v23  ;;  %v7001_v19 = vld [vmem:[%s18691_s13 + $0x340] sm:$0xff]  ;;  %v10150_v23 = vpack.c.bf16 %v7012_v40, %v7010_v6 }
 0x778   : > { %10119 = vmatprep.subr.bf16.mxu0 %v10118_v27  ;;  %v10144_v54 = vpack.c.bf16 %v7003_v48, %v7001_v19  ;;  %v7014_v27 = vld [vmem:[%s18691_s13 + $0x3a8] sm:$0xff]  ;;  %v18706_v19 = vld [vmem:[#allocation24_spill] sm:$0xff] }
 0x779   : > { %v6334_v48 = vld [vmem:[%s16560_s17 + $0x8] sm:$0xff] }
 0x77b   : > { %10121 = vmatpush1.bf16.msra.mxu0 %v10120_v28  ;;  %v10154_v28 = vpack.c.bf16 %v7016_v62, %v7014_v27 }
 0x77c   : > { %10123 = vmatprep.subr.bf16.mxu0 %v10122_v63 }
 0x77f   : > { %10125 = vmatpush1.bf16.msra.mxu0 %v10124_v22  ;;  %v7020_v22 = vld [vmem:[%s18691_s13 + $0x3d8] sm:$0xff] }
 0x780   : > { %10127 = vmatprep.subr.bf16.mxu0 %v10126_v34  ;;  %v10158_v41 = vpack.c.bf16 %v7020_v22, %v7018_v3  ;;  %v7019_v34 = vld [vmem:[%s18691_s13 + $0x3d0] sm:$0xff]  ;;  %v6336_v3 = vld [vmem:[%s16560_s17 + $0x18] sm:$0xff] }
 0x781   : > { %v10160_v35 = vpack.c.bf16 %v7019_v34, %v7017_v13 }
 0x783   : > { %10129 = vmatpush1.bf16.msra.mxu0 %v10128_v38  ;;  %v16543_v38 = vld [vmem:[%s18704_s20] ss:$0 sm:$0xff] }
 0x784   : > { %10131 = vmatprep.subr.bf16.mxu0 %v10130_v20  ;;  %v7021_v20 = vld [vmem:[%s18691_s13 + $0x3e0] sm:$0xff] }
 0x785   : > { %v10164_v10 = vpack.c.bf16 %v7023_v42, %v7021_v20  ;;  %v6337_v42 = vld [vmem:[%s16560_s17 + $0x20] sm:$0xff] }
 0x787   : > { %10133 = vmatpush1.bf16.msra.mxu0 %v10132_v36 }
 0x788   : > { %10135 = vmatprep.subr.bf16.mxu0 %v10134_v32  ;;  %v18705_v32 = vld [vmem:[#allocation59_spill] sm:$0xff] }
 0x78b   : > { %10137 = vmatpush1.bf16.msra.mxu0 %v10136_v39  ;;  %v6333_v39 = vld [vmem:[%s16560_s17] sm:$0xff] }
 0x78c   : > { %10139 = vmatprep.subr.bf16.mxu0 %v10138_v8 }
 0x78f   : > { %10141 = vmatpush1.bf16.msra.mxu0 %v10140_v9  ;;  %v7028_v9 = vld [vmem:[%s18691_s13 + $0x418] sm:$0xff] }
 0x790   : > { %10143 = vmatprep.subr.bf16.mxu0 %v10142_v44  ;;  %v10166_v57 = vpack.c.bf16 %v7028_v9, %v7026_v5 }
 0x793   : > { %10145 = vmatpush1.bf16.msra.mxu0 %v10144_v54 }
 0x794   : > { %10147 = vmatprep.subr.bf16.mxu0 %v10146_v14 }
 0x797   : > { %10149 = vmatpush1.bf16.msra.mxu0 %v10148_v59  ;;  %v18707_v59 = vld [vmem:[#allocation30_spill] sm:$0xff] }
 0x798   : > { %10151 = vmatprep.subr.bf16.mxu0 %v10150_v23  ;;  %v6335_v23 = vld [vmem:[%s16560_s17 + $0x10] sm:$0xff] }
 0x79b   : > { %10153 = vmatpush1.bf16.msra.mxu0 %v10152_v45 }
 0x79c   : > { %10155 = vmatprep.subr.bf16.mxu0 %v10154_v28 }
 0x79f   : > { %10157 = vmatpush1.bf16.msra.mxu0 %v10156_v61 }
 0x7a0   : > { %10159 = vmatprep.subr.bf16.mxu0 %v10158_v41 }
 0x7a3   : > { %10161 = vmatpush1.bf16.msra.mxu0 %v10160_v35 }
 0x7a4   : > { %10163 = vmatprep.subr.bf16.mxu0 %v10162_v26 }
 0x7a7   : > { %10165 = vmatpush1.bf16.msra.mxu0 %v10164_v10 }
 0x7a8   : > { %10167 = vmatprep.subr.bf16.mxu0 %v10166_v57 }
 0x7b6   : > { %v16524_v63 = vpop.f32.mrb[126].mxu0 }
 0x7b7   : > { %v16532_v18 = vpop.f32.mrb[127].mxu0 }
 0x7ce   : > { %v5917_v36 = vpop.f32.mrb[144].mxu1 }
 0x7cf   : > { %v10510_v12 = vadd.f32 %v16543_v38, %v5917_v36  ;;  %v5919_v30 = vpop.f32.mrb[145].mxu1 }
 0x7d1   : > { %v6143_v24 = vadd.f32 %v10510_v12, %v18705_v32 }
 0x7d2   : > { %v5922_v56 = vpop.f32.mrb[146].mxu1 }
 0x7d3   : > { %v6301_v50 = vmax.f32 %v6143_v24, 0.0  ;;  %v10511_v47 = vadd.f32 %v16543_v38, %v5922_v56  ;;  %v5924_v8 = vpop.f32.mrb[147].mxu1 }
 0x7d5   : > { %v16570_v31 = vadd.f32 %v6333_v39, %v6301_v50  ;;  %v6148_v44 = vadd.f32 %v10511_v47, %v18706_v19  ;;  %v18710_v39 = vld [vmem:[#allocation38_spill] sm:$0xff] }
 0x7d6   : > { %v5927_v54 = vpop.f32.mrb[148].mxu1  ;;  %v6338_v47 = vld [vmem:[%s16560_s17 + $0x28] sm:$0xff] }
 0x7d7   : > { %6469 = vst [vmem:[#allocation2 + $0x28] sm:$0xff] %v16570_v31  ;;  %v6302_v11 = vmax.f32 %v6148_v44, 0.0  ;;  %v10512_v58 = vadd.f32 %v16543_v38, %v5927_v54  ;;  %v5929_v4 = vpop.f32.mrb[149].mxu1  ;;  %7273 = vmatprep.mubr.f32.mxu0 %v16570_v31  ;;  %v6627_v14 = vrot.slane %v16570_v31, 7 }
 0x7d9   : > { %v16578_v21 = vadd.f32 %v6334_v48, %v6302_v11  ;;  %v6153_v6 = vadd.f32 %v10512_v58, %v18707_v59  ;;  %v16583_v40 = vsel %vm1001_vm1, %v16339_v53, %v6627_v14  ;;  %v6339_v11 = vld [vmem:[%s16560_s17 + $0x30] sm:$0xff] }
 0x7da   : > { %v5932_v25 = vpop.f32.mrb[150].mxu1  ;;  %7274 = vmatmul.mubr.f32.gmra.mrb[132].mxu0 %v16583_v40 }
 0x7db   : > { %6470 = vst [vmem:[#allocation2 + $0x30] sm:$0xff] %v16578_v21  ;;  %v6303_v15 = vmax.f32 %v6153_v6, 0.0  ;;  %v10513_v45 = vadd.f32 %v16543_v38, %v5932_v25  ;;  %v5934_v27 = vpop.f32.mrb[151].mxu1  ;;  %7279 = vmatprep.mubr.f32.mxu0 %v16578_v21  ;;  %v6629_v62 = vrot.slane %v16578_v21, 7 }
 0x7dd   : > { %v16591_v28 = vadd.f32 %v6335_v23, %v6303_v15  ;;  %v6158_v46 = vadd.f32 %v10513_v45, %v18708_v17  ;;  %v16595_v61 = vsel %vm1001_vm1, %v6627_v14, %v6629_v62  ;;  %v6340_v15 = vld [vmem:[%s16560_s17 + $0x38] sm:$0xff] }
 0x7de   : > { %v5937_v22 = vpop.f32.mrb[152].mxu1  ;;  %7280 = vmatmul.mubr.f32.gmra.mrb[134].mxu0 %v16595_v61 }
 0x7df   : > { %6471 = vst [vmem:[#allocation2 + $0x48] sm:$0xff] %v16591_v28  ;;  %v6304_v41 = vmax.f32 %v6158_v46, 0.0  ;;  %v10514_v13 = vadd.f32 %v16543_v38, %v5937_v22  ;;  %v5939_v34 = vpop.f32.mrb[153].mxu1  ;;  %7285 = vmatprep.mubr.f32.mxu0 %v16591_v28  ;;  %v6632_v35 = vrot.slane %v16591_v28, 7 }
 0x7e1   : > { %v16603_v37 = vadd.f32 %v6336_v3, %v6304_v41  ;;  %v6163_v26 = vadd.f32 %v10514_v13, %v18709_v16  ;;  %v16608_v20 = vsel %vm1001_vm1, %v16339_v53, %v6632_v35  ;;  %v6341_v13 = vld [vmem:[%s16560_s17 + $0x40] sm:$0xff] }
 0x7e2   : > { %v5942_v36 = vpop.f32.mrb[154].mxu1  ;;  %7286 = vmatmul.mubr.f32.gmra.mrb[136].mxu0 %v16608_v20 }
 0x7e3   : > { %6472 = vst [vmem:[#allocation2 + $0x50] sm:$0xff] %v16603_v37  ;;  %v6305_v10 = vmax.f32 %v6163_v26, 0.0  ;;  %v10515_v12 = vadd.f32 %v16543_v38, %v5942_v36  ;;  %v5944_v30 = vpop.f32.mrb[155].mxu1  ;;  %7291 = vmatprep.mubr.f32.mxu0 %v16603_v37  ;;  %v6634_v32 = vrot.slane %v16603_v37, 7 }
 0x7e5   : > { %v16616_v24 = vadd.f32 %v6337_v42, %v6305_v10  ;;  %v6168_v56 = vadd.f32 %v10515_v12, %v18710_v39  ;;  %v16620_v50 = vsel %vm1001_vm1, %v6632_v35, %v6634_v32  ;;  %v18712_v10 = vld [vmem:[#allocation63_spill] sm:$0xff]  ;;  %v6342_v32 = vld [vmem:[%s16560_s17 + $0x48] sm:$0xff] }
 0x7e6   : > { %v5947_v8 = vpop.f32.mrb[156].mxu1  ;;  %7292 = vmatmul.mubr.f32.gmra.mrb[138].mxu0 %v16620_v50 }
 0x7e7   : > { %6473 = vst [vmem:[#allocation2 + $0x68] sm:$0xff] %v16616_v24  ;;  %v6306_v5 = vmax.f32 %v6168_v56, 0.0  ;;  %v10516_v9 = vadd.f32 %v16543_v38, %v5947_v8  ;;  %v5949_v57 = vpop.f32.mrb[157].mxu1  ;;  %7297 = vmatprep.mubr.f32.mxu0 %v16616_v24  ;;  %v6637_v19 = vrot.slane %v16616_v24, 7 }
 0x7e8   : > { %v18713_v57 = vld [vmem:[#allocation16_spill] sm:$0xff] }
 0x7e9   : > { %v16628_v44 = vadd.f32 %v6338_v47, %v6306_v5  ;;  %v6173_v48 = vadd.f32 %v10516_v9, %v15869_v55  ;;  %v16633_v54 = vsel %vm1001_vm1, %v16339_v53, %v6637_v19 }
 0x7ea   : > { %v5952_v58 = vpop.f32.mrb[158].mxu1  ;;  %7298 = vmatmul.mubr.f32.gmra.mrb[140].mxu0 %v16633_v54 }
 0x7eb   : > { %6474 = vst [vmem:[#allocation2 + $0x70] sm:$0xff] %v16628_v44  ;;  %v6307_v4 = vmax.f32 %v6173_v48, 0.0  ;;  %v10517_v14 = vadd.f32 %v16543_v38, %v5952_v58  ;;  %v5954_v59 = vpop.f32.mrb[159].mxu1  ;;  %7303 = vmatprep.mubr.f32.mxu0 %v16628_v44  ;;  %v6639_v6 = vrot.slane %v16628_v44, 7 }
 0x7ed   : > { %v16641_v55 = vadd.f32 %v6339_v11, %v6307_v4  ;;  %v6178_v23 = vadd.f32 %v10517_v14, %v15866_v33  ;;  %v16645_v25 = vsel %vm1001_vm1, %v6637_v19, %v6639_v6  ;;  %v18711_v33 = vld [vmem:[#allocation62_spill] sm:$0xff]  ;;  %v6343_v11 = vld [vmem:[%s16560_s17 + $0x50] sm:$0xff] }
 0x7ee   : > { %v5957_v45 = vpop.f32.mrb[160].mxu1  ;;  %7304 = vmatmul.mubr.f32.gmra.mrb[142].mxu0 %v16645_v25 }
 0x7ef   : > { %6475 = vst [vmem:[#allocation2 + $0x88] sm:$0xff] %v16641_v55  ;;  %v6308_v27 = vmax.f32 %v6178_v23, 0.0  ;;  %v10518_v62 = vadd.f32 %v16543_v38, %v5957_v45  ;;  %v5959_v17 = vpop.f32.mrb[161].mxu1  ;;  %7309 = vmatprep.mubr.f32.mxu0 %v16641_v55  ;;  %v6642_v46 = vrot.slane %v16641_v55, 7 }
 0x7f1   : > { %v16653_v3 = vadd.f32 %v6340_v15, %v6308_v27  ;;  %v6183_v22 = vadd.f32 %v10518_v62, %v18711_v33  ;;  %v16658_v41 = vsel %vm1001_vm1, %v16339_v53, %v6642_v46  ;;  %v18714_v15 = vld [vmem:[#allocation64_spill] sm:$0xff] }
 0x7f2   : > { %v5962_v34 = vpop.f32.mrb[162].mxu1  ;;  %7310 = vmatmul.mubr.f32.gmra.mrb[144].mxu0 %v16658_v41  ;;  %v6344_v62 = vld [vmem:[%s16560_s17 + $0x58] sm:$0xff] }
 0x7f3   : > { %6476 = vst [vmem:[#allocation2 + $0x90] sm:$0xff] %v16653_v3  ;;  %v6309_v35 = vmax.f32 %v6183_v22, 0.0  ;;  %v10519_v16 = vadd.f32 %v16543_v38, %v5962_v34  ;;  %v5964_v26 = vpop.f32.mrb[163].mxu1  ;;  %7315 = vmatprep.mubr.f32.mxu0 %v16653_v3  ;;  %v6644_v42 = vrot.slane %v16653_v3, 7 }
 0x7f5   : > { %v16666_v36 = vadd.f32 %v6341_v13, %v6309_v35  ;;  %v6188_v12 = vadd.f32 %v10519_v16, %v18712_v10  ;;  %v16670_v30 = vsel %vm1001_vm1, %v6642_v46, %v6644_v42  ;;  %v18715_v35 = vld [vmem:[#allocation17_spill] sm:$0xff] }
 0x7f6   : > { %v5967_v39 = vpop.f32.mrb[164].mxu1  ;;  %7316 = vmatmul.mubr.f32.gmra.mrb[146].mxu0 %v16670_v30  ;;  %v6345_v42 = vld [vmem:[%s16560_s17 + $0x60] sm:$0xff] }
 0x7f7   : > { %6477 = vst [vmem:[#allocation2 + $0xa8] sm:$0xff] %v16666_v36  ;;  %v6310_v56 = vmax.f32 %v6188_v12, 0.0  ;;  %v10520_v47 = vadd.f32 %v16543_v38, %v5967_v39  ;;  %v5969_v8 = vpop.f32.mrb[165].mxu1  ;;  %7321 = vmatprep.mubr.f32.mxu0 %v16666_v36  ;;  %v6647_v5 = vrot.slane %v16666_v36, 7 }
 0x7f8   : > { %v18716_v8 = vld [vmem:[#allocation65_spill] sm:$0xff] }
 0x7f9   : > { %v16678_v9 = vadd.f32 %v6342_v32, %v6310_v56  ;;  %v6193_v19 = vadd.f32 %v10520_v47, %v18713_v57  ;;  %v16683_v48 = vsel %vm1001_vm1, %v16339_v53, %v6647_v5 }
 0x7fa   : > { %v5972_v58 = vpop.f32.mrb[166].mxu1  ;;  %7322 = vmatmul.mubr.f32.gmra.mrb[148].mxu0 %v16683_v48 }
 0x7fb   : > { %6478 = vst [vmem:[#allocation2 + $0xb0] sm:$0xff] %v16678_v9  ;;  %v6311_v4 = vmax.f32 %v6193_v19, 0.0  ;;  %v10521_v14 = vadd.f32 %v16543_v38, %v5972_v58  ;;  %v5974_v59 = vpop.f32.mrb[167].mxu1  ;;  %7327 = vmatprep.mubr.f32.mxu0 %v16678_v9  ;;  %v6649_v6 = vrot.slane %v16678_v9, 7  ;;  %v6346_v19 = vld [vmem:[%s16560_s17 + $0x68] sm:$0xff] }
 0x7fd   : > { %v16691_v23 = vadd.f32 %v6343_v11, %v6311_v4  ;;  %v6198_v45 = vadd.f32 %v10521_v14, %v18714_v15  ;;  %v16695_v27 = vsel %vm1001_vm1, %v6647_v5, %v6649_v6  ;;  %v18717_v15 = vld [vmem:[#allocation19_spill] sm:$0xff] }
 0x7fe   : > { %v5977_v17 = vpop.f32.mrb[168].mxu1  ;;  %7328 = vmatmul.mubr.f32.gmra.mrb[150].mxu0 %v16695_v27 }
 0x7ff   : > { %6479 = vst [vmem:[#allocation2 + $0xc8] sm:$0xff] %v16691_v23  ;;  %v6312_v46 = vmax.f32 %v6198_v45, 0.0  ;;  %v10522_v33 = vadd.f32 %v16543_v38, %v5977_v17  ;;  %v5979_v22 = vpop.f32.mrb[169].mxu1  ;;  %7333 = vmatprep.mubr.f32.mxu0 %v16691_v23  ;;  %v6652_v13 = vrot.slane %v16691_v23, 7  ;;  %v6347_v17 = vld [vmem:[%s16560_s17 + $0x70] sm:$0xff] }
 0x801   : > { %v16703_v34 = vadd.f32 %v6344_v62, %v6312_v46  ;;  %v6203_v16 = vadd.f32 %v10522_v33, %v18715_v35  ;;  %v16708_v26 = vsel %vm1001_vm1, %v16339_v53, %v6652_v13 }
 0x802   : > { %v5982_v10 = vpop.f32.mrb[170].mxu1  ;;  %7334 = vmatmul.mubr.f32.gmra.mrb[152].mxu0 %v16708_v26 }
 0x803   : > { %6480 = vst [vmem:[#allocation2 + $0xd0] sm:$0xff] %v16703_v34  ;;  %v6313_v12 = vmax.f32 %v6203_v16, 0.0  ;;  %v10523_v32 = vadd.f32 %v16543_v38, %v5982_v10  ;;  %v5984_v39 = vpop.f32.mrb[171].mxu1  ;;  %7339 = vmatprep.mubr.f32.mxu0 %v16703_v34  ;;  %v6654_v56 = vrot.slane %v16703_v34, 7 }
 0x805   : > { %v16716_v47 = vadd.f32 %v6345_v42, %v6313_v12  ;;  %v6208_v5 = vadd.f32 %v10523_v32, %v18716_v8  ;;  %v16720_v57 = vsel %vm1001_vm1, %v6652_v13, %v6654_v56  ;;  %v18718_v42 = vld [vmem:[#allocation66_spill] sm:$0xff]  ;;  %v6348_v32 = vld [vmem:[%s16560_s17 + $0x78] sm:$0xff] }
 0x806   : > { %v5987_v11 = vpop.f32.mrb[172].mxu1  ;;  %7340 = vmatmul.mubr.f32.gmra.mrb[154].mxu0 %v16720_v57 }
 0x807   : > { %6481 = vst [vmem:[#allocation2 + $0xe8] sm:$0xff] %v16716_v47  ;;  %v6314_v58 = vmax.f32 %v6208_v5, 0.0  ;;  %v10524_v4 = vadd.f32 %v16543_v38, %v5987_v11  ;;  %v5989_v14 = vpop.f32.mrb[173].mxu1  ;;  %7345 = vmatprep.mubr.f32.mxu0 %v16716_v47  ;;  %v6657_v59 = vrot.slane %v16716_v47, 7 }
 0x809   : > { %v16728_v6 = vadd.f32 %v6346_v19, %v6314_v58  ;;  %v6213_v45 = vadd.f32 %v10524_v4, %v18717_v15  ;;  %v16733_v62 = vsel %vm1001_vm1, %v16339_v53, %v6657_v59  ;;  %v18719_v58 = vld [vmem:[#allocation20_spill] sm:$0xff] }
 0x80a   : > { %v5992_v46 = vpop.f32.mrb[174].mxu1  ;;  %7346 = vmatmul.mubr.f32.gmra.mrb[156].mxu0 %v16733_v62 }
 0x80b   : > { %6482 = vst [vmem:[#allocation2 + $0xf0] sm:$0xff] %v16728_v6  ;;  %v6315_v33 = vmax.f32 %v6213_v45, 0.0  ;;  %v10525_v22 = vadd.f32 %v16543_v38, %v5992_v46  ;;  %v5994_v13 = vpop.f32.mrb[175].mxu1  ;;  %7351 = vmatprep.mubr.f32.mxu0 %v16728_v6  ;;  %v6659_v35 = vrot.slane %v16728_v6, 7 }
 0x80c   : > { %v18721_v13 = vld [vmem:[#allocation67_spill] sm:$0xff] }
 0x80d   : > { %v16741_v16 = vadd.f32 %v6347_v17, %v6315_v33  ;;  %v6218_v10 = vadd.f32 %v10525_v22, %v18718_v42  ;;  %v16745_v12 = vsel %vm1001_vm1, %v6657_v59, %v6659_v35  ;;  %v6349_v59 = vld [vmem:[%s16560_s17 + $0x80] sm:$0xff] }
 0x80e   : > { %v5997_v39 = vpop.f32.mrb[176].mxu1  ;;  %7352 = vmatmul.mubr.f32.gmra.mrb[158].mxu0 %v16745_v12 }
 0x80f   : > { %6483 = vst [vmem:[#allocation2 + $0x108] sm:$0xff] %v16741_v16  ;;  %v6316_v56 = vmax.f32 %v6218_v10, 0.0  ;;  %v10526_v8 = vadd.f32 %v16543_v38, %v5997_v39  ;;  %v5999_v5 = vpop.f32.mrb[177].mxu1  ;;  %7357 = vmatprep.mubr.f32.mxu0 %v16741_v16  ;;  %v6662_v19 = vrot.slane %v16741_v16, 7  ;;  %v6350_v10 = vld [vmem:[%s16560_s17 + $0x88] sm:$0xff] }
 0x811   : > { %v16753_v11 = vadd.f32 %v6348_v32, %v6316_v56  ;;  %v6223_v4 = vadd.f32 %v10526_v8, %v18719_v58  ;;  %v16758_v14 = vsel %vm1001_vm1, %v16339_v53, %v6662_v19 }
 0x812   : > { %v6002_v15 = vpop.f32.mrb[178].mxu1  ;;  %7358 = vmatmul.mubr.f32.gmra.mrb[160].mxu0 %v16758_v14 }
 0x813   : > { %6484 = vst [vmem:[#allocation2 + $0x110] sm:$0xff] %v16753_v11  ;;  %v6317_v45 = vmax.f32 %v6223_v4, 0.0  ;;  %v10527_v17 = vadd.f32 %v16543_v38, %v6002_v15  ;;  %v6004_v46 = vpop.f32.mrb[179].mxu1  ;;  %7363 = vmatprep.mubr.f32.mxu0 %v16753_v11  ;;  %v6664_v33 = vrot.slane %v16753_v11, 7  ;;  %v18722_v4 = vld [vmem:[#allocation21_spill] sm:$0xff]  ;;  %v6351_v15 = vld [vmem:[%s16560_s17 + $0x90] sm:$0xff] }
 0x815   : > { %v16766_v22 = vadd.f32 %v6349_v59, %v6317_v45  ;;  %v6228_v35 = vadd.f32 %v10527_v17, %v18721_v13  ;;  %v16770_v42 = vsel %vm1001_vm1, %v6662_v19, %v6664_v33 }
 0x816   : > { %v6007_v32 = vpop.f32.mrb[180].mxu1  ;;  %7364 = vmatmul.mubr.f32.gmra.mrb[162].mxu0 %v16770_v42 }
 0x817   : > { %18720 = vst [vmem:[#allocation22_spill] sm:$0xff] %v16766_v22  ;;  %6485 = vst [vmem:[#allocation2 + $0x128] sm:$0xff] %v16766_v22  ;;  %v6318_v39 = vmax.f32 %v6228_v35, 0.0  ;;  %v10528_v56 = vadd.f32 %v16543_v38, %v6007_v32  ;;  %v6009_v8 = vpop.f32.mrb[181].mxu1  ;;  %7369 = vmatprep.mubr.f32.mxu0 %v16766_v22  ;;  %v6667_v5 = vrot.slane %v16766_v22, 7 }
 0x819   : > { %v16778_v58 = vadd.f32 %v6350_v10, %v6318_v39  ;;  %v6233_v19 = vadd.f32 %v10528_v56, %v18722_v4  ;;  %v16783_v59 = vsel %vm1001_vm1, %v16339_v53, %v6667_v5  ;;  %v18724_v10 = vld [vmem:[#allocation68_spill] sm:$0xff] }
 0x81a   : > { %v6012_v45 = vpop.f32.mrb[182].mxu1  ;;  %7370 = vmatmul.mubr.f32.gmra.mrb[164].mxu0 %v16783_v59  ;;  %v6352_v56 = vld [vmem:[%s16560_s17 + $0x98] sm:$0xff] }
 0x81b   : > { %6486 = vst [vmem:[#allocation2 + $0x130] sm:$0xff] %v16778_v58  ;;  %v6319_v17 = vmax.f32 %v6233_v19, 0.0  ;;  %v10529_v46 = vadd.f32 %v16543_v38, %v6012_v45  ;;  %v6014_v33 = vpop.f32.mrb[183].mxu1  ;;  %7375 = vmatprep.mubr.f32.mxu0 %v16778_v58  ;;  %v6669_v13 = vrot.slane %v16778_v58, 7 }
 0x81c   : > { %v6353_v33 = vld [vmem:[%s16560_s17 + $0xa0] sm:$0xff] }
 0x81d   : > { %v16791_v35 = vadd.f32 %v6351_v15, %v6319_v17  ;;  %v6238_v32 = vadd.f32 %v10529_v46, %v18724_v10  ;;  %v16795_v39 = vsel %vm1001_vm1, %v6667_v5, %v6669_v13 }
 0x81e   : > { %18725 = vst [vmem:[#allocation58_spill] sm:$0xff] %v16795_v39  ;;  %v6017_v8 = vpop.f32.mrb[184].mxu1  ;;  %7376 = vmatmul.mubr.f32.gmra.mrb[166].mxu0 %v16795_v39 }
 0x81f   : > { %18723 = vst [vmem:[#allocation70_spill] sm:$0xff] %v16791_v35  ;;  %6487 = vst [vmem:[#allocation2 + $0x148] sm:$0xff] %v16791_v35  ;;  %v6320_v4 = vmax.f32 %v6238_v32, 0.0  ;;  %v10530_v19 = vadd.f32 %v16543_v38, %v6017_v8  ;;  %v6019_v45 = vpop.f32.mrb[185].mxu1  ;;  %7381 = vmatprep.mubr.f32.mxu0 %v16791_v35  ;;  %v6672_v15 = vrot.slane %v16791_v35, 7  ;;  %v6354_v35 = vld [vmem:[%s16560_s17 + $0xa8] sm:$0xff] }
 0x821   : > { %v16803_v17 = vadd.f32 %v6352_v56, %v6320_v4  ;;  %v6243_v5 = vadd.f32 %v10530_v19, %v16048_v2  ;;  %v16808_v46 = vsel %vm1001_vm1, %v16339_v53, %v6672_v15  ;;  %v18728_v4 = vld [vmem:[#allocation69_spill] sm:$0xff] }
 0x822   : > { %18726 = vst [vmem:[#allocation57_spill] sm:$0xff] %v16808_v46  ;;  %v6022_v13 = vpop.f32.mrb[186].mxu1  ;;  %7382 = vmatmul.mubr.f32.gmra.mrb[168].mxu0 %v16808_v46 }
 0x823   : > { %6488 = vst [vmem:[#allocation2 + $0x150] sm:$0xff] %v16803_v17  ;;  %v6321_v10 = vmax.f32 %v6243_v5, 0.0  ;;  %v10531_v32 = vadd.f32 %v16543_v38, %v6022_v13  ;;  %v6024_v8 = vpop.f32.mrb[187].mxu1  ;;  %7387 = vmatprep.mubr.f32.mxu0 %v16803_v17  ;;  %v6674_v56 = vrot.slane %v16803_v17, 7 }
 0x825   : > { %v16816_v2 = vadd.f32 %v6353_v33, %v6321_v10  ;;  %v6248_v19 = vadd.f32 %v10531_v32, %v18728_v4  ;;  %v16820_v45 = vsel %vm1001_vm1, %v6672_v15, %v6674_v56  ;;  %v6355_v56 = vld [vmem:[%s16560_s17 + $0xb0] sm:$0xff] }
 0x826   : > { %18729 = vst [vmem:[#allocation29_spill] sm:$0xff] %v16820_v45  ;;  %v6027_v22 = vpop.f32.mrb[188].mxu1  ;;  %7388 = vmatmul.mubr.f32.gmra.mrb[170].mxu0 %v16820_v45 }
 0x827   : > { %18727 = vst [vmem:[#allocation60_spill] sm:$0xff] %v16816_v2  ;;  %6489 = vst [vmem:[#allocation2 + $0x168] sm:$0xff] %v16816_v2  ;;  %v6322_v5 = vmax.f32 %v6248_v19, 0.0  ;;  %v10532_v13 = vadd.f32 %v16543_v38, %v6027_v22  ;;  %v6029_v8 = vpop.f32.mrb[189].mxu1  ;;  %7393 = vmatprep.mubr.f32.mxu0 %v16816_v2  ;;  %v6677_v33 = vrot.slane %v16816_v2, 7  ;;  %v6356_v2 = vld [vmem:[%s16560_s17 + $0xb8] sm:$0xff] }
 0x829   : > { %v16828_v10 = vadd.f32 %v6354_v35, %v6322_v5  ;;  %v6253_v15 = vadd.f32 %v10532_v13, %v16059_v51  ;;  %v16833_v32 = vsel %vm1001_vm1, %v16339_v53, %v6677_v33 }
 0x82a   : > { %18730 = vst [vmem:[#allocation26_spill] sm:$0xff] %v16833_v32  ;;  %v6032_v4 = vpop.f32.mrb[190].mxu1  ;;  %7394 = vmatmul.mubr.f32.gmra.mrb[172].mxu0 %v16833_v32 }
 0x82b   : > { %6490 = vst [vmem:[#allocation2 + $0x170] sm:$0xff] %v16828_v10  ;;  %v6323_v22 = vmax.f32 %v6253_v15, 0.0  ;;  %v10533_v19 = vadd.f32 %v16543_v38, %v6032_v4  ;;  %v6034_v8 = vpop.f32.mrb[191].mxu1  ;;  %7399 = vmatprep.mubr.f32.mxu0 %v16828_v10  ;;  %v6679_v35 = vrot.slane %v16828_v10, 7 }
 0x82d   : > { %v16841_v51 = vadd.f32 %v6355_v56, %v6323_v22  ;;  %v6258_v5 = vadd.f32 %v10533_v19, %v16056_v0  ;;  %v16845_v13 = vsel %vm1001_vm1, %v6677_v33, %v6679_v35  ;;  %v6357_v19 = vld [vmem:[%s16560_s17 + $0xc0] sm:$0xff] }
 0x82e   : > { %18732 = vst [vmem:[#allocation35_spill] sm:$0xff] %v16845_v13  ;;  %v6037_v32 = vpop.f32.mrb[192].mxu1  ;;  %7400 = vmatmul.mubr.f32.gmra.mrb[174].mxu0 %v16845_v13 }
 0x82f   : > { %18731 = vst [vmem:[#allocation28_spill] sm:$0xff] %v16841_v51  ;;  %6491 = vst [vmem:[#allocation2 + $0x188] sm:$0xff] %v16841_v51  ;;  %v6324_v15 = vmax.f32 %v6258_v5, 0.0  ;;  %v10534_v4 = vadd.f32 %v16543_v38, %v6037_v32  ;;  %v6039_v8 = vpop.f32.mrb[193].mxu1  ;;  %7405 = vmatprep.mubr.f32.mxu0 %v16841_v51  ;;  %v6682_v56 = vrot.slane %v16841_v51, 7  ;;  %v6358_v51 = vld [vmem:[%s16560_s17 + $0xc8] sm:$0xff] }
 0x831   : > { %v16853_v22 = vadd.f32 %v6356_v2, %v6324_v15  ;;  %v6263_v0 = vadd.f32 %v10534_v4, %v16067_v60  ;;  %v16858_v33 = vsel %vm1001_vm1, %v16339_v53, %v6682_v56 }
 0x832   : > { %18733 = vst [vmem:[#allocation39_spill] sm:$0xff] %v16858_v33  ;;  %v6042_v35 = vpop.f32.mrb[194].mxu1  ;;  %7406 = vmatmul.mubr.f32.gmra.mrb[176].mxu0 %v16858_v33 }
 0x833   : > { %6492 = vst [vmem:[#allocation2 + $0x190] sm:$0xff] %v16853_v22  ;;  %v6325_v32 = vmax.f32 %v6263_v0, 0.0  ;;  %v10535_v5 = vadd.f32 %v16543_v38, %v6042_v35  ;;  %v6044_v8 = vpop.f32.mrb[195].mxu1  ;;  %7411 = vmatprep.mubr.f32.mxu0 %v16853_v22  ;;  %v6684_v2 = vrot.slane %v16853_v22, 7 }
 0x835   : > { %v16866_v60 = vadd.f32 %v6357_v19, %v6325_v32  ;;  %v6268_v15 = vadd.f32 %v10535_v5, %v16064_v7  ;;  %v16870_v4 = vsel %vm1001_vm1, %v6682_v56, %v6684_v2  ;;  %v6359_v5 = vld [vmem:[%s16560_s17 + $0xd0] sm:$0xff] }
 0x836   : > { %18735 = vst [vmem:[#allocation55_spill] sm:$0xff] %v16870_v4  ;;  %v6047_v33 = vpop.f32.mrb[196].mxu1  ;;  %7412 = vmatmul.mubr.f32.gmra.mrb[178].mxu0 %v16870_v4 }
 0x837   : > { %18734 = vst [vmem:[#allocation46_spill] sm:$0xff] %v16866_v60  ;;  %6493 = vst [vmem:[#allocation2 + $0x1a8] sm:$0xff] %v16866_v60  ;;  %v6326_v0 = vmax.f32 %v6268_v15, 0.0  ;;  %v10536_v35 = vadd.f32 %v16543_v38, %v6047_v33  ;;  %v6049_v8 = vpop.f32.mrb[197].mxu1  ;;  %7417 = vmatprep.mubr.f32.mxu0 %v16866_v60  ;;  %v6687_v19 = vrot.slane %v16866_v60, 7 }
 0x839   : > { %v16878_v32 = vadd.f32 %v6358_v51, %v6326_v0  ;;  %v6273_v7 = vadd.f32 %v10536_v35, %v16075_v29  ;;  %v16883_v56 = vsel %vm1001_vm1, %v16339_v53, %v6687_v19  ;;  %v16897_v35 = vld [vmem:[#allocation2 + $0x8] sm:$0xff] }
 0x83a   : > { %18737 = vst [vmem:[#allocation56_spill] sm:$0xff] %v16883_v56  ;;  %v6052_v2 = vpop.f32.mrb[198].mxu1  ;;  %7418 = vmatmul.mubr.f32.gmra.mrb[180].mxu0 %v16883_v56  ;;  %v16900_v60 = vrot.slane %v16897_v35, 7 }
 0x83b   : > { %18736 = vst [vmem:[#allocation49_spill] sm:$0xff] %v16878_v32  ;;  %6494 = vst [vmem:[#allocation2 + $0x1b0] sm:$0xff] %v16878_v32  ;;  %v6327_v33 = vmax.f32 %v6273_v7, 0.0  ;;  %v10537_v15 = vadd.f32 %v16543_v38, %v6052_v2  ;;  %v6054_v8 = vpop.f32.mrb[199].mxu1  ;;  %7423 = vmatprep.mubr.f32.mxu0 %v16878_v32  ;;  %v6689_v51 = vrot.slane %v16878_v32, 7  ;;  %v6360_v7 = vld [vmem:[%s16560_s17 + $0xd8] sm:$0xff] }
 0x83c   : > { %18740 = vst [vmem:[#allocation23_spill] sm:$0xff] %v16900_v60  ;;  %v6361_v32 = vld [vmem:[%s16560_s17 + $0xe0] sm:$0xff] }
 0x83d   : > { %v16891_v29 = vadd.f32 %v6359_v5, %v6327_v33  ;;  %v6278_v0 = vadd.f32 %v10537_v15, %v16072_v43  ;;  %v16895_v53 = vsel %vm1001_vm1, %v6687_v19, %v6689_v51 }
 0x83e   : > { %18739 = vst [vmem:[#allocation14_spill] sm:$0xff] %v16895_v53  ;;  %v6057_v2 = vpop.f32.mrb[200].mxu1  ;;  %7424 = vmatmul.mubr.f32.gmra.mrb[182].mxu0 %v16895_v53 }
 0x83f   : > { %18738 = vst [vmem:[#allocation18_spill] sm:$0xff] %v16891_v29  ;;  %6495 = vst [vmem:[#allocation2 + $0x1c8] sm:$0xff] %v16891_v29  ;;  %v6328_v8 = vmax.f32 %v6278_v0, 0.0  ;;  %v10538_v5 = vadd.f32 %v16543_v38, %v6057_v2  ;;  %v6059_v33 = vpop.f32.mrb[201].mxu1  ;;  %7429 = vmatprep.mubr.f32.mxu0 %v16891_v29  ;;  %v6692_v43 = vrot.slane %v16891_v29, 7  ;;  %v6362_v29 = vld [vmem:[%s16560_s17 + $0xe8] sm:$0xff] }
 0x841   : > { %v16908_v19 = vadd.f32 %v6360_v7, %v6328_v8  ;;  %v6283_v15 = vadd.f32 %v10538_v5, %v16083_v49  ;;  %v16913_v51 = vsel %vm1001_vm1, %v16900_v60, %v6692_v43 }
 0x842   : > { %18741 = vst [vmem:[#allocation25_spill] sm:$0xff] %v16913_v51  ;;  %v6062_v53 = vpop.f32.mrb[202].mxu1  ;;  %7430 = vmatmul.mubr.f32.gmra.mrb[184].mxu0 %v16913_v51 }
 0x843   : > { %6496 = vst [vmem:[#allocation2 + $0x1d0] sm:$0xff] %v16908_v19  ;;  %v6329_v0 = vmax.f32 %v6283_v15, 0.0  ;;  %v10539_v2 = vadd.f32 %v16543_v38, %v6062_v53  ;;  %v6064_v33 = vpop.f32.mrb[203].mxu1  ;;  %7435 = vmatprep.mubr.f32.mxu0 %v16908_v19  ;;  %v6694_v7 = vrot.slane %v16908_v19, 7 }
 0x845   : > { %v16921_v49 = vadd.f32 %v6361_v32, %v6329_v0  ;;  %v6288_v8 = vadd.f32 %v10539_v2, %v16080_v52  ;;  %v16925_v5 = vsel %vm1001_vm1, %v6692_v43, %v6694_v7  ;;  %v6363_v2 = vld [vmem:[%s16560_s17 + $0xf0] sm:$0xff] }
 0x846   : > { %18743 = vst [vmem:[#allocation31_spill] sm:$0xff] %v16925_v5  ;;  %v6067_v51 = vpop.f32.mrb[204].mxu1  ;;  %7436 = vmatmul.mubr.f32.gmra.mrb[186].mxu0 %v16925_v5 }
 0x847   : > { %18742 = vst [vmem:[#allocation27_spill] sm:$0xff] %v16921_v49  ;;  %6497 = vst [vmem:[#allocation2 + $0x1e8] sm:$0xff] %v16921_v49  ;;  %v6330_v53 = vmax.f32 %v6288_v8, 0.0  ;;  %v10540_v15 = vadd.f32 %v16543_v38, %v6067_v51  ;;  %v6069_v33 = vpop.f32.mrb[205].mxu1  ;;  %7441 = vmatprep.mubr.f32.mxu0 %v16921_v49  ;;  %v6697_v32 = vrot.slane %v16921_v49, 7 }
 0x849   : > { %v16933_v0 = vadd.f32 %v6362_v29, %v6330_v53  ;;  %v6293_v52 = vadd.f32 %v10540_v15, %v16532_v18  ;;  %v16938_v43 = vsel %vm1001_vm1, %v16900_v60, %v6697_v32  ;;  %v7025_v18 = vld [vmem:[%s18691_s13 + $0x400] sm:$0xff]  ;;  %v7027_v53 = vld [vmem:[%s18691_s13 + $0x410] sm:$0xff]  ;;  %v16977_v60 = vrot.slane %v16897_v35, 1 }
 0x84a   : > { %18744 = vst [vmem:[#allocation37_spill] sm:$0xff] %v16938_v43  ;;  %v6072_v7 = vpop.f32.mrb[206].mxu1  ;;  %7442 = vmatmul.mubr.f32.gmra.mrb[188].mxu0 %v16938_v43 }
 0x84b   : > { %6498 = vst [vmem:[#allocation2 + $0x1f0] sm:$0xff] %v16933_v0  ;;  %v6331_v51 = vmax.f32 %v6293_v52, 0.0  ;;  %v10541_v8 = vadd.f32 %v16543_v38, %v6072_v7  ;;  %v6074_v33 = vpop.f32.mrb[207].mxu1  ;;  %7447 = vmatprep.mubr.f32.mxu0 %v16933_v0  ;;  %v6699_v29 = vrot.slane %v16933_v0, 7  ;;  %v7030_v38 = vld [vmem:[%s18691_s13 + $0x428] sm:$0xff]  ;;  %v7032_v7 = vld [vmem:[%s18691_s13 + $0x438] sm:$0xff]  ;;  %v6753_v35 = vsel %vm1130_vm2, %v16102_v1, %v16977_v60 }
 0x84c   : > { %v6364_v33 = vld [vmem:[%s16560_s17 + $0xf8] sm:$0xff]  ;;  %s18804_s17 = sld [smem:[#allocation76_spill]] }
 0x84d   : > { %v16952_v15 = vadd.f32 %v6363_v2, %v6331_v51  ;;  %v6298_v49 = vadd.f32 %v10541_v8, %v16524_v63  ;;  %v16956_v52 = vsel %vm1001_vm1, %v6697_v32, %v6699_v29  ;;  %v10168_v63 = vpack.c.bf16 %v7027_v53, %v7025_v18  ;;  %v7029_v32 = vld [vmem:[%s18691_s13 + $0x420] sm:$0xff]  ;;  %v7031_v8 = vld [vmem:[%s18691_s13 + $0x430] sm:$0xff] }
 0x84e   : > { %18745 = vst [vmem:[#allocation43_spill] sm:$0xff] %v16956_v52  ;;  %7448 = vmatmul.mubr.f32.gmra.mrb[190].mxu0 %v16956_v52  ;;  %v10170_v51 = vpack.c.bf16 %v7032_v7, %v7030_v38  ;;  %v10172_v18 = vpack.c.bf16 %v7031_v8, %v7029_v32  ;;  %v7033_v38 = vld [vmem:[%s18691_s13 + $0x440] sm:$0xff]  ;;  %v7035_v7 = vld [vmem:[%s18691_s13 + $0x450] sm:$0xff] }
 0x84f   : > { %6499 = vst [vmem:[#allocation2 + $0x208] sm:$0xff] %v16952_v15  ;;  %v6332_v2 = vmax.f32 %v6298_v49, 0.0  ;;  %7518 = vmatprep.mubr.f32.mxu0 %v16583_v40  ;;  %v7034_v49 = vld [vmem:[%s18691_s13 + $0x448] sm:$0xff]  ;;  %v7036_v40 = vld [vmem:[%s18691_s13 + $0x458] sm:$0xff]  ;;  %v7039_v32 = vld [vmem:[%s18691_s13 + $0x470] sm:$0xff] }
 0x850   : > { %v10174_v53 = vpack.c.bf16 %v7036_v40, %v7034_v49  ;;  %v7042_v49 = vld [vmem:[%s18691_s13 + $0x488] sm:$0xff] }
 0x851   : > { %v16974_v29 = vadd.f32 %v6364_v33, %v6332_v2  ;;  %v6755_v33 = vrot.slane %v16578_v21, 1  ;;  %v6754_v2 = vrot.slane %v16570_v31, 1  ;;  %v7037_v21 = vld [vmem:[%s18691_s13 + $0x460] sm:$0xff]  ;;  %v7044_v31 = vld [vmem:[%s18691_s13 + $0x498] sm:$0xff] }
 0x852   : > { %7519 = vmatmul.mubr.f32.vlgmr.msra.gmra.mrb[128].mxu0 %v16102_v1  ;;  %v7040_v1 = vld [vmem:[%s18691_s13 + $0x478] sm:$0xff]  ;;  %v10180_v40 = vpack.c.bf16 %v7039_v32, %v7037_v21  ;;  %v7050_v32 = vld [vmem:[%s18691_s13 + $0x4c8] sm:$0xff] }
 0x853   : > { %6500 = vst [vmem:[#allocation2 + $0x210] sm:$0xff] %v16974_v29  ;;  %7524 = vmatprep.mubr.f32.mxu0 %v16595_v61  ;;  %10169 = vmatpush1.bf16.msra.mxu0 %v10168_v63  ;;  %v7038_v61 = vld [vmem:[%s18691_s13 + $0x468] sm:$0xff]  ;;  %v10176_v63 = vpack.c.bf16 %v7035_v7, %v7033_v38  ;;  %v17013_v8 = vsel %vm1130_vm2, %v6754_v2, %v6755_v33  ;;  %v6760_v7 = vrot.slane %v16603_v37, 1  ;;  %v6759_v2 = vrot.slane %v16591_v28, 1  ;;  %v7045_v37 = vld [vmem:[%s18691_s13 + $0x4a0] sm:$0xff]  ;;  %v7052_v28 = vld [vmem:[%s18691_s13 + $0x4d8] sm:$0xff] }
 0x854   : > { %10171 = vmatprep.subr.bf16.mxu0 %v10170_v51  ;;  %v10178_v51 = vpack.c.bf16 %v7040_v1, %v7038_v61  ;;  %v17031_v38 = vsel %vm1130_vm2, %v6755_v33, %v16977_v60  ;;  %v7046_v61 = vld [vmem:[%s18691_s13 + $0x4a8] sm:$0xff]  ;;  %v7048_v1 = vld [vmem:[%s18691_s13 + $0x4b8] sm:$0xff] }
 0x855   : > { %v10186_v33 = vpack.c.bf16 %v7048_v1, %v7046_v61  ;;  %v17050_v21 = vsel %vm1130_vm2, %v6759_v2, %v6760_v7  ;;  %v7054_v61 = vld [vmem:[%s18691_s13 + $0x4e8] sm:$0xff]  ;;  %v7056_v1 = vld [vmem:[%s18691_s13 + $0x4f8] sm:$0xff]  ;;  %v6764_v2 = vrot.slane %v16616_v24, 1 }
 0x856   : > { %7525 = vmatmul.mubr.f32.gmra.mrb[130].mxu0 %v6753_v35  ;;  %v10182_v35 = vpack.c.bf16 %v7044_v31, %v7042_v49  ;;  %v10190_v31 = vpack.c.bf16 %v7052_v28, %v7050_v32  ;;  %v7060_v24 = vld [vmem:[%s18691_s13 + $0x518] sm:$0xff] }
 0x857   : > { %7530 = vmatprep.mubr.f32.mxu0 %v16608_v20  ;;  %10173 = vmatpush1.bf16.msra.mxu0 %v10172_v18  ;;  %v7041_v18 = vld [vmem:[%s18691_s13 + $0x480] sm:$0xff] }
 0x858   : > { %10175 = vmatprep.subr.bf16.mxu0 %v10174_v53  ;;  %v7043_v53 = vld [vmem:[%s18691_s13 + $0x490] sm:$0xff] }
 0x85a   : > { %7531 = vmatmul.mubr.f32.gmra.mrb[132].mxu0 %v17013_v8 }
 0x85b   : > { %7536 = vmatprep.mubr.f32.mxu0 %v16620_v50  ;;  %10177 = vmatpush1.bf16.msra.mxu0 %v10176_v63  ;;  %v10184_v63 = vpack.c.bf16 %v7043_v53, %v7041_v18  ;;  %v17068_v18 = vsel %vm1130_vm2, %v6760_v7, %v16977_v60  ;;  %v6765_v53 = vrot.slane %v16628_v44, 1  ;;  %v10194_v7 = vpack.c.bf16 %v7056_v1, %v7054_v61  ;;  %v7053_v44 = vld [vmem:[%s18691_s13 + $0x4e0] sm:$0xff]  ;;  %v7062_v61 = vld [vmem:[%s18691_s13 + $0x528] sm:$0xff]  ;;  %v7064_v1 = vld [vmem:[%s18691_s13 + $0x538] sm:$0xff] }
 0x85c   : > { %10179 = vmatprep.subr.bf16.mxu0 %v10178_v51  ;;  %v7047_v51 = vld [vmem:[%s18691_s13 + $0x4b0] sm:$0xff] }
 0x85d   : > { %v10188_v49 = vpack.c.bf16 %v7047_v51, %v7045_v37  ;;  %v17087_v37 = vsel %vm1130_vm2, %v6764_v2, %v6765_v53  ;;  %v7058_v51 = vld [vmem:[%s18691_s13 + $0x508] sm:$0xff]  ;;  %v6769_v2 = vrot.slane %v16641_v55, 1  ;;  %v7068_v55 = vld [vmem:[%s18691_s13 + $0x558] sm:$0xff] }
 0x85e   : > { %7537 = vmatmul.mubr.f32.gmra.mrb[134].mxu0 %v17031_v38  ;;  %18746 = vst [vmem:[#allocation44_spill] sm:$0xff] %v17087_v37  ;;  %v10198_v28 = vpack.c.bf16 %v7060_v24, %v7058_v51 }
 0x85f   : > { %7542 = vmatprep.mubr.f32.mxu0 %v16633_v54  ;;  %10181 = vmatpush1.bf16.msra.mxu0 %v10180_v40  ;;  %v7049_v40 = vld [vmem:[%s18691_s13 + $0x4c0] sm:$0xff] }
 0x860   : > { %10183 = vmatprep.subr.bf16.mxu0 %v10182_v35  ;;  %v7051_v35 = vld [vmem:[%s18691_s13 + $0x4d0] sm:$0xff] }
 0x862   : > { %7543 = vmatmul.mubr.f32.gmra.mrb[136].mxu0 %v17050_v21 }
 0x863   : > { %7548 = vmatprep.mubr.f32.mxu0 %v16645_v25  ;;  %10185 = vmatpush1.bf16.msra.mxu0 %v10184_v63  ;;  %v10192_v63 = vpack.c.bf16 %v7051_v35, %v7049_v40  ;;  %v17105_v40 = vsel %vm1130_vm2, %v6765_v53, %v16977_v60  ;;  %v6770_v35 = vrot.slane %v16653_v3, 1  ;;  %v10202_v53 = vpack.c.bf16 %v7064_v1, %v7062_v61  ;;  %v7061_v3 = vld [vmem:[%s18691_s13 + $0x520] sm:$0xff]  ;;  %v7070_v61 = vld [vmem:[%s18691_s13 + $0x568] sm:$0xff]  ;;  %v7072_v1 = vld [vmem:[%s18691_s13 + $0x578] sm:$0xff] }
 0x864   : > { %10187 = vmatprep.subr.bf16.mxu0 %v10186_v33  ;;  %v7055_v33 = vld [vmem:[%s18691_s13 + $0x4f0] sm:$0xff]  ;;  %18747 = vst [vmem:[#allocation47_spill] sm:$0xff] %v17105_v40 }
 0x865   : > { %v10196_v32 = vpack.c.bf16 %v7055_v33, %v7053_v44  ;;  %v17124_v44 = vsel %vm1130_vm2, %v6769_v2, %v6770_v35  ;;  %v7066_v33 = vld [vmem:[%s18691_s13 + $0x548] sm:$0xff]  ;;  %v6774_v2 = vrot.slane %v16666_v36, 1  ;;  %v7076_v36 = vld [vmem:[%s18691_s13 + $0x598] sm:$0xff] }
 0x866   : > { %7549 = vmatmul.mubr.f32.gmra.mrb[138].mxu0 %v17068_v18  ;;  %18748 = vst [vmem:[#allocation52_spill] sm:$0xff] %v17124_v44  ;;  %v10206_v24 = vpack.c.bf16 %v7068_v55, %v7066_v33 }
 0x867   : > { %7554 = vmatprep.mubr.f32.mxu0 %v16658_v41  ;;  %10189 = vmatpush1.bf16.msra.mxu0 %v10188_v49  ;;  %v7057_v49 = vld [vmem:[%s18691_s13 + $0x500] sm:$0xff] }
 0x868   : > { %10191 = vmatprep.subr.bf16.mxu0 %v10190_v31  ;;  %v7059_v31 = vld [vmem:[%s18691_s13 + $0x510] sm:$0xff] }
 0x86a   : > { %7555 = vmatmul.mubr.f32.gmra.mrb[140].mxu0 %v17087_v37 }
 0x86b   : > { %7560 = vmatprep.mubr.f32.mxu0 %v16670_v30  ;;  %10193 = vmatpush1.bf16.msra.mxu0 %v10192_v63  ;;  %v10200_v63 = vpack.c.bf16 %v7059_v31, %v7057_v49  ;;  %v17142_v49 = vsel %vm1130_vm2, %v6770_v35, %v16977_v60  ;;  %v6775_v31 = vrot.slane %v16678_v9, 1  ;;  %v10210_v35 = vpack.c.bf16 %v7072_v1, %v7070_v61  ;;  %v7069_v9 = vld [vmem:[%s18691_s13 + $0x560] sm:$0xff]  ;;  %v7078_v61 = vld [vmem:[%s18691_s13 + $0x5a8] sm:$0xff]  ;;  %v7080_v1 = vld [vmem:[%s18691_s13 + $0x5b8] sm:$0xff] }
 0x86c   : > { %10195 = vmatprep.subr.bf16.mxu0 %v10194_v7  ;;  %v7063_v7 = vld [vmem:[%s18691_s13 + $0x530] sm:$0xff]  ;;  %18749 = vst [vmem:[#allocation53_spill] sm:$0xff] %v17142_v49 }
 0x86d   : > { %v10204_v51 = vpack.c.bf16 %v7063_v7, %v7061_v3  ;;  %v17161_v3 = vsel %vm1130_vm2, %v6774_v2, %v6775_v31  ;;  %v7074_v7 = vld [vmem:[%s18691_s13 + $0x588] sm:$0xff]  ;;  %v6779_v2 = vrot.slane %v16691_v23, 1  ;;  %v7084_v23 = vld [vmem:[%s18691_s13 + $0x5d8] sm:$0xff] }
 0x86e   : > { %7561 = vmatmul.mubr.f32.gmra.mrb[142].mxu0 %v17105_v40  ;;  %18750 = vst [vmem:[#allocation40_spill] sm:$0xff] %v17161_v3  ;;  %v10214_v55 = vpack.c.bf16 %v7076_v36, %v7074_v7 }
 0x86f   : > { %7566 = vmatprep.mubr.f32.mxu0 %v16683_v48  ;;  %10197 = vmatpush1.bf16.msra.mxu0 %v10196_v32  ;;  %v7065_v32 = vld [vmem:[%s18691_s13 + $0x540] sm:$0xff] }
 0x870   : > { %10199 = vmatprep.subr.bf16.mxu0 %v10198_v28  ;;  %v7067_v28 = vld [vmem:[%s18691_s13 + $0x550] sm:$0xff] }
 0x872   : > { %7567 = vmatmul.mubr.f32.gmra.mrb[144].mxu0 %v17124_v44 }
 0x873   : > { %7572 = vmatprep.mubr.f32.mxu0 %v16695_v27  ;;  %10201 = vmatpush1.bf16.msra.mxu0 %v10200_v63  ;;  %v10208_v63 = vpack.c.bf16 %v7067_v28, %v7065_v32  ;;  %v17179_v32 = vsel %vm1130_vm2, %v6775_v31, %v16977_v60  ;;  %v6780_v28 = vrot.slane %v16703_v34, 1  ;;  %v10218_v31 = vpack.c.bf16 %v7080_v1, %v7078_v61  ;;  %v7077_v34 = vld [vmem:[%s18691_s13 + $0x5a0] sm:$0xff]  ;;  %v7086_v61 = vld [vmem:[%s18691_s13 + $0x5e8] sm:$0xff]  ;;  %v7088_v1 = vld [vmem:[%s18691_s13 + $0x5f8] sm:$0xff] }
 0x874   : > { %10203 = vmatprep.subr.bf16.mxu0 %v10202_v53  ;;  %v7071_v53 = vld [vmem:[%s18691_s13 + $0x570] sm:$0xff]  ;;  %18751 = vst [vmem:[#allocation33_spill] sm:$0xff] %v17179_v32 }
 0x875   : > { %v10212_v33 = vpack.c.bf16 %v7071_v53, %v7069_v9  ;;  %v17198_v9 = vsel %vm1130_vm2, %v6779_v2, %v6780_v28  ;;  %v7082_v53 = vld [vmem:[%s18691_s13 + $0x5c8] sm:$0xff]  ;;  %v6784_v2 = vrot.slane %v16716_v47, 1  ;;  %v7092_v47 = vld [vmem:[%s18691_s13 + $0x618] sm:$0xff] }
 0x876   : > { %7573 = vmatmul.mubr.f32.gmra.mrb[146].mxu0 %v17142_v49  ;;  %18752 = vst [vmem:[#allocation41_spill] sm:$0xff] %v17198_v9  ;;  %v10222_v36 = vpack.c.bf16 %v7084_v23, %v7082_v53 }
 0x877   : > { %7578 = vmatprep.mubr.f32.mxu0 %v16708_v26  ;;  %10205 = vmatpush1.bf16.msra.mxu0 %v10204_v51  ;;  %v7073_v51 = vld [vmem:[%s18691_s13 + $0x580] sm:$0xff] }
 0x878   : > { %10207 = vmatprep.subr.bf16.mxu0 %v10206_v24  ;;  %v7075_v24 = vld [vmem:[%s18691_s13 + $0x590] sm:$0xff] }
 0x87a   : > { %7579 = vmatmul.mubr.f32.gmra.mrb[148].mxu0 %v17161_v3 }
 0x87b   : > { %7584 = vmatprep.mubr.f32.mxu0 %v16720_v57  ;;  %10209 = vmatpush1.bf16.msra.mxu0 %v10208_v63  ;;  %v10216_v63 = vpack.c.bf16 %v7075_v24, %v7073_v51  ;;  %v17216_v51 = vsel %vm1130_vm2, %v6780_v28, %v16977_v60  ;;  %v6785_v24 = vrot.slane %v16728_v6, 1  ;;  %v10226_v28 = vpack.c.bf16 %v7088_v1, %v7086_v61  ;;  %v7085_v6 = vld [vmem:[%s18691_s13 + $0x5e0] sm:$0xff] }
 0x87c   : > { %10211 = vmatprep.subr.bf16.mxu0 %v10210_v35  ;;  %v7079_v35 = vld [vmem:[%s18691_s13 + $0x5b0] sm:$0xff]  ;;  %18753 = vst [vmem:[#allocation45_spill] sm:$0xff] %v17216_v51 }
 0x87d   : > { %v10220_v7 = vpack.c.bf16 %v7079_v35, %v7077_v34  ;;  %v17235_v34 = vsel %vm1130_vm2, %v6784_v2, %v6785_v24  ;;  %v7090_v35 = vld [vmem:[%s18691_s13 + $0x608] sm:$0xff] }
 0x87e   : > { %7585 = vmatmul.mubr.f32.gmra.mrb[150].mxu0 %v17179_v32  ;;  %18754 = vst [vmem:[#allocation48_spill] sm:$0xff] %v17235_v34  ;;  %v10230_v23 = vpack.c.bf16 %v7092_v47, %v7090_v35  ;;  %v6805_v47 = vrot.slane %v16828_v10, 1  ;;  %v18762_v10 = vld [vmem:[#allocation28_spill] sm:$0xff] }
 0x87f   : > { %7590 = vmatprep.mubr.f32.mxu0 %v16733_v62  ;;  %10213 = vmatpush1.bf16.msra.mxu0 %v10212_v33  ;;  %v7081_v33 = vld [vmem:[%s18691_s13 + $0x5c0] sm:$0xff] }
 0x880   : > { %10215 = vmatprep.subr.bf16.mxu0 %v10214_v55  ;;  %v7083_v55 = vld [vmem:[%s18691_s13 + $0x5d0] sm:$0xff] }
 0x882   : > { %7591 = vmatmul.mubr.f32.gmra.mrb[152].mxu0 %v17198_v9 }
 0x883   : > { %7596 = vmatprep.mubr.f32.mxu0 %v16745_v12  ;;  %10217 = vmatpush1.bf16.msra.mxu0 %v10216_v63  ;;  %v10224_v63 = vpack.c.bf16 %v7083_v55, %v7081_v33  ;;  %v6789_v33 = vrot.slane %v16741_v16, 1  ;;  %v18757_v16 = vld [vmem:[#allocation22_spill] sm:$0xff] }
 0x884   : > { %10219 = vmatprep.subr.bf16.mxu0 %v10218_v31  ;;  %v7087_v31 = vld [vmem:[%s18691_s13 + $0x5f0] sm:$0xff]  ;;  %v6794_v61 = vrot.slane %v18757_v16, 1  ;;  %v6809_v16 = vrot.slane %v18762_v10, 1 }
 0x885   : > { %v10228_v53 = vpack.c.bf16 %v7087_v31, %v7085_v6 }
 0x886   : > { %7597 = vmatmul.mubr.f32.gmra.mrb[154].mxu0 %v17216_v51 }
 0x887   : > { %7602 = vmatprep.mubr.f32.mxu0 %v16758_v14  ;;  %10221 = vmatpush1.bf16.msra.mxu0 %v10220_v7  ;;  %v17247_v7 = vsel %vm1130_vm2, %v6785_v24, %v16977_v60 }
 0x888   : > { %10223 = vmatprep.subr.bf16.mxu0 %v10222_v36  ;;  %18755 = vst [vmem:[#allocation50_spill] sm:$0xff] %v17247_v7  ;;  %v6790_v36 = vrot.slane %v16753_v11, 1  ;;  %v6795_v11 = vrot.slane %v16778_v58, 1  ;;  %v18758_v58 = vld [vmem:[#allocation26_spill] sm:$0xff] }
 0x88a   : > { %7603 = vmatmul.mubr.f32.gmra.mrb[156].mxu0 %v17235_v34  ;;  %v17254_v55 = vsel %vm1130_vm2, %v6789_v33, %v6790_v36  ;;  %v17260_v24 = vsel %vm1130_vm2, %v6790_v36, %v16977_v60  ;;  %v17267_v1 = vsel %vm1130_vm2, %v6794_v61, %v6795_v11  ;;  %v17273_v2 = vsel %vm1130_vm2, %v6795_v11, %v16977_v60 }
 0x88b   : > { %7608 = vmatprep.mubr.f32.mxu0 %v16770_v42  ;;  %10225 = vmatpush1.bf16.msra.mxu0 %v10224_v63  ;;  %18756 = vst [vmem:[#allocation51_spill] sm:$0xff] %v17254_v55  ;;  %v6800_v63 = vrot.slane %v16803_v17, 1  ;;  %v18760_v17 = vld [vmem:[#allocation39_spill] sm:$0xff]  ;;  %v17299_v33 = vsel %vm1130_vm2, %v6805_v47, %v16977_v60  ;;  %v6810_v11 = vrot.slane %v16853_v22, 1  ;;  %v18765_v22 = vld [vmem:[#allocation25_spill] sm:$0xff] }
 0x88c   : > { %10227 = vmatprep.subr.bf16.mxu0 %v10226_v28  ;;  %v18759_v28 = vld [vmem:[#allocation70_spill] sm:$0xff] }
 0x88d   : > { %v6799_v6 = vrot.slane %v18759_v28, 1  ;;  %v17286_v35 = vsel %vm1130_vm2, %v6800_v63, %v16977_v60  ;;  %v17306_v61 = vsel %vm1130_vm2, %v6809_v16, %v6810_v11  ;;  %v17312_v28 = vsel %vm1130_vm2, %v6810_v11, %v16977_v60 }
 0x88e   : > { %7609 = vmatmul.mubr.f32.gmra.mrb[158].mxu0 %v17247_v7  ;;  %v6820_v11 = vrot.slane %v16908_v19, 1 }
 0x88f   : > { %7614 = vmatprep.mubr.f32.mxu0 %v16783_v59  ;;  %10229 = vmatpush1.bf16.msra.mxu0 %v10228_v53  ;;  %v17280_v31 = vsel %vm1130_vm2, %v6799_v6, %v6800_v63  ;;  %v18761_v53 = vld [vmem:[#allocation60_spill] sm:$0xff]  ;;  %v18763_v63 = vld [vmem:[#allocation14_spill] sm:$0xff]  ;;  %v18764_v6 = vld [vmem:[#allocation49_spill] sm:$0xff] }
 0x890   : > { %10231 = vmatprep.subr.bf16.mxu0 %v10230_v23  ;;  %v6804_v23 = vrot.slane %v18761_v53, 1  ;;  %v18766_v53 = vld [vmem:[#allocation46_spill] sm:$0xff] }
 0x892   : > { %7615 = vmatmul.mubr.f32.gmra.mrb[160].mxu0 %v17254_v55  ;;  %v17293_v36 = vsel %vm1130_vm2, %v6804_v23, %v6805_v47  ;;  %v6815_v47 = vrot.slane %v18764_v6, 1  ;;  %v6814_v23 = vrot.slane %v18766_v53, 1 }
 0x893   : > { %7620 = vmatprep.mubr.f32.mxu0 %v16795_v39  ;;  %v11492_v39 = vld [vmem:[#allocation2 + $0x28] sm:$0xff] }
 0x894   : > { %v17319_v10 = vsel %vm1130_vm2, %v6814_v23, %v6815_v47  ;;  %v17325_v16 = vsel %vm1130_vm2, %v6815_v47, %v16977_v60  ;;  %v6865_v23 = vrot.slane %v16952_v15, 7  ;;  %v17339_v47 = vsel %vm1130_vm2, %v6820_v11, %v16977_v60 }
 0x895   : > { %18767 = vst [vmem:[#allocation54_spill] sm:$0xff] %v17325_v16 }
 0x896   : > { %7621 = vmatmul.mubr.f32.gmra.mrb[162].mxu0 %v17260_v24 }
 0x897   : > { %7626 = vmatprep.mubr.f32.mxu0 %v16808_v46  ;;  %v7100_v46 = vld [vmem:[%s18691_s13 + $0x658] sm:$0xff] }
 0x89a   : > { %7627 = vmatmul.mubr.f32.gmra.mrb[164].mxu0 %v17267_v1 }
 0x89b   : > { %7632 = vmatprep.mubr.f32.mxu0 %v16820_v45  ;;  %v7098_v45 = vld [vmem:[%s18691_s13 + $0x648] sm:$0xff] }
 0x89e   : > { %7633 = vmatmul.mubr.f32.gmra.mrb[166].mxu0 %v17273_v2 }
 0x89f   : > { %7638 = vmatprep.mubr.f32.mxu0 %v18758_v58  ;;  %v7093_v58 = vld [vmem:[%s18691_s13 + $0x620] sm:$0xff] }
 0x8a2   : > { %7639 = vmatmul.mubr.f32.gmra.mrb[168].mxu0 %v17280_v31 }
 0x8a3   : > { %7644 = vmatprep.mubr.f32.mxu0 %v16845_v13 }
 0x8a6   : > { %7645 = vmatmul.mubr.f32.gmra.mrb[170].mxu0 %v17286_v35 }
 0x8a7   : > { %7650 = vmatprep.mubr.f32.mxu0 %v18760_v17 }
 0x8aa   : > { %7651 = vmatmul.mubr.f32.gmra.mrb[172].mxu0 %v17293_v36 }
 0x8ab   : > { %7656 = vmatprep.mubr.f32.mxu0 %v16870_v4  ;;  %v18771_v4 = vld [vmem:[#allocation27_spill] sm:$0xff] }
 0x8ac   : > { %v6824_v17 = vrot.slane %v18771_v4, 1 }
 0x8ae   : > { %7657 = vmatmul.mubr.f32.gmra.mrb[174].mxu0 %v17299_v33 }
 0x8af   : > { %7662 = vmatprep.mubr.f32.mxu0 %v16883_v56 }
 0x8b2   : > { %7663 = vmatmul.mubr.f32.gmra.mrb[176].mxu0 %v17306_v61 }
 0x8b3   : > { %7668 = vmatprep.mubr.f32.mxu0 %v18763_v63 }
 0x8b6   : > { %7669 = vmatmul.mubr.f32.gmra.mrb[178].mxu0 %v17312_v28 }
 0x8b7   : > { %7674 = vmatprep.mubr.f32.mxu0 %v18765_v22  ;;  %v18768_v22 = vld [vmem:[#allocation18_spill] sm:$0xff] }
 0x8b8   : > { %v6819_v63 = vrot.slane %v18768_v22, 1 }
 0x8ba   : > { %7675 = vmatmul.mubr.f32.gmra.mrb[180].mxu0 %v17319_v10  ;;  %v17332_v53 = vsel %vm1130_vm2, %v6819_v63, %v6820_v11  ;;  %v6867_v63 = vrot.slane %v16974_v29, 7 }
 0x8bb   : > { %7680 = vmatprep.mubr.f32.mxu0 %v16925_v5  ;;  %v6825_v5 = vrot.slane %v16933_v0, 1 }
 0x8bc   : > { %v17355_v11 = vsel %vm1001_vm1, %v6865_v23, %v6867_v63 }
 0x8bd   : > { %18772 = vst [vmem:[#allocation32_spill] sm:$0xff] %v17355_v11  ;;  %v17366_v13 = vsel %vm1130_vm2, %v6825_v5, %v16977_v60 }
 0x8be   : > { %7681 = vmatmul.mubr.f32.gmra.mrb[182].mxu0 %v17325_v16 }
 0x8bf   : > { %7686 = vmatprep.mubr.f32.mxu0 %v16938_v43  ;;  %v18769_v43 = vld [vmem:[#allocation23_spill] sm:$0xff] }
 0x8c0   : > { %v17345_v56 = vsel %vm1001_vm1, %v18769_v43, %v6865_v23  ;;  %v7089_v43 = vld [vmem:[%s18691_s13 + $0x600] sm:$0xff]  ;;  %v7096_v23 = vld [vmem:[%s18691_s13 + $0x638] sm:$0xff] }
 0x8c1   : > { %18770 = vst [vmem:[#allocation36_spill] sm:$0xff] %v17345_v56 }
 0x8c2   : > { %7687 = vmatmul.mubr.f32.gmra.mrb[184].mxu0 %v17332_v53 }
 0x8c3   : > { %7692 = vmatprep.mubr.f32.mxu0 %v16956_v52  ;;  %v17351_v52 = vsel %vm1130_vm2, %v6824_v17, %v6825_v5  ;;  %v7094_v17 = vld [vmem:[%s18691_s13 + $0x628] sm:$0xff]  ;;  %v7095_v5 = vld [vmem:[%s18691_s13 + $0x630] sm:$0xff] }
 0x8c6   : > { %7693 = vmatmul.mubr.f32.gmra.mrb[186].mxu0 %v17339_v47 }
 0x8c7   : > { %7698 = vmatprep.mubr.f32.mxu0 %v17345_v56  ;;  %v7091_v56 = vld [vmem:[%s18691_s13 + $0x610] sm:$0xff] }
 0x8c8   : > { %v10232_v63 = vpack.c.bf16 %v7091_v56, %v7089_v43  ;;  %v10236_v56 = vpack.c.bf16 %v7095_v5, %v7093_v58  ;;  %v7097_v43 = vld [vmem:[%s18691_s13 + $0x640] sm:$0xff]  ;;  %v7108_v5 = vld [vmem:[%s18691_s13 + $0x698] sm:$0xff] }
 0x8c9   : > { %v7101_v58 = vld [vmem:[%s18691_s13 + $0x660] sm:$0xff] }
 0x8ca   : > { %7699 = vmatmul.mubr.f32.gmra.mrb[188].mxu0 %v17351_v52 }
 0x8cb   : > { %7704 = vmatprep.mubr.f32.mxu0 %v17355_v11  ;;  %v10234_v11 = vpack.c.bf16 %v7096_v23, %v7094_v17  ;;  %v7099_v17 = vld [vmem:[%s18691_s13 + $0x650] sm:$0xff]  ;;  %v7102_v23 = vld [vmem:[%s18691_s13 + $0x668] sm:$0xff] }
 0x8ce   : > { %7705 = vmatmul.mubr.f32.gmra.mrb[190].mxu0 %v17366_v13 }
 0x8cf   : > { %7775 = vmatprep.mubr.f32.mxu0 %v17013_v8  ;;  %v10238_v8 = vpack.c.bf16 %v7100_v46, %v7098_v45  ;;  %v10240_v46 = vpack.c.bf16 %v7099_v17, %v7097_v43  ;;  %v7105_v17 = vld [vmem:[%s18691_s13 + $0x680] sm:$0xff] }
 0x8d2   : > { %7776 = vmatmul.mubr.f32.vlgmr.msra.gmra.mrb[128].mxu0 %v11492_v39  ;;  %v7104_v39 = vld [vmem:[%s18691_s13 + $0x678] sm:$0xff] }
 0x8d3   : > { %7781 = vmatprep.mubr.f32.mxu0 %v17031_v38  ;;  %10233 = vmatpush1.bf16.msra.mxu0 %v10232_v63  ;;  %v11493_v38 = vld [vmem:[#allocation2 + $0x30] sm:$0xff]  ;;  %v10242_v45 = vpack.c.bf16 %v7104_v39, %v7102_v23  ;;  %v7106_v63 = vld [vmem:[%s18691_s13 + $0x688] sm:$0xff] }
 0x8d4   : > { %10235 = vmatprep.subr.bf16.mxu0 %v10234_v11  ;;  %v7103_v11 = vld [vmem:[%s18691_s13 + $0x670] sm:$0xff]  ;;  %v10246_v43 = vpack.c.bf16 %v7108_v5, %v7106_v63  ;;  %v7110_v39 = vld [vmem:[%s18691_s13 + $0x6a8] sm:$0xff] }
 0x8d5   : > { %v7107_v23 = vld [vmem:[%s18691_s13 + $0x690] sm:$0xff]  ;;  %v7114_v5 = vld [vmem:[%s18691_s13 + $0x6c8] sm:$0xff] }
 0x8d6   : > { %7782 = vmatmul.mubr.f32.gmra.mrb[130].mxu0 %v11493_v38  ;;  %v7112_v38 = vld [vmem:[%s18691_s13 + $0x6b8] sm:$0xff]  ;;  %v7111_v63 = vld [vmem:[%s18691_s13 + $0x6b0] sm:$0xff] }
 0x8d7   : > { %7787 = vmatprep.mubr.f32.mxu0 %v17050_v21  ;;  %10237 = vmatpush1.bf16.msra.mxu0 %v10236_v56  ;;  %v17414_v56 = vld [vmem:[#allocation2 + $0x48] sm:$0xff] }
 0x8d8   : > { %10239 = vmatprep.subr.bf16.mxu0 %v10238_v8  ;;  %v10244_v8 = vpack.c.bf16 %v7103_v11, %v7101_v58  ;;  %v10250_v58 = vpack.c.bf16 %v7112_v38, %v7110_v39  ;;  %v7109_v11 = vld [vmem:[%s18691_s13 + $0x6a0] sm:$0xff]  ;;  %v7115_v39 = vld [vmem:[%s18691_s13 + $0x6d0] sm:$0xff]  ;;  %v7118_v38 = vld [vmem:[%s18691_s13 + $0x6e8] sm:$0xff] }
 0x8da   : > { %7788 = vmatmul.mubr.f32.gmra.mrb[132].mxu0 %v17414_v56 }
 0x8db   : > { %7793 = vmatprep.mubr.f32.mxu0 %v17068_v18  ;;  %10241 = vmatpush1.bf16.msra.mxu0 %v10240_v46  ;;  %v17430_v46 = vld [vmem:[#allocation2 + $0x50] sm:$0xff] }
 0x8dc   : > { %10243 = vmatprep.subr.bf16.mxu0 %v10242_v45  ;;  %v10248_v45 = vpack.c.bf16 %v7107_v23, %v7105_v17  ;;  %v7113_v23 = vld [vmem:[%s18691_s13 + $0x6c0] sm:$0xff] }
 0x8de   : > { %7794 = vmatmul.mubr.f32.gmra.mrb[134].mxu0 %v17430_v46 }
 0x8df   : > { %7799 = vmatprep.mubr.f32.mxu0 %v17087_v37  ;;  %10245 = vmatpush1.bf16.msra.mxu0 %v10244_v8  ;;  %v7116_v37 = vld [vmem:[%s18691_s13 + $0x6d8] sm:$0xff]  ;;  %v17446_v8 = vld [vmem:[#allocation2 + $0x68] sm:$0xff] }
 0x8e0   : > { %10247 = vmatprep.subr.bf16.mxu0 %v10246_v43  ;;  %v10252_v43 = vpack.c.bf16 %v7111_v63, %v7109_v11  ;;  %v10254_v17 = vpack.c.bf16 %v7116_v37, %v7114_v5  ;;  %v10256_v37 = vpack.c.bf16 %v7115_v39, %v7113_v23  ;;  %v7117_v11 = vld [vmem:[%s18691_s13 + $0x6e0] sm:$0xff]  ;;  %v7119_v63 = vld [vmem:[%s18691_s13 + $0x6f0] sm:$0xff]  ;;  %v7122_v5 = vld [vmem:[%s18691_s13 + $0x708] sm:$0xff] }
 0x8e1   : > { %v7121_v23 = vld [vmem:[%s18691_s13 + $0x700] sm:$0xff]  ;;  %v7123_v39 = vld [vmem:[%s18691_s13 + $0x710] sm:$0xff] }
 0x8e2   : > { %7800 = vmatmul.mubr.f32.gmra.mrb[136].mxu0 %v17446_v8 }
 0x8e3   : > { %7805 = vmatprep.mubr.f32.mxu0 %v17105_v40  ;;  %10249 = vmatpush1.bf16.msra.mxu0 %v10248_v45  ;;  %v7120_v40 = vld [vmem:[%s18691_s13 + $0x6f8] sm:$0xff]  ;;  %v17462_v45 = vld [vmem:[#allocation2 + $0x70] sm:$0xff] }
 0x8e4   : > { %10251 = vmatprep.subr.bf16.mxu0 %v10250_v58  ;;  %v10258_v58 = vpack.c.bf16 %v7120_v40, %v7118_v38  ;;  %v10260_v40 = vpack.c.bf16 %v7119_v63, %v7117_v11  ;;  %v7126_v38 = vld [vmem:[%s18691_s13 + $0x728] sm:$0xff]  ;;  %v7125_v11 = vld [vmem:[%s18691_s13 + $0x720] sm:$0xff]  ;;  %v7127_v63 = vld [vmem:[%s18691_s13 + $0x730] sm:$0xff] }
 0x8e6   : > { %7806 = vmatmul.mubr.f32.gmra.mrb[138].mxu0 %v17462_v45 }
 0x8e7   : > { %7811 = vmatprep.mubr.f32.mxu0 %v17124_v44  ;;  %10253 = vmatpush1.bf16.msra.mxu0 %v10252_v43  ;;  %v7124_v44 = vld [vmem:[%s18691_s13 + $0x718] sm:$0xff]  ;;  %v17478_v43 = vld [vmem:[#allocation2 + $0x88] sm:$0xff] }
 0x8e8   : > { %10255 = vmatprep.subr.bf16.mxu0 %v10254_v17  ;;  %v10262_v17 = vpack.c.bf16 %v7124_v44, %v7122_v5  ;;  %v10264_v44 = vpack.c.bf16 %v7123_v39, %v7121_v23  ;;  %v7130_v5 = vld [vmem:[%s18691_s13 + $0x748] sm:$0xff]  ;;  %v7129_v23 = vld [vmem:[%s18691_s13 + $0x740] sm:$0xff]  ;;  %v7131_v39 = vld [vmem:[%s18691_s13 + $0x750] sm:$0xff] }
 0x8ea   : > { %7812 = vmatmul.mubr.f32.gmra.mrb[140].mxu0 %v17478_v43 }
 0x8eb   : > { %7817 = vmatprep.mubr.f32.mxu0 %v17142_v49  ;;  %10257 = vmatpush1.bf16.msra.mxu0 %v10256_v37  ;;  %v7128_v49 = vld [vmem:[%s18691_s13 + $0x738] sm:$0xff]  ;;  %v17494_v37 = vld [vmem:[#allocation2 + $0x90] sm:$0xff] }
 0x8ec   : > { %10259 = vmatprep.subr.bf16.mxu0 %v10258_v58  ;;  %v10266_v58 = vpack.c.bf16 %v7128_v49, %v7126_v38  ;;  %v10268_v49 = vpack.c.bf16 %v7127_v63, %v7125_v11  ;;  %v7134_v38 = vld [vmem:[%s18691_s13 + $0x768] sm:$0xff]  ;;  %v7133_v11 = vld [vmem:[%s18691_s13 + $0x760] sm:$0xff]  ;;  %v7135_v63 = vld [vmem:[%s18691_s13 + $0x770] sm:$0xff] }
 0x8ee   : > { %7818 = vmatmul.mubr.f32.gmra.mrb[142].mxu0 %v17494_v37 }
 0x8ef   : > { %7823 = vmatprep.mubr.f32.mxu0 %v17161_v3  ;;  %10261 = vmatpush1.bf16.msra.mxu0 %v10260_v40  ;;  %v7132_v3 = vld [vmem:[%s18691_s13 + $0x758] sm:$0xff]  ;;  %v17510_v40 = vld [vmem:[#allocation2 + $0xa8] sm:$0xff] }
 0x8f0   : > { %10263 = vmatprep.subr.bf16.mxu0 %v10262_v17  ;;  %v10270_v17 = vpack.c.bf16 %v7132_v3, %v7130_v5  ;;  %v10272_v3 = vpack.c.bf16 %v7131_v39, %v7129_v23  ;;  %v7138_v5 = vld [vmem:[%s18691_s13 + $0x788] sm:$0xff]  ;;  %v7137_v23 = vld [vmem:[%s18691_s13 + $0x780] sm:$0xff]  ;;  %v7139_v39 = vld [vmem:[%s18691_s13 + $0x790] sm:$0xff] }
 0x8f2   : > { %7824 = vmatmul.mubr.f32.gmra.mrb[144].mxu0 %v17510_v40 }
 0x8f3   : > { %7829 = vmatprep.mubr.f32.mxu0 %v17179_v32  ;;  %10265 = vmatpush1.bf16.msra.mxu0 %v10264_v44  ;;  %v7136_v32 = vld [vmem:[%s18691_s13 + $0x778] sm:$0xff]  ;;  %v17526_v44 = vld [vmem:[#allocation2 + $0xb0] sm:$0xff] }
 0x8f4   : > { %10267 = vmatprep.subr.bf16.mxu0 %v10266_v58  ;;  %v10274_v58 = vpack.c.bf16 %v7136_v32, %v7134_v38  ;;  %v10276_v32 = vpack.c.bf16 %v7135_v63, %v7133_v11  ;;  %v7142_v38 = vld [vmem:[%s18691_s13 + $0x7a8] sm:$0xff]  ;;  %v7141_v11 = vld [vmem:[%s18691_s13 + $0x7a0] sm:$0xff]  ;;  %v7143_v63 = vld [vmem:[%s18691_s13 + $0x7b0] sm:$0xff] }
 0x8f6   : > { %7830 = vmatmul.mubr.f32.gmra.mrb[146].mxu0 %v17526_v44 }
 0x8f7   : > { %7835 = vmatprep.mubr.f32.mxu0 %v17198_v9  ;;  %10269 = vmatpush1.bf16.msra.mxu0 %v10268_v49  ;;  %v7140_v9 = vld [vmem:[%s18691_s13 + $0x798] sm:$0xff]  ;;  %v17542_v49 = vld [vmem:[#allocation2 + $0xc8] sm:$0xff] }
 0x8f8   : > { %10271 = vmatprep.subr.bf16.mxu0 %v10270_v17  ;;  %v10278_v17 = vpack.c.bf16 %v7140_v9, %v7138_v5  ;;  %v10280_v9 = vpack.c.bf16 %v7139_v39, %v7137_v23  ;;  %v7146_v5 = vld [vmem:[%s18691_s13 + $0x7c8] sm:$0xff]  ;;  %v7145_v23 = vld [vmem:[%s18691_s13 + $0x7c0] sm:$0xff]  ;;  %v7147_v39 = vld [vmem:[%s18691_s13 + $0x7d0] sm:$0xff] }
 0x8fa   : > { %7836 = vmatmul.mubr.f32.gmra.mrb[148].mxu0 %v17542_v49 }
 0x8fb   : > { %7841 = vmatprep.mubr.f32.mxu0 %v17216_v51  ;;  %10273 = vmatpush1.bf16.msra.mxu0 %v10272_v3  ;;  %v7144_v51 = vld [vmem:[%s18691_s13 + $0x7b8] sm:$0xff]  ;;  %v17558_v3 = vld [vmem:[#allocation2 + $0xd0] sm:$0xff] }
 0x8fc   : > { %10275 = vmatprep.subr.bf16.mxu0 %v10274_v58  ;;  %v10282_v58 = vpack.c.bf16 %v7144_v51, %v7142_v38  ;;  %v10284_v51 = vpack.c.bf16 %v7143_v63, %v7141_v11  ;;  %v7150_v38 = vld [vmem:[%s18691_s13 + $0x7e8] sm:$0xff]  ;;  %v7149_v11 = vld [vmem:[%s18691_s13 + $0x7e0] sm:$0xff]  ;;  %v7151_v63 = vld [vmem:[%s18691_s13 + $0x7f0] sm:$0xff] }
 0x8fe   : > { %7842 = vmatmul.mubr.f32.gmra.mrb[150].mxu0 %v17558_v3 }
 0x8ff   : > { %7847 = vmatprep.mubr.f32.mxu0 %v17235_v34  ;;  %10277 = vmatpush1.bf16.msra.mxu0 %v10276_v32  ;;  %v7148_v34 = vld [vmem:[%s18691_s13 + $0x7d8] sm:$0xff]  ;;  %v17574_v32 = vld [vmem:[#allocation2 + $0xe8] sm:$0xff] }
 0x900   : > { %10279 = vmatprep.subr.bf16.mxu0 %v10278_v17  ;;  %v10286_v17 = vpack.c.bf16 %v7148_v34, %v7146_v5  ;;  %v10288_v34 = vpack.c.bf16 %v7147_v39, %v7145_v23  ;;  %v7154_v5 = vld [vmem:[%s18691_s13 + $0x808] sm:$0xff]  ;;  %v17610_v23 = vld [vmem:[#allocation2 + $0x110] sm:$0xff] }
 0x901   : > { %v17614_v39 = vld [vmem:[#allocation2 + $0x128] sm:$0xff] }
 0x902   : > { %7848 = vmatmul.mubr.f32.gmra.mrb[152].mxu0 %v17574_v32 }
 0x903   : > { %7853 = vmatprep.mubr.f32.mxu0 %v17247_v7  ;;  %10281 = vmatpush1.bf16.msra.mxu0 %v10280_v9  ;;  %v7152_v7 = vld [vmem:[%s18691_s13 + $0x7f8] sm:$0xff]  ;;  %v17590_v9 = vld [vmem:[#allocation2 + $0xf0] sm:$0xff] }
 0x904   : > { %10283 = vmatprep.subr.bf16.mxu0 %v10282_v58  ;;  %v10290_v58 = vpack.c.bf16 %v7152_v7, %v7150_v38  ;;  %v10292_v7 = vpack.c.bf16 %v7151_v63, %v7149_v11  ;;  %v17618_v38 = vld [vmem:[#allocation2 + $0x130] sm:$0xff]  ;;  %v17638_v63 = vld [vmem:[#allocation2 + $0x188] sm:$0xff] }
 0x905   : > { %v17634_v11 = vld [vmem:[#allocation2 + $0x170] sm:$0xff] }
 0x906   : > { %7854 = vmatmul.mubr.f32.gmra.mrb[154].mxu0 %v17590_v9 }
 0x907   : > { %7859 = vmatprep.mubr.f32.mxu0 %v17254_v55  ;;  %10285 = vmatpush1.bf16.msra.mxu0 %v10284_v51  ;;  %v7156_v55 = vld [vmem:[%s18691_s13 + $0x818] sm:$0xff]  ;;  %v17606_v51 = vld [vmem:[#allocation2 + $0x108] sm:$0xff] }
 0x908   : > { %10287 = vmatprep.subr.bf16.mxu0 %v10286_v17  ;;  %v10294_v17 = vpack.c.bf16 %v7156_v55, %v7154_v5  ;;  %v17622_v55 = vld [vmem:[#allocation2 + $0x148] sm:$0xff]  ;;  %v17642_v5 = vld [vmem:[#allocation2 + $0x190] sm:$0xff] }
 0x90a   : > { %7860 = vmatmul.mubr.f32.gmra.mrb[156].mxu0 %v17606_v51 }
 0x90b   : > { %7865 = vmatprep.mubr.f32.mxu0 %v17260_v24  ;;  %10289 = vmatpush1.bf16.msra.mxu0 %v10288_v34  ;;  %v17626_v34 = vld [vmem:[#allocation2 + $0x150] sm:$0xff] }
 0x90c   : > { %10291 = vmatprep.subr.bf16.mxu0 %v10290_v58  ;;  %v17630_v58 = vld [vmem:[#allocation2 + $0x168] sm:$0xff] }
 0x90e   : > { %7866 = vmatmul.mubr.f32.gmra.mrb[158].mxu0 %v17610_v23 }
 0x90f   : > { %7871 = vmatprep.mubr.f32.mxu0 %v17267_v1  ;;  %10293 = vmatpush1.bf16.msra.mxu0 %v10292_v7  ;;  %v17646_v7 = vld [vmem:[#allocation2 + $0x1a8] sm:$0xff] }
 0x910   : > { %10295 = vmatprep.subr.bf16.mxu0 %v10294_v17  ;;  %v6873_v17 = vrot.slane %v16974_v29, 1 }
 0x912   : > { %7872 = vmatmul.mubr.f32.gmra.mrb[160].mxu0 %v17614_v39 }
 0x913   : > { %7877 = vmatprep.mubr.f32.mxu0 %v17273_v2 }
 0x916   : > { %7878 = vmatmul.mubr.f32.gmra.mrb[162].mxu0 %v17618_v38 }
 0x917   : > { %7883 = vmatprep.mubr.f32.mxu0 %v17280_v31 }
 0x91a   : > { %7884 = vmatmul.mubr.f32.gmra.mrb[164].mxu0 %v17622_v55 }
 0x91b   : > { %7889 = vmatprep.mubr.f32.mxu0 %v17286_v35 }
 0x91e   : > { %7890 = vmatmul.mubr.f32.gmra.mrb[166].mxu0 %v17626_v34 }
 0x91f   : > { %7895 = vmatprep.mubr.f32.mxu0 %v17293_v36 }
 0x922   : > { %7896 = vmatmul.mubr.f32.gmra.mrb[168].mxu0 %v17630_v58 }
 0x923   : > { %7901 = vmatprep.mubr.f32.mxu0 %v17299_v33 }
 0x926   : > { %7902 = vmatmul.mubr.f32.gmra.mrb[170].mxu0 %v17634_v11 }
 0x927   : > { %7907 = vmatprep.mubr.f32.mxu0 %v17306_v61 }
 0x92a   : > { %7908 = vmatmul.mubr.f32.gmra.mrb[172].mxu0 %v17638_v63 }
 0x92b   : > { %7913 = vmatprep.mubr.f32.mxu0 %v17312_v28 }
 0x92e   : > { %7914 = vmatmul.mubr.f32.gmra.mrb[174].mxu0 %v17642_v5 }
 0x92f   : > { %7919 = vmatprep.mubr.f32.mxu0 %v17319_v10 }
 0x932   : > { %7920 = vmatmul.mubr.f32.gmra.mrb[176].mxu0 %v17646_v7 }
 0x933   : > { %7925 = vmatprep.mubr.f32.mxu0 %v17325_v16  ;;  %v6872_v16 = vrot.slane %v16952_v15, 1 }
 0x936   : > { %7926 = vmatmul.mubr.f32.gmra.mrb[178].mxu0 %v18764_v6  ;;  %v17662_v6 = vsel %vm1130_vm2, %v6872_v16, %v6873_v17 }
 0x937   : > { %7931 = vmatprep.mubr.f32.mxu0 %v17332_v53  ;;  %18773 = vst [vmem:[#allocation15_spill] sm:$0xff] %v17662_v6 }
 0x93a   : > { %7932 = vmatmul.mubr.f32.gmra.mrb[180].mxu0 %v18768_v22  ;;  %v7158_v22 = vld [vmem:[%s18691_s13 + $0x828] sm:$0xff] }
 0x93b   : > { %7937 = vmatprep.mubr.f32.mxu0 %v17339_v47 }
 0x93e   : > { %7938 = vmatmul.mubr.f32.gmra.mrb[182].mxu0 %v16908_v19  ;;  %v17668_v19 = vsel %vm1130_vm2, %v6873_v17, %v16977_v60  ;;  %v7157_v17 = vld [vmem:[%s18691_s13 + $0x820] sm:$0xff] }
 0x93f   : > { %7943 = vmatprep.mubr.f32.mxu0 %v17351_v52  ;;  %18774 = vst [vmem:[#allocation42_spill] sm:$0xff] %v17668_v19 }
 0x942   : > { %7944 = vmatmul.mubr.f32.gmra.mrb[184].mxu0 %v18771_v4  ;;  %v7153_v4 = vld [vmem:[%s18691_s13 + $0x800] sm:$0xff] }
 0x943   : > { %7949 = vmatprep.mubr.f32.mxu0 %v17366_v13 }
 0x946   : > { %7950 = vmatmul.mubr.f32.gmra.mrb[186].mxu0 %v16933_v0  ;;  %v7155_v0 = vld [vmem:[%s18691_s13 + $0x810] sm:$0xff] }
 0x947   : > { %7955 = vmatprep.mubr.f32.mxu0 %v17662_v6  ;;  %v10296_v60 = vpack.c.bf16 %v7155_v0, %v7153_v4  ;;  %v7162_v6 = vld [vmem:[%s18691_s13 + $0x848] sm:$0xff]  ;;  %v7161_v0 = vld [vmem:[%s18691_s13 + $0x840] sm:$0xff] }
 0x94a   : > { %7956 = vmatmul.mubr.f32.gmra.mrb[188].mxu0 %v16952_v15  ;;  %v7160_v15 = vld [vmem:[%s18691_s13 + $0x838] sm:$0xff] }
 0x94b   : > { %7961 = vmatprep.mubr.f32.mxu0 %v17668_v19  ;;  %v10298_v16 = vpack.c.bf16 %v7160_v15, %v7158_v22  ;;  %v7159_v19 = vld [vmem:[%s18691_s13 + $0x830] sm:$0xff]  ;;  %v7166_v15 = vld [vmem:[%s18691_s13 + $0x868] sm:$0xff] }
 0x94c   : > { %v7163_v22 = vld [vmem:[%s18691_s13 + $0x850] sm:$0xff] }
 0x94e   : > { %7962 = vmatmul.mubr.f32.gmra.mrb[190].mxu0 %v16974_v29  ;;  %v7164_v29 = vld [vmem:[%s18691_s13 + $0x858] sm:$0xff] }
 0x94f   : > { %8032 = vmatprep.mubr.f32.mxu0 %v17414_v56  ;;  %v10300_v56 = vpack.c.bf16 %v7159_v19, %v7157_v17  ;;  %v10302_v4 = vpack.c.bf16 %v7164_v29, %v7162_v6  ;;  %v7165_v19 = vld [vmem:[%s18691_s13 + $0x860] sm:$0xff] }
 0x950   : > { %v7169_v29 = vld [vmem:[%s18691_s13 + $0x880] sm:$0xff] }
 0x952   : > { %8033 = vmatmul.mubr.f32.vlgmr.msra.gmra.mrb[128].mxu0 %v16608_v20  ;;  %v7168_v20 = vld [vmem:[%s18691_s13 + $0x878] sm:$0xff] }
 0x953   : > { %8038 = vmatprep.mubr.f32.mxu0 %v17430_v46  ;;  %10297 = vmatpush1.bf16.msra.mxu0 %v10296_v60  ;;  %v10304_v46 = vpack.c.bf16 %v7163_v22, %v7161_v0  ;;  %v10306_v6 = vpack.c.bf16 %v7168_v20, %v7166_v15  ;;  %v7167_v60 = vld [vmem:[%s18691_s13 + $0x870] sm:$0xff]  ;;  %v7173_v22 = vld [vmem:[%s18691_s13 + $0x8a0] sm:$0xff]  ;;  %v7178_v20 = vld [vmem:[%s18691_s13 + $0x8c8] sm:$0xff] }
 0x954   : > { %10299 = vmatprep.subr.bf16.mxu0 %v10298_v16  ;;  %v7170_v16 = vld [vmem:[%s18691_s13 + $0x888] sm:$0xff]  ;;  %v7175_v15 = vld [vmem:[%s18691_s13 + $0x8b0] sm:$0xff] }
 0x956   : > { %8039 = vmatmul.mubr.f32.gmra.mrb[130].mxu0 %v16620_v50  ;;  %v7172_v50 = vld [vmem:[%s18691_s13 + $0x898] sm:$0xff] }
 0x957   : > { %8044 = vmatprep.mubr.f32.mxu0 %v17446_v8  ;;  %10301 = vmatpush1.bf16.msra.mxu0 %v10300_v56  ;;  %v10308_v8 = vpack.c.bf16 %v7167_v60, %v7165_v19  ;;  %v10310_v17 = vpack.c.bf16 %v7172_v50, %v7170_v16  ;;  %v7171_v56 = vld [vmem:[%s18691_s13 + $0x890] sm:$0xff]  ;;  %v7182_v60 = vld [vmem:[%s18691_s13 + $0x8e8] sm:$0xff]  ;;  %v7181_v50 = vld [vmem:[%s18691_s13 + $0x8e0] sm:$0xff] }
 0x958   : > { %10303 = vmatprep.subr.bf16.mxu0 %v10302_v4  ;;  %v7174_v4 = vld [vmem:[%s18691_s13 + $0x8a8] sm:$0xff]  ;;  %v7179_v19 = vld [vmem:[%s18691_s13 + $0x8d0] sm:$0xff] }
 0x95a   : > { %8045 = vmatmul.mubr.f32.gmra.mrb[132].mxu0 %v16633_v54  ;;  %v7176_v54 = vld [vmem:[%s18691_s13 + $0x8b8] sm:$0xff] }
 0x95b   : > { %8050 = vmatprep.mubr.f32.mxu0 %v17462_v45  ;;  %10305 = vmatpush1.bf16.msra.mxu0 %v10304_v46  ;;  %v10312_v45 = vpack.c.bf16 %v7171_v56, %v7169_v29  ;;  %v10314_v0 = vpack.c.bf16 %v7176_v54, %v7174_v4  ;;  %v18793_v29 = vld [vmem:[#allocation53_spill] sm:$0xff]  ;;  %v18798_v54 = vld [vmem:[#allocation48_spill] sm:$0xff] }
 0x95c   : > { %10307 = vmatprep.subr.bf16.mxu0 %v10306_v6  ;;  %v7177_v6 = vld [vmem:[%s18691_s13 + $0x8c0] sm:$0xff] }
 0x95d   : > { %v18796_v56 = vld [vmem:[#allocation41_spill] sm:$0xff] }
 0x95e   : > { %8051 = vmatmul.mubr.f32.gmra.mrb[134].mxu0 %v16645_v25  ;;  %v7180_v25 = vld [vmem:[%s18691_s13 + $0x8d8] sm:$0xff]  ;;  %v18797_v4 = vld [vmem:[#allocation45_spill] sm:$0xff] }
 0x95f   : > { %8056 = vmatprep.mubr.f32.mxu0 %v17478_v43  ;;  %10309 = vmatpush1.bf16.msra.mxu0 %v10308_v8  ;;  %v10316_v43 = vpack.c.bf16 %v7175_v15, %v7173_v22  ;;  %v10318_v46 = vpack.c.bf16 %v7180_v25, %v7178_v20  ;;  %v7183_v8 = vld [vmem:[%s18691_s13 + $0x8f0] sm:$0xff] }
 0x960   : > { %10311 = vmatprep.subr.bf16.mxu0 %v10310_v17  ;;  %v18792_v17 = vld [vmem:[#allocation52_spill] sm:$0xff] }
 0x962   : > { %8057 = vmatmul.mubr.f32.gmra.mrb[136].mxu0 %v16658_v41  ;;  %v7184_v41 = vld [vmem:[%s18691_s13 + $0x8f8] sm:$0xff] }
 0x963   : > { %8062 = vmatprep.mubr.f32.mxu0 %v17494_v37  ;;  %10313 = vmatpush1.bf16.msra.mxu0 %v10312_v45  ;;  %v10320_v37 = vpack.c.bf16 %v7179_v19, %v7177_v6  ;;  %v10322_v16 = vpack.c.bf16 %v7184_v41, %v7182_v60  ;;  %v18799_v45 = vld [vmem:[#allocation50_spill] sm:$0xff] }
 0x964   : > { %10315 = vmatprep.subr.bf16.mxu0 %v10314_v0  ;;  %v18800_v0 = vld [vmem:[#allocation51_spill] sm:$0xff]  ;;  %v8547_v41 = vld [vmem:[%s17904_s28 + $0x8] sm:$0xff] }
 0x965   : > { %v8548_v19 = vld [vmem:[%s17904_s28 + $0x10] sm:$0xff] }
 0x966   : > { %8063 = vmatmul.mubr.f32.gmra.mrb[138].mxu0 %v16670_v30  ;;  %v10324_v30 = vpack.c.bf16 %v7183_v8, %v7181_v50  ;;  %v17915_v50 = vld [vmem:[%s18806_s22] sm:$0x3] }
 0x967   : > { %8068 = vmatprep.mubr.f32.mxu0 %v17510_v40  ;;  %10317 = vmatpush1.bf16.msra.mxu0 %v10316_v43  ;;  %v18783_v40 = vld [vmem:[#allocation14_spill] sm:$0xff] }
 0x968   : > { %10319 = vmatprep.subr.bf16.mxu0 %v10318_v46  ;;  %v8546_v46 = vld [vmem:[%s17904_s28] sm:$0xff] }
 0x96a   : > { %8069 = vmatmul.mubr.f32.gmra.mrb[140].mxu0 %v16683_v48  ;;  %v18775_v48 = vld [vmem:[#allocation58_spill] sm:$0xff] }
 0x96b   : > { %8074 = vmatprep.mubr.f32.mxu0 %v17526_v44  ;;  %10321 = vmatpush1.bf16.msra.mxu0 %v10320_v37  ;;  %v11518_v44 = vld [vmem:[#allocation2 + $0x1c8] sm:$0xff] }
 0x96c   : > { %10323 = vmatprep.subr.bf16.mxu0 %v10322_v16  ;;  %v8549_v16 = vld [vmem:[%s17904_s28 + $0x18] sm:$0xff] }
 0x96e   : > { %8075 = vmatmul.mubr.f32.gmra.mrb[142].mxu0 %v16695_v27  ;;  %v18776_v27 = vld [vmem:[#allocation57_spill] sm:$0xff] }
 0x96f   : > { %8080 = vmatprep.mubr.f32.mxu0 %v17542_v49  ;;  %10325 = vmatpush1.bf16.msra.mxu0 %v10324_v30  ;;  %v18784_v49 = vld [vmem:[#allocation25_spill] sm:$0xff] }
 0x972   : > { %8081 = vmatmul.mubr.f32.gmra.mrb[144].mxu0 %v16708_v26  ;;  %v18777_v26 = vld [vmem:[#allocation29_spill] sm:$0xff] }
 0x973   : > { %8086 = vmatprep.mubr.f32.mxu0 %v17558_v3  ;;  %v11519_v3 = vld [vmem:[#allocation2 + $0x1d0] sm:$0xff] }
 0x976   : > { %8087 = vmatmul.mubr.f32.gmra.mrb[146].mxu0 %v16720_v57  ;;  %v18778_v57 = vld [vmem:[#allocation26_spill] sm:$0xff] }
 0x977   : > { %8092 = vmatprep.mubr.f32.mxu0 %v17574_v32  ;;  %v18785_v32 = vld [vmem:[#allocation31_spill] sm:$0xff] }
 0x97a   : > { %8093 = vmatmul.mubr.f32.gmra.mrb[148].mxu0 %v16733_v62  ;;  %v18779_v62 = vld [vmem:[#allocation35_spill] sm:$0xff] }
 0x97b   : > { %8098 = vmatprep.mubr.f32.mxu0 %v17590_v9  ;;  %v11520_v9 = vld [vmem:[#allocation2 + $0x1e8] sm:$0xff] }
 0x97e   : > { %8099 = vmatmul.mubr.f32.gmra.mrb[150].mxu0 %v16745_v12  ;;  %v18780_v12 = vld [vmem:[#allocation39_spill] sm:$0xff] }
 0x97f   : > { %8104 = vmatprep.mubr.f32.mxu0 %v17606_v51  ;;  %v18786_v51 = vld [vmem:[#allocation37_spill] sm:$0xff] }
 0x982   : > { %8105 = vmatmul.mubr.f32.gmra.mrb[152].mxu0 %v16758_v14  ;;  %v18781_v14 = vld [vmem:[#allocation55_spill] sm:$0xff] }
 0x983   : > { %8110 = vmatprep.mubr.f32.mxu0 %v17610_v23  ;;  %v11521_v23 = vld [vmem:[#allocation2 + $0x1f0] sm:$0xff] }
 0x986   : > { %8111 = vmatmul.mubr.f32.gmra.mrb[154].mxu0 %v16770_v42  ;;  %v18782_v42 = vld [vmem:[#allocation56_spill] sm:$0xff] }
 0x987   : > { %8116 = vmatprep.mubr.f32.mxu0 %v17614_v39  ;;  %v18787_v39 = vld [vmem:[#allocation43_spill] sm:$0xff] }
 0x98a   : > { %8117 = vmatmul.mubr.f32.gmra.mrb[156].mxu0 %v16783_v59  ;;  %v11517_v59 = vld [vmem:[#allocation2 + $0x1b0] sm:$0xff] }
 0x98b   : > { %8122 = vmatprep.mubr.f32.mxu0 %v17618_v38  ;;  %v11522_v38 = vld [vmem:[#allocation2 + $0x208] sm:$0xff] }
 0x98e   : > { %8123 = vmatmul.mubr.f32.gmra.mrb[158].mxu0 %v18775_v48 }
 0x98f   : > { %8128 = vmatprep.mubr.f32.mxu0 %v17622_v55  ;;  %v18788_v55 = vld [vmem:[#allocation36_spill] sm:$0xff] }
 0x992   : > { %8129 = vmatmul.mubr.f32.gmra.mrb[160].mxu0 %v18776_v27 }
 0x993   : > { %8134 = vmatprep.mubr.f32.mxu0 %v17626_v34  ;;  %v11523_v34 = vld [vmem:[#allocation2 + $0x210] sm:$0xff] }
 0x996   : > { %8135 = vmatmul.mubr.f32.gmra.mrb[162].mxu0 %v18777_v26 }
 0x997   : > { %8140 = vmatprep.mubr.f32.mxu0 %v17630_v58  ;;  %v17814_v58 = vld [vmem:[#allocation2 + $0x8] sm:$0xff] }
 0x99a   : > { %8141 = vmatmul.mubr.f32.gmra.mrb[164].mxu0 %v18778_v57 }
 0x99b   : > { %8146 = vmatprep.mubr.f32.mxu0 %v17634_v11  ;;  %v6883_v11 = vrot.slane %v17814_v58, 7 }
 0x99e   : > { %8147 = vmatmul.mubr.f32.gmra.mrb[166].mxu0 %v18779_v62 }
 0x99f   : > { %8152 = vmatprep.mubr.f32.mxu0 %v17638_v63  ;;  %v18789_v63 = vld [vmem:[#allocation32_spill] sm:$0xff] }
 0x9a2   : > { %8153 = vmatmul.mubr.f32.gmra.mrb[168].mxu0 %v18780_v12 }
 0x9a3   : > { %8158 = vmatprep.mubr.f32.mxu0 %v17642_v5  ;;  %v18790_v5 = vld [vmem:[#allocation44_spill] sm:$0xff] }
 0x9a6   : > { %8159 = vmatmul.mubr.f32.gmra.mrb[170].mxu0 %v18781_v14 }
 0x9a7   : > { %8164 = vmatprep.mubr.f32.mxu0 %v17646_v7  ;;  %v18791_v7 = vld [vmem:[#allocation47_spill] sm:$0xff] }
 0x9aa   : > { %8165 = vmatmul.mubr.f32.gmra.mrb[172].mxu0 %v18782_v42 }
 0x9ab   : > { %8170 = vmatprep.mubr.f32.mxu0 %v11517_v59 }
 0x9ae   : > { %8171 = vmatmul.mubr.f32.gmra.mrb[174].mxu0 %v18783_v40 }
 0x9af   : > { %8176 = vmatprep.mubr.f32.mxu0 %v11518_v44 }
 0x9b2   : > { %8177 = vmatmul.mubr.f32.gmra.mrb[176].mxu0 %v18784_v49 }
 0x9b3   : > { %8182 = vmatprep.mubr.f32.mxu0 %v11519_v3 }
 0x9b6   : > { %8183 = vmatmul.mubr.f32.gmra.mrb[178].mxu0 %v18785_v32 }
 0x9b7   : > { %8188 = vmatprep.mubr.f32.mxu0 %v11520_v9  ;;  %v8550_v9 = vld [vmem:[%s17904_s28 + $0x20] sm:$0xff] }
 0x9ba   : > { %8189 = vmatmul.mubr.f32.gmra.mrb[180].mxu0 %v18786_v51 }
 0x9bb   : > { %8194 = vmatprep.mubr.f32.mxu0 %v11521_v23  ;;  %v8552_v23 = vld [vmem:[%s17904_s28 + $0x30] sm:$0xff] }
 0x9be   : > { %8195 = vmatmul.mubr.f32.gmra.mrb[182].mxu0 %v18787_v39 }
 0x9bf   : > { %8200 = vmatprep.mubr.f32.mxu0 %v11522_v38  ;;  %v8675_v38 = vld [vmem:[#allocation3] sm:$0x1] }
 0x9c2   : > { %8201 = vmatmul.mubr.f32.gmra.mrb[184].mxu0 %v18788_v55  ;;  %v8551_v55 = vld [vmem:[%s17904_s28 + $0x28] sm:$0xff] }
 0x9c3   : > { %8206 = vmatprep.mubr.f32.mxu0 %v11523_v34 }
 0x9c6   : > { %8207 = vmatmul.mubr.f32.gmra.mrb[186].mxu0 %v18789_v63 }
 0x9c7   : > { %8212 = vmatprep.mubr.f32.mxu0 %v17814_v58 }
 0x9ca   : > { %8213 = vmatmul.mubr.f32.gmra.mrb[188].mxu0 %v6883_v11 }
 0x9cb   : > { %8218 = vmatprep.mubr.f32.mxu0 %v17814_v58 }
 0x9ce   : > { %8219 = vmatmul.mubr.f32.gmra.mrb[190].mxu0 %v6883_v11  ;;  %v11662_v11 = vmov 0  }
 0x9cf   : > { %8289 = vmatprep.mubr.f32.mxu0 %v17814_v58  ;;  %11445 = vset.pattern.permute.xlu0 %v11662_v11 }
 0x9d0   : > { %8678 = vperm.xlu0 %11445, %v8675_v38  }
 0x9d2   : > { %8290 = vmatmul.mubr.f32.vlgmr.msra.gmra.mrb[128].mxu0 %v17050_v21  ;;  %v18794_v21 = vld [vmem:[#allocation40_spill] sm:$0xff] }
 0x9d3   : > { %8295 = vmatprep.mubr.f32.mxu0 %v17814_v58 }
 0x9d6   : > { %8296 = vmatmul.mubr.f32.gmra.mrb[130].mxu0 %v17068_v18  ;;  %v18795_v18 = vld [vmem:[#allocation33_spill] sm:$0xff] }
 0x9d7   : > { %8301 = vmatprep.mubr.f32.mxu0 %v17814_v58 }
 0x9da   : > { %8302 = vmatmul.mubr.f32.gmra.mrb[132].mxu0 %v18790_v5 }
 0x9db   : > { %8307 = vmatprep.mubr.f32.mxu0 %v17814_v58 }
 0x9de   : > { %8308 = vmatmul.mubr.f32.gmra.mrb[134].mxu0 %v18791_v7 }
 0x9df   : > { %8313 = vmatprep.mubr.f32.mxu0 %v17814_v58 }
 0x9e2   : > { %8314 = vmatmul.mubr.f32.gmra.mrb[136].mxu0 %v18792_v17 }
 0x9e3   : > { %8319 = vmatprep.mubr.f32.mxu0 %v17814_v58 }
 0x9e6   : > { %8320 = vmatmul.mubr.f32.gmra.mrb[138].mxu0 %v18793_v29 }
 0x9e7   : > { %8325 = vmatprep.mubr.f32.mxu0 %v17814_v58 }
 0x9ea   : > { %8326 = vmatmul.mubr.f32.gmra.mrb[140].mxu0 %v18794_v21 }
 0x9eb   : > { %8331 = vmatprep.mubr.f32.mxu0 %v17814_v58 }
 0x9ee   : > { %8332 = vmatmul.mubr.f32.gmra.mrb[142].mxu0 %v18795_v18 }
 0x9ef   : > { %8337 = vmatprep.mubr.f32.mxu0 %v17814_v58 }
 0x9f2   : > { %8338 = vmatmul.mubr.f32.gmra.mrb[144].mxu0 %v18796_v56 }
 0x9f3   : > { %8343 = vmatprep.mubr.f32.mxu0 %v17814_v58 }
 0x9f6   : > { %8344 = vmatmul.mubr.f32.gmra.mrb[146].mxu0 %v18797_v4 }
 0x9f7   : > { %8349 = vmatprep.mubr.f32.mxu0 %v17814_v58 }
 0x9fa   : > { %8350 = vmatmul.mubr.f32.gmra.mrb[148].mxu0 %v18798_v54 }
 0x9fb   : > { %8355 = vmatprep.mubr.f32.mxu0 %v17814_v58 }
 0x9fe   : > { %8356 = vmatmul.mubr.f32.gmra.mrb[150].mxu0 %v18799_v45 }
 0x9ff   : > { %8361 = vmatprep.mubr.f32.mxu0 %v17814_v58 }
 0xa02   : > { %8362 = vmatmul.mubr.f32.gmra.mrb[152].mxu0 %v18800_v0 }
 0xa03   : > { %8367 = vmatprep.mubr.f32.mxu0 %v17814_v58 }
 0xa06   : > { %8368 = vmatmul.mubr.f32.gmra.mrb[154].mxu0 %v17260_v24  ;;  %v18801_v24 = vld [vmem:[#allocation54_spill] sm:$0xff] }
 0xa07   : > { %8373 = vmatprep.mubr.f32.mxu0 %v17814_v58 }
 0xa0a   : > { %8374 = vmatmul.mubr.f32.gmra.mrb[156].mxu0 %v17267_v1  ;;  %v18802_v1 = vld [vmem:[#allocation15_spill] sm:$0xff] }
 0xa0b   : > { %8379 = vmatprep.mubr.f32.mxu0 %v17814_v58 }
 0xa0e   : > { %8380 = vmatmul.mubr.f32.gmra.mrb[158].mxu0 %v17273_v2  ;;  %v6890_v2 = vrot.slane %v17814_v58, 1 }
 0xa0f   : > { %8385 = vmatprep.mubr.f32.mxu0 %v17814_v58 }
 0xa12   : > { %8386 = vmatmul.mubr.f32.gmra.mrb[160].mxu0 %v17280_v31  ;;  %v18803_v31 = vld [vmem:[#allocation42_spill] sm:$0xff] }
 0xa13   : > { %8391 = vmatprep.mubr.f32.mxu0 %v17814_v58 }
 0xa16   : > { %8392 = vmatmul.mubr.f32.gmra.mrb[162].mxu0 %v17286_v35 }
 0xa17   : > { %8397 = vmatprep.mubr.f32.mxu0 %v17814_v58 }
 0xa1a   : > { %8398 = vmatmul.mubr.f32.gmra.mrb[164].mxu0 %v17293_v36  ;;  %v7185_v36 = vld [vmem:[%s18804_s17] sm:$0x3] }
 0xa1b   : > { %8403 = vmatprep.mubr.f32.mxu0 %v17814_v58 }
 0xa1e   : > { %8404 = vmatmul.mubr.f32.gmra.mrb[166].mxu0 %v17299_v33 }
 0xa1f   : > { %8409 = vmatprep.mubr.f32.mxu0 %v17814_v58 }
 0xa22   : > { %8410 = vmatmul.mubr.f32.gmra.mrb[168].mxu0 %v17306_v61 }
 0xa23   : > { %8415 = vmatprep.mubr.f32.mxu0 %v17814_v58 }
 0xa26   : > { %8416 = vmatmul.mubr.f32.gmra.mrb[170].mxu0 %v17312_v28 }
 0xa27   : > { %8421 = vmatprep.mubr.f32.mxu0 %v17814_v58 }
 0xa2a   : > { %8422 = vmatmul.mubr.f32.gmra.mrb[172].mxu0 %v17319_v10 }
 0xa2b   : > { %8427 = vmatprep.mubr.f32.mxu0 %v17814_v58 }
 0xa2e   : > { %8428 = vmatmul.mubr.f32.gmra.mrb[174].mxu0 %v18801_v24 }
 0xa2f   : > { %8433 = vmatprep.mubr.f32.mxu0 %v17814_v58 }
 0xa32   : > { %8434 = vmatmul.mubr.f32.gmra.mrb[176].mxu0 %v17332_v53 }
 0xa33   : > { %8439 = vmatprep.mubr.f32.mxu0 %v17814_v58 }
 0xa36   : > { %8440 = vmatmul.mubr.f32.gmra.mrb[178].mxu0 %v17339_v47 }
 0xa37   : > { %8445 = vmatprep.mubr.f32.mxu0 %v17814_v58 }
 0xa3a   : > { %8446 = vmatmul.mubr.f32.gmra.mrb[180].mxu0 %v17351_v52  ;;  %v7187_v52 = vlaneseq }
 0xa3b   : > { %8451 = vmatprep.mubr.f32.mxu0 %v17814_v58 }
 0xa3c   : > { %vm8799_vm5 = vcmp.lt.s32.totalorder %v7187_v52, 256 }
 0xa3e   : > { %8452 = vmatmul.mubr.f32.gmra.mrb[182].mxu0 %v17366_v13  ;;  %v17884_v13 = vshrl.u32 %v7187_v52, 7 }
 0xa3f   : > { %8457 = vmatprep.mubr.f32.mxu0 %v17814_v58 }
 0xa40   : > { %v17887_v35 = vsub.s32 0, %v17884_v13  ;;  %v7193_v33 = vsub.s32 1, %v17884_v13 }
 0xa42   : > { %8458 = vmatmul.mubr.f32.gmra.mrb[184].mxu0 %v18802_v1  ;;  %v17894_v61 = vrot.slane %v7185_v36, %v17887_v35  ;;  %v17896_v28 = vrot.slane %v7185_v36, %v7193_v33  ;;  %v8693_v48 = vrot.slane %v17915_v50, %v7193_v33  ;;  %v8556_v33 = vld [vmem:[%s17904_s28 + $0x50] sm:$0xff] }
 0xa43   : > { %8463 = vmatprep.mubr.f32.mxu0 %v17814_v58 }
 0xa44   : > { %8760 = vmatprep.mubr.f32.mxu1 %v8693_v48 }
 0xa46   : > { %8464 = vmatmul.mubr.f32.gmra.mrb[186].mxu0 %v18803_v31  ;;  %v8554_v31 = vld [vmem:[%s17904_s28 + $0x40] sm:$0xff] }
 0xa47   : > { %8469 = vmatprep.mubr.f32.mxu0 %v17814_v58 }
 0xa4a   : > { %8470 = vmatmul.mubr.f32.gmra.mrb[188].mxu0 %v6890_v2 }
 0xa4b   : > { %8475 = vmatprep.mubr.f32.mxu0 %v17814_v58  ;;  %v8553_v58 = vld [vmem:[%s17904_s28 + $0x38] sm:$0xff] }
 0xa4e   : > { %8476 = vmatmul.mubr.f32.gmra.mrb[190].mxu0 %v6890_v2 }
 0xaa5   : > { %v8291_v10 = vpop.f32.mrb[128].mxu0 }
 0xaa6   : > { %v10542_v53 = vadd.f32 %v8291_v10, %v17894_v61  ;;  %v8293_v47 = vpop.f32.mrb[129].mxu0 }
 0xaa7   : > { %v10543_v22 = vadd.f32 %v8293_v47, %v17896_v28 }
 0xaa8   : > { %v8482_v20 = vmax.f32 %v10542_v53, 0.0  ;;  %v8555_v53 = vld [vmem:[%s17904_s28 + $0x48] sm:$0xff] }
 0xaa9   : > { %v8297_v15 = vpop.f32.mrb[130].mxu0  ;;  %v8483_v6 = vmax.f32 %v10543_v22, 0.0  ;;  %v8557_v22 = vld [vmem:[%s17904_s28 + $0x58] sm:$0xff] }
 0xaaa   : > { %v10544_v25 = vadd.f32 %v8297_v15, %v17894_v61  ;;  %v8299_v43 = vpop.f32.mrb[131].mxu0  ;;  %v8610_v27 = vadd.f32 %v8546_v46, %v8482_v20 }
 0xaab   : > { %v10545_v60 = vadd.f32 %v8299_v43, %v17896_v28  ;;  %v8611_v12 = vadd.f32 %v8547_v41, %v8483_v6 }
 0xaac   : > { %v8484_v37 = vmax.f32 %v10544_v25, 0.0 }
 0xaad   : > { %v8485_v8 = vmax.f32 %v10545_v60, 0.0  ;;  %v8303_v30 = vpop.f32.mrb[132].mxu0 }
 0xaae   : > { %v8612_v26 = vadd.f32 %v8548_v19, %v8484_v37  ;;  %v10546_v57 = vadd.f32 %v8303_v30, %v17894_v61  ;;  %v8305_v62 = vpop.f32.mrb[133].mxu0 }
 0xaaf   : > { %v8613_v14 = vadd.f32 %v8549_v16, %v8485_v8  ;;  %v10547_v42 = vadd.f32 %v8305_v62, %v17896_v28  ;;  %v8560_v62 = vld [vmem:[%s17904_s28 + $0x70] sm:$0xff] }
 0xab0   : > { %v10328_v59 = vpack.c.bf16 %v8612_v26, %v8610_v27  ;;  %v8486_v49 = vmax.f32 %v10546_v57, 0.0  ;;  %v8558_v26 = vld [vmem:[%s17904_s28 + $0x60] sm:$0xff] }
 0xab1   : > { %v8309_v40 = vpop.f32.mrb[134].mxu0  ;;  %v10326_v44 = vpack.c.bf16 %v8613_v14, %v8611_v12  ;;  %v8487_v51 = vmax.f32 %v10547_v42, 0.0  ;;  %v8559_v14 = vld [vmem:[%s17904_s28 + $0x68] sm:$0xff] }
 0xab2   : > { %v10548_v3 = vadd.f32 %v8309_v40, %v17894_v61  ;;  %v8311_v32 = vpop.f32.mrb[135].mxu0  ;;  %v8614_v7 = vadd.f32 %v8550_v9, %v8486_v49 }
 0xab3   : > { %v10549_v39 = vadd.f32 %v8311_v32, %v17896_v28  ;;  %10327 = vmatprep.subr.bf16.mxu1 %v10326_v44  ;;  %v8615_v18 = vadd.f32 %v8551_v55, %v8487_v51 }
 0xab4   : > { %v8488_v34 = vmax.f32 %v10548_v3, 0.0  ;;  %10329 = vmatpush1.bf16.xpose.msra.mxu1 %v10328_v59  ;;  %v8561_v59 = vld [vmem:[%s17904_s28 + $0x78] sm:$0xff] }
 0xab5   : > { %v8489_v63 = vmax.f32 %v10549_v39, 0.0  ;;  %v8315_v5 = vpop.f32.mrb[136].mxu0 }
 0xab6   : > { %v8616_v17 = vadd.f32 %v8552_v23, %v8488_v34  ;;  %v10550_v29 = vadd.f32 %v8315_v5, %v17894_v61  ;;  %v8317_v21 = vpop.f32.mrb[137].mxu0  ;;  %v8562_v5 = vld [vmem:[%s17904_s28 + $0x80] sm:$0xff] }
 0xab7   : > { %v8617_v56 = vadd.f32 %v8553_v58, %v8489_v63  ;;  %v10551_v4 = vadd.f32 %v8317_v21, %v17896_v28  ;;  %v8563_v21 = vld [vmem:[%s17904_s28 + $0x88] sm:$0xff] }
 0xab8   : > { %v10332_v54 = vpack.c.bf16 %v8616_v17, %v8614_v7  ;;  %v8490_v24 = vmax.f32 %v10550_v29, 0.0  ;;  %v8564_v17 = vld [vmem:[%s17904_s28 + $0x90] sm:$0xff] }
 0xab9   : > { %v8321_v45 = vpop.f32.mrb[138].mxu0  ;;  %v10330_v0 = vpack.c.bf16 %v8617_v56, %v8615_v18  ;;  %v8491_v36 = vmax.f32 %v10551_v4, 0.0  ;;  %v8565_v56 = vld [vmem:[%s17904_s28 + $0x98] sm:$0xff] }
 0xaba   : > { %v10552_v1 = vadd.f32 %v8321_v45, %v17894_v61  ;;  %v8323_v2 = vpop.f32.mrb[139].mxu0  ;;  %v8618_v25 = vadd.f32 %v8554_v31, %v8490_v24 }
 0xabb   : > { %v10553_v10 = vadd.f32 %v8323_v2, %v17896_v28  ;;  %10331 = vmatprep.subr.bf16.mxu1 %v10330_v0  ;;  %v8619_v19 = vadd.f32 %v8555_v53, %v8491_v36 }
 0xabc   : > { %v8492_v47 = vmax.f32 %v10552_v1, 0.0  ;;  %10333 = vmatpush1.bf16.xpose.msra.mxu1 %v10332_v54 }
 0xabd   : > { %v8493_v15 = vmax.f32 %v10553_v10, 0.0  ;;  %v8327_v20 = vpop.f32.mrb[140].mxu0 }
 0xabe   : > { %v8620_v43 = vadd.f32 %v8556_v33, %v8492_v47  ;;  %v10554_v46 = vadd.f32 %v8327_v20, %v17894_v61  ;;  %v8329_v6 = vpop.f32.mrb[141].mxu0  ;;  %v8566_v20 = vld [vmem:[%s17904_s28 + $0xa0] sm:$0xff] }
 0xabf   : > { %v8621_v60 = vadd.f32 %v8557_v22, %v8493_v15  ;;  %v10555_v41 = vadd.f32 %v8329_v6, %v17896_v28  ;;  %v8567_v6 = vld [vmem:[%s17904_s28 + $0xa8] sm:$0xff] }
 0xac0   : > { %v10336_v37 = vpack.c.bf16 %v8620_v43, %v8618_v25  ;;  %v8494_v30 = vmax.f32 %v10554_v46, 0.0  ;;  %v8568_v43 = vld [vmem:[%s17904_s28 + $0xb0] sm:$0xff] }
 0xac1   : > { %v8333_v16 = vpop.f32.mrb[142].mxu0  ;;  %v10334_v8 = vpack.c.bf16 %v8621_v60, %v8619_v19  ;;  %v8495_v57 = vmax.f32 %v10555_v41, 0.0  ;;  %v8569_v60 = vld [vmem:[%s17904_s28 + $0xb8] sm:$0xff] }
 0xac2   : > { %v10556_v48 = vadd.f32 %v8333_v16, %v17894_v61  ;;  %v8335_v27 = vpop.f32.mrb[143].mxu0  ;;  %v8622_v49 = vadd.f32 %v8558_v26, %v8494_v30 }
 0xac3   : > { %v10557_v12 = vadd.f32 %v8335_v27, %v17896_v28  ;;  %10335 = vmatprep.subr.bf16.mxu1 %v10334_v8  ;;  %v8623_v51 = vadd.f32 %v8559_v14, %v8495_v57 }
 0xac4   : > { %v8496_v42 = vmax.f32 %v10556_v48, 0.0  ;;  %10337 = vmatpush1.bf16.xpose.msra.mxu1 %v10336_v37 }
 0xac5   : > { %v8497_v40 = vmax.f32 %v10557_v12, 0.0  ;;  %v8339_v44 = vpop.f32.mrb[144].mxu0 }
 0xac6   : > { %v8624_v3 = vadd.f32 %v8560_v62, %v8496_v42  ;;  %v10558_v32 = vadd.f32 %v8339_v44, %v17894_v61  ;;  %v8341_v9 = vpop.f32.mrb[145].mxu0  ;;  %v8570_v44 = vld [vmem:[%s17904_s28 + $0xc0] sm:$0xff] }
 0xac7   : > { %v8625_v23 = vadd.f32 %v8561_v59, %v8497_v40  ;;  %v10559_v39 = vadd.f32 %v8341_v9, %v17896_v28  ;;  %v8571_v9 = vld [vmem:[%s17904_s28 + $0xc8] sm:$0xff] }
 0xac8   : > { %v10340_v38 = vpack.c.bf16 %v8624_v3, %v8622_v49  ;;  %v8498_v58 = vmax.f32 %v10558_v32, 0.0  ;;  %v8572_v3 = vld [vmem:[%s17904_s28 + $0xd0] sm:$0xff] }
 0xac9   : > { %v8345_v55 = vpop.f32.mrb[146].mxu0  ;;  %v10338_v34 = vpack.c.bf16 %v8625_v23, %v8623_v51  ;;  %v8499_v7 = vmax.f32 %v10559_v39, 0.0  ;;  %v8573_v23 = vld [vmem:[%s17904_s28 + $0xd8] sm:$0xff] }
 0xaca   : > { %v10560_v11 = vadd.f32 %v8345_v55, %v17894_v61  ;;  %v8347_v63 = vpop.f32.mrb[147].mxu0  ;;  %v8626_v45 = vadd.f32 %v8562_v5, %v8498_v58 }
 0xacb   : > { %v10561_v29 = vadd.f32 %v8347_v63, %v17896_v28  ;;  %10339 = vmatprep.subr.bf16.mxu1 %v10338_v34  ;;  %v8627_v2 = vadd.f32 %v8563_v21, %v8499_v7 }
 0xacc   : > { %v8500_v18 = vmax.f32 %v10560_v11, 0.0  ;;  %10341 = vmatpush1.bf16.xpose.msra.mxu1 %v10340_v38 }
 0xacd   : > { %v8501_v4 = vmax.f32 %v10561_v29, 0.0  ;;  %v8351_v54 = vpop.f32.mrb[148].mxu0 }
 0xace   : > { %v8628_v0 = vadd.f32 %v8564_v17, %v8500_v18  ;;  %v10562_v24 = vadd.f32 %v8351_v54, %v17894_v61  ;;  %v8353_v1 = vpop.f32.mrb[149].mxu0  ;;  %v8574_v54 = vld [vmem:[%s17904_s28 + $0xe0] sm:$0xff] }
 0xacf   : > { %v8629_v31 = vadd.f32 %v8565_v56, %v8501_v4  ;;  %v10563_v36 = vadd.f32 %v8353_v1, %v17896_v28  ;;  %v8575_v1 = vld [vmem:[%s17904_s28 + $0xe8] sm:$0xff] }
 0xad0   : > { %v10344_v33 = vpack.c.bf16 %v8628_v0, %v8626_v45  ;;  %v8502_v47 = vmax.f32 %v10562_v24, 0.0  ;;  %v8576_v0 = vld [vmem:[%s17904_s28 + $0xf0] sm:$0xff] }
 0xad1   : > { %v8357_v10 = vpop.f32.mrb[150].mxu0  ;;  %v10342_v53 = vpack.c.bf16 %v8629_v31, %v8627_v2  ;;  %v8503_v25 = vmax.f32 %v10563_v36, 0.0  ;;  %v8577_v31 = vld [vmem:[%s17904_s28 + $0xf8] sm:$0xff] }
 0xad2   : > { %v10564_v22 = vadd.f32 %v8357_v10, %v17894_v61  ;;  %v8359_v15 = vpop.f32.mrb[151].mxu0  ;;  %v8630_v16 = vadd.f32 %v8566_v20, %v8502_v47 }
 0xad3   : > { %v10565_v46 = vadd.f32 %v8359_v15, %v17896_v28  ;;  %10343 = vmatprep.subr.bf16.mxu1 %v10342_v53  ;;  %v8631_v27 = vadd.f32 %v8567_v6, %v8503_v25 }
 0xad4   : > { %v8504_v19 = vmax.f32 %v10564_v22, 0.0  ;;  %10345 = vmatpush1.bf16.xpose.msra.mxu1 %v10344_v33 }
 0xad5   : > { %v8505_v41 = vmax.f32 %v10565_v46, 0.0  ;;  %v8363_v37 = vpop.f32.mrb[152].mxu0 }
 0xad6   : > { %v8632_v8 = vadd.f32 %v8568_v43, %v8504_v19  ;;  %v10566_v30 = vadd.f32 %v8363_v37, %v17894_v61  ;;  %v8365_v48 = vpop.f32.mrb[153].mxu0  ;;  %v8578_v37 = vld [vmem:[%s17904_s28 + $0x100] sm:$0xff] }
 0xad7   : > { %v8633_v26 = vadd.f32 %v8569_v60, %v8505_v41  ;;  %v10567_v57 = vadd.f32 %v8365_v48, %v17896_v28  ;;  %v8579_v48 = vld [vmem:[%s17904_s28 + $0x108] sm:$0xff] }
 0xad8   : > { %v10348_v62 = vpack.c.bf16 %v8632_v8, %v8630_v16  ;;  %v8506_v42 = vmax.f32 %v10566_v30, 0.0  ;;  %v8580_v8 = vld [vmem:[%s17904_s28 + $0x110] sm:$0xff] }
 0xad9   : > { %v8369_v12 = vpop.f32.mrb[154].mxu0  ;;  %v10346_v14 = vpack.c.bf16 %v8633_v26, %v8631_v27  ;;  %v8507_v49 = vmax.f32 %v10567_v57, 0.0  ;;  %v8581_v26 = vld [vmem:[%s17904_s28 + $0x118] sm:$0xff] }
 0xada   : > { %v10568_v59 = vadd.f32 %v8369_v12, %v17894_v61  ;;  %v8371_v40 = vpop.f32.mrb[155].mxu0  ;;  %v8634_v55 = vadd.f32 %v8570_v44, %v8506_v42 }
 0xadb   : > { %v10569_v32 = vadd.f32 %v8371_v40, %v17896_v28  ;;  %10347 = vmatprep.subr.bf16.mxu1 %v10346_v14  ;;  %v8635_v63 = vadd.f32 %v8571_v9, %v8507_v49 }
 0xadc   : > { %v8508_v51 = vmax.f32 %v10568_v59, 0.0  ;;  %10349 = vmatpush1.bf16.xpose.msra.mxu1 %v10348_v62 }
 0xadd   : > { %v8509_v39 = vmax.f32 %v10569_v32, 0.0  ;;  %v8375_v38 = vpop.f32.mrb[156].mxu0 }
 0xade   : > { %v8636_v34 = vadd.f32 %v8572_v3, %v8508_v51  ;;  %v10570_v58 = vadd.f32 %v8375_v38, %v17894_v61  ;;  %v8377_v11 = vpop.f32.mrb[157].mxu0  ;;  %v8582_v38 = vld [vmem:[%s17904_s28 + $0x120] sm:$0xff] }
 0xadf   : > { %v8637_v5 = vadd.f32 %v8573_v23, %v8509_v39  ;;  %v10571_v7 = vadd.f32 %v8377_v11, %v17896_v28  ;;  %v8583_v11 = vld [vmem:[%s17904_s28 + $0x128] sm:$0xff] }
 0xae0   : > { %v10352_v17 = vpack.c.bf16 %v8636_v34, %v8634_v55  ;;  %v8510_v18 = vmax.f32 %v10570_v58, 0.0  ;;  %v8584_v34 = vld [vmem:[%s17904_s28 + $0x130] sm:$0xff] }
 0xae1   : > { %v8381_v29 = vpop.f32.mrb[158].mxu0  ;;  %v10350_v21 = vpack.c.bf16 %v8637_v5, %v8635_v63  ;;  %v8511_v45 = vmax.f32 %v10571_v7, 0.0  ;;  %v8585_v5 = vld [vmem:[%s17904_s28 + $0x138] sm:$0xff] }
 0xae2   : > { %v10572_v56 = vadd.f32 %v8381_v29, %v17894_v61  ;;  %v8383_v4 = vpop.f32.mrb[159].mxu0  ;;  %v8638_v10 = vadd.f32 %v8574_v54, %v8510_v18 }
 0xae3   : > { %v10573_v24 = vadd.f32 %v8383_v4, %v17896_v28  ;;  %10351 = vmatprep.subr.bf16.mxu1 %v10350_v21  ;;  %v8639_v15 = vadd.f32 %v8575_v1, %v8511_v45 }
 0xae4   : > { %v8512_v2 = vmax.f32 %v10572_v56, 0.0  ;;  %10353 = vmatpush1.bf16.xpose.msra.mxu1 %v10352_v17 }
 0xae5   : > { %v8513_v36 = vmax.f32 %v10573_v24, 0.0  ;;  %v8387_v33 = vpop.f32.mrb[160].mxu0 }
 0xae6   : > { %v8640_v53 = vadd.f32 %v8576_v0, %v8512_v2  ;;  %v10574_v47 = vadd.f32 %v8387_v33, %v17894_v61  ;;  %v8389_v22 = vpop.f32.mrb[161].mxu0  ;;  %v8586_v33 = vld [vmem:[%s17904_s28 + $0x140] sm:$0xff] }
 0xae7   : > { %v8641_v20 = vadd.f32 %v8577_v31, %v8513_v36  ;;  %v10575_v25 = vadd.f32 %v8389_v22, %v17896_v28  ;;  %v8587_v22 = vld [vmem:[%s17904_s28 + $0x148] sm:$0xff] }
 0xae8   : > { %v10356_v43 = vpack.c.bf16 %v8640_v53, %v8638_v10  ;;  %v8514_v19 = vmax.f32 %v10574_v47, 0.0  ;;  %v8588_v53 = vld [vmem:[%s17904_s28 + $0x150] sm:$0xff] }
 0xae9   : > { %v8393_v46 = vpop.f32.mrb[162].mxu0  ;;  %v10354_v6 = vpack.c.bf16 %v8641_v20, %v8639_v15  ;;  %v8515_v16 = vmax.f32 %v10575_v25, 0.0  ;;  %v8589_v20 = vld [vmem:[%s17904_s28 + $0x158] sm:$0xff] }
 0xaea   : > { %v10576_v60 = vadd.f32 %v8393_v46, %v17894_v61  ;;  %v8395_v41 = vpop.f32.mrb[163].mxu0  ;;  %v8642_v12 = vadd.f32 %v8578_v37, %v8514_v19 }
 0xaeb   : > { %v10577_v30 = vadd.f32 %v8395_v41, %v17896_v28  ;;  %10355 = vmatprep.subr.bf16.mxu1 %v10354_v6  ;;  %v8643_v40 = vadd.f32 %v8579_v48, %v8515_v16 }
 0xaec   : > { %v8516_v27 = vmax.f32 %v10576_v60, 0.0  ;;  %10357 = vmatpush1.bf16.xpose.msra.mxu1 %v10356_v43 }
 0xaed   : > { %v8517_v57 = vmax.f32 %v10577_v30, 0.0  ;;  %v8399_v62 = vpop.f32.mrb[164].mxu0 }
 0xaee   : > { %v8644_v14 = vadd.f32 %v8580_v8, %v8516_v27  ;;  %v10578_v42 = vadd.f32 %v8399_v62, %v17894_v61  ;;  %v8401_v59 = vpop.f32.mrb[165].mxu0  ;;  %v8590_v62 = vld [vmem:[%s17904_s28 + $0x160] sm:$0xff] }
 0xaef   : > { %v8645_v44 = vadd.f32 %v8581_v26, %v8517_v57  ;;  %v10579_v49 = vadd.f32 %v8401_v59, %v17896_v28  ;;  %v8591_v59 = vld [vmem:[%s17904_s28 + $0x168] sm:$0xff] }
 0xaf0   : > { %v10360_v3 = vpack.c.bf16 %v8644_v14, %v8642_v12  ;;  %v8518_v51 = vmax.f32 %v10578_v42, 0.0  ;;  %v8592_v14 = vld [vmem:[%s17904_s28 + $0x170] sm:$0xff] }
 0xaf1   : > { %v8405_v32 = vpop.f32.mrb[166].mxu0  ;;  %v10358_v9 = vpack.c.bf16 %v8645_v44, %v8643_v40  ;;  %v8519_v55 = vmax.f32 %v10579_v49, 0.0  ;;  %v8593_v44 = vld [vmem:[%s17904_s28 + $0x178] sm:$0xff] }
 0xaf2   : > { %v10580_v23 = vadd.f32 %v8405_v32, %v17894_v61  ;;  %v8407_v39 = vpop.f32.mrb[167].mxu0  ;;  %v8646_v29 = vadd.f32 %v8582_v38, %v8518_v51 }
 0xaf3   : > { %v10581_v58 = vadd.f32 %v8407_v39, %v17896_v28  ;;  %10359 = vmatprep.subr.bf16.mxu1 %v10358_v9  ;;  %v8647_v4 = vadd.f32 %v8583_v11, %v8519_v55 }
 0xaf4   : > { %v8520_v63 = vmax.f32 %v10580_v23, 0.0  ;;  %10361 = vmatpush1.bf16.xpose.msra.mxu1 %v10360_v3 }
 0xaf5   : > { %v8521_v7 = vmax.f32 %v10581_v58, 0.0  ;;  %v8411_v17 = vpop.f32.mrb[168].mxu0 }
 0xaf6   : > { %v8648_v21 = vadd.f32 %v8584_v34, %v8520_v63  ;;  %v10582_v18 = vadd.f32 %v8411_v17, %v17894_v61  ;;  %v8413_v56 = vpop.f32.mrb[169].mxu0  ;;  %v8594_v17 = vld [vmem:[%s17904_s28 + $0x180] sm:$0xff] }
 0xaf7   : > { %v8649_v54 = vadd.f32 %v8585_v5, %v8521_v7  ;;  %v10583_v45 = vadd.f32 %v8413_v56, %v17896_v28  ;;  %v8595_v56 = vld [vmem:[%s17904_s28 + $0x188] sm:$0xff] }
 0xaf8   : > { %v10364_v0 = vpack.c.bf16 %v8648_v21, %v8646_v29  ;;  %v8522_v2 = vmax.f32 %v10582_v18, 0.0  ;;  %v8596_v21 = vld [vmem:[%s17904_s28 + $0x190] sm:$0xff] }
 0xaf9   : > { %v8417_v24 = vpop.f32.mrb[170].mxu0  ;;  %v10362_v1 = vpack.c.bf16 %v8649_v54, %v8647_v4  ;;  %v8523_v10 = vmax.f32 %v10583_v45, 0.0  ;;  %v8597_v54 = vld [vmem:[%s17904_s28 + $0x198] sm:$0xff] }
 0xafa   : > { %v10584_v31 = vadd.f32 %v8417_v24, %v17894_v61  ;;  %v8419_v36 = vpop.f32.mrb[171].mxu0  ;;  %v8650_v46 = vadd.f32 %v8586_v33, %v8522_v2 }
 0xafb   : > { %v10585_v47 = vadd.f32 %v8419_v36, %v17896_v28  ;;  %10363 = vmatprep.subr.bf16.mxu1 %v10362_v1  ;;  %v8651_v41 = vadd.f32 %v8587_v22, %v8523_v10 }
 0xafc   : > { %v8524_v15 = vmax.f32 %v10584_v31, 0.0  ;;  %10365 = vmatpush1.bf16.xpose.msra.mxu1 %v10364_v0 }
 0xafd   : > { %v8525_v25 = vmax.f32 %v10585_v47, 0.0  ;;  %v8423_v43 = vpop.f32.mrb[172].mxu0 }
 0xafe   : > { %v8652_v6 = vadd.f32 %v8588_v53, %v8524_v15  ;;  %v10586_v19 = vadd.f32 %v8423_v43, %v17894_v61  ;;  %v8425_v60 = vpop.f32.mrb[173].mxu0  ;;  %v8598_v43 = vld [vmem:[%s17904_s28 + $0x1a0] sm:$0xff] }
 0xaff   : > { %v8653_v37 = vadd.f32 %v8589_v20, %v8525_v25  ;;  %v10587_v16 = vadd.f32 %v8425_v60, %v17896_v28  ;;  %v8599_v60 = vld [vmem:[%s17904_s28 + $0x1a8] sm:$0xff] }
 0xb00   : > { %v10368_v8 = vpack.c.bf16 %v8652_v6, %v8650_v46  ;;  %v8526_v27 = vmax.f32 %v10586_v19, 0.0  ;;  %v8600_v6 = vld [vmem:[%s17904_s28 + $0x1b0] sm:$0xff] }
 0xb01   : > { %v8429_v30 = vpop.f32.mrb[174].mxu0  ;;  %v10366_v48 = vpack.c.bf16 %v8653_v37, %v8651_v41  ;;  %v8527_v12 = vmax.f32 %v10587_v16, 0.0  ;;  %v8601_v37 = vld [vmem:[%s17904_s28 + $0x1b8] sm:$0xff] }
 0xb02   : > { %v10588_v26 = vadd.f32 %v8429_v30, %v17894_v61  ;;  %v8431_v57 = vpop.f32.mrb[175].mxu0  ;;  %v8654_v32 = vadd.f32 %v8590_v62, %v8526_v27 }
 0xb03   : > { %v10589_v42 = vadd.f32 %v8431_v57, %v17896_v28  ;;  %10367 = vmatprep.subr.bf16.mxu1 %v10366_v48  ;;  %v8655_v39 = vadd.f32 %v8591_v59, %v8527_v12 }
 0xb04   : > { %v8528_v40 = vmax.f32 %v10588_v26, 0.0  ;;  %10369 = vmatpush1.bf16.xpose.msra.mxu1 %v10368_v8 }
 0xb05   : > { %v8529_v49 = vmax.f32 %v10589_v42, 0.0  ;;  %v8435_v3 = vpop.f32.mrb[176].mxu0 }
 0xb06   : > { %v8656_v9 = vadd.f32 %v8592_v14, %v8528_v40  ;;  %v10590_v51 = vadd.f32 %v8435_v3, %v17894_v61  ;;  %v8437_v23 = vpop.f32.mrb[177].mxu0  ;;  %v8602_v3 = vld [vmem:[%s17904_s28 + $0x1c0] sm:$0xff] }
 0xb07   : > { %v8657_v38 = vadd.f32 %v8593_v44, %v8529_v49  ;;  %v10591_v55 = vadd.f32 %v8437_v23, %v17896_v28  ;;  %v8603_v23 = vld [vmem:[%s17904_s28 + $0x1c8] sm:$0xff] }
 0xb08   : > { %v10372_v34 = vpack.c.bf16 %v8656_v9, %v8654_v32  ;;  %v8530_v63 = vmax.f32 %v10590_v51, 0.0  ;;  %v8604_v9 = vld [vmem:[%s17904_s28 + $0x1d0] sm:$0xff] }
 0xb09   : > { %v8441_v58 = vpop.f32.mrb[178].mxu0  ;;  %v10370_v11 = vpack.c.bf16 %v8657_v38, %v8655_v39  ;;  %v8531_v29 = vmax.f32 %v10591_v55, 0.0  ;;  %v8605_v38 = vld [vmem:[%s17904_s28 + $0x1d8] sm:$0xff] }
 0xb0a   : > { %v10592_v5 = vadd.f32 %v8441_v58, %v17894_v61  ;;  %v8443_v7 = vpop.f32.mrb[179].mxu0  ;;  %v8658_v24 = vadd.f32 %v8594_v17, %v8530_v63 }
 0xb0b   : > { %v10593_v18 = vadd.f32 %v8443_v7, %v17896_v28  ;;  %10371 = vmatprep.subr.bf16.mxu1 %v10370_v11  ;;  %v8659_v36 = vadd.f32 %v8595_v56, %v8531_v29 }
 0xb0c   : > { %v8532_v4 = vmax.f32 %v10592_v5, 0.0  ;;  %10373 = vmatpush1.bf16.xpose.msra.mxu1 %v10372_v34 }
 0xb0d   : > { %v8533_v45 = vmax.f32 %v10593_v18, 0.0  ;;  %v8447_v0 = vpop.f32.mrb[180].mxu0 }
 0xb0e   : > { %v8660_v1 = vadd.f32 %v8596_v21, %v8532_v4  ;;  %v10594_v2 = vadd.f32 %v8447_v0, %v17894_v61  ;;  %v8449_v31 = vpop.f32.mrb[181].mxu0  ;;  %v8606_v0 = vld [vmem:[%s17904_s28 + $0x1e0] sm:$0xff] }
 0xb0f   : > { %v8661_v33 = vadd.f32 %v8597_v54, %v8533_v45  ;;  %v10595_v10 = vadd.f32 %v8449_v31, %v17896_v28  ;;  %v8607_v31 = vld [vmem:[%s17904_s28 + $0x1e8] sm:$0xff] }
 0xb10   : > { %v10376_v53 = vpack.c.bf16 %v8660_v1, %v8658_v24  ;;  %v8534_v15 = vmax.f32 %v10594_v2, 0.0  ;;  %v8608_v1 = vld [vmem:[%s17904_s28 + $0x1f0] sm:$0xff] }
 0xb11   : > { %v8453_v47 = vpop.f32.mrb[182].mxu0  ;;  %v10374_v22 = vpack.c.bf16 %v8661_v33, %v8659_v36  ;;  %v8535_v46 = vmax.f32 %v10595_v10, 0.0  ;;  %v8609_v33 = vld [vmem:[%s17904_s28 + $0x1f8] sm:$0xff] }
 0xb12   : > { %v10596_v20 = vadd.f32 %v8453_v47, %v17894_v61  ;;  %v8455_v25 = vpop.f32.mrb[183].mxu0  ;;  %v8662_v30 = vadd.f32 %v8598_v43, %v8534_v15  ;;  %v8679_v43 = vpop.permute.xlu0 %8678 }
 0xb13   : > { %v10597_v19 = vadd.f32 %v8455_v25, %v17896_v28  ;;  %10375 = vmatprep.subr.bf16.mxu1 %v10374_v22  ;;  %v8663_v57 = vadd.f32 %v8599_v60, %v8535_v46 }
 0xb14   : > { %v8536_v41 = vmax.f32 %v10596_v20, 0.0  ;;  %10377 = vmatpush1.bf16.xpose.msra.mxu1 %v10376_v53 }
 0xb15   : > { %v8537_v16 = vmax.f32 %v10597_v19, 0.0  ;;  %v8459_v8 = vpop.f32.mrb[184].mxu0 }
 0xb16   : > { %v8664_v48 = vadd.f32 %v8600_v6, %v8536_v41  ;;  %v10598_v27 = vadd.f32 %v8459_v8, %v17894_v61  ;;  %v8461_v26 = vpop.f32.mrb[185].mxu0 }
 0xb17   : > { %v8665_v62 = vadd.f32 %v8601_v37, %v8537_v16  ;;  %v10599_v12 = vadd.f32 %v8461_v26, %v17896_v28 }
 0xb18   : > { %v10380_v14 = vpack.c.bf16 %v8664_v48, %v8662_v30  ;;  %v8538_v40 = vmax.f32 %v10598_v27, 0.0 }
 0xb19   : > { %v8465_v42 = vpop.f32.mrb[186].mxu0  ;;  %v10378_v59 = vpack.c.bf16 %v8665_v62, %v8663_v57  ;;  %v8539_v32 = vmax.f32 %v10599_v12, 0.0 }
 0xb1a   : > { %v10600_v44 = vadd.f32 %v8465_v42, %v17894_v61  ;;  %v8467_v49 = vpop.f32.mrb[187].mxu0  ;;  %v8666_v58 = vadd.f32 %v8602_v3, %v8538_v40 }
 0xb1b   : > { %v10601_v51 = vadd.f32 %v8467_v49, %v17896_v28  ;;  %10379 = vmatprep.subr.bf16.mxu1 %v10378_v59  ;;  %v8667_v7 = vadd.f32 %v8603_v23, %v8539_v32 }
 0xb1c   : > { %v8540_v39 = vmax.f32 %v10600_v44, 0.0  ;;  %10381 = vmatpush1.bf16.xpose.msra.mxu1 %v10380_v14 }
 0xb1d   : > { %v8541_v55 = vmax.f32 %v10601_v51, 0.0  ;;  %v8471_v34 = vpop.f32.mrb[188].mxu0 }
 0xb1e   : > { %v8668_v11 = vadd.f32 %v8604_v9, %v8540_v39  ;;  %v10602_v63 = vadd.f32 %v8471_v34, %v17894_v61  ;;  %v8473_v5 = vpop.f32.mrb[189].mxu0 }
 0xb1f   : > { %v8669_v17 = vadd.f32 %v8605_v38, %v8541_v55  ;;  %v10603_v29 = vadd.f32 %v8473_v5, %v17896_v28 }
 0xb20   : > { %v10384_v21 = vpack.c.bf16 %v8668_v11, %v8666_v58  ;;  %v8542_v4 = vmax.f32 %v10602_v63, 0.0 }
 0xb21   : > { %v8477_v18 = vpop.f32.mrb[190].mxu0  ;;  %v10382_v56 = vpack.c.bf16 %v8669_v17, %v8667_v7  ;;  %v8543_v24 = vmax.f32 %v10603_v29, 0.0 }
 0xb22   : > { %v10604_v54 = vadd.f32 %v8477_v18, %v17894_v61  ;;  %v8479_v45 = vpop.f32.mrb[191].mxu0  ;;  %v8670_v53 = vadd.f32 %v8606_v0, %v8542_v4  ;;  %v8689_v61 = vrot.slane %v17915_v50, %v17887_v35  ;;  %v11663_v50 = vmov 1966171168  }
 0xb23   : > { %v10605_v2 = vadd.f32 %v8479_v45, %v17896_v28  ;;  %10383 = vmatprep.subr.bf16.mxu1 %v10382_v56  ;;  %v8671_v22 = vadd.f32 %v8607_v31, %v8543_v24  ;;  %v8684_v28 = vrot.slane %v8679_v43, %v17887_v35  ;;  %v8783_v27 = vunpack.c.l.s4 %v11663_v50 }
 0xb24   : > { %v8544_v36 = vmax.f32 %v10604_v54, 0.0  ;;  %10385 = vmatpush1.bf16.xpose.msra.mxu1 %v10384_v21 }
 0xb25   : > { %v8545_v10 = vmax.f32 %v10605_v2, 0.0  ;;  %v8784_v26 = vunpack.c.0.s8 %v8783_v27 }
 0xb26   : > { %v8672_v47 = vadd.f32 %v8608_v1, %v8544_v36 }
 0xb27   : > { %v8673_v15 = vadd.f32 %v8609_v33, %v8545_v10  ;;  %v8787_v35 = vsub.s32 %v8784_v26, %v17884_v13 }
 0xb28   : > { %v10388_v20 = vpack.c.bf16 %v8672_v47, %v8670_v53 }
 0xb29   : > { %v10386_v25 = vpack.c.bf16 %v8673_v15, %v8671_v22 }
 0xb2b   : > { %10387 = vmatprep.subr.bf16.mxu1 %v10386_v25 }
 0xb2c   : > { %10389 = vmatpush1.bf16.xpose.msra.mxu1 %v10388_v20 }
 0xb33   : > { %8761 = vmatmul.mubr.f32.vlgmr.msra.gmra.mrb[208].mxu1 %v8689_v61 }
 0xc06   : > { %v8762_v46 = vpop.f32.mrb[208].mxu1 }
 0xc07   : > { %v8763_v6 = vadd.f32 %v8762_v46, %v8684_v28  ;;  %v8764_v19 = vpop.f32.mrb[209].mxu1 }
 0xc08   : > { %v8765_v60 = vadd.f32 %v8764_v19, %v8684_v28 }
 0xc09   : > { %v8972_v41 = vmul.f32 -1.442695, %v8763_v6 }
 0xc0a   : > { %v8973_v37 = vmul.f32 -1.442695, %v8765_v60 }
 0xc0b   : > { %11446 = vpow2.f32 %v8972_v41 }
 0xc0c   : > { %11448 = vpow2.f32 %v8973_v37 }
 0xc15   : > { %v11447_v16 = vpop.eup %11446 }
 0xc16   : > { %v11449_v8 = vpop.eup %11448  ;;  %v8773_v30 = vadd.f32 1.0, %v11447_v16 }
 0xc17   : > { %v8774_v48 = vadd.f32 1.0, %v11449_v8 }
 0xc18   : > { %11450 = vrcp.f32 %v8773_v30 }
 0xc19   : > { %11452 = vrcp.f32 %v8774_v48 }
 0xc22   : > { %v11451_v57 = vpop.eup %11450 }
 0xc23   : > { %v11453_v62 = vpop.eup %11452 }
 0xc24   : > { %v8781_v12 = vcombine.low %v11451_v57, %v11453_v62 }
 0xc26   : > { %v8788_v14 = vrot.slane %v8781_v12, %v8787_v35 }
 0xc28   : > { %v8795_v42 = vrot.slane %v8788_v14, %v8787_v35 }
 0xc2a   : > { %8801 = vst.msk [vmem:[%s678_s11] sm:$0x3] %vm8799_vm5, %v8795_v42 }
 0xc2b PF: > { %s18808_s26 = sld [smem:[#allocation11_spill]]  ;;  %s18809_s5 = sld [smem:[#allocation12_spill]] }
 0xc2c   : > { %s18810_s23 = smov %s11645_s24  ;;  %s18811_s24 = smov %s11649_s25 }
 0xc31   : > { %p31_p2 = scmp.ge.s32.totalorder %s18808_s26, 4   ;;  %s18812_s25 = smov %s18809_s5 }
 0xc33   :  { %33 = sbr.rel (!%p31_p2) target bundleno = 14 (0xe), region = 158 }
 0xc3a   :  { %8821 = vsyncpa [#allocation5], 1 }
 0xc3b   :  { %8823 = vsyncpa [#allocation5 + $0x1], 1 }
 0xc3c   :  { %8824 = vsyncpa [#allocation7], 1 }
 0xc3d   :  { %8826 = vsyncpa [#allocation7 + $0x1], 1 }

</bundles_post_ra>
